<compile_context>
chip_gen: v5e
topology: v5e:2x2
jax: 0.10.0
libtpu: 0.0.40
codegen_flags: <defaults>
</compile_context>

<pallas_src>
import math

import jax
import jax.numpy as jnp
from jax import lax
from jax.experimental import pallas as pl
from jax.experimental.pallas import tpu as pltpu

_IO = 8  # sublane-aligned column offset of the activation interior in xpad


# ----------------------------------------------------------------------------
# Fused kernel builder: 3x ResConv + 1x1-conv attention gate, one image / step
# ----------------------------------------------------------------------------
def _make_latent_kernel(H, W, C, Wp, fat_k):
    """fat_k=True  -> K=3C conv formulation (v5-class, slow MXU).
       fat_k=False -> 9 K=C dots, no lane-dim concat (v6e/v7x, fast MXU)."""
    HW = H * W
    IO = _IO

    def kernel(x_ref, w1_ref, b1_ref, w2_ref, b2_ref, w3_ref, b3_ref,
               wa_ref, ba_ref, out_ref, att_ref, xpad_ref, acc_ref):
        # ---- halo-only zeroing (interior is overwritten right below) -------
        zrow = jnp.zeros((1, Wp, C), xpad_ref.dtype)
        xpad_ref[0:1, :, :] = zrow                     # top halo row
        xpad_ref[H + 1:H + 2, :, :] = zrow             # bottom halo row
        zcol = jnp.zeros((H, 1, C), xpad_ref.dtype)
        xpad_ref[1:H + 1, IO - 1:IO, :] = zcol         # left halo column
        xpad_ref[1:H + 1, IO + W:IO + W + 1, :] = zcol  # right halo column

        x0 = x_ref[...]                                # (H, W, C) bf16
        xpad_ref[1:H + 1, IO:IO + W, :] = x0           # aligned interior store

        def conv3x3(w_ref):
            """3x3 'same' conv of the xpad interior -> acc_ref (f32 (HW, C))."""
            first = True
            for ky in range(3):
                if fat_k:
                    patch = jnp.concatenate(
                        [xpad_ref[ky:ky + H, IO - 1 + kx:IO - 1 + kx + W, :]
                         for kx in range(3)], axis=-1).reshape(HW, 3 * C)
                    d = jnp.dot(patch, w_ref[ky],
                                preferred_element_type=jnp.float32)
                    if first:
                        acc_ref[...] = d
                        first = False
                    else:
                        acc_ref[...] += d
                else:
                    for kx in range(3):
                        patch = xpad_ref[ky:ky + H,
                                         IO - 1 + kx:IO - 1 + kx + W,
                                         :].reshape(HW, C)
                        d = jnp.dot(patch, w_ref[ky * 3 + kx],
                                    preferred_element_type=jnp.float32)
                        if first:
                            acc_ref[...] = d
                            first = False
                        else:
                            acc_ref[...] += d

        def res_block(x_in_lo, w_ref, b_ref, write_back):
            """x_in_lo: (HW, C) bf16 layer input (same value as xpad interior)."""
            conv3x3(w_ref)
            y = jnp.maximum(
                acc_ref[...] + b_ref[...] + x_in_lo.astype(jnp.float32), 0.0)
            if write_back:
                y_lo = y.astype(xpad_ref.dtype)                    # (HW, C) bf16
                xpad_ref[1:H + 1, IO:IO + W, :] = y_lo.reshape(H, W, C)
                return y_lo
            return y                                               # f32, no round trip

        y1 = res_block(x0.reshape(HW, C), w1_ref, b1_ref, True)
        y2 = res_block(y1, w2_ref, b2_ref, True)
        x3 = res_block(y2, w3_ref, b3_ref, False)      # (HW, C) f32, fused w/ gate

        # ---- 1x1 conv -> sigmoid -> gate (single logit, used for both) -----
        wa = wa_ref[...]                                            # (1, C) f32
        logit = jnp.sum(x3 * wa, axis=-1, keepdims=True) + ba_ref[...]
        att = jax.nn.sigmoid(logit)                                 # (HW, 1) f32
        att_ref[...] = att
        out_ref[...] = (x3 * att).reshape(H, W, C).astype(out_ref.dtype)

    return kernel


# ----------------------------------------------------------------------------
# Pallas wrapper
# ----------------------------------------------------------------------------
def latent_pallas(x_nhwc, kparams):
    N, H, W, C = x_nhwc.shape
    res_w = kparams["res_hwio"]          # [(w_hwio bf16 (3,3,C,C), b f32 (1,C))]*3
    wa, ba = kparams["attn"]             # (1,C) f32, (1,1) f32

    # Per-generation strategy / limits.
    kind = jax.devices()[0].device_kind.lower()
    fat_k = ("v5" in kind) or ("v4" in kind)           # slow-MXU chips keep fat-K
    if "v7" in kind:
        vmem_limit = 52 * 2 ** 20                      # 64 MiB physical per TC
    elif ("v5" in kind) or ("v6" in kind):
        vmem_limit = 100 * 2 ** 20                     # 128 MiB physical
    else:
        vmem_limit = None                              # leave compiler default

    w_shape = (3, 3 * C, C) if fat_k else (9, C, C)
    ws = [w.reshape(w_shape) for (w, _) in res_w]
    bs = [b for (_, b) in res_w]

    Wp = ((_IO + W + 1 + 7) // 8) * 8                  # padded scratch width

    kernel = _make_latent_kernel(H, W, C, Wp, fat_k)

    flops = int(N * (3 * 2 * H * W * (9 * C) * C + 3 * H * W * C))
    bytes_accessed = int(N * H * W * C * 2 * 2          # bf16 in + bf16 out
                         + N * H * W * 4                # f32 attention map
                         + 3 * 9 * C * C * 2            # bf16 conv weights
                         + (3 * C + C + 1) * 4)         # f32 biases + 1x1 weight
    cost = pl.CostEstimate(flops=flops, transcendentals=int(N * H * W),
                           bytes_accessed=bytes_accessed)

    cp_kwargs = dict(dimension_semantics=("parallel",))
    if vmem_limit is not None:
        cp_kwargs["vmem_limit_bytes"] = vmem_limit
    cparams = pltpu.CompilerParams(**cp_kwargs)

    def call(single_buffer_weights):
        pm = {"pipeline_mode": pl.Buffered(1)} if single_buffer_weights else {}
        wspec = pl.BlockSpec(w_shape, lambda n: (0, 0, 0), **pm)
        bspec = pl.BlockSpec((1, C), lambda n: (0, 0), **pm)
        ba_spec = pl.BlockSpec((1, 1), lambda n: (0, 0), **pm)
        return pl.pallas_call(
            kernel,
            out_shape=(jax.ShapeDtypeStruct((N, H, W, C), jnp.bfloat16),
                       jax.ShapeDtypeStruct((N, H * W, 1), jnp.float32)),
            grid=(N,),
            in_specs=[
                pl.BlockSpec((None, H, W, C), lambda n: (n, 0, 0, 0)),
                wspec, bspec,          # res1
                wspec, bspec,          # res2
                wspec, bspec,          # res3
                bspec,                 # 1x1 weight (1, C)
                ba_spec,               # 1x1 bias   (1, 1)
            ],
            out_specs=(pl.BlockSpec((None, H, W, C), lambda n: (n, 0, 0, 0)),
                       pl.BlockSpec((None, H * W, 1), lambda n: (n, 0, 0))),
            scratch_shapes=[pltpu.VMEM((H + 2, Wp, C), jnp.bfloat16),
                            pltpu.VMEM((H * W, C), jnp.float32)],
            compiler_params=cparams,
            cost_estimate=cost,
        )(x_nhwc, ws[0], bs[0], ws[1], bs[1], ws[2], bs[2], wa, ba)

    # Single-buffer the constant-index_map weights only when they are big
    # enough to matter for VMEM (v7x: 64 MiB); fall back if unsupported.
    if C >= 256:
        try:
            return call(True)
        except Exception:
            return call(False)
    return call(False)


def latent_forward(x_nchw, kparams):
    """Public forward: NCHW in, (out NCHW bf16, attention (N,1,H,W) f32) out."""
    x = jnp.transpose(x_nchw, (0, 2, 3, 1)).astype(jnp.bfloat16)   # NHWC, bf16
    N, H, W, _ = x.shape
    out, att = latent_pallas(x, kparams)
    # Output stays bf16 through the transpose (halves the relayout traffic).
    return jnp.transpose(out, (0, 3, 1, 2)), att.reshape(N, 1, H, W)


# ----------------------------------------------------------------------------
# Parameter init (PyTorch-like uniform fan-in) + eval-BN fold / bf16 cast
# ----------------------------------------------------------------------------
def init_latent_params(key, ndf):
    C = ndf * 16
    eps = 1e-5

    def conv3x3_init(k):
        fan_in = C * 3 * 3
        bound = 1.0 / math.sqrt(fan_in)
        kw, kb = jax.random.split(k)
        w = jax.random.uniform(kw, (3, 3, C, C), jnp.float32, -bound, bound)  # HWIO
        b = jax.random.uniform(kb, (C,), jnp.float32, -bound, bound)
        # eval-mode BatchNorm: gamma=1, beta=0, running_mean=0, running_var=1
        scale = jnp.full((C,), 1.0 / math.sqrt(1.0 + eps), jnp.float32)
        bias = jnp.zeros((C,), jnp.float32)
        return w, b, scale, bias

    k1, k2, k3, k4 = jax.random.split(key, 4)
    params = {"res_raw": [conv3x3_init(k) for k in (k1, k2, k3)]}

    bound = 1.0 / math.sqrt(C)
    kw, kb = jax.random.split(k4)
    params["wa"] = jax.random.uniform(kw, (C,), jnp.float32, -bound, bound)
    params["ba"] = jax.random.uniform(kb, (), jnp.float32, -bound, bound)
    return params


def fold_latent_params(params):
    """Fold eval-mode BN into the conv weight/bias and cast weights to bf16."""
    res_hwio = []
    for (w, b, scale, bias) in params["res_raw"]:
        C = w.shape[-1]
        wf = (w * scale[None, None, None, :]).astype(jnp.bfloat16)   # (3,3,C,C)
        bf = (b * scale + bias).reshape(1, C).astype(jnp.float32)    # (1,C)
        res_hwio.append((wf, bf))
    wa = params["wa"].reshape(1, -1).astype(jnp.float32)
    ba = params["ba"].reshape(1, 1).astype(jnp.float32)
    return {"res_hwio": res_hwio, "attn": (wa, ba)}


# ----------------------------------------------------------------------------
# Pure-JAX reference (same bf16 cast points as the kernel; correctness only)
# ----------------------------------------------------------------------------
def latent_forward_ref(x_nchw, folded):
    x = jnp.transpose(x_nchw, (0, 2, 3, 1)).astype(jnp.bfloat16)
    n_res = len(folded["res_hwio"])
    for i, (w_hwio, b) in enumerate(folded["res_hwio"]):
        y = lax.conv_general_dilated(
            x, w_hwio, (1, 1), ((1, 1), (1, 1)),
            dimension_numbers=("NHWC", "HWIO", "NHWC"),
            preferred_element_type=jnp.float32) + b[0]
        y = jnp.maximum(x.astype(jnp.float32) + y, 0.0)
        # Kernel keeps the last layer's activation in f32 (fused with the gate).
        x = y if i == n_res - 1 else y.astype(jnp.bfloat16)
    x3 = x.astype(jnp.float32)
    wa, ba = folded["attn"]
    logit = jnp.einsum("nhwc,c->nhw", x3, wa[0]) + ba[0, 0]
    att = jax.nn.sigmoid(logit)[..., None]                 # (N,H,W,1)
    out = x3 * att
    return (jnp.transpose(out, (0, 3, 1, 2)),
            jnp.transpose(att, (0, 3, 1, 2)))


if __name__ == "__main__":
    ndf = 2                          # -> channels = ndf * 16 = 32
    N, C, H, W = 2, ndf * 16, 8, 8   # even batch keeps both v7x TCs busy

    key = jax.random.PRNGKey(0)
    kparam, kx = jax.random.split(key)
    raw = init_latent_params(kparam, ndf)
    folded = fold_latent_params(raw)
    x = jax.random.normal(kx, (N, C, H, W), jnp.float32)

    out, att = latent_forward(x, folded)
    out = jax.block_until_ready(out)
    att = jax.block_until_ready(att)

    out_ref, att_ref = latent_forward_ref(x, folded)
    assert out.shape == (N, C, H, W) and att.shape == (N, 1, H, W)
    out_f32 = out.astype(jnp.float32)
    # bf16 activations / bf16 output: allow a few bf16 ulps vs the XLA conv.
    assert jnp.allclose(out_f32, out_ref, rtol=2e-2, atol=2e-2), \
        float(jnp.max(jnp.abs(out_f32 - out_ref)))
    assert jnp.allclose(att, att_ref, rtol=2e-2, atol=2e-2), \
        float(jnp.max(jnp.abs(att - att_ref)))

    print("KERNEL_OK")
</pallas_src>

<mosaic_0001>
module attributes {stable_mosaic.version = 11 : i64} {
  func.func @kernel(%arg0: i32, %arg1: memref<1x8x8x32xbf16, #tpu.memory_space<vmem>>, %arg2: memref<9x32x32xbf16, #tpu.memory_space<vmem>>, %arg3: memref<1x32xf32, #tpu.memory_space<vmem>>, %arg4: memref<9x32x32xbf16, #tpu.memory_space<vmem>>, %arg5: memref<1x32xf32, #tpu.memory_space<vmem>>, %arg6: memref<9x32x32xbf16, #tpu.memory_space<vmem>>, %arg7: memref<1x32xf32, #tpu.memory_space<vmem>>, %arg8: memref<1x32xf32, #tpu.memory_space<vmem>>, %arg9: memref<1x1xf32, #tpu.memory_space<vmem>>, %arg10: memref<1x8x8x32xbf16, #tpu.memory_space<vmem>>, %arg11: memref<1x64x1xf32, #tpu.memory_space<vmem>>, %arg12: memref<10x24x32xbf16, #tpu.memory_space<vmem>>, %arg13: memref<64x32xf32, #tpu.memory_space<vmem>>) attributes {dimension_semantics = [#tpu.dimension_semantics<parallel>], iteration_bounds = array<i64: 2>, scalar_prefetch = 0 : i64, scratch_operands = 2 : i64, tpu.core_type = #tpu.core_type<tc>, window_params = [{transform_indices = @transform_0, window_bounds = array<i64: 1, 8, 8, 32>}, {pipeline_mode = #tpu.pipeline_mode<synchronous>, transform_indices = @transform_1, window_bounds = array<i64: 9, 32, 32>}, {pipeline_mode = #tpu.pipeline_mode<synchronous>, transform_indices = @transform_2, window_bounds = array<i64: 1, 32>}, {pipeline_mode = #tpu.pipeline_mode<synchronous>, transform_indices = @transform_3, window_bounds = array<i64: 9, 32, 32>}, {pipeline_mode = #tpu.pipeline_mode<synchronous>, transform_indices = @transform_4, window_bounds = array<i64: 1, 32>}, {pipeline_mode = #tpu.pipeline_mode<synchronous>, transform_indices = @transform_5, window_bounds = array<i64: 9, 32, 32>}, {pipeline_mode = #tpu.pipeline_mode<synchronous>, transform_indices = @transform_6, window_bounds = array<i64: 1, 32>}, {pipeline_mode = #tpu.pipeline_mode<synchronous>, transform_indices = @transform_7, window_bounds = array<i64: 1, 32>}, {pipeline_mode = #tpu.pipeline_mode<synchronous>, transform_indices = @transform_8, window_bounds = array<i64: 1, 1>}, {transform_indices = @transform_9, window_bounds = array<i64: 1, 8, 8, 32>}, {transform_indices = @transform_10, window_bounds = array<i64: 1, 64, 1>}]} {
    %cst = arith.constant 0.000000e+00 : bf16
    %0 = vector.broadcast %cst : bf16 to vector<1x24x32xbf16>
    %c0 = arith.constant 0 : index
    %c0_0 = arith.constant 0 : index
    %c0_1 = arith.constant 0 : index
    %1 = vector.load %arg12[%c0, %c0_0, %c0_1] : memref<10x24x32xbf16, #tpu.memory_space<vmem>>, vector<1x24x32xbf16>
    tpu.vector_store %arg12[%c0, %c0_0, %c0_1], %0 {strides = array<i32>} : memref<10x24x32xbf16, #tpu.memory_space<vmem>>, vector<1x24x32xbf16>,
    %c9 = arith.constant 9 : index
    %c0_2 = arith.constant 0 : index
    %c0_3 = arith.constant 0 : index
    %2 = vector.load %arg12[%c9, %c0_2, %c0_3] : memref<10x24x32xbf16, #tpu.memory_space<vmem>>, vector<1x24x32xbf16>
    tpu.vector_store %arg12[%c9, %c0_2, %c0_3], %0 {strides = array<i32>} : memref<10x24x32xbf16, #tpu.memory_space<vmem>>, vector<1x24x32xbf16>,
    %cst_4 = arith.constant 0.000000e+00 : bf16
    %3 = vector.broadcast %cst_4 : bf16 to vector<8x1x32xbf16>
    %c1 = arith.constant 1 : index
    %c7 = arith.constant 7 : index
    %c0_5 = arith.constant 0 : index
    %4 = vector.load %arg12[%c1, %c7, %c0_5] : memref<10x24x32xbf16, #tpu.memory_space<vmem>>, vector<8x1x32xbf16>
    tpu.vector_store %arg12[%c1, %c7, %c0_5], %3 {strides = array<i32>} : memref<10x24x32xbf16, #tpu.memory_space<vmem>>, vector<8x1x32xbf16>,
    %c1_6 = arith.constant 1 : index
    %c16 = arith.constant 16 : index
    %c0_7 = arith.constant 0 : index
    %5 = vector.load %arg12[%c1_6, %c16, %c0_7] : memref<10x24x32xbf16, #tpu.memory_space<vmem>>, vector<8x1x32xbf16>
    tpu.vector_store %arg12[%c1_6, %c16, %c0_7], %3 {strides = array<i32>} : memref<10x24x32xbf16, #tpu.memory_space<vmem>>, vector<8x1x32xbf16>,
    %c0_8 = arith.constant 0 : index
    %c0_9 = arith.constant 0 : index
    %c0_10 = arith.constant 0 : index
    %c0_11 = arith.constant 0 : index
    %6 = vector.load %arg1[%c0_8, %c0_9, %c0_10, %c0_11] : memref<1x8x8x32xbf16, #tpu.memory_space<vmem>>, vector<1x8x8x32xbf16>
    %7 = vector.shape_cast %6 : vector<1x8x8x32xbf16> to vector<8x8x32xbf16>
    %c1_12 = arith.constant 1 : index
    %c8 = arith.constant 8 : index
    %c0_13 = arith.constant 0 : index
    %8 = vector.load %arg12[%c1_12, %c8, %c0_13] : memref<10x24x32xbf16, #tpu.memory_space<vmem>>, vector<8x8x32xbf16>
    tpu.vector_store %arg12[%c1_12, %c8, %c0_13], %7 {strides = array<i32>} : memref<10x24x32xbf16, #tpu.memory_space<vmem>>, vector<8x8x32xbf16>,
    %9 = vector.shape_cast %7 : vector<8x8x32xbf16> to vector<64x32xbf16>
    %c0_14 = arith.constant 0 : index
    %c7_15 = arith.constant 7 : index
    %c0_16 = arith.constant 0 : index
    %10 = vector.load %arg12[%c0_14, %c7_15, %c0_16] : memref<10x24x32xbf16, #tpu.memory_space<vmem>>, vector<8x8x32xbf16>
    %11 = vector.shape_cast %10 : vector<8x8x32xbf16> to vector<64x32xbf16>
    %c0_17 = arith.constant 0 : index
    %c0_18 = arith.constant 0 : index
    %c0_19 = arith.constant 0 : index
    %12 = vector.load %arg2[%c0_17, %c0_18, %c0_19] : memref<9x32x32xbf16, #tpu.memory_space<vmem>>, vector<1x32x32xbf16>
    %13 = vector.shape_cast %12 : vector<1x32x32xbf16> to vector<32x32xbf16>
    %cst_20 = arith.constant dense<0.000000e+00> : vector<64x32xf32>
    %14 = tpu.matmul %11, %13, %cst_20 {dimension_numbers = #tpu.dot_dimension_numbers<[1], [0], [0], [1], [0, 0, 1, 1], [], []>} : vector<64x32xbf16>, vector<32x32xbf16>, vector<64x32xf32> -> vector<64x32xf32>
    %c0_21 = arith.constant 0 : index
    %c0_22 = arith.constant 0 : index
    %15 = vector.load %arg13[%c0_21, %c0_22] : memref<64x32xf32, #tpu.memory_space<vmem>>, vector<64x32xf32>
    tpu.vector_store %arg13[%c0_21, %c0_22], %14 {strides = array<i32>} : memref<64x32xf32, #tpu.memory_space<vmem>>, vector<64x32xf32>,
    %c0_23 = arith.constant 0 : index
    %c8_24 = arith.constant 8 : index
    %c0_25 = arith.constant 0 : index
    %16 = vector.load %arg12[%c0_23, %c8_24, %c0_25] : memref<10x24x32xbf16, #tpu.memory_space<vmem>>, vector<8x8x32xbf16>
    %17 = vector.shape_cast %16 : vector<8x8x32xbf16> to vector<64x32xbf16>
    %c1_26 = arith.constant 1 : index
    %c0_27 = arith.constant 0 : index
    %c0_28 = arith.constant 0 : index
    %18 = vector.load %arg2[%c1_26, %c0_27, %c0_28] : memref<9x32x32xbf16, #tpu.memory_space<vmem>>, vector<1x32x32xbf16>
    %19 = vector.shape_cast %18 : vector<1x32x32xbf16> to vector<32x32xbf16>
    %cst_29 = arith.constant dense<0.000000e+00> : vector<64x32xf32>
    %20 = tpu.matmul %17, %19, %cst_29 {dimension_numbers = #tpu.dot_dimension_numbers<[1], [0], [0], [1], [0, 0, 1, 1], [], []>} : vector<64x32xbf16>, vector<32x32xbf16>, vector<64x32xf32> -> vector<64x32xf32>
    %c0_30 = arith.constant 0 : index
    %c0_31 = arith.constant 0 : index
    %21 = vector.load %arg13[%c0_30, %c0_31] : memref<64x32xf32, #tpu.memory_space<vmem>>, vector<64x32xf32>
    %22 = arith.addf %21, %20 : vector<64x32xf32>
    %c0_32 = arith.constant 0 : index
    %c0_33 = arith.constant 0 : index
    %23 = vector.load %arg13[%c0_32, %c0_33] : memref<64x32xf32, #tpu.memory_space<vmem>>, vector<64x32xf32>
    tpu.vector_store %arg13[%c0_32, %c0_33], %22 {strides = array<i32>} : memref<64x32xf32, #tpu.memory_space<vmem>>, vector<64x32xf32>,
    %c0_34 = arith.constant 0 : index
    %c9_35 = arith.constant 9 : index
    %c0_36 = arith.constant 0 : index
    %24 = vector.load %arg12[%c0_34, %c9_35, %c0_36] : memref<10x24x32xbf16, #tpu.memory_space<vmem>>, vector<8x8x32xbf16>
    %25 = vector.shape_cast %24 : vector<8x8x32xbf16> to vector<64x32xbf16>
    %c2 = arith.constant 2 : index
    %c0_37 = arith.constant 0 : index
    %c0_38 = arith.constant 0 : index
    %26 = vector.load %arg2[%c2, %c0_37, %c0_38] : memref<9x32x32xbf16, #tpu.memory_space<vmem>>, vector<1x32x32xbf16>
    %27 = vector.shape_cast %26 : vector<1x32x32xbf16> to vector<32x32xbf16>
    %cst_39 = arith.constant dense<0.000000e+00> : vector<64x32xf32>
    %28 = tpu.matmul %25, %27, %cst_39 {dimension_numbers = #tpu.dot_dimension_numbers<[1], [0], [0], [1], [0, 0, 1, 1], [], []>} : vector<64x32xbf16>, vector<32x32xbf16>, vector<64x32xf32> -> vector<64x32xf32>
    %c0_40 = arith.constant 0 : index
    %c0_41 = arith.constant 0 : index
    %29 = vector.load %arg13[%c0_40, %c0_41] : memref<64x32xf32, #tpu.memory_space<vmem>>, vector<64x32xf32>
    %30 = arith.addf %29, %28 : vector<64x32xf32>
    %c0_42 = arith.constant 0 : index
    %c0_43 = arith.constant 0 : index
    %31 = vector.load %arg13[%c0_42, %c0_43] : memref<64x32xf32, #tpu.memory_space<vmem>>, vector<64x32xf32>
    tpu.vector_store %arg13[%c0_42, %c0_43], %30 {strides = array<i32>} : memref<64x32xf32, #tpu.memory_space<vmem>>, vector<64x32xf32>,
    %c1_44 = arith.constant 1 : index
    %c7_45 = arith.constant 7 : index
    %c0_46 = arith.constant 0 : index
    %32 = vector.load %arg12[%c1_44, %c7_45, %c0_46] : memref<10x24x32xbf16, #tpu.memory_space<vmem>>, vector<8x8x32xbf16>
    %33 = vector.shape_cast %32 : vector<8x8x32xbf16> to vector<64x32xbf16>
    %c3 = arith.constant 3 : index
    %c0_47 = arith.constant 0 : index
    %c0_48 = arith.constant 0 : index
    %34 = vector.load %arg2[%c3, %c0_47, %c0_48] : memref<9x32x32xbf16, #tpu.memory_space<vmem>>, vector<1x32x32xbf16>
    %35 = vector.shape_cast %34 : vector<1x32x32xbf16> to vector<32x32xbf16>
    %cst_49 = arith.constant dense<0.000000e+00> : vector<64x32xf32>
    %36 = tpu.matmul %33, %35, %cst_49 {dimension_numbers = #tpu.dot_dimension_numbers<[1], [0], [0], [1], [0, 0, 1, 1], [], []>} : vector<64x32xbf16>, vector<32x32xbf16>, vector<64x32xf32> -> vector<64x32xf32>
    %c0_50 = arith.constant 0 : index
    %c0_51 = arith.constant 0 : index
    %37 = vector.load %arg13[%c0_50, %c0_51] : memref<64x32xf32, #tpu.memory_space<vmem>>, vector<64x32xf32>
    %38 = arith.addf %37, %36 : vector<64x32xf32>
    %c0_52 = arith.constant 0 : index
    %c0_53 = arith.constant 0 : index
    %39 = vector.load %arg13[%c0_52, %c0_53] : memref<64x32xf32, #tpu.memory_space<vmem>>, vector<64x32xf32>
    tpu.vector_store %arg13[%c0_52, %c0_53], %38 {strides = array<i32>} : memref<64x32xf32, #tpu.memory_space<vmem>>, vector<64x32xf32>,
    %c1_54 = arith.constant 1 : index
    %c8_55 = arith.constant 8 : index
    %c0_56 = arith.constant 0 : index
    %40 = vector.load %arg12[%c1_54, %c8_55, %c0_56] : memref<10x24x32xbf16, #tpu.memory_space<vmem>>, vector<8x8x32xbf16>
    %41 = vector.shape_cast %40 : vector<8x8x32xbf16> to vector<64x32xbf16>
    %c4 = arith.constant 4 : index
    %c0_57 = arith.constant 0 : index
    %c0_58 = arith.constant 0 : index
    %42 = vector.load %arg2[%c4, %c0_57, %c0_58] : memref<9x32x32xbf16, #tpu.memory_space<vmem>>, vector<1x32x32xbf16>
    %43 = vector.shape_cast %42 : vector<1x32x32xbf16> to vector<32x32xbf16>
    %cst_59 = arith.constant dense<0.000000e+00> : vector<64x32xf32>
    %44 = tpu.matmul %41, %43, %cst_59 {dimension_numbers = #tpu.dot_dimension_numbers<[1], [0], [0], [1], [0, 0, 1, 1], [], []>} : vector<64x32xbf16>, vector<32x32xbf16>, vector<64x32xf32> -> vector<64x32xf32>
    %c0_60 = arith.constant 0 : index
    %c0_61 = arith.constant 0 : index
    %45 = vector.load %arg13[%c0_60, %c0_61] : memref<64x32xf32, #tpu.memory_space<vmem>>, vector<64x32xf32>
    %46 = arith.addf %45, %44 : vector<64x32xf32>
    %c0_62 = arith.constant 0 : index
    %c0_63 = arith.constant 0 : index
    %47 = vector.load %arg13[%c0_62, %c0_63] : memref<64x32xf32, #tpu.memory_space<vmem>>, vector<64x32xf32>
    tpu.vector_store %arg13[%c0_62, %c0_63], %46 {strides = array<i32>} : memref<64x32xf32, #tpu.memory_space<vmem>>, vector<64x32xf32>,
    %c1_64 = arith.constant 1 : index
    %c9_65 = arith.constant 9 : index
    %c0_66 = arith.constant 0 : index
    %48 = vector.load %arg12[%c1_64, %c9_65, %c0_66] : memref<10x24x32xbf16, #tpu.memory_space<vmem>>, vector<8x8x32xbf16>
    %49 = vector.shape_cast %48 : vector<8x8x32xbf16> to vector<64x32xbf16>
    %c5 = arith.constant 5 : index
    %c0_67 = arith.constant 0 : index
    %c0_68 = arith.constant 0 : index
    %50 = vector.load %arg2[%c5, %c0_67, %c0_68] : memref<9x32x32xbf16, #tpu.memory_space<vmem>>, vector<1x32x32xbf16>
    %51 = vector.shape_cast %50 : vector<1x32x32xbf16> to vector<32x32xbf16>
    %cst_69 = arith.constant dense<0.000000e+00> : vector<64x32xf32>
    %52 = tpu.matmul %49, %51, %cst_69 {dimension_numbers = #tpu.dot_dimension_numbers<[1], [0], [0], [1], [0, 0, 1, 1], [], []>} : vector<64x32xbf16>, vector<32x32xbf16>, vector<64x32xf32> -> vector<64x32xf32>
    %c0_70 = arith.constant 0 : index
    %c0_71 = arith.constant 0 : index
    %53 = vector.load %arg13[%c0_70, %c0_71] : memref<64x32xf32, #tpu.memory_space<vmem>>, vector<64x32xf32>
    %54 = arith.addf %53, %52 : vector<64x32xf32>
    %c0_72 = arith.constant 0 : index
    %c0_73 = arith.constant 0 : index
    %55 = vector.load %arg13[%c0_72, %c0_73] : memref<64x32xf32, #tpu.memory_space<vmem>>, vector<64x32xf32>
    tpu.vector_store %arg13[%c0_72, %c0_73], %54 {strides = array<i32>} : memref<64x32xf32, #tpu.memory_space<vmem>>, vector<64x32xf32>,
    %c2_74 = arith.constant 2 : index
    %c7_75 = arith.constant 7 : index
    %c0_76 = arith.constant 0 : index
    %56 = vector.load %arg12[%c2_74, %c7_75, %c0_76] : memref<10x24x32xbf16, #tpu.memory_space<vmem>>, vector<8x8x32xbf16>
    %57 = vector.shape_cast %56 : vector<8x8x32xbf16> to vector<64x32xbf16>
    %c6 = arith.constant 6 : index
    %c0_77 = arith.constant 0 : index
    %c0_78 = arith.constant 0 : index
    %58 = vector.load %arg2[%c6, %c0_77, %c0_78] : memref<9x32x32xbf16, #tpu.memory_space<vmem>>, vector<1x32x32xbf16>
    %59 = vector.shape_cast %58 : vector<1x32x32xbf16> to vector<32x32xbf16>
    %cst_79 = arith.constant dense<0.000000e+00> : vector<64x32xf32>
    %60 = tpu.matmul %57, %59, %cst_79 {dimension_numbers = #tpu.dot_dimension_numbers<[1], [0], [0], [1], [0, 0, 1, 1], [], []>} : vector<64x32xbf16>, vector<32x32xbf16>, vector<64x32xf32> -> vector<64x32xf32>
    %c0_80 = arith.constant 0 : index
    %c0_81 = arith.constant 0 : index
    %61 = vector.load %arg13[%c0_80, %c0_81] : memref<64x32xf32, #tpu.memory_space<vmem>>, vector<64x32xf32>
    %62 = arith.addf %61, %60 : vector<64x32xf32>
    %c0_82 = arith.constant 0 : index
    %c0_83 = arith.constant 0 : index
    %63 = vector.load %arg13[%c0_82, %c0_83] : memref<64x32xf32, #tpu.memory_space<vmem>>, vector<64x32xf32>
    tpu.vector_store %arg13[%c0_82, %c0_83], %62 {strides = array<i32>} : memref<64x32xf32, #tpu.memory_space<vmem>>, vector<64x32xf32>,
    %c2_84 = arith.constant 2 : index
    %c8_85 = arith.constant 8 : index
    %c0_86 = arith.constant 0 : index
    %64 = vector.load %arg12[%c2_84, %c8_85, %c0_86] : memref<10x24x32xbf16, #tpu.memory_space<vmem>>, vector<8x8x32xbf16>
    %65 = vector.shape_cast %64 : vector<8x8x32xbf16> to vector<64x32xbf16>
    %c7_87 = arith.constant 7 : index
    %c0_88 = arith.constant 0 : index
    %c0_89 = arith.constant 0 : index
    %66 = vector.load %arg2[%c7_87, %c0_88, %c0_89] : memref<9x32x32xbf16, #tpu.memory_space<vmem>>, vector<1x32x32xbf16>
    %67 = vector.shape_cast %66 : vector<1x32x32xbf16> to vector<32x32xbf16>
    %cst_90 = arith.constant dense<0.000000e+00> : vector<64x32xf32>
    %68 = tpu.matmul %65, %67, %cst_90 {dimension_numbers = #tpu.dot_dimension_numbers<[1], [0], [0], [1], [0, 0, 1, 1], [], []>} : vector<64x32xbf16>, vector<32x32xbf16>, vector<64x32xf32> -> vector<64x32xf32>
    %c0_91 = arith.constant 0 : index
    %c0_92 = arith.constant 0 : index
    %69 = vector.load %arg13[%c0_91, %c0_92] : memref<64x32xf32, #tpu.memory_space<vmem>>, vector<64x32xf32>
    %70 = arith.addf %69, %68 : vector<64x32xf32>
    %c0_93 = arith.constant 0 : index
    %c0_94 = arith.constant 0 : index
    %71 = vector.load %arg13[%c0_93, %c0_94] : memref<64x32xf32, #tpu.memory_space<vmem>>, vector<64x32xf32>
    tpu.vector_store %arg13[%c0_93, %c0_94], %70 {strides = array<i32>} : memref<64x32xf32, #tpu.memory_space<vmem>>, vector<64x32xf32>,
    %c2_95 = arith.constant 2 : index
    %c9_96 = arith.constant 9 : index
    %c0_97 = arith.constant 0 : index
    %72 = vector.load %arg12[%c2_95, %c9_96, %c0_97] : memref<10x24x32xbf16, #tpu.memory_space<vmem>>, vector<8x8x32xbf16>
    %73 = vector.shape_cast %72 : vector<8x8x32xbf16> to vector<64x32xbf16>
    %c8_98 = arith.constant 8 : index
    %c0_99 = arith.constant 0 : index
    %c0_100 = arith.constant 0 : index
    %74 = vector.load %arg2[%c8_98, %c0_99, %c0_100] : memref<9x32x32xbf16, #tpu.memory_space<vmem>>, vector<1x32x32xbf16>
    %75 = vector.shape_cast %74 : vector<1x32x32xbf16> to vector<32x32xbf16>
    %cst_101 = arith.constant dense<0.000000e+00> : vector<64x32xf32>
    %76 = tpu.matmul %73, %75, %cst_101 {dimension_numbers = #tpu.dot_dimension_numbers<[1], [0], [0], [1], [0, 0, 1, 1], [], []>} : vector<64x32xbf16>, vector<32x32xbf16>, vector<64x32xf32> -> vector<64x32xf32>
    %c0_102 = arith.constant 0 : index
    %c0_103 = arith.constant 0 : index
    %77 = vector.load %arg13[%c0_102, %c0_103] : memref<64x32xf32, #tpu.memory_space<vmem>>, vector<64x32xf32>
    %78 = arith.addf %77, %76 : vector<64x32xf32>
    %c0_104 = arith.constant 0 : index
    %c0_105 = arith.constant 0 : index
    %79 = vector.load %arg13[%c0_104, %c0_105] : memref<64x32xf32, #tpu.memory_space<vmem>>, vector<64x32xf32>
    tpu.vector_store %arg13[%c0_104, %c0_105], %78 {strides = array<i32>} : memref<64x32xf32, #tpu.memory_space<vmem>>, vector<64x32xf32>,
    %c0_106 = arith.constant 0 : index
    %c0_107 = arith.constant 0 : index
    %80 = vector.load %arg13[%c0_106, %c0_107] : memref<64x32xf32, #tpu.memory_space<vmem>>, vector<64x32xf32>
    %c0_108 = arith.constant 0 : index
    %c0_109 = arith.constant 0 : index
    %81 = vector.load %arg3[%c0_108, %c0_109] : memref<1x32xf32, #tpu.memory_space<vmem>>, vector<1x32xf32>
    %82 = vector.broadcast %81 : vector<1x32xf32> to vector<64x32xf32>
    %83 = arith.addf %80, %82 : vector<64x32xf32>
    %84 = arith.extf %9 : vector<64x32xbf16> to vector<64x32xf32>
    %85 = arith.addf %83, %84 : vector<64x32xf32>
    %cst_110 = arith.constant 0.000000e+00 : f32
    %86 = vector.broadcast %cst_110 : f32 to vector<64x32xf32>
    %87 = arith.maximumf %85, %86 : vector<64x32xf32>
    %88 = arith.truncf %87 : vector<64x32xf32> to vector<64x32xbf16>
    %89 = vector.shape_cast %88 : vector<64x32xbf16> to vector<8x8x32xbf16>
    %c1_111 = arith.constant 1 : index
    %c8_112 = arith.constant 8 : index
    %c0_113 = arith.constant 0 : index
    %90 = vector.load %arg12[%c1_111, %c8_112, %c0_113] : memref<10x24x32xbf16, #tpu.memory_space<vmem>>, vector<8x8x32xbf16>
    tpu.vector_store %arg12[%c1_111, %c8_112, %c0_113], %89 {strides = array<i32>} : memref<10x24x32xbf16, #tpu.memory_space<vmem>>, vector<8x8x32xbf16>,
    %c0_114 = arith.constant 0 : index
    %c7_115 = arith.constant 7 : index
    %c0_116 = arith.constant 0 : index
    %91 = vector.load %arg12[%c0_114, %c7_115, %c0_116] : memref<10x24x32xbf16, #tpu.memory_space<vmem>>, vector<8x8x32xbf16>
    %92 = vector.shape_cast %91 : vector<8x8x32xbf16> to vector<64x32xbf16>
    %c0_117 = arith.constant 0 : index
    %c0_118 = arith.constant 0 : index
    %c0_119 = arith.constant 0 : index
    %93 = vector.load %arg4[%c0_117, %c0_118, %c0_119] : memref<9x32x32xbf16, #tpu.memory_space<vmem>>, vector<1x32x32xbf16>
    %94 = vector.shape_cast %93 : vector<1x32x32xbf16> to vector<32x32xbf16>
    %cst_120 = arith.constant dense<0.000000e+00> : vector<64x32xf32>
    %95 = tpu.matmul %92, %94, %cst_120 {dimension_numbers = #tpu.dot_dimension_numbers<[1], [0], [0], [1], [0, 0, 1, 1], [], []>} : vector<64x32xbf16>, vector<32x32xbf16>, vector<64x32xf32> -> vector<64x32xf32>
    %c0_121 = arith.constant 0 : index
    %c0_122 = arith.constant 0 : index
    %96 = vector.load %arg13[%c0_121, %c0_122] : memref<64x32xf32, #tpu.memory_space<vmem>>, vector<64x32xf32>
    tpu.vector_store %arg13[%c0_121, %c0_122], %95 {strides = array<i32>} : memref<64x32xf32, #tpu.memory_space<vmem>>, vector<64x32xf32>,
    %c0_123 = arith.constant 0 : index
    %c8_124 = arith.constant 8 : index
    %c0_125 = arith.constant 0 : index
    %97 = vector.load %arg12[%c0_123, %c8_124, %c0_125] : memref<10x24x32xbf16, #tpu.memory_space<vmem>>, vector<8x8x32xbf16>
    %98 = vector.shape_cast %97 : vector<8x8x32xbf16> to vector<64x32xbf16>
    %c1_126 = arith.constant 1 : index
    %c0_127 = arith.constant 0 : index
    %c0_128 = arith.constant 0 : index
    %99 = vector.load %arg4[%c1_126, %c0_127, %c0_128] : memref<9x32x32xbf16, #tpu.memory_space<vmem>>, vector<1x32x32xbf16>
    %100 = vector.shape_cast %99 : vector<1x32x32xbf16> to vector<32x32xbf16>
    %cst_129 = arith.constant dense<0.000000e+00> : vector<64x32xf32>
    %101 = tpu.matmul %98, %100, %cst_129 {dimension_numbers = #tpu.dot_dimension_numbers<[1], [0], [0], [1], [0, 0, 1, 1], [], []>} : vector<64x32xbf16>, vector<32x32xbf16>, vector<64x32xf32> -> vector<64x32xf32>
    %c0_130 = arith.constant 0 : index
    %c0_131 = arith.constant 0 : index
    %102 = vector.load %arg13[%c0_130, %c0_131] : memref<64x32xf32, #tpu.memory_space<vmem>>, vector<64x32xf32>
    %103 = arith.addf %102, %101 : vector<64x32xf32>
    %c0_132 = arith.constant 0 : index
    %c0_133 = arith.constant 0 : index
    %104 = vector.load %arg13[%c0_132, %c0_133] : memref<64x32xf32, #tpu.memory_space<vmem>>, vector<64x32xf32>
    tpu.vector_store %arg13[%c0_132, %c0_133], %103 {strides = array<i32>} : memref<64x32xf32, #tpu.memory_space<vmem>>, vector<64x32xf32>,
    %c0_134 = arith.constant 0 : index
    %c9_135 = arith.constant 9 : index
    %c0_136 = arith.constant 0 : index
    %105 = vector.load %arg12[%c0_134, %c9_135, %c0_136] : memref<10x24x32xbf16, #tpu.memory_space<vmem>>, vector<8x8x32xbf16>
    %106 = vector.shape_cast %105 : vector<8x8x32xbf16> to vector<64x32xbf16>
    %c2_137 = arith.constant 2 : index
    %c0_138 = arith.constant 0 : index
    %c0_139 = arith.constant 0 : index
    %107 = vector.load %arg4[%c2_137, %c0_138, %c0_139] : memref<9x32x32xbf16, #tpu.memory_space<vmem>>, vector<1x32x32xbf16>
    %108 = vector.shape_cast %107 : vector<1x32x32xbf16> to vector<32x32xbf16>
    %cst_140 = arith.constant dense<0.000000e+00> : vector<64x32xf32>
    %109 = tpu.matmul %106, %108, %cst_140 {dimension_numbers = #tpu.dot_dimension_numbers<[1], [0], [0], [1], [0, 0, 1, 1], [], []>} : vector<64x32xbf16>, vector<32x32xbf16>, vector<64x32xf32> -> vector<64x32xf32>
    %c0_141 = arith.constant 0 : index
    %c0_142 = arith.constant 0 : index
    %110 = vector.load %arg13[%c0_141, %c0_142] : memref<64x32xf32, #tpu.memory_space<vmem>>, vector<64x32xf32>
    %111 = arith.addf %110, %109 : vector<64x32xf32>
    %c0_143 = arith.constant 0 : index
    %c0_144 = arith.constant 0 : index
    %112 = vector.load %arg13[%c0_143, %c0_144] : memref<64x32xf32, #tpu.memory_space<vmem>>, vector<64x32xf32>
    tpu.vector_store %arg13[%c0_143, %c0_144], %111 {strides = array<i32>} : memref<64x32xf32, #tpu.memory_space<vmem>>, vector<64x32xf32>,
    %c1_145 = arith.constant 1 : index
    %c7_146 = arith.constant 7 : index
    %c0_147 = arith.constant 0 : index
    %113 = vector.load %arg12[%c1_145, %c7_146, %c0_147] : memref<10x24x32xbf16, #tpu.memory_space<vmem>>, vector<8x8x32xbf16>
    %114 = vector.shape_cast %113 : vector<8x8x32xbf16> to vector<64x32xbf16>
    %c3_148 = arith.constant 3 : index
    %c0_149 = arith.constant 0 : index
    %c0_150 = arith.constant 0 : index
    %115 = vector.load %arg4[%c3_148, %c0_149, %c0_150] : memref<9x32x32xbf16, #tpu.memory_space<vmem>>, vector<1x32x32xbf16>
    %116 = vector.shape_cast %115 : vector<1x32x32xbf16> to vector<32x32xbf16>
    %cst_151 = arith.constant dense<0.000000e+00> : vector<64x32xf32>
    %117 = tpu.matmul %114, %116, %cst_151 {dimension_numbers = #tpu.dot_dimension_numbers<[1], [0], [0], [1], [0, 0, 1, 1], [], []>} : vector<64x32xbf16>, vector<32x32xbf16>, vector<64x32xf32> -> vector<64x32xf32>
    %c0_152 = arith.constant 0 : index
    %c0_153 = arith.constant 0 : index
    %118 = vector.load %arg13[%c0_152, %c0_153] : memref<64x32xf32, #tpu.memory_space<vmem>>, vector<64x32xf32>
    %119 = arith.addf %118, %117 : vector<64x32xf32>
    %c0_154 = arith.constant 0 : index
    %c0_155 = arith.constant 0 : index
    %120 = vector.load %arg13[%c0_154, %c0_155] : memref<64x32xf32, #tpu.memory_space<vmem>>, vector<64x32xf32>
    tpu.vector_store %arg13[%c0_154, %c0_155], %119 {strides = array<i32>} : memref<64x32xf32, #tpu.memory_space<vmem>>, vector<64x32xf32>,
    %c1_156 = arith.constant 1 : index
    %c8_157 = arith.constant 8 : index
    %c0_158 = arith.constant 0 : index
    %121 = vector.load %arg12[%c1_156, %c8_157, %c0_158] : memref<10x24x32xbf16, #tpu.memory_space<vmem>>, vector<8x8x32xbf16>
    %122 = vector.shape_cast %121 : vector<8x8x32xbf16> to vector<64x32xbf16>
    %c4_159 = arith.constant 4 : index
    %c0_160 = arith.constant 0 : index
    %c0_161 = arith.constant 0 : index
    %123 = vector.load %arg4[%c4_159, %c0_160, %c0_161] : memref<9x32x32xbf16, #tpu.memory_space<vmem>>, vector<1x32x32xbf16>
    %124 = vector.shape_cast %123 : vector<1x32x32xbf16> to vector<32x32xbf16>
    %cst_162 = arith.constant dense<0.000000e+00> : vector<64x32xf32>
    %125 = tpu.matmul %122, %124, %cst_162 {dimension_numbers = #tpu.dot_dimension_numbers<[1], [0], [0], [1], [0, 0, 1, 1], [], []>} : vector<64x32xbf16>, vector<32x32xbf16>, vector<64x32xf32> -> vector<64x32xf32>
    %c0_163 = arith.constant 0 : index
    %c0_164 = arith.constant 0 : index
    %126 = vector.load %arg13[%c0_163, %c0_164] : memref<64x32xf32, #tpu.memory_space<vmem>>, vector<64x32xf32>
    %127 = arith.addf %126, %125 : vector<64x32xf32>
    %c0_165 = arith.constant 0 : index
    %c0_166 = arith.constant 0 : index
    %128 = vector.load %arg13[%c0_165, %c0_166] : memref<64x32xf32, #tpu.memory_space<vmem>>, vector<64x32xf32>
    tpu.vector_store %arg13[%c0_165, %c0_166], %127 {strides = array<i32>} : memref<64x32xf32, #tpu.memory_space<vmem>>, vector<64x32xf32>,
    %c1_167 = arith.constant 1 : index
    %c9_168 = arith.constant 9 : index
    %c0_169 = arith.constant 0 : index
    %129 = vector.load %arg12[%c1_167, %c9_168, %c0_169] : memref<10x24x32xbf16, #tpu.memory_space<vmem>>, vector<8x8x32xbf16>
    %130 = vector.shape_cast %129 : vector<8x8x32xbf16> to vector<64x32xbf16>
    %c5_170 = arith.constant 5 : index
    %c0_171 = arith.constant 0 : index
    %c0_172 = arith.constant 0 : index
    %131 = vector.load %arg4[%c5_170, %c0_171, %c0_172] : memref<9x32x32xbf16, #tpu.memory_space<vmem>>, vector<1x32x32xbf16>
    %132 = vector.shape_cast %131 : vector<1x32x32xbf16> to vector<32x32xbf16>
    %cst_173 = arith.constant dense<0.000000e+00> : vector<64x32xf32>
    %133 = tpu.matmul %130, %132, %cst_173 {dimension_numbers = #tpu.dot_dimension_numbers<[1], [0], [0], [1], [0, 0, 1, 1], [], []>} : vector<64x32xbf16>, vector<32x32xbf16>, vector<64x32xf32> -> vector<64x32xf32>
    %c0_174 = arith.constant 0 : index
    %c0_175 = arith.constant 0 : index
    %134 = vector.load %arg13[%c0_174, %c0_175] : memref<64x32xf32, #tpu.memory_space<vmem>>, vector<64x32xf32>
    %135 = arith.addf %134, %133 : vector<64x32xf32>
    %c0_176 = arith.constant 0 : index
    %c0_177 = arith.constant 0 : index
    %136 = vector.load %arg13[%c0_176, %c0_177] : memref<64x32xf32, #tpu.memory_space<vmem>>, vector<64x32xf32>
    tpu.vector_store %arg13[%c0_176, %c0_177], %135 {strides = array<i32>} : memref<64x32xf32, #tpu.memory_space<vmem>>, vector<64x32xf32>,
    %c2_178 = arith.constant 2 : index
    %c7_179 = arith.constant 7 : index
    %c0_180 = arith.constant 0 : index
    %137 = vector.load %arg12[%c2_178, %c7_179, %c0_180] : memref<10x24x32xbf16, #tpu.memory_space<vmem>>, vector<8x8x32xbf16>
    %138 = vector.shape_cast %137 : vector<8x8x32xbf16> to vector<64x32xbf16>
    %c6_181 = arith.constant 6 : index
    %c0_182 = arith.constant 0 : index
    %c0_183 = arith.constant 0 : index
    %139 = vector.load %arg4[%c6_181, %c0_182, %c0_183] : memref<9x32x32xbf16, #tpu.memory_space<vmem>>, vector<1x32x32xbf16>
    %140 = vector.shape_cast %139 : vector<1x32x32xbf16> to vector<32x32xbf16>
    %cst_184 = arith.constant dense<0.000000e+00> : vector<64x32xf32>
    %141 = tpu.matmul %138, %140, %cst_184 {dimension_numbers = #tpu.dot_dimension_numbers<[1], [0], [0], [1], [0, 0, 1, 1], [], []>} : vector<64x32xbf16>, vector<32x32xbf16>, vector<64x32xf32> -> vector<64x32xf32>
    %c0_185 = arith.constant 0 : index
    %c0_186 = arith.constant 0 : index
    %142 = vector.load %arg13[%c0_185, %c0_186] : memref<64x32xf32, #tpu.memory_space<vmem>>, vector<64x32xf32>
    %143 = arith.addf %142, %141 : vector<64x32xf32>
    %c0_187 = arith.constant 0 : index
    %c0_188 = arith.constant 0 : index
    %144 = vector.load %arg13[%c0_187, %c0_188] : memref<64x32xf32, #tpu.memory_space<vmem>>, vector<64x32xf32>
    tpu.vector_store %arg13[%c0_187, %c0_188], %143 {strides = array<i32>} : memref<64x32xf32, #tpu.memory_space<vmem>>, vector<64x32xf32>,
    %c2_189 = arith.constant 2 : index
    %c8_190 = arith.constant 8 : index
    %c0_191 = arith.constant 0 : index
    %145 = vector.load %arg12[%c2_189, %c8_190, %c0_191] : memref<10x24x32xbf16, #tpu.memory_space<vmem>>, vector<8x8x32xbf16>
    %146 = vector.shape_cast %145 : vector<8x8x32xbf16> to vector<64x32xbf16>
    %c7_192 = arith.constant 7 : index
    %c0_193 = arith.constant 0 : index
    %c0_194 = arith.constant 0 : index
    %147 = vector.load %arg4[%c7_192, %c0_193, %c0_194] : memref<9x32x32xbf16, #tpu.memory_space<vmem>>, vector<1x32x32xbf16>
    %148 = vector.shape_cast %147 : vector<1x32x32xbf16> to vector<32x32xbf16>
    %cst_195 = arith.constant dense<0.000000e+00> : vector<64x32xf32>
    %149 = tpu.matmul %146, %148, %cst_195 {dimension_numbers = #tpu.dot_dimension_numbers<[1], [0], [0], [1], [0, 0, 1, 1], [], []>} : vector<64x32xbf16>, vector<32x32xbf16>, vector<64x32xf32> -> vector<64x32xf32>
    %c0_196 = arith.constant 0 : index
    %c0_197 = arith.constant 0 : index
    %150 = vector.load %arg13[%c0_196, %c0_197] : memref<64x32xf32, #tpu.memory_space<vmem>>, vector<64x32xf32>
    %151 = arith.addf %150, %149 : vector<64x32xf32>
    %c0_198 = arith.constant 0 : index
    %c0_199 = arith.constant 0 : index
    %152 = vector.load %arg13[%c0_198, %c0_199] : memref<64x32xf32, #tpu.memory_space<vmem>>, vector<64x32xf32>
    tpu.vector_store %arg13[%c0_198, %c0_199], %151 {strides = array<i32>} : memref<64x32xf32, #tpu.memory_space<vmem>>, vector<64x32xf32>,
    %c2_200 = arith.constant 2 : index
    %c9_201 = arith.constant 9 : index
    %c0_202 = arith.constant 0 : index
    %153 = vector.load %arg12[%c2_200, %c9_201, %c0_202] : memref<10x24x32xbf16, #tpu.memory_space<vmem>>, vector<8x8x32xbf16>
    %154 = vector.shape_cast %153 : vector<8x8x32xbf16> to vector<64x32xbf16>
    %c8_203 = arith.constant 8 : index
    %c0_204 = arith.constant 0 : index
    %c0_205 = arith.constant 0 : index
    %155 = vector.load %arg4[%c8_203, %c0_204, %c0_205] : memref<9x32x32xbf16, #tpu.memory_space<vmem>>, vector<1x32x32xbf16>
    %156 = vector.shape_cast %155 : vector<1x32x32xbf16> to vector<32x32xbf16>
    %cst_206 = arith.constant dense<0.000000e+00> : vector<64x32xf32>
    %157 = tpu.matmul %154, %156, %cst_206 {dimension_numbers = #tpu.dot_dimension_numbers<[1], [0], [0], [1], [0, 0, 1, 1], [], []>} : vector<64x32xbf16>, vector<32x32xbf16>, vector<64x32xf32> -> vector<64x32xf32>
    %c0_207 = arith.constant 0 : index
    %c0_208 = arith.constant 0 : index
    %158 = vector.load %arg13[%c0_207, %c0_208] : memref<64x32xf32, #tpu.memory_space<vmem>>, vector<64x32xf32>
    %159 = arith.addf %158, %157 : vector<64x32xf32>
    %c0_209 = arith.constant 0 : index
    %c0_210 = arith.constant 0 : index
    %160 = vector.load %arg13[%c0_209, %c0_210] : memref<64x32xf32, #tpu.memory_space<vmem>>, vector<64x32xf32>
    tpu.vector_store %arg13[%c0_209, %c0_210], %159 {strides = array<i32>} : memref<64x32xf32, #tpu.memory_space<vmem>>, vector<64x32xf32>,
    %c0_211 = arith.constant 0 : index
    %c0_212 = arith.constant 0 : index
    %161 = vector.load %arg13[%c0_211, %c0_212] : memref<64x32xf32, #tpu.memory_space<vmem>>, vector<64x32xf32>
    %c0_213 = arith.constant 0 : index
    %c0_214 = arith.constant 0 : index
    %162 = vector.load %arg5[%c0_213, %c0_214] : memref<1x32xf32, #tpu.memory_space<vmem>>, vector<1x32xf32>
    %163 = vector.broadcast %162 : vector<1x32xf32> to vector<64x32xf32>
    %164 = arith.addf %161, %163 : vector<64x32xf32>
    %165 = arith.extf %88 : vector<64x32xbf16> to vector<64x32xf32>
    %166 = arith.addf %164, %165 : vector<64x32xf32>
    %cst_215 = arith.constant 0.000000e+00 : f32
    %167 = vector.broadcast %cst_215 : f32 to vector<64x32xf32>
    %168 = arith.maximumf %166, %167 : vector<64x32xf32>
    %169 = arith.truncf %168 : vector<64x32xf32> to vector<64x32xbf16>
    %170 = vector.shape_cast %169 : vector<64x32xbf16> to vector<8x8x32xbf16>
    %c1_216 = arith.constant 1 : index
    %c8_217 = arith.constant 8 : index
    %c0_218 = arith.constant 0 : index
    %171 = vector.load %arg12[%c1_216, %c8_217, %c0_218] : memref<10x24x32xbf16, #tpu.memory_space<vmem>>, vector<8x8x32xbf16>
    tpu.vector_store %arg12[%c1_216, %c8_217, %c0_218], %170 {strides = array<i32>} : memref<10x24x32xbf16, #tpu.memory_space<vmem>>, vector<8x8x32xbf16>,
    %c0_219 = arith.constant 0 : index
    %c7_220 = arith.constant 7 : index
    %c0_221 = arith.constant 0 : index
    %172 = vector.load %arg12[%c0_219, %c7_220, %c0_221] : memref<10x24x32xbf16, #tpu.memory_space<vmem>>, vector<8x8x32xbf16>
    %173 = vector.shape_cast %172 : vector<8x8x32xbf16> to vector<64x32xbf16>
    %c0_222 = arith.constant 0 : index
    %c0_223 = arith.constant 0 : index
    %c0_224 = arith.constant 0 : index
    %174 = vector.load %arg6[%c0_222, %c0_223, %c0_224] : memref<9x32x32xbf16, #tpu.memory_space<vmem>>, vector<1x32x32xbf16>
    %175 = vector.shape_cast %174 : vector<1x32x32xbf16> to vector<32x32xbf16>
    %cst_225 = arith.constant dense<0.000000e+00> : vector<64x32xf32>
    %176 = tpu.matmul %173, %175, %cst_225 {dimension_numbers = #tpu.dot_dimension_numbers<[1], [0], [0], [1], [0, 0, 1, 1], [], []>} : vector<64x32xbf16>, vector<32x32xbf16>, vector<64x32xf32> -> vector<64x32xf32>
    %c0_226 = arith.constant 0 : index
    %c0_227 = arith.constant 0 : index
    %177 = vector.load %arg13[%c0_226, %c0_227] : memref<64x32xf32, #tpu.memory_space<vmem>>, vector<64x32xf32>
    tpu.vector_store %arg13[%c0_226, %c0_227], %176 {strides = array<i32>} : memref<64x32xf32, #tpu.memory_space<vmem>>, vector<64x32xf32>,
    %c0_228 = arith.constant 0 : index
    %c8_229 = arith.constant 8 : index
    %c0_230 = arith.constant 0 : index
    %178 = vector.load %arg12[%c0_228, %c8_229, %c0_230] : memref<10x24x32xbf16, #tpu.memory_space<vmem>>, vector<8x8x32xbf16>
    %179 = vector.shape_cast %178 : vector<8x8x32xbf16> to vector<64x32xbf16>
    %c1_231 = arith.constant 1 : index
    %c0_232 = arith.constant 0 : index
    %c0_233 = arith.constant 0 : index
    %180 = vector.load %arg6[%c1_231, %c0_232, %c0_233] : memref<9x32x32xbf16, #tpu.memory_space<vmem>>, vector<1x32x32xbf16>
    %181 = vector.shape_cast %180 : vector<1x32x32xbf16> to vector<32x32xbf16>
    %cst_234 = arith.constant dense<0.000000e+00> : vector<64x32xf32>
    %182 = tpu.matmul %179, %181, %cst_234 {dimension_numbers = #tpu.dot_dimension_numbers<[1], [0], [0], [1], [0, 0, 1, 1], [], []>} : vector<64x32xbf16>, vector<32x32xbf16>, vector<64x32xf32> -> vector<64x32xf32>
    %c0_235 = arith.constant 0 : index
    %c0_236 = arith.constant 0 : index
    %183 = vector.load %arg13[%c0_235, %c0_236] : memref<64x32xf32, #tpu.memory_space<vmem>>, vector<64x32xf32>
    %184 = arith.addf %183, %182 : vector<64x32xf32>
    %c0_237 = arith.constant 0 : index
    %c0_238 = arith.constant 0 : index
    %185 = vector.load %arg13[%c0_237, %c0_238] : memref<64x32xf32, #tpu.memory_space<vmem>>, vector<64x32xf32>
    tpu.vector_store %arg13[%c0_237, %c0_238], %184 {strides = array<i32>} : memref<64x32xf32, #tpu.memory_space<vmem>>, vector<64x32xf32>,
    %c0_239 = arith.constant 0 : index
    %c9_240 = arith.constant 9 : index
    %c0_241 = arith.constant 0 : index
    %186 = vector.load %arg12[%c0_239, %c9_240, %c0_241] : memref<10x24x32xbf16, #tpu.memory_space<vmem>>, vector<8x8x32xbf16>
    %187 = vector.shape_cast %186 : vector<8x8x32xbf16> to vector<64x32xbf16>
    %c2_242 = arith.constant 2 : index
    %c0_243 = arith.constant 0 : index
    %c0_244 = arith.constant 0 : index
    %188 = vector.load %arg6[%c2_242, %c0_243, %c0_244] : memref<9x32x32xbf16, #tpu.memory_space<vmem>>, vector<1x32x32xbf16>
    %189 = vector.shape_cast %188 : vector<1x32x32xbf16> to vector<32x32xbf16>
    %cst_245 = arith.constant dense<0.000000e+00> : vector<64x32xf32>
    %190 = tpu.matmul %187, %189, %cst_245 {dimension_numbers = #tpu.dot_dimension_numbers<[1], [0], [0], [1], [0, 0, 1, 1], [], []>} : vector<64x32xbf16>, vector<32x32xbf16>, vector<64x32xf32> -> vector<64x32xf32>
    %c0_246 = arith.constant 0 : index
    %c0_247 = arith.constant 0 : index
    %191 = vector.load %arg13[%c0_246, %c0_247] : memref<64x32xf32, #tpu.memory_space<vmem>>, vector<64x32xf32>
    %192 = arith.addf %191, %190 : vector<64x32xf32>
    %c0_248 = arith.constant 0 : index
    %c0_249 = arith.constant 0 : index
    %193 = vector.load %arg13[%c0_248, %c0_249] : memref<64x32xf32, #tpu.memory_space<vmem>>, vector<64x32xf32>
    tpu.vector_store %arg13[%c0_248, %c0_249], %192 {strides = array<i32>} : memref<64x32xf32, #tpu.memory_space<vmem>>, vector<64x32xf32>,
    %c1_250 = arith.constant 1 : index
    %c7_251 = arith.constant 7 : index
    %c0_252 = arith.constant 0 : index
    %194 = vector.load %arg12[%c1_250, %c7_251, %c0_252] : memref<10x24x32xbf16, #tpu.memory_space<vmem>>, vector<8x8x32xbf16>
    %195 = vector.shape_cast %194 : vector<8x8x32xbf16> to vector<64x32xbf16>
    %c3_253 = arith.constant 3 : index
    %c0_254 = arith.constant 0 : index
    %c0_255 = arith.constant 0 : index
    %196 = vector.load %arg6[%c3_253, %c0_254, %c0_255] : memref<9x32x32xbf16, #tpu.memory_space<vmem>>, vector<1x32x32xbf16>
    %197 = vector.shape_cast %196 : vector<1x32x32xbf16> to vector<32x32xbf16>
    %cst_256 = arith.constant dense<0.000000e+00> : vector<64x32xf32>
    %198 = tpu.matmul %195, %197, %cst_256 {dimension_numbers = #tpu.dot_dimension_numbers<[1], [0], [0], [1], [0, 0, 1, 1], [], []>} : vector<64x32xbf16>, vector<32x32xbf16>, vector<64x32xf32> -> vector<64x32xf32>
    %c0_257 = arith.constant 0 : index
    %c0_258 = arith.constant 0 : index
    %199 = vector.load %arg13[%c0_257, %c0_258] : memref<64x32xf32, #tpu.memory_space<vmem>>, vector<64x32xf32>
    %200 = arith.addf %199, %198 : vector<64x32xf32>
    %c0_259 = arith.constant 0 : index
    %c0_260 = arith.constant 0 : index
    %201 = vector.load %arg13[%c0_259, %c0_260] : memref<64x32xf32, #tpu.memory_space<vmem>>, vector<64x32xf32>
    tpu.vector_store %arg13[%c0_259, %c0_260], %200 {strides = array<i32>} : memref<64x32xf32, #tpu.memory_space<vmem>>, vector<64x32xf32>,
    %c1_261 = arith.constant 1 : index
    %c8_262 = arith.constant 8 : index
    %c0_263 = arith.constant 0 : index
    %202 = vector.load %arg12[%c1_261, %c8_262, %c0_263] : memref<10x24x32xbf16, #tpu.memory_space<vmem>>, vector<8x8x32xbf16>
    %203 = vector.shape_cast %202 : vector<8x8x32xbf16> to vector<64x32xbf16>
    %c4_264 = arith.constant 4 : index
    %c0_265 = arith.constant 0 : index
    %c0_266 = arith.constant 0 : index
    %204 = vector.load %arg6[%c4_264, %c0_265, %c0_266] : memref<9x32x32xbf16, #tpu.memory_space<vmem>>, vector<1x32x32xbf16>
    %205 = vector.shape_cast %204 : vector<1x32x32xbf16> to vector<32x32xbf16>
    %cst_267 = arith.constant dense<0.000000e+00> : vector<64x32xf32>
    %206 = tpu.matmul %203, %205, %cst_267 {dimension_numbers = #tpu.dot_dimension_numbers<[1], [0], [0], [1], [0, 0, 1, 1], [], []>} : vector<64x32xbf16>, vector<32x32xbf16>, vector<64x32xf32> -> vector<64x32xf32>
    %c0_268 = arith.constant 0 : index
    %c0_269 = arith.constant 0 : index
    %207 = vector.load %arg13[%c0_268, %c0_269] : memref<64x32xf32, #tpu.memory_space<vmem>>, vector<64x32xf32>
    %208 = arith.addf %207, %206 : vector<64x32xf32>
    %c0_270 = arith.constant 0 : index
    %c0_271 = arith.constant 0 : index
    %209 = vector.load %arg13[%c0_270, %c0_271] : memref<64x32xf32, #tpu.memory_space<vmem>>, vector<64x32xf32>
    tpu.vector_store %arg13[%c0_270, %c0_271], %208 {strides = array<i32>} : memref<64x32xf32, #tpu.memory_space<vmem>>, vector<64x32xf32>,
    %c1_272 = arith.constant 1 : index
    %c9_273 = arith.constant 9 : index
    %c0_274 = arith.constant 0 : index
    %210 = vector.load %arg12[%c1_272, %c9_273, %c0_274] : memref<10x24x32xbf16, #tpu.memory_space<vmem>>, vector<8x8x32xbf16>
    %211 = vector.shape_cast %210 : vector<8x8x32xbf16> to vector<64x32xbf16>
    %c5_275 = arith.constant 5 : index
    %c0_276 = arith.constant 0 : index
    %c0_277 = arith.constant 0 : index
    %212 = vector.load %arg6[%c5_275, %c0_276, %c0_277] : memref<9x32x32xbf16, #tpu.memory_space<vmem>>, vector<1x32x32xbf16>
    %213 = vector.shape_cast %212 : vector<1x32x32xbf16> to vector<32x32xbf16>
    %cst_278 = arith.constant dense<0.000000e+00> : vector<64x32xf32>
    %214 = tpu.matmul %211, %213, %cst_278 {dimension_numbers = #tpu.dot_dimension_numbers<[1], [0], [0], [1], [0, 0, 1, 1], [], []>} : vector<64x32xbf16>, vector<32x32xbf16>, vector<64x32xf32> -> vector<64x32xf32>
    %c0_279 = arith.constant 0 : index
    %c0_280 = arith.constant 0 : index
    %215 = vector.load %arg13[%c0_279, %c0_280] : memref<64x32xf32, #tpu.memory_space<vmem>>, vector<64x32xf32>
    %216 = arith.addf %215, %214 : vector<64x32xf32>
    %c0_281 = arith.constant 0 : index
    %c0_282 = arith.constant 0 : index
    %217 = vector.load %arg13[%c0_281, %c0_282] : memref<64x32xf32, #tpu.memory_space<vmem>>, vector<64x32xf32>
    tpu.vector_store %arg13[%c0_281, %c0_282], %216 {strides = array<i32>} : memref<64x32xf32, #tpu.memory_space<vmem>>, vector<64x32xf32>,
    %c2_283 = arith.constant 2 : index
    %c7_284 = arith.constant 7 : index
    %c0_285 = arith.constant 0 : index
    %218 = vector.load %arg12[%c2_283, %c7_284, %c0_285] : memref<10x24x32xbf16, #tpu.memory_space<vmem>>, vector<8x8x32xbf16>
    %219 = vector.shape_cast %218 : vector<8x8x32xbf16> to vector<64x32xbf16>
    %c6_286 = arith.constant 6 : index
    %c0_287 = arith.constant 0 : index
    %c0_288 = arith.constant 0 : index
    %220 = vector.load %arg6[%c6_286, %c0_287, %c0_288] : memref<9x32x32xbf16, #tpu.memory_space<vmem>>, vector<1x32x32xbf16>
    %221 = vector.shape_cast %220 : vector<1x32x32xbf16> to vector<32x32xbf16>
    %cst_289 = arith.constant dense<0.000000e+00> : vector<64x32xf32>
    %222 = tpu.matmul %219, %221, %cst_289 {dimension_numbers = #tpu.dot_dimension_numbers<[1], [0], [0], [1], [0, 0, 1, 1], [], []>} : vector<64x32xbf16>, vector<32x32xbf16>, vector<64x32xf32> -> vector<64x32xf32>
    %c0_290 = arith.constant 0 : index
    %c0_291 = arith.constant 0 : index
    %223 = vector.load %arg13[%c0_290, %c0_291] : memref<64x32xf32, #tpu.memory_space<vmem>>, vector<64x32xf32>
    %224 = arith.addf %223, %222 : vector<64x32xf32>
    %c0_292 = arith.constant 0 : index
    %c0_293 = arith.constant 0 : index
    %225 = vector.load %arg13[%c0_292, %c0_293] : memref<64x32xf32, #tpu.memory_space<vmem>>, vector<64x32xf32>
    tpu.vector_store %arg13[%c0_292, %c0_293], %224 {strides = array<i32>} : memref<64x32xf32, #tpu.memory_space<vmem>>, vector<64x32xf32>,
    %c2_294 = arith.constant 2 : index
    %c8_295 = arith.constant 8 : index
    %c0_296 = arith.constant 0 : index
    %226 = vector.load %arg12[%c2_294, %c8_295, %c0_296] : memref<10x24x32xbf16, #tpu.memory_space<vmem>>, vector<8x8x32xbf16>
    %227 = vector.shape_cast %226 : vector<8x8x32xbf16> to vector<64x32xbf16>
    %c7_297 = arith.constant 7 : index
    %c0_298 = arith.constant 0 : index
    %c0_299 = arith.constant 0 : index
    %228 = vector.load %arg6[%c7_297, %c0_298, %c0_299] : memref<9x32x32xbf16, #tpu.memory_space<vmem>>, vector<1x32x32xbf16>
    %229 = vector.shape_cast %228 : vector<1x32x32xbf16> to vector<32x32xbf16>
    %cst_300 = arith.constant dense<0.000000e+00> : vector<64x32xf32>
    %230 = tpu.matmul %227, %229, %cst_300 {dimension_numbers = #tpu.dot_dimension_numbers<[1], [0], [0], [1], [0, 0, 1, 1], [], []>} : vector<64x32xbf16>, vector<32x32xbf16>, vector<64x32xf32> -> vector<64x32xf32>
    %c0_301 = arith.constant 0 : index
    %c0_302 = arith.constant 0 : index
    %231 = vector.load %arg13[%c0_301, %c0_302] : memref<64x32xf32, #tpu.memory_space<vmem>>, vector<64x32xf32>
    %232 = arith.addf %231, %230 : vector<64x32xf32>
    %c0_303 = arith.constant 0 : index
    %c0_304 = arith.constant 0 : index
    %233 = vector.load %arg13[%c0_303, %c0_304] : memref<64x32xf32, #tpu.memory_space<vmem>>, vector<64x32xf32>
    tpu.vector_store %arg13[%c0_303, %c0_304], %232 {strides = array<i32>} : memref<64x32xf32, #tpu.memory_space<vmem>>, vector<64x32xf32>,
    %c2_305 = arith.constant 2 : index
    %c9_306 = arith.constant 9 : index
    %c0_307 = arith.constant 0 : index
    %234 = vector.load %arg12[%c2_305, %c9_306, %c0_307] : memref<10x24x32xbf16, #tpu.memory_space<vmem>>, vector<8x8x32xbf16>
    %235 = vector.shape_cast %234 : vector<8x8x32xbf16> to vector<64x32xbf16>
    %c8_308 = arith.constant 8 : index
    %c0_309 = arith.constant 0 : index
    %c0_310 = arith.constant 0 : index
    %236 = vector.load %arg6[%c8_308, %c0_309, %c0_310] : memref<9x32x32xbf16, #tpu.memory_space<vmem>>, vector<1x32x32xbf16>
    %237 = vector.shape_cast %236 : vector<1x32x32xbf16> to vector<32x32xbf16>
    %cst_311 = arith.constant dense<0.000000e+00> : vector<64x32xf32>
    %238 = tpu.matmul %235, %237, %cst_311 {dimension_numbers = #tpu.dot_dimension_numbers<[1], [0], [0], [1], [0, 0, 1, 1], [], []>} : vector<64x32xbf16>, vector<32x32xbf16>, vector<64x32xf32> -> vector<64x32xf32>
    %c0_312 = arith.constant 0 : index
    %c0_313 = arith.constant 0 : index
    %239 = vector.load %arg13[%c0_312, %c0_313] : memref<64x32xf32, #tpu.memory_space<vmem>>, vector<64x32xf32>
    %240 = arith.addf %239, %238 : vector<64x32xf32>
    %c0_314 = arith.constant 0 : index
    %c0_315 = arith.constant 0 : index
    %241 = vector.load %arg13[%c0_314, %c0_315] : memref<64x32xf32, #tpu.memory_space<vmem>>, vector<64x32xf32>
    tpu.vector_store %arg13[%c0_314, %c0_315], %240 {strides = array<i32>} : memref<64x32xf32, #tpu.memory_space<vmem>>, vector<64x32xf32>,
    %c0_316 = arith.constant 0 : index
    %c0_317 = arith.constant 0 : index
    %242 = vector.load %arg13[%c0_316, %c0_317] : memref<64x32xf32, #tpu.memory_space<vmem>>, vector<64x32xf32>
    %c0_318 = arith.constant 0 : index
    %c0_319 = arith.constant 0 : index
    %243 = vector.load %arg7[%c0_318, %c0_319] : memref<1x32xf32, #tpu.memory_space<vmem>>, vector<1x32xf32>
    %244 = vector.broadcast %243 : vector<1x32xf32> to vector<64x32xf32>
    %245 = arith.addf %242, %244 : vector<64x32xf32>
    %246 = arith.extf %169 : vector<64x32xbf16> to vector<64x32xf32>
    %247 = arith.addf %245, %246 : vector<64x32xf32>
    %cst_320 = arith.constant 0.000000e+00 : f32
    %248 = vector.broadcast %cst_320 : f32 to vector<64x32xf32>
    %249 = arith.maximumf %247, %248 : vector<64x32xf32>
    %c0_321 = arith.constant 0 : index
    %c0_322 = arith.constant 0 : index
    %250 = vector.load %arg8[%c0_321, %c0_322] : memref<1x32xf32, #tpu.memory_space<vmem>>, vector<1x32xf32>
    %251 = vector.broadcast %250 : vector<1x32xf32> to vector<64x32xf32>
    %252 = arith.mulf %249, %251 : vector<64x32xf32>
    %cst_323 = arith.constant dense<0.000000e+00> : vector<64xf32>
    %253 = vector.multi_reduction <add>, %252, %cst_323 [1] : vector<64x32xf32> to vector<64xf32>
    %254 = vector.shape_cast %253 : vector<64xf32> to vector<64x1xf32>
    %c0_324 = arith.constant 0 : index
    %c0_325 = arith.constant 0 : index
    %255 = vector.load %arg9[%c0_324, %c0_325] : memref<1x1xf32, #tpu.memory_space<vmem>>, vector<1x1xf32>
    %256 = vector.broadcast %255 : vector<1x1xf32> to vector<64x1xf32>
    %257 = arith.addf %254, %256 : vector<64x1xf32>
    %258 = arith.negf %257 : vector<64x1xf32>
    %259 = math.exp %258 : vector<64x1xf32>
    %cst_326 = arith.constant 1.000000e+00 : f32
    %260 = vector.broadcast %cst_326 : f32 to vector<64x1xf32>
    %261 = arith.addf %260, %259 : vector<64x1xf32>
    %262 = arith.divf %260, %261 : vector<64x1xf32>
    %c0_327 = arith.constant 0 : index
    %c0_328 = arith.constant 0 : index
    %c0_329 = arith.constant 0 : index
    %263 = vector.load %arg11[%c0_327, %c0_328, %c0_329] : memref<1x64x1xf32, #tpu.memory_space<vmem>>, vector<1x64x1xf32>
    %264 = vector.shape_cast %263 : vector<1x64x1xf32> to vector<64x1xf32>
    %265 = vector.shape_cast %262 : vector<64x1xf32> to vector<1x64x1xf32>
    tpu.vector_store %arg11[%c0_327, %c0_328, %c0_329], %265 {strides = array<i32>} : memref<1x64x1xf32, #tpu.memory_space<vmem>>, vector<1x64x1xf32>,
    %266 = vector.broadcast %262 : vector<64x1xf32> to vector<64x32xf32>
    %267 = arith.mulf %249, %266 : vector<64x32xf32>
    %268 = vector.shape_cast %267 : vector<64x32xf32> to vector<8x8x32xf32>
    %269 = arith.truncf %268 : vector<8x8x32xf32> to vector<8x8x32xbf16>
    %c0_330 = arith.constant 0 : index
    %c0_331 = arith.constant 0 : index
    %c0_332 = arith.constant 0 : index
    %c0_333 = arith.constant 0 : index
    %270 = vector.load %arg10[%c0_330, %c0_331, %c0_332, %c0_333] : memref<1x8x8x32xbf16, #tpu.memory_space<vmem>>, vector<1x8x8x32xbf16>
    %271 = vector.shape_cast %270 : vector<1x8x8x32xbf16> to vector<8x8x32xbf16>
    %272 = vector.shape_cast %269 : vector<8x8x32xbf16> to vector<1x8x8x32xbf16>
    tpu.vector_store %arg10[%c0_330, %c0_331, %c0_332, %c0_333], %272 {strides = array<i32>} : memref<1x8x8x32xbf16, #tpu.memory_space<vmem>>, vector<1x8x8x32xbf16>,
    return
  }
  func.func @transform_0(%arg0: i32) -> (i32, i32, i32, i32) {
    %c0_i32 = arith.constant 0 : i32
    %c0_i32_0 = arith.constant 0 : i32
    %c0_i32_1 = arith.constant 0 : i32
    %c0_i32_2 = arith.constant 0 : i32
    return %arg0, %c0_i32, %c0_i32_0, %c0_i32_1 : i32, i32, i32, i32
  }
  func.func @transform_1(%arg0: i32) -> (i32, i32, i32) {
    %c0_i32 = arith.constant 0 : i32
    %c0_i32_0 = arith.constant 0 : i32
    %c0_i32_1 = arith.constant 0 : i32
    %c0_i32_2 = arith.constant 0 : i32
    return %c0_i32, %c0_i32_0, %c0_i32_1 : i32, i32, i32
  }
  func.func @transform_2(%arg0: i32) -> (i32, i32) {
    %c0_i32 = arith.constant 0 : i32
    %c0_i32_0 = arith.constant 0 : i32
    %c0_i32_1 = arith.constant 0 : i32
    return %c0_i32, %c0_i32_0 : i32, i32
  }
  func.func @transform_3(%arg0: i32) -> (i32, i32, i32) {
    %c0_i32 = arith.constant 0 : i32
    %c0_i32_0 = arith.constant 0 : i32
    %c0_i32_1 = arith.constant 0 : i32
    %c0_i32_2 = arith.constant 0 : i32
    return %c0_i32, %c0_i32_0, %c0_i32_1 : i32, i32, i32
  }
  func.func @transform_4(%arg0: i32) -> (i32, i32) {
    %c0_i32 = arith.constant 0 : i32
    %c0_i32_0 = arith.constant 0 : i32
    %c0_i32_1 = arith.constant 0 : i32
    return %c0_i32, %c0_i32_0 : i32, i32
  }
  func.func @transform_5(%arg0: i32) -> (i32, i32, i32) {
    %c0_i32 = arith.constant 0 : i32
    %c0_i32_0 = arith.constant 0 : i32
    %c0_i32_1 = arith.constant 0 : i32
    %c0_i32_2 = arith.constant 0 : i32
    return %c0_i32, %c0_i32_0, %c0_i32_1 : i32, i32, i32
  }
  func.func @transform_6(%arg0: i32) -> (i32, i32) {
    %c0_i32 = arith.constant 0 : i32
    %c0_i32_0 = arith.constant 0 : i32
    %c0_i32_1 = arith.constant 0 : i32
    return %c0_i32, %c0_i32_0 : i32, i32
  }
  func.func @transform_7(%arg0: i32) -> (i32, i32) {
    %c0_i32 = arith.constant 0 : i32
    %c0_i32_0 = arith.constant 0 : i32
    %c0_i32_1 = arith.constant 0 : i32
    return %c0_i32, %c0_i32_0 : i32, i32
  }
  func.func @transform_8(%arg0: i32) -> (i32, i32) {
    %c0_i32 = arith.constant 0 : i32
    %c0_i32_0 = arith.constant 0 : i32
    %c0_i32_1 = arith.constant 0 : i32
    return %c0_i32, %c0_i32_0 : i32, i32
  }
  func.func @transform_9(%arg0: i32) -> (i32, i32, i32, i32) {
    %c0_i32 = arith.constant 0 : i32
    %c0_i32_0 = arith.constant 0 : i32
    %c0_i32_1 = arith.constant 0 : i32
    %c0_i32_2 = arith.constant 0 : i32
    return %arg0, %c0_i32, %c0_i32_0, %c0_i32_1 : i32, i32, i32, i32
  }
  func.func @transform_10(%arg0: i32) -> (i32, i32, i32) {
    %c0_i32 = arith.constant 0 : i32
    %c0_i32_0 = arith.constant 0 : i32
    %c0_i32_1 = arith.constant 0 : i32
    return %arg0, %c0_i32, %c0_i32_0 : i32, i32, i32
  }
}

</mosaic_0001>

<bundles_post_ra>
// kernel: tpu_custom_call.1
= control target key start
LH: loop header
LB: loop body
LE: loop exit
PB: predicated region body
PF: predicated region fallthrough
CT: control target
= control target key end

     0   :  { %s8341_s0 = inlined_call_operand.hbm [shape: bf16[2,8,8,32], index: 0, kind: input, shape index: {}]   ;;  %s8342_s1 = inlined_call_operand.hbm [shape: bf16[9,32,32], index: 1, kind: input, shape index: {}]   ;;  %s8343_s2 = inlined_call_operand.vmem [shape: f32[1,32], index: 2, kind: input, shape index: {}]   ;;  %s8344_s3 = inlined_call_operand.hbm [shape: bf16[9,32,32], index: 3, kind: input, shape index: {}]   ;;  %s8345_s4 = inlined_call_operand.vmem [shape: f32[1,32], index: 4, kind: input, shape index: {}]   ;;  %s8346_s5 = inlined_call_operand.hbm [shape: bf16[9,32,32], index: 5, kind: input, shape index: {}]   ;;  %s8347_s6 = inlined_call_operand.vmem [shape: f32[1,32], index: 6, kind: input, shape index: {}]   ;;  %s8348_s7 = inlined_call_operand.vmem [shape: f32[1,32], index: 7, kind: input, shape index: {}]   ;;  %s8349_s8 = inlined_call_operand.<no memory space> [shape: f32[1,1], index: 8, kind: input, shape index: {}]   ;;  %s8350_s9 = inlined_call_operand.hbm [shape: bf16[2,8,8,32], index: 9, kind: output, shape index: {0}]   ;;  %s8351_s10 = inlined_call_operand.vmem [shape: f32[2,64,1], index: 10, kind: output, shape index: {1}]  }
   0x1   :  { %8354 = sst [smem:[#allocation18_spill]] %s8342_s1  ;;  %v16_v0 = vstv %s8349_s8 }
   0x2   :  { %8355 = sst [smem:[#allocation19_spill]] %s8344_s3  ;;  %17 = vst [vmem:[#allocation4] sm:$0x1] %v16_v0 }
   0x3   :  { %8356 = sst [smem:[#allocation20_spill]] %s8346_s5 }
   0x4   :  { %18 = vsyncpa [#allocation6], 0 }
   0x5   :  { %20 = vsyncpa [#allocation6 + $0x1], 0 }
   0x6   :  { %21 = vsyncpa [#allocation9], 0 }
   0x7   :  { %22 = vsyncpa [#allocation12], 0 }
   0x8   :  { %23 = vsyncpa [#allocation7], 0 }
   0x9   :  { %25 = vsyncpa [#allocation7 + $0x1], 0  ;;  %s7036_s15 = smov 0   ;;  %s7038_s16 = smov 0  }
   0xa   :  { %s7040_s17 = smov 0   ;;  %s7042_s18 = smov 0  }
   0xb LB: > { %s7057_s8 = sadd.s32 4294967295, %s6968_s18   ;;  %s5983_s19 = sadd.s32 4294967294, %s6968_s18   ;;  %s6968_s18 = sphi %s7042_s18, %s8380_s18   ;;  %s6964_s17 = sphi %s7040_s17, %s8379_s17   ;;  %s6960_s16 = sphi %s7038_s16, %s8378_s16   ;;  %s6956_s15 = sphi %s7036_s15, %s8377_s15  }
   0xc   : > { %p51_p0 = scmp.ne.s32.totalorder %s6960_s16, %s6956_s15  ;;  %p52_p1 = scmp.eq.s32.totalorder %s7057_s8, 0 }
   0xd   : > { %p243_p2 = scmp.eq.s32.totalorder %s7057_s8, 1  ;;  %p249_p3 = scmp.eq.s32.totalorder %s5983_s19, 1 }
   0xe   : > { %p7066_p4 = por %p52_p1, %p51_p0  ;;  %p5984_p5 = scmp.ge.s32.totalorder %s6968_s18, 1 }
   0xf   : > { %p7071_p6 = por %p249_p3, %p51_p0  ;;  %p282_p7 = scmp.lt.s32.totalorder %s6968_s18, 3 }
  0x10   : > { %s8359_s1 = sld [smem:[#allocation18_spill]]  ;;  %s6970_s26 = smov [#allocation8]  }
  0x11   : > { %p7079_p8 = pnand %p5984_p5, %p282_p7  ;;  %s295_s27 = sshll.u32 %s6970_s26, 4  ;;  %s296_s27 = int_to_ptr.vmem [resolvable:$true] %s295_s27 }
  0x12   : > { %s8362_s3 = sld [smem:[#allocation19_spill]]  ;;  %s8352_s12 = smov 64  }
  0x13   : > { %p6668_p9 = pneg %p7079_p8  ;;  %s8353_s13 = smov 4  }
  0x14   : > { %s6973_s14 = smov [#allocation10]   ;;  %s8363_s5 = sld [smem:[#allocation20_spill]] }
  0x15   : > { %p7087_p10 = pnand %p6668_p9, %p52_p1  ;;  %s312_s19 = sshll.u32 %s6973_s14, 4  ;;  %s313_s19 = int_to_ptr.vmem [resolvable:$true] %s312_s19 }
  0x16   : > { %s293_s24 = sshll.u32 %s8359_s1, 4  ;;  %s7109_s29 = sadd.s32 1, %s6968_s18   ;;  %s294_s24 = int_to_ptr.hbm [resolvable:$true] %s293_s24 }
  0x17   : > { %6671 = dma.hbm_to_vmem [thread:$0]  (!%p7087_p10), %s294_s24, 2304, %s296_s27, [#allocation9], %s8352_s12, %s8352_s12, %s8353_s13  }
  0x18   : > { %s310_s11 = sshll.u32 %s8362_s3, 4  ;;  %s6974_s24 = smov [#allocation11]   ;;  %s311_s11 = int_to_ptr.hbm [resolvable:$true] %s310_s11 }
  0x19   : > { %6674 = dma.hbm_to_vmem [thread:$0]  (!%p7087_p10), %s311_s11, 2304, %s313_s19, [#allocation9], %s8352_s12, %s8352_s12, %s8353_s13  }
  0x1a   : > { %s327_s26 = sshll.u32 %s8363_s5, 4  ;;  %s329_s27 = sshll.u32 %s6974_s24, 4  ;;  %s328_s26 = int_to_ptr.hbm [resolvable:$true] %s327_s26  ;;  %s330_s27 = int_to_ptr.vmem [resolvable:$true] %s329_s27 }
  0x1b   : > { %6677 = dma.hbm_to_vmem [thread:$0]  (!%p7087_p10), %s328_s26, 2304, %s330_s27, [#allocation12], %s8352_s12, %s8352_s12, %s8353_s13  }
  0x1c   : > { %s35_s30 = ssub.s32 %s6968_s18, %s7109_s29  ;;  %s38_s14 = sadd.s32 1, %s6964_s17 }
  0x1d   : > { %p36_p12 = scmp.eq.s32.totalorder %s35_s30, 0  ;;  %p45_p13 = scmp.ne.s32.totalorder %s6964_s17, %s6960_s16 }
  0x1e   : > { %p46_p0 = scmp.eq.s32.totalorder %s6968_s18, 0  ;;  %p6689_p5 = scmp.lt.s32.totalorder %s6968_s18, 2 }
  0x1f   : > { %s7123_s22 = scalar_select %p36_p12, %s6964_s17, %s38_s14  }
  0x20   : > { %p7127_p3 = por %p243_p2, %p45_p13  ;;  %s352_s19 = sand.u32 1, %s6964_s17  }
  0x21   : > { %s6553_s28 = sshll.u32 %s6968_s18, 5  ;;  %p47_p7 = por %p46_p0, %p45_p13 }
  0x22   : > { %s5989_s23 = sshll.u32 %s352_s19, 5  ;;  %s361_s26 = scalar_lea.hbm %s8341_s0, %s6553_s28 }
  0x23   : > { %s362_s27 = sshll.u32 %s361_s26, 4  ;;  %s356_s30 = scalar_lea.vmem [#allocation5], %s5989_s23  ;;  %s363_s27 = int_to_ptr.hbm [resolvable:$true] %s362_s27 }
  0x24   : > { %s364_s12 = sshll.u32 %s356_s30, 4  ;;  %p7137_p9 = pnand %p6689_p5, %p47_p7  ;;  %s365_s12 = int_to_ptr.vmem [resolvable:$true] %s364_s12 }
  0x25   : > { %s353_s13 = scalar_lea.sflag [#allocation6], %s352_s19  ;;  %s6864_s3 = sshra.s32 %s363_s27, 4  ;;  %s6865_s3 = int_to_ptr.hbm [resolvable:$true] %s6864_s3 }
  0x26   : > { %s6866_s5 = scalar_lea.hbm %s6865_s3, 32  ;;  %p6868_p10 = pneg %p7137_p9 }
  0x27   : > { %p6867_p2 = scmp.ne.s32.totalorder %s6865_s3, %s6866_s5  ;;  %s6871_s23 = scalar_lea.hbm %s8341_s0, 64 }
  0x28   : > { %p6872_p0 = scmp.lt.s32.totalorder %s6865_s3, %s8341_s0  ;;  %p6873_p5 = scmp.lt.s32.totalorder %s6871_s23, %s6866_s5 }
  0x29   : > { %p6869_p12 = pnand %p6868_p10, %p6867_p2 }
  0x2a   : > { %p6874_p7 = por %p6873_p5, %p6872_p0 }
  0x2b   : > { %p6870_p13 = pneg %p6869_p12 }
  0x2d   : > { %p6875_p11 = pnand %p6874_p7, %p6870_p13 }
  0x2f   : > { %6878 = shalt.err (!%p6875_p11)
}
  0x30   : > { %s8366_s19 = smov 4   ;;  %s8367_s30 = smov 64  }
  0x31   : > { %6681 = dma.hbm_to_vmem [thread:$0]  (!%p7137_p9), %s363_s27, 512, %s365_s12, %s353_s13, %s8367_s30, %s8367_s30, %s8366_s19  }
  0x32   : > { %376 = sbr.rel (%p7079_p8) target bundleno = 1281 (0x501), region = 56  ;;  %s7157_s1 = sand.u32 (!%p7079_p8), 1, %s6960_s16  }
  0x33   : > { %s5993_s3 = sshll.u32 (!%p7079_p8), %s7157_s1, 5  ;;  %s379_s5 = scalar_lea.sflag (!%p7079_p8), [#allocation6], %s7157_s1 }
  0x34   : > { %s7163_s28 = scalar_lea.vmem (!%p7079_p8), [#allocation5], %s5993_s3 }
  0x37   : > { %6939 = dma.done.wait (%p7066_p4), %s379_s5, 512  }
  0x38   : > { %6941 = vsyncadd (%p7066_p4), %s379_s5, 4294966784 }
  0x39   : > { %6943 = dma.done.wait (%p52_p1), [#allocation9], 4608  }
  0x3a   : > { %6945 = vsyncadd (%p52_p1), [#allocation9], 4294962688 }
  0x3b   : > { %6947 = dma.done.wait (%p52_p1), [#allocation12], 2304  }
  0x3c   : > { %6949 = vsyncadd (%p52_p1), [#allocation12], 4294964992  ;;  %vm446_vm0 = vcmask 257024   ;;  %v6975_v1 = vmov 0   ;;  %vm455_vm1 = vcmask 257027   ;;  %v6556_v3 = vld [vmem:[#allocation8 + $0x8] sm:$0xff] }
  0x3d   : > { %447 = vst.msk [vmem:[#allocation2] sm:$0xf] %vm446_vm0, %v6975_v1  ;;  %6734 = vset.pattern.permute.xlu2 %v6975_v1  ;;  %6735 = vset.pattern.permute.xlu0 %v6975_v1  ;;  %vm456_vm2 = vsmask.f32 7950  ;;  %vm483_vm4 = vsmask.f32 256 }
  0x3e   : > { %448 = vst.msk [vmem:[#allocation2 + $0x4] sm:$0xf] %vm446_vm0, %v6975_v1  ;;  %6736 = vset.pattern.permute.xlu1 %v6975_v1  ;;  %vm7181_vm3 = vmand %vm455_vm1, %vm456_vm2  ;;  %v458_v4 = vld [vmem:[#allocation2 + $0xc] sm:$0x8]  ;;  %vm541_vm5 = vsmask.f32 4368  ;;  %694 = vmatpush.bf16.msra.mxu0 %v6556_v3 }
  0x3f   : > { %449 = vst.msk [vmem:[#allocation2 + $0x8] sm:$0xf] %vm446_vm0, %v6975_v1  ;;  %v6555_v5 = vld [vmem:[#allocation8] sm:$0xff]  ;;  %v459_v6 = vsel %vm7181_vm3, 0, %v458_v4  ;;  %6646 = vmatpush.bf16.msra.mxu3 %v6556_v3  ;;  %v6562_v11 = vld [vmem:[#allocation8 + $0x18] sm:$0xff]  ;;  %v6561_v23 = vld [vmem:[#allocation8 + $0x10] sm:$0xff] }
  0x40   : > { %451 = vst.msk [vmem:[#allocation2 + $0x6c] sm:$0xf] %vm446_vm0, %v6975_v1  ;;  %v7190_v7 = vld [vmem:[%s7163_s28] sm:$0xf]  ;;  %v6566_v14 = vld [vmem:[#allocation8 + $0x38] sm:$0xff]  ;;  %6648 = vmatpush.bf16.msra.mxu1 %v6562_v11  ;;  %v7204_v24 = vld [vmem:[#allocation8 + $0x28] sm:$0xff] }
  0x41   : > { %452 = vst.msk [vmem:[#allocation2 + $0x70] sm:$0xf] %vm446_vm0, %v6975_v1  ;;  %v461_v13 = vld [vmem:[#allocation2 + $0x18] sm:$0x8]  ;;  %v464_v17 = vld [vmem:[#allocation2 + $0x24] sm:$0x8]  ;;  %6650 = vmatpush.bf16.msra.mxu2 %v7204_v24  ;;  %vm7225_vm6 = vmor %vm483_vm4, %vm541_vm5 }
  0x42   : > { %453 = vst.msk [vmem:[#allocation2 + $0x74] sm:$0xf] %vm446_vm0, %v6975_v1  ;;  %v462_v16 = vsel %vm7181_vm3, 0, %v461_v13  ;;  %v7197_v18 = vld [vmem:[%s7163_s28 + $0x4] sm:$0xf]  ;;  %v465_v20 = vsel %vm7181_vm3, 0, %v464_v17  ;;  %695 = vmatpush.bf16.msra.mxu0 %v6555_v5 }
  0x43   : > { %460 = vst [vmem:[#allocation2 + $0xc] sm:$0x8] %v459_v6  ;;  %v7202_v21 = vld [vmem:[%s7163_s28 + $0x8] sm:$0xf]  ;;  %6647 = vmatpush.bf16.msra.mxu3 %v6555_v5  ;;  %v7206_v25 = vld [vmem:[#allocation8 + $0x20] sm:$0xff]  ;;  %v6565_v40 = vld [vmem:[#allocation8 + $0x30] sm:$0xff] }
  0x44   : > { %v525_v8 = vld [vmem:[#allocation2] sm:$0x8]  ;;  %517 = vst.msk [vmem:[#allocation2 + $0x10] sm:$0xf] %vm446_vm0, %v7190_v7  ;;  %v467_v26 = vld [vmem:[#allocation2 + $0x30] sm:$0x8]  ;;  %6649 = vmatpush.bf16.msra.mxu1 %v6561_v23 }
  0x45   : > { %v526_v9 = vld [vmem:[#allocation2 + $0x4] sm:$0xf]  ;;  %v544_v10 = vshrl.u32 %v525_v8, 16  ;;  %463 = vst [vmem:[#allocation2 + $0x18] sm:$0x8] %v462_v16  ;;  %v468_v28 = vsel %vm7181_vm3, 0, %v467_v26  ;;  %6651 = vmatpush.bf16.msra.mxu2 %v7206_v25 }
  0x46   : > { %v549_v12 = vshrl.u32 %v526_v9, 16  ;;  %v552_v15 = vshll.u32 %v526_v9, 16  ;;  %466 = vst [vmem:[#allocation2 + $0x24] sm:$0x8] %v465_v20  ;;  %788 = vmatpush.bf16.msrb.mxu0 %v6562_v11  ;;  %v470_v27 = vld [vmem:[#allocation2 + $0x3c] sm:$0x8] }
  0x47   : > { %v6000_v22 = vrot.slane %v544_v10, 11  ;;  %518 = vst.msk [vmem:[#allocation2 + $0x1c] sm:$0xf] %vm446_vm0, %v7197_v18  ;;  %1227 = vmatpush.bf16.msrb.mxu3 %v6566_v14  ;;  %v471_v29 = vsel %vm7181_vm3, 0, %v470_v27  ;;  %v7218_v30 = vld [vmem:[%s7163_s28 + $0xc] sm:$0xf] }
  0x48   : > { %v551_v19 = vrot.slane %v549_v12, 7  ;;  %519 = vst.msk [vmem:[#allocation2 + $0x28] sm:$0xf] %vm446_vm0, %v7202_v21  ;;  %v7221_v33 = vld [vmem:[%s7163_s28 + $0x10] sm:$0xf]  ;;  %vm675_vm7 = vcmask 261120  }
  0x49   : > { %469 = vst [vmem:[#allocation2 + $0x30] sm:$0x8] %v468_v28  ;;  %vm482_vm8 = vcmask 253952   ;;  %v488_v12 = vld [vmem:[#allocation2 + $0x20] sm:$0x1]  ;;  %p440_p1 = scmp.lt.s32.totalorder %s7057_s8, 1 }
  0x4a   : > { %v527_v31 = vld [vmem:[#allocation2 + $0xc] sm:$0x8]  ;;  %v554_v32 = vor.u32 %v552_v15, %v551_v19  ;;  %472 = vst [vmem:[#allocation2 + $0x3c] sm:$0x8] %v471_v29  ;;  %789 = vmatpush.bf16.msrb.mxu0 %v6561_v23  ;;  %vm7241_vm9 = vmand %vm482_vm8, %vm483_vm4  ;;  %v491_v17 = vld [vmem:[#allocation2 + $0x2c] sm:$0x1] }
  0x4b   : > { %v528_v34 = vld [vmem:[#allocation2 + $0x10] sm:$0xf]  ;;  %v557_v36 = vshrl.u32 %v527_v31, 16  ;;  %520 = vst.msk [vmem:[#allocation2 + $0x34] sm:$0xf] %vm446_vm0, %v7218_v30  ;;  %1228 = vmatpush.bf16.msrb.mxu3 %v6565_v40  ;;  %v489_v29 = vsel %vm7241_vm9, 0, %v488_v12 }
  0x4c   : > { %v562_v37 = vshrl.u32 %v528_v34, 16  ;;  %v565_v38 = vshll.u32 %v528_v34, 16  ;;  %v529_v39 = vld [vmem:[#allocation2 + $0x18] sm:$0x8]  ;;  %521 = vst.msk [vmem:[#allocation2 + $0x40] sm:$0xf] %vm446_vm0, %v7221_v33  ;;  %v555_v41 = vsel %vm7225_vm6, %v6000_v22, %v554_v32 }
  0x4d   : > { %v6001_v42 = vrot.slane %v557_v36, 11  ;;  %v531_v44 = vld [vmem:[#allocation2 + $0x24] sm:$0x8]  ;;  %v570_v45 = vshrl.u32 %v529_v39, 16  ;;  %v651_v53 = vunpack.c.l.b16 %v555_v41  ;;  %v492_v31 = vsel %vm7241_vm9, 0, %v491_v17  ;;  %s441_s26 = scalar_select %p440_p1, %s7057_s8, 1 }
  0x4e   : > { %v564_v43 = vrot.slane %v562_v37, 7  ;;  %v530_v46 = vld [vmem:[#allocation2 + $0x1c] sm:$0xf]  ;;  %v583_v47 = vshrl.u32 %v531_v44, 16  ;;  %490 = vst [vmem:[#allocation2 + $0x20] sm:$0x1] %v489_v29 }
  0x4f   : > { %v6026_v48 = vld [vmem:[#allocation2 + $0x1c] sm:$0xf]  ;;  %v532_v50 = vld [vmem:[#allocation2 + $0x28] sm:$0xf]  ;;  %v575_v51 = vshrl.u32 %v530_v46, 16  ;;  %v578_v52 = vshll.u32 %v530_v46, 16 }
  0x50   : > { %v567_v49 = vor.u32 %v565_v38, %v564_v43  ;;  %v6002_v54 = vrot.slane %v570_v45, 11  ;;  %v588_v55 = vshrl.u32 %v532_v50, 16  ;;  %v591_v56 = vshll.u32 %v532_v50, 16  ;;  %v6558_v57 = vld [vmem:[#allocation2 + $0x24] sm:$0xf0]  ;;  %s6554_s19 = sshll.u32 %s441_s26, 6 }
  0x51   : > { %v577_v59 = vrot.slane %v575_v51, 7  ;;  %v6003_v60 = vrot.slane %v583_v47, 11  ;;  %v6027_v61 = vor.u32 %v6558_v57, %v6026_v48  ;;  %v533_v62 = vld [vmem:[#allocation2 + $0x30] sm:$0x8]  ;;  %v535_v63 = vld [vmem:[#allocation2 + $0x3c] sm:$0x8] }
  0x52   : > { %v568_v58 = vsel %vm7225_vm6, %v6001_v42, %v567_v49  ;;  %v590_v1 = vrot.slane %v588_v55, 7  ;;  %v534_v3 = vld [vmem:[#allocation2 + $0x34] sm:$0xf]  ;;  %v596_v4 = vshrl.u32 %v533_v62, 16  ;;  %v609_v5 = vshrl.u32 %v535_v63, 16  ;;  %s8275_s20 = scalar_lea.vmem [#allocation13], %s5993_s3 }
  0x53   : > { %v652_v0 = vunpack.c.l.b16 %v568_v58  ;;  %v580_v6 = vor.u32 %v578_v52, %v577_v59  ;;  %6045 = vmatmul.msk.bf16.vlgmr.msra.gmra.mxu1 %vm675_vm7, %v6027_v61  ;;  %v536_v8 = vld [vmem:[#allocation2 + $0x40] sm:$0xf]  ;;  %v601_v9 = vshrl.u32 %v534_v3, 16  ;;  %v604_v10 = vshll.u32 %v534_v3, 16  ;;  %v839_v26 = vld [vmem:[#allocation2 + $0x1c] sm:$0xf] }
  0x54   : > { %v593_v14 = vor.u32 %v591_v56, %v590_v1  ;;  %v6004_v15 = vrot.slane %v596_v4, 11  ;;  %v6005_v16 = vrot.slane %v609_v5, 11  ;;  %v614_v22 = vshrl.u32 %v536_v8, 16  ;;  %v841_v32 = vld [vmem:[#allocation2 + $0x28] sm:$0xf]  ;;  %s6645_s3 = sshll.u32 %s7057_s8, 5 }
  0x55   : > { %v659_v13 = vpack.c.b16 %v652_v0, %v651_v53  ;;  %v581_v19 = vsel %vm7225_vm6, %v6002_v54, %v580_v6  ;;  %v603_v20 = vrot.slane %v601_v9, 7  ;;  %v617_v23 = vshll.u32 %v536_v8, 16  ;;  %493 = vst [vmem:[#allocation2 + $0x2c] sm:$0x1] %v492_v31  ;;  %v473_v43 = vld [vmem:[#allocation2 + $0x48] sm:$0x8]  ;;  %s5849_s13 = scalar_lea.hbm %s8350_s9, %s6645_s3 }
  0x56   : > { %v594_v27 = vsel %vm7225_vm6, %v6003_v60, %v593_v14  ;;  %v653_v28 = vunpack.c.l.b16 %v581_v19  ;;  %v616_v37 = vrot.slane %v614_v22, 7  ;;  %vm851_vm10 = vsmask.f32 3328  ;;  %v476_v44 = vld [vmem:[#allocation2 + $0x54] sm:$0x8]  ;;  %s5850_s27 = sshll.u32 %s8275_s20, 4  ;;  %s5851_s27 = int_to_ptr.vmem [resolvable:$true] %s5850_s27 }
  0x57   : > { %6016 = vmatmul.msk.bf16.vlgmr.msra.gmra.mxu0 %vm675_vm7, %v659_v13  ;;  %v654_v34 = vunpack.c.l.b16 %v594_v27  ;;  %v606_v36 = vor.u32 %v604_v10, %v603_v20  ;;  %vm852_vm11 = vsmask.f32 7440  ;;  %v883_v38 = vshrl.u32 %v839_v26, 16  ;;  %v6030_v49 = vld [vmem:[#allocation2 + $0x34] sm:$0xf]  ;;  %s5852_s14 = sshll.u32 %s5849_s13, 4  ;;  %s5853_s14 = int_to_ptr.hbm [resolvable:$true] %s5852_s14 }
  0x58   : > { %1013 = vmatpush.bf16.msra.mxu0 %v7204_v24  ;;  %v886_v39 = vshll.u32 %v839_v26, 16  ;;  %v619_v41 = vor.u32 %v617_v23, %v616_v37  ;;  %v897_v42 = vshrl.u32 %v841_v32, 16  ;;  %v900_v48 = vshll.u32 %v841_v32, 16  ;;  %v6559_v50 = vld [vmem:[#allocation2 + $0x3c] sm:$0xf0]  ;;  %vm7283_vm12 = vmor %vm851_vm10, %vm852_vm11  ;;  %s5833_s23 = scalar_lea.sflag [#allocation7], %s7157_s1 }
  0x59   : > { %v660_v40 = vpack.c.b16 %v654_v34, %v653_v28  ;;  %v607_v45 = vsel %vm7225_vm6, %v6004_v15, %v606_v36  ;;  %v885_v46 = vrot.slane %v883_v38, 4  ;;  %v7258_v24 = vld [vmem:[%s7163_s28 + $0x14] sm:$0xf]  ;;  %v6022_v52 = vld [vmem:[#allocation2 + $0x4] sm:$0xf]  ;;  %v474_v55 = vsel %vm7181_vm3, 0, %v473_v43 }
  0x5a   : > { %v888_v47 = vrot.slane %v886_v39, 5  ;;  %v620_v51 = vsel %vm7225_vm6, %v6005_v16, %v619_v41  ;;  %v6557_v53 = vld [vmem:[#allocation2 + $0xc] sm:$0xf0]  ;;  %v899_v54 = vrot.slane %v897_v42, 4  ;;  %v477_v56 = vsel %vm7181_vm3, 0, %v476_v44  ;;  %s6908_s24 = sshra.s32 %s5853_s14, 4  ;;  %s6909_s24 = int_to_ptr.hbm [resolvable:$true] %s6908_s24 }
  0x5b   : > { %6017 = vmatmul.msk.bf16.vlgmr.msra.gmra.mxu3 %vm675_vm7, %v660_v40  ;;  %v7269_v57 = vld [vmem:[%s7163_s28 + $0x18] sm:$0xf]  ;;  %v902_v59 = vrot.slane %v900_v48, 5  ;;  %475 = vst [vmem:[#allocation2 + $0x48] sm:$0x8] %v474_v55  ;;  %v7271_v61 = vunpack.c.l.b16 %v607_v45  ;;  %v6031_v8 = vor.u32 %v6559_v50, %v6030_v49  ;;  %v6023_v10 = vor.u32 %v6557_v53, %v6022_v52  ;;  %s6910_s26 = scalar_lea.hbm %s6909_s24, 32  ;;  %p6915_p9 = scmp.lt.s32.totalorder %s6909_s24, %s8350_s9 }
  0x5c   : > { %1014 = vmatpush.bf16.msra.mxu0 %v7206_v25  ;;  %v889_v58 = vor.u32 %v888_v47, %v885_v46  ;;  %v485_v60 = vld [vmem:[#allocation2 + $0x14] sm:$0x1]  ;;  %478 = vst [vmem:[#allocation2 + $0x54] sm:$0x8] %v477_v56  ;;  %v835_v63 = vld [vmem:[#allocation2 + $0x4] sm:$0xf]  ;;  %v7275_v25 = vunpack.c.l.b16 %v620_v51  ;;  %p6911_p4 = scmp.ne.s32.totalorder %s6909_s24, %s6910_s26 }
  0x5d   : > { %v486_v62 = vsel %vm7241_vm9, 0, %v485_v60  ;;  %v840_v0 = vld [vmem:[#allocation2 + $0x20] sm:$0x1]  ;;  %v903_v3 = vor.u32 %v902_v59, %v899_v54  ;;  %522 = vst.msk [vmem:[#allocation2 + $0x4c] sm:$0xf] %vm446_vm0, %v7258_v24  ;;  %v855_v4 = vshrl.u32 %v835_v63, 16 }
  0x5e   : > { %v890_v1 = vrot.slane %v889_v58, 4  ;;  %v842_v5 = vld [vmem:[#allocation2 + $0x2c] sm:$0x1]  ;;  %v892_v6 = vshll.u32 %v840_v0, 16  ;;  %523 = vst.msk [vmem:[#allocation2 + $0x58] sm:$0xf] %vm446_vm0, %v7269_v57  ;;  %v661_v23 = vpack.c.b16 %v7275_v25, %v7271_v61  ;;  %p6912_p8 = pnand %p6911_p4, %p7127_p3 }
  0x5f   : > { %v858_v9 = vshll.u32 %v835_v63, 16  ;;  %v904_v13 = vrot.slane %v903_v3, 4  ;;  %v906_v14 = vshll.u32 %v842_v5, 16  ;;  %487 = vst [vmem:[#allocation2 + $0x14] sm:$0x1] %v486_v62  ;;  %v857_v19 = vrot.slane %v855_v4, 4 }
  0x60   : > { %v836_v15 = vld [vmem:[#allocation2 + $0x8] sm:$0x1]  ;;  %v894_v16 = vrot.slane %v892_v6, 5  ;;  %v837_v17 = vld [vmem:[#allocation2 + $0x10] sm:$0xf]  ;;  %vm5759_vm1 = vcmask 7168   ;;  %p6913_p11 = pneg %p6912_p8 }
  0x61   : > { %v860_v20 = vrot.slane %v858_v9, 5  ;;  %v864_v22 = vshll.u32 %v836_v15, 16  ;;  %v908_v26 = vrot.slane %v906_v14, 5  ;;  %v869_v27 = vshrl.u32 %v837_v17, 16  ;;  %v494_v29 = vld [vmem:[#allocation2 + $0x38] sm:$0x1] }
  0x62   : > { %v872_v28 = vshll.u32 %v837_v17, 16  ;;  %v895_v31 = vsel %vm7283_vm12, %v890_v1, %v894_v16  ;;  %v537_v32 = vld [vmem:[#allocation2 + $0x48] sm:$0x8]  ;;  %v495_v37 = vsel %vm7241_vm9, 0, %v494_v29  ;;  %v497_v38 = vld [vmem:[#allocation2 + $0x44] sm:$0x1] }
  0x63   : > { %6046 = vmatmul.msk.bf16.gmra.mxu1 %vm675_vm7, %v6031_v8  ;;  %v861_v34 = vor.u32 %v860_v20, %v857_v19  ;;  %v866_v36 = vrot.slane %v864_v22, 5  ;;  %v909_v39 = vsel %vm7283_vm12, %v904_v13, %v908_v26  ;;  %v973_v40 = vunpack.c.l.b16 %v895_v31  ;;  %v539_v41 = vld [vmem:[#allocation2 + $0x54] sm:$0x8]  ;;  %496 = vst [vmem:[#allocation2 + $0x38] sm:$0x1] %v495_v37  ;;  %v6572_v13 = vld [vmem:[#allocation8 + $0x48] sm:$0xff] }
  0x64   : > { %v622_v42 = vshrl.u32 %v537_v32, 16  ;;  %v871_v43 = vrot.slane %v869_v27, 4  ;;  %v974_v44 = vunpack.c.l.b16 %v909_v39  ;;  %v538_v45 = vld [vmem:[#allocation2 + $0x4c] sm:$0xf]  ;;  %v635_v46 = vshrl.u32 %v539_v41, 16  ;;  %v6582_v20 = vld [vmem:[#allocation8 + $0x78] sm:$0xff] }
  0x65   : > { %v862_v47 = vrot.slane %v861_v34, 4  ;;  %v874_v48 = vrot.slane %v872_v28, 5  ;;  %v540_v49 = vld [vmem:[#allocation2 + $0x58] sm:$0xf]  ;;  %v627_v51 = vshrl.u32 %v538_v45, 16  ;;  %v630_v52 = vshll.u32 %v538_v45, 16  ;;  %1884 = vmatpush.bf16.msra.mxu3 %v6582_v20 }
  0x66   : > { %v6006_v50 = vrot.slane %v622_v42, 11  ;;  %v498_v53 = vsel %vm7241_vm9, 0, %v497_v38  ;;  %v980_v54 = vpack.c.b16 %v974_v44, %v973_v40  ;;  %v6007_v55 = vrot.slane %v635_v46, 11  ;;  %v838_v59 = vld [vmem:[#allocation2 + $0x14] sm:$0x1]  ;;  %s6914_s30 = scalar_lea.hbm %s8350_s9, 64 }
  0x67   : > { %6044 = vmatmul.msk.bf16.vlgmr.msrb.gmra.mxu0 %vm675_vm7, %v6023_v10  ;;  %v640_v56 = vshrl.u32 %v540_v49, 16  ;;  %v643_v58 = vshll.u32 %v540_v49, 16  ;;  %v629_v60 = vrot.slane %v627_v51, 7  ;;  %v875_v61 = vor.u32 %v874_v48, %v871_v43  ;;  %499 = vst [vmem:[#allocation2 + $0x44] sm:$0x1] %v498_v53  ;;  %p6916_p2 = scmp.lt.s32.totalorder %s6914_s30, %s6910_s26 }
  0x68   : > { %v878_v62 = vshll.u32 %v838_v59, 16  ;;  %v843_v63 = vld [vmem:[#allocation2 + $0x34] sm:$0xf]  ;;  %6057 = vmatmul.msk.bf16.vlgmr.msra.gmra.mxu2 %vm675_vm7, %v980_v54  ;;  %v867_v0 = vsel %vm7283_vm12, %v862_v47, %v866_v36  ;;  %v845_v1 = vld [vmem:[#allocation2 + $0x40] sm:$0xf]  ;;  %1337 = vmatpush.bf16.msrb.mxu0 %v6572_v13 }
  0x69   : > { %v642_v25 = vrot.slane %v640_v56, 7  ;;  %v911_v3 = vshrl.u32 %v843_v63, 16  ;;  %v914_v4 = vshll.u32 %v843_v63, 16  ;;  %v632_v5 = vor.u32 %v630_v52, %v629_v60  ;;  %v6034_v10 = vld [vmem:[#allocation2 + $0x4c] sm:$0xf]  ;;  %v6574_v47 = vld [vmem:[#allocation8 + $0x58] sm:$0xff]  ;;  %p6917_p10 = por %p6916_p2, %p6915_p9 }
  0x6a   : > { %v876_v6 = vrot.slane %v875_v61, 4  ;;  %v880_v8 = vrot.slane %v878_v62, 5  ;;  %v925_v9 = vshrl.u32 %v845_v1, 16  ;;  %v844_v15 = vld [vmem:[#allocation2 + $0x38] sm:$0x1]  ;;  %v928_v19 = vshll.u32 %v845_v1, 16  ;;  %1559 = vmatpush.bf16.msrb.mxu1 %v6574_v47 }
  0x6b   : > { %6018 = vmatmul.msk.bf16.gmra.mxu3 %vm675_vm7, %v661_v23  ;;  %v645_v14 = vor.u32 %v643_v58, %v642_v25  ;;  %v913_v16 = vrot.slane %v911_v3, 4  ;;  %v916_v17 = vrot.slane %v914_v4, 5  ;;  %v971_v26 = vunpack.c.l.b16 %v867_v0  ;;  %v6560_v29 = vld [vmem:[#allocation2 + $0x54] sm:$0xf0]  ;;  %v1060_v31 = vld [vmem:[#allocation2 + $0xc] sm:$0x8]  ;;  %p6918_p12 = pnand %p6917_p10, %p6913_p11 }
  0x6c   : > { %v881_v22 = vsel %vm7283_vm12, %v876_v6, %v880_v8  ;;  %v920_v27 = vshll.u32 %v844_v15, 16  ;;  %v927_v28 = vrot.slane %v925_v9, 4  ;;  %v633_v32 = vsel %vm7225_vm6, %v6006_v50, %v632_v5  ;;  %v1061_v37 = vld [vmem:[#allocation2 + $0x10] sm:$0xf]  ;;  %v1062_v40 = vld [vmem:[#allocation2 + $0x18] sm:$0x8] }
  0x6d   : > { %v646_v23 = vsel %vm7225_vm6, %v6007_v55, %v645_v14  ;;  %v972_v34 = vunpack.c.l.b16 %v881_v22  ;;  %v917_v36 = vor.u32 %v916_v17, %v913_v16  ;;  %v930_v39 = vrot.slane %v928_v19, 5  ;;  %v1063_v41 = vld [vmem:[#allocation2 + $0x1c] sm:$0xf]  ;;  %v500_v52 = vld [vmem:[#allocation2 + $0x50] sm:$0x1]  ;;  %v6576_v61 = vld [vmem:[#allocation8 + $0x68] sm:$0xff] }
  0x6e   : > { %v922_v38 = vrot.slane %v920_v27, 5  ;;  %v846_v42 = vld [vmem:[#allocation2 + $0x44] sm:$0x1]  ;;  %v6035_v44 = vor.u32 %v6560_v29, %v6034_v10  ;;  %v1077_v45 = vshrl.u32 %v1060_v31, 16  ;;  %v1082_v46 = vshrl.u32 %v1061_v37, 16  ;;  %v6571_v60 = vld [vmem:[#allocation8 + $0x40] sm:$0xff]  ;;  %1774 = vmatpush.bf16.msrb.mxu2 %v6576_v61 }
  0x6f   : > { %v918_v43 = vrot.slane %v917_v36, 4  ;;  %v657_v48 = vunpack.c.l.b16 %v633_v32  ;;  %v658_v49 = vunpack.c.l.b16 %v646_v23  ;;  %v931_v50 = vor.u32 %v930_v39, %v927_v28  ;;  %v503_v53 = vld [vmem:[#allocation2 + $0x5c] sm:$0x1]  ;;  %v847_v59 = vld [vmem:[#allocation2 + $0x4c] sm:$0xf]  ;;  %1338 = vmatpush.bf16.msrb.mxu0 %v6571_v60 }
  0x70   : > { %v934_v51 = vshll.u32 %v846_v42, 16  ;;  %v979_v54 = vpack.c.b16 %v972_v34, %v971_v26  ;;  %v1084_v56 = vrot.slane %v1082_v46, 7  ;;  %v1085_v58 = vshll.u32 %v1061_v37, 16  ;;  %v849_v1 = vld [vmem:[#allocation2 + $0x58] sm:$0xf] }
  0x71   : > { %v923_v55 = vsel %vm7283_vm12, %v918_v43, %v922_v38  ;;  %v932_v62 = vrot.slane %v931_v50, 4  ;;  %v1090_v25 = vshrl.u32 %v1062_v40, 16  ;;  %v1095_v0 = vshrl.u32 %v1063_v41, 16  ;;  %v1064_v27 = vld [vmem:[#allocation2 + $0x24] sm:$0x8] }
  0x72   : > { %v936_v63 = vrot.slane %v934_v51, 5  ;;  %v975_v3 = vunpack.c.l.b16 %v923_v55  ;;  %v6060_v4 = vrot.slane %v1077_v45, 11  ;;  %v1098_v5 = vshll.u32 %v1063_v41, 16  ;;  %v7319_v23 = vld [vmem:[#allocation2 + $0x28] sm:$0xf] }
  0x73   : > { %6047 = vmatmul.msk.bf16.gmra.mxu1 %vm675_vm7, %v6035_v44  ;;  %v501_v6 = vsel %vm7241_vm9, 0, %v500_v52  ;;  %v1097_v9 = vrot.slane %v1095_v0, 7  ;;  %v504_v10 = vsel %vm7241_vm9, 0, %v503_v53  ;;  %v939_v13 = vshrl.u32 %v847_v59, 16  ;;  %v1066_v36 = vld [vmem:[#allocation2 + $0x30] sm:$0x8] }
  0x74   : > { %v937_v8 = vsel %vm7283_vm12, %v932_v62, %v936_v63  ;;  %502 = vst [vmem:[#allocation2 + $0x50] sm:$0x1] %v501_v6  ;;  %v1087_v15 = vor.u32 %v1085_v58, %v1084_v56  ;;  %v942_v16 = vshll.u32 %v847_v59, 16  ;;  %v953_v17 = vshrl.u32 %v849_v1, 16  ;;  %v1384_v42 = vld [vmem:[#allocation2 + $0x10] sm:$0xf] }
  0x75   : > { %v976_v14 = vunpack.c.l.b16 %v937_v8  ;;  %505 = vst [vmem:[#allocation2 + $0x5c] sm:$0x1] %v504_v10  ;;  %v662_v19 = vpack.c.b16 %v658_v49, %v657_v48  ;;  %v6061_v20 = vrot.slane %v1090_v25, 11  ;;  %v941_v22 = vrot.slane %v939_v13, 4  ;;  %v6082_v45 = vld [vmem:[#allocation2 + $0x10] sm:$0xf] }
  0x76   : > { %v956_v26 = vshll.u32 %v849_v1, 16  ;;  %v1100_v29 = vor.u32 %v1098_v5, %v1097_v9  ;;  %v944_v31 = vrot.slane %v942_v16, 5  ;;  %v955_v32 = vrot.slane %v953_v17, 4  ;;  %v6567_v46 = vld [vmem:[#allocation2 + $0x18] sm:$0xf0]  ;;  %v6584_v49 = vld [vmem:[#allocation8 + $0x88] sm:$0xff] }
  0x77   : > { %6056 = vmatmul.msk.bf16.vlgmr.msra.gmra.mxu0 %vm675_vm7, %v979_v54  ;;  %v981_v28 = vpack.c.b16 %v976_v14, %v975_v3  ;;  %v1088_v37 = vsel %vm7225_vm6, %v6060_v4, %v1087_v15  ;;  %v1103_v39 = vshrl.u32 %v1064_v27, 16  ;;  %v1108_v41 = vshrl.u32 %v7319_v23, 16  ;;  %v7328_v47 = vld [vmem:[#allocation2 + $0x34] sm:$0xf]  ;;  %v6573_v55 = vld [vmem:[#allocation8 + $0x50] sm:$0xff]  ;;  %v6575_v3 = vld [vmem:[#allocation8 + $0x60] sm:$0xff] }
  0x78   : > { %v958_v34 = vrot.slane %v956_v26, 5  ;;  %v945_v38 = vor.u32 %v944_v31, %v941_v22  ;;  %v1101_v43 = vsel %vm7225_vm6, %v6061_v20, %v1100_v29  ;;  %v1116_v48 = vshrl.u32 %v1066_v36, 16  ;;  %2106 = vmatpush.bf16.msra.mxu0 %v6584_v49  ;;  %v1386_v60 = vld [vmem:[#allocation2 + $0x1c] sm:$0xf]  ;;  %1560 = vmatpush.bf16.msrb.mxu1 %v6573_v55  ;;  %v1385_v1 = vld [vmem:[#allocation2 + $0x14] sm:$0x1] }
  0x79   : > { %6058 = vmatmul.msk.bf16.gmra.mxu2 %vm675_vm7, %v981_v28  ;;  %v7330_v50 = vunpack.c.l.b16 %v1088_v37  ;;  %v1111_v54 = vshll.u32 %v7319_v23, 16  ;;  %v7333_v59 = vrot.slane %v1103_v39, 11  ;;  %v1401_v61 = vshrl.u32 %v1384_v42, 16  ;;  %v1387_v13 = vld [vmem:[#allocation2 + $0x20] sm:$0x1] }
  0x7a   : > { %v959_v40 = vor.u32 %v958_v34, %v955_v32  ;;  %v946_v52 = vrot.slane %v945_v38, 4  ;;  %v7335_v62 = vunpack.c.l.b16 %v1101_v43  ;;  %v1110_v25 = vrot.slane %v1108_v41, 7  ;;  %1775 = vmatpush.bf16.msrb.mxu2 %v6575_v3  ;;  %v1607_v16 = vld [vmem:[#allocation2 + $0x18] sm:$0x8]  ;;  %v1608_v26 = vld [vmem:[#allocation2 + $0x1c] sm:$0xf] }
  0x7b   : > { %6019 = vmatmul.msk.bf16.gmra.mxu3 %vm675_vm7, %v662_v19  ;;  %v848_v44 = vld [vmem:[#allocation2 + $0x50] sm:$0x1]  ;;  %v1121_v0 = vshrl.u32 %v7328_v47, 16  ;;  %v7338_v5 = vrot.slane %v1116_v48, 11  ;;  %v1403_v6 = vrot.slane %v1401_v61, 4  ;;  %v1404_v8 = vshll.u32 %v1384_v42, 16 }
  0x7c   : > { %v850_v51 = vld [vmem:[#allocation2 + $0x5c] sm:$0x1]  ;;  %v948_v53 = vshll.u32 %v848_v44, 16  ;;  %v960_v56 = vrot.slane %v959_v40, 4  ;;  %v6083_v10 = vor.u32 %v6567_v46, %v6082_v45  ;;  %v1410_v14 = vshll.u32 %v1385_v1, 16 }
  0x7d   : > { %v962_v58 = vshll.u32 %v850_v51, 16  ;;  %v1415_v15 = vshrl.u32 %v1386_v60, 16  ;;  %v1124_v20 = vshll.u32 %v7328_v47, 16  ;;  %v1406_v22 = vrot.slane %v1404_v8, 5  ;;  %v1609_v32 = vld [vmem:[#allocation2 + $0x24] sm:$0x8] }
  0x7e   : > { %v950_v63 = vrot.slane %v948_v53, 5  ;;  %v1193_v27 = vpack.c.b16 %v7335_v62, %v7330_v50  ;;  %v1418_v31 = vshll.u32 %v1386_v60, 16  ;;  %v1610_v23 = vld [vmem:[#allocation2 + $0x28] sm:$0xf]  ;;  %v1412_v36 = vrot.slane %v1410_v14, 5 }
  0x7f   : > { %v964_v4 = vrot.slane %v962_v58, 5  ;;  %v1417_v29 = vrot.slane %v1415_v15, 4  ;;  %v1407_v34 = vor.u32 %v1406_v22, %v1403_v6  ;;  %v1424_v37 = vshll.u32 %v1387_v13, 16  ;;  %v1069_v39 = vld [vmem:[#allocation2 + $0x40] sm:$0xf] }
  0x80   : > { %v951_v9 = vsel %vm7283_vm12, %v946_v52, %v950_v63  ;;  %v1624_v38 = vshrl.u32 %v1607_v16, 16  ;;  %v1123_v40 = vrot.slane %v1121_v0, 7  ;;  %v1420_v41 = vrot.slane %v1418_v31, 5  ;;  %v1068_v52 = vld [vmem:[#allocation2 + $0x3c] sm:$0x8] }
  0x81   : > { %v965_v17 = vsel %vm7283_vm12, %v960_v56, %v964_v4  ;;  %v977_v19 = vunpack.c.l.b16 %v951_v9  ;;  %v1629_v42 = vshrl.u32 %v1608_v26, 16  ;;  %v1632_v43 = vshll.u32 %v1608_v26, 16  ;;  %v1071_v58 = vld [vmem:[#allocation2 + $0x4c] sm:$0xf]  ;;  %v1070_v4 = vld [vmem:[#allocation2 + $0x48] sm:$0x8] }
  0x82   : > { %v978_v28 = vunpack.c.l.b16 %v965_v17  ;;  %v1408_v45 = vrot.slane %v1407_v34, 4  ;;  %v1426_v46 = vrot.slane %v1424_v37, 5  ;;  %v1637_v47 = vshrl.u32 %v1609_v32, 16  ;;  %v7352_v9 = vld [vmem:[%s7163_s28 + $0x1c] sm:$0xf]  ;;  %s8249_s28 = scalar_lea.vmem %s8351_s10, %s6554_s19 }
  0x83   : > { %v1421_v48 = vor.u32 %v1420_v41, %v1417_v29  ;;  %v1631_v49 = vrot.slane %v1629_v42, 7  ;;  %v1642_v50 = vshrl.u32 %v1610_v23, 16  ;;  %v1645_v51 = vshll.u32 %v1610_v23, 16  ;;  %v1388_v14 = vld [vmem:[#allocation2 + $0x28] sm:$0xf] }
  0x84   : > { %v982_v44 = vpack.c.b16 %v978_v28, %v977_v19  ;;  %v1113_v53 = vor.u32 %v1111_v54, %v1110_v25  ;;  %v1413_v55 = vsel %vm7283_vm12, %v1408_v45, %v1412_v36  ;;  %v6120_v56 = vrot.slane %v1624_v38, 11  ;;  %524 = vst.msk [vmem:[#allocation2 + $0x64] sm:$0xf] %vm446_vm0, %v7352_v9  ;;  %v6581_v19 = vld [vmem:[#allocation8 + $0x70] sm:$0xff]  ;;  %v6568_v37 = vld [vmem:[#allocation2 + $0x30] sm:$0xf0] }
  0x85   : > { %v1134_v60 = vshrl.u32 %v1069_v39, 16  ;;  %v1422_v61 = vrot.slane %v1421_v48, 4  ;;  %v1634_v62 = vor.u32 %v1632_v43, %v1631_v49  ;;  %v6121_v63 = vrot.slane %v1637_v47, 11  ;;  %v1389_v31 = vld [vmem:[#allocation2 + $0x2c] sm:$0x1]  ;;  %1885 = vmatpush.bf16.msra.mxu3 %v6581_v19 }
  0x86   : > { %v1644_v0 = vrot.slane %v1642_v50, 7  ;;  %v1126_v1 = vor.u32 %v1124_v20, %v1123_v40  ;;  %v1517_v3 = vunpack.c.l.b16 %v1413_v55  ;;  %v1129_v6 = vshrl.u32 %v1068_v52, 16  ;;  %v1390_v20 = vld [vmem:[#allocation2 + $0x34] sm:$0xf]  ;;  %v6086_v36 = vld [vmem:[#allocation2 + $0x28] sm:$0xf] }
  0x87   : > { %6104 = vmatmul.msk.bf16.vlgmr.msrb.gmra.mxu0 %vm675_vm7, %v6083_v10  ;;  %v1136_v8 = vrot.slane %v1134_v60, 7  ;;  %v1427_v54 = vsel %vm7283_vm12, %v1422_v61, %v1426_v46  ;;  %v1137_v10 = vshll.u32 %v1069_v39, 16  ;;  %v1147_v13 = vshrl.u32 %v1071_v58, 16  ;;  %v1612_v46 = vld [vmem:[#allocation2 + $0x34] sm:$0xf] }
  0x88   : > { %v1647_v25 = vor.u32 %v1645_v51, %v1644_v0  ;;  %v1114_v15 = vsel %vm7225_vm6, %v7333_v59, %v1113_v53  ;;  %v1518_v16 = vunpack.c.l.b16 %v1427_v54  ;;  %v1635_v17 = vsel %vm7225_vm6, %v6120_v56, %v1634_v62  ;;  %v1391_v59 = vld [vmem:[#allocation2 + $0x38] sm:$0x1]  ;;  %v1611_v55 = vld [vmem:[#allocation2 + $0x30] sm:$0x8]  ;;  %v1614_v56 = vld [vmem:[#allocation2 + $0x40] sm:$0xf] }
  0x89   : > { %6059 = vmatmul.msk.bf16.gmra.mxu2 %vm675_vm7, %v982_v44  ;;  %v1142_v26 = vshrl.u32 %v1070_v4, 16  ;;  %v1149_v28 = vrot.slane %v1147_v13, 7  ;;  %v1150_v29 = vshll.u32 %v1071_v58, 16  ;;  %v6064_v23 = vrot.slane %v1129_v6, 11  ;;  %v1613_v6 = vld [vmem:[#allocation2 + $0x3c] sm:$0x8] }
  0x8a   : > { %v1648_v22 = vsel %vm7225_vm6, %v6121_v63, %v1647_v25  ;;  %v1525_v32 = vpack.c.b16 %v1518_v16, %v1517_v3  ;;  %v1429_v34 = vshrl.u32 %v1388_v14, 16  ;;  %v1732_v38 = vunpack.c.l.b16 %v1635_v17  ;;  %v479_v63 = vld [vmem:[#allocation2 + $0x60] sm:$0x8] }
  0x8b   : > { %6076 = vmatmul.msk.bf16.vlgmr.msrb.gmra.mxu3 %vm675_vm7, %v1193_v27  ;;  %v1127_v27 = vsel %vm7225_vm6, %v7338_v5, %v1126_v1  ;;  %v1139_v39 = vor.u32 %v1137_v10, %v1136_v8  ;;  %v1432_v40 = vshll.u32 %v1388_v14, 16  ;;  %v1438_v41 = vshll.u32 %v1389_v31, 16  ;;  %v1392_v31 = vld [vmem:[#allocation2 + $0x40] sm:$0xf] }
  0x8c   : > { %6116 = vmatmul.msk.bf16.vlgmr.msrb.gmra.mxu1 %vm675_vm7, %v1525_v32  ;;  %v1733_v42 = vunpack.c.l.b16 %v1648_v22  ;;  %v1431_v43 = vrot.slane %v1429_v34, 4  ;;  %v1443_v44 = vshrl.u32 %v1390_v20, 16  ;;  %v1446_v45 = vshll.u32 %v1390_v20, 16 }
  0x8d   : > { %v6065_v47 = vrot.slane %v1142_v26, 11  ;;  %v1152_v5 = vor.u32 %v1150_v29, %v1149_v28  ;;  %v1434_v48 = vrot.slane %v1432_v40, 5  ;;  %v1452_v49 = vshll.u32 %v1391_v59, 16  ;;  %v7388_v59 = vld [vmem:[#allocation2 + $0x48] sm:$0xf0] }
  0x8e   : > { %v1187_v50 = vunpack.c.l.b16 %v1114_v15  ;;  %v6087_v51 = vor.u32 %v6568_v37, %v6086_v36  ;;  %v1445_v52 = vrot.slane %v1443_v44, 4  ;;  %v1448_v53 = vrot.slane %v1446_v45, 5  ;;  %v7390_v40 = vld [vmem:[#allocation2 + $0x54] sm:$0x8]  ;;  %v7395_v44 = vld [vmem:[#allocation2 + $0x64] sm:$0xf] }
  0x8f   : > { %v1188_v58 = vunpack.c.l.b16 %v1127_v27  ;;  %v1435_v60 = vor.u32 %v1434_v48, %v1431_v43  ;;  %v1440_v61 = vrot.slane %v1438_v41, 5  ;;  %v1655_v62 = vshrl.u32 %v1612_v46, 16  ;;  %v7392_v41 = vld [vmem:[#allocation2 + $0x58] sm:$0xf]  ;;  %v1393_v48 = vld [vmem:[#allocation2 + $0x44] sm:$0x1] }
  0x90   : > { %v1740_v0 = vpack.c.b16 %v1733_v42, %v1732_v38  ;;  %v1140_v1 = vsel %vm7225_vm6, %v6064_v23, %v1139_v39  ;;  %v1449_v3 = vor.u32 %v1448_v53, %v1445_v52  ;;  %v1454_v4 = vrot.slane %v1452_v49, 5  ;;  %v7386_v23 = vld [vmem:[#allocation2 + $0x40] sm:$0xf]  ;;  %v1395_v49 = vld [vmem:[#allocation2 + $0x50] sm:$0x1] }
  0x91   : > { %v1153_v8 = vsel %vm7225_vm6, %v6065_v47, %v1152_v5  ;;  %v1436_v54 = vrot.slane %v1435_v60, 4  ;;  %v1650_v25 = vshrl.u32 %v1611_v55, 16  ;;  %v1668_v10 = vshrl.u32 %v1614_v56, 16  ;;  %v6583_v45 = vld [vmem:[#allocation8 + $0x80] sm:$0xff] }
  0x92   : > { %v1450_v13 = vrot.slane %v1449_v3, 4  ;;  %v1657_v14 = vrot.slane %v1655_v62, 7  ;;  %v1658_v15 = vshll.u32 %v1612_v46, 16  ;;  %v480_v16 = vsel %vm7181_vm3, 0, %v479_v63  ;;  %v1394_v46 = vld [vmem:[#allocation2 + $0x4c] sm:$0xf]  ;;  %2107 = vmatpush.bf16.msra.mxu0 %v6583_v45 }
  0x93   : > { %v1441_v17 = vsel %vm7283_vm12, %v1436_v54, %v1440_v61  ;;  %v1663_v19 = vshrl.u32 %v1613_v6, 16  ;;  %v1670_v20 = vrot.slane %v1668_v10, 7  ;;  %v1671_v22 = vshll.u32 %v1614_v56, 16  ;;  %481 = vst [vmem:[#allocation2 + $0x60] sm:$0x8] %v480_v16 }
  0x94   : > { %v1194_v26 = vpack.c.b16 %v1188_v58, %v1187_v50  ;;  %v1455_v28 = vsel %vm7283_vm12, %v1450_v13, %v1454_v4  ;;  %v1519_v29 = vunpack.c.l.b16 %v1441_v17  ;;  %v7381_v27 = vunpack.c.l.b16 %v1140_v1  ;;  %v1615_v63 = vld [vmem:[#allocation2 + $0x48] sm:$0x8]  ;;  %v1618_v16 = vld [vmem:[#allocation2 + $0x58] sm:$0xf] }
  0x95   : > { %v7383_v32 = vunpack.c.l.b16 %v1153_v8  ;;  %v1520_v2 = vunpack.c.l.b16 %v1455_v28  ;;  %v6122_v34 = vrot.slane %v1650_v25, 11  ;;  %v1660_v36 = vor.u32 %v1658_v15, %v1657_v14  ;;  %v1617_v14 = vld [vmem:[#allocation2 + $0x54] sm:$0x8]  ;;  %v1933_v45 = vld [vmem:[#allocation2 + $0x28] sm:$0xf] }
  0x96   : > { %v1457_v37 = vshrl.u32 %v1392_v31, 16  ;;  %v6123_v38 = vrot.slane %v1663_v19, 11  ;;  %v1673_v39 = vor.u32 %v1671_v22, %v1670_v20  ;;  %v1460_v42 = vshll.u32 %v1392_v31, 16  ;;  %v506_v31 = vld [vmem:[#allocation2 + $0x68] sm:$0x1] }
  0x97   : > { %6105 = vmatmul.msk.bf16.gmra.mxu0 %vm675_vm7, %v6087_v51  ;;  %v1526_v43 = vpack.c.b16 %v1520_v2, %v1519_v29  ;;  %v1195_v47 = vpack.c.b16 %v7383_v32, %v7381_v27  ;;  %v6091_v5 = vor.u32 %v7388_v59, %v7386_v23  ;;  %v1661_v52 = vsel %vm7225_vm6, %v6122_v34, %v1660_v36  ;;  %v6570_v32 = vld [vmem:[#allocation2 + $0x60] sm:$0xf0] }
  0x98   : > { %v1459_v50 = vrot.slane %v1457_v37, 4  ;;  %v1462_v51 = vrot.slane %v1460_v42, 5  ;;  %v1155_v53 = vshrl.u32 %v7390_v40, 16  ;;  %v1160_v55 = vshrl.u32 %v7392_v41, 16 }
  0x99   : > { %6136 = vmatmul.msk.bf16.vlgmr.msrb.gmra.mxu2 %vm675_vm7, %v1740_v0  ;;  %v1466_v56 = vshll.u32 %v1393_v48, 16  ;;  %v1674_v58 = vsel %vm7225_vm6, %v6123_v38, %v1673_v39  ;;  %v1471_v61 = vshrl.u32 %v1394_v46, 16  ;;  %v1474_v62 = vshll.u32 %v1394_v46, 16  ;;  %v1616_v0 = vld [vmem:[#allocation2 + $0x4c] sm:$0xf] }
  0x9a   : > { %v1463_v60 = vor.u32 %v1462_v51, %v1459_v50  ;;  %v1074_v1 = vld [vmem:[#allocation2 + $0x60] sm:$0x8]  ;;  %v1163_v3 = vshll.u32 %v7392_v41, 16  ;;  %v1173_v4 = vshrl.u32 %v7395_v44, 16  ;;  %v1480_v8 = vshll.u32 %v1395_v49, 16 }
  0x9b   : > { %6077 = vmatmul.msk.bf16.gmra.mxu3 %vm675_vm7, %v1194_v26  ;;  %v1468_v6 = vrot.slane %v1466_v56, 5  ;;  %v1734_v54 = vunpack.c.l.b16 %v1661_v52  ;;  %v1473_v10 = vrot.slane %v1471_v61, 4  ;;  %v1476_v13 = vrot.slane %v1474_v62, 5 }
  0x9c   : > { %6117 = vmatmul.msk.bf16.gmra.mxu1 %vm675_vm7, %v1526_v43  ;;  %v1464_v25 = vrot.slane %v1463_v60, 4  ;;  %v1735_v15 = vunpack.c.l.b16 %v1674_v58  ;;  %v1676_v17 = vshrl.u32 %v1615_v63, 16  ;;  %v1681_v19 = vshrl.u32 %v1616_v0, 16  ;;  %v1931_v43 = vld [vmem:[#allocation2 + $0x1c] sm:$0xf] }
  0x9d   : > { %v1684_v20 = vshll.u32 %v1616_v0, 16  ;;  %v1162_v22 = vrot.slane %v1160_v55, 7  ;;  %v1176_v26 = vshll.u32 %v7395_v44, 16  ;;  %v1477_v28 = vor.u32 %v1476_v13, %v1473_v10  ;;  %v1396_v63 = vld [vmem:[#allocation2 + $0x58] sm:$0xf] }
  0x9e   : > { %v1482_v29 = vrot.slane %v1480_v8, 5  ;;  %v1168_v2 = vshrl.u32 %v1074_v1, 16  ;;  %v1175_v23 = vrot.slane %v1173_v4, 7  ;;  %v1469_v59 = vsel %vm7283_vm12, %v1464_v25, %v1468_v6  ;;  %v1398_v6 = vld [vmem:[#allocation2 + $0x64] sm:$0xf] }
  0x9f   : > { %v1683_v34 = vrot.slane %v1681_v19, 7  ;;  %v1478_v36 = vrot.slane %v1477_v28, 4  ;;  %v1689_v37 = vshrl.u32 %v1617_v14, 16  ;;  %v1694_v38 = vshrl.u32 %v1618_v16, 16  ;;  %v1932_v8 = vld [vmem:[#allocation2 + $0x20] sm:$0x1] }
  0xa0   : > { %v1697_v39 = vshll.u32 %v1618_v16, 16  ;;  %v1741_v40 = vpack.c.b16 %v1735_v15, %v1734_v54  ;;  %v6124_v41 = vrot.slane %v1676_v17, 11  ;;  %v507_v44 = vsel %vm7241_vm9, 0, %v506_v31  ;;  %v1397_v54 = vld [vmem:[#allocation2 + $0x5c] sm:$0x1] }
  0xa1   : > { %v1686_v42 = vor.u32 %v1684_v20, %v1683_v34  ;;  %v1483_v46 = vsel %vm7283_vm12, %v1478_v36, %v1482_v29  ;;  %v1696_v48 = vrot.slane %v1694_v38, 7  ;;  %v1948_v49 = vshrl.u32 %v1931_v43, 16  ;;  %508 = vst [vmem:[#allocation2 + $0x68] sm:$0x1] %v507_v44  ;;  %v6094_v13 = vld [vmem:[#allocation2 + $0x58] sm:$0xf] }
  0xa2   : > { %v1951_v50 = vshll.u32 %v1931_v43, 16  ;;  %v6066_v51 = vrot.slane %v1155_v53, 11  ;;  %v1165_v52 = vor.u32 %v1163_v3, %v1162_v22  ;;  %v1521_v55 = vunpack.c.l.b16 %v1469_v59  ;;  %v1934_v15 = vld [vmem:[#allocation2 + $0x2c] sm:$0x1] }
  0xa3   : > { %v1522_v56 = vunpack.c.l.b16 %v1483_v46  ;;  %v6125_v58 = vrot.slane %v1689_v37, 11  ;;  %v1699_v60 = vor.u32 %v1697_v39, %v1696_v48  ;;  %v1962_v61 = vshrl.u32 %v1933_v45, 16 }
  0xa4   : > { %v1965_v62 = vshll.u32 %v1933_v45, 16  ;;  %v6067_v11 = vrot.slane %v1168_v2, 11  ;;  %v1687_v0 = vsel %vm7225_vm6, %v6124_v41, %v1686_v42  ;;  %v1950_v1 = vrot.slane %v1948_v49, 4  ;;  %v1622_v42 = vld [vmem:[#allocation2 + $0x70] sm:$0xf] }
  0xa5   : > { %v1953_v4 = vrot.slane %v1951_v50, 5  ;;  %v1166_v53 = vsel %vm7225_vm6, %v6066_v51, %v1165_v52  ;;  %v1527_v3 = vpack.c.b16 %v1522_v56, %v1521_v55  ;;  %v1485_v25 = vshrl.u32 %v1396_v63, 16  ;;  %v1619_v51 = vld [vmem:[#allocation2 + $0x60] sm:$0x8]  ;;  %v1621_v52 = vld [vmem:[#allocation2 + $0x6c] sm:$0x8] }
  0xa6   : > { %v1488_v10 = vshll.u32 %v1396_v63, 16  ;;  %v1700_v14 = vsel %vm7225_vm6, %v6125_v58, %v1699_v60  ;;  %v1964_v16 = vrot.slane %v1962_v61, 4  ;;  %v1967_v17 = vrot.slane %v1965_v62, 5 }
  0xa7   : > { %6106 = vmatmul.msk.bf16.gmra.mxu0 %vm675_vm7, %v6091_v5  ;;  %v1178_v5 = vor.u32 %v1176_v26, %v1175_v23  ;;  %v1494_v19 = vshll.u32 %v1397_v54, 16  ;;  %v1487_v22 = vrot.slane %v1485_v25, 4  ;;  %v1954_v28 = vor.u32 %v1953_v4, %v1950_v1  ;;  %v1620_v23 = vld [vmem:[#allocation2 + $0x64] sm:$0xf] }
  0xa8   : > { %v1399_v20 = vld [vmem:[#allocation2 + $0x68] sm:$0x1]  ;;  %v1490_v26 = vrot.slane %v1488_v10, 5  ;;  %v1957_v29 = vshll.u32 %v1932_v8, 16  ;;  %v1499_v31 = vshrl.u32 %v1398_v6, 16  ;;  %v1502_v2 = vshll.u32 %v1398_v6, 16 }
  0xa9   : > { %6137 = vmatmul.msk.bf16.gmra.mxu2 %vm675_vm7, %v1741_v40  ;;  %v1179_v27 = vsel %vm7225_vm6, %v6067_v11, %v1178_v5  ;;  %v1737_v59 = vunpack.c.l.b16 %v1700_v14  ;;  %v1971_v34 = vshll.u32 %v1934_v15, 16  ;;  %v1508_v37 = vshll.u32 %v1399_v20, 16  ;;  %v1935_v8 = vld [vmem:[#allocation2 + $0x34] sm:$0xf] }
  0xaa   : > { %v1491_v36 = vor.u32 %v1490_v26, %v1487_v22  ;;  %v1968_v38 = vor.u32 %v1967_v17, %v1964_v16  ;;  %v1496_v39 = vrot.slane %v1494_v19, 5  ;;  %v1501_v40 = vrot.slane %v1499_v31, 4 }
  0xab   : > { %6078 = vmatmul.msk.bf16.gmra.mxu3 %vm675_vm7, %v1195_v47  ;;  %v1736_v47 = vunpack.c.l.b16 %v1687_v0  ;;  %v1504_v41 = vrot.slane %v1502_v2, 5  ;;  %v6095_v43 = vor.u32 %v6570_v32, %v6094_v13  ;;  %v1707_v44 = vshrl.u32 %v1620_v23, 16  ;;  %v1937_v13 = vld [vmem:[#allocation2 + $0x40] sm:$0xf] }
  0xac   : > { %6118 = vmatmul.msk.bf16.gmra.mxu1 %vm675_vm7, %v1527_v3  ;;  %v1492_v45 = vrot.slane %v1491_v36, 4  ;;  %v1191_v46 = vunpack.c.l.b16 %v1166_v53  ;;  %v1192_v48 = vunpack.c.l.b16 %v1179_v27  ;;  %v1510_v50 = vrot.slane %v1508_v37, 5  ;;  %v1936_v37 = vld [vmem:[#allocation2 + $0x38] sm:$0x1] }
  0xad   : > { %v1505_v49 = vor.u32 %v1504_v41, %v1501_v40  ;;  %v1955_v55 = vrot.slane %v1954_v28, 4  ;;  %v1959_v56 = vrot.slane %v1957_v29, 5  ;;  %v1973_v58 = vrot.slane %v1971_v34, 5 }
  0xae   : > { %v1720_v60 = vshrl.u32 %v1622_v42, 16  ;;  %v1742_v61 = vpack.c.b16 %v1737_v59, %v1736_v47  ;;  %v1969_v62 = vrot.slane %v1968_v38, 4  ;;  %v1497_v63 = vsel %vm7283_vm12, %v1492_v45, %v1496_v39  ;;  %v1938_v38 = vld [vmem:[#allocation2 + $0x44] sm:$0x1] }
  0xaf   : > { %v1506_v11 = vrot.slane %v1505_v49, 4  ;;  %v1702_v5 = vshrl.u32 %v1619_v51, 16  ;;  %v1709_v0 = vrot.slane %v1707_v44, 7  ;;  %v1710_v1 = vshll.u32 %v1620_v23, 16 }
  0xb0   : > { %v1715_v4 = vshrl.u32 %v1621_v52, 16  ;;  %v1722_v53 = vrot.slane %v1720_v60, 7  ;;  %v1723_v3 = vshll.u32 %v1622_v42, 16  ;;  %v1196_v54 = vpack.c.b16 %v1192_v48, %v1191_v46  ;;  %v6142_v46 = vld [vmem:[#allocation2 + $0x1c] sm:$0xf] }
  0xb1   : > { %v1511_v6 = vsel %vm7283_vm12, %v1506_v11, %v1510_v50  ;;  %v1523_v25 = vunpack.c.l.b16 %v1497_v63  ;;  %v1960_v14 = vsel %vm7283_vm12, %v1955_v55, %v1959_v56  ;;  %v1974_v15 = vsel %vm7283_vm12, %v1969_v62, %v1973_v58  ;;  %v6577_v48 = vld [vmem:[#allocation2 + $0x24] sm:$0xf0]  ;;  %v1939_v58 = vld [vmem:[#allocation2 + $0x4c] sm:$0xf]  ;;  %v1941_v60 = vld [vmem:[#allocation2 + $0x58] sm:$0xf] }
  0xb2   : > { %v1524_v10 = vunpack.c.l.b16 %v1511_v6  ;;  %v6126_v16 = vrot.slane %v1702_v5, 11  ;;  %v1712_v17 = vor.u32 %v1710_v1, %v1709_v0  ;;  %v6127_v19 = vrot.slane %v1715_v4, 11 }
  0xb3   : > { %v1976_v27 = vshrl.u32 %v1935_v8, 16  ;;  %v1725_v32 = vor.u32 %v1723_v3, %v1722_v53  ;;  %v1979_v47 = vshll.u32 %v1935_v8, 16  ;;  %v1990_v20 = vshrl.u32 %v1937_v13, 16 }
  0xb4   : > { %v1993_v22 = vshll.u32 %v1937_v13, 16  ;;  %v1528_v26 = vpack.c.b16 %v1524_v10, %v1523_v25  ;;  %v2064_v28 = vunpack.c.l.b16 %v1960_v14  ;;  %v2065_v29 = vunpack.c.l.b16 %v1974_v15  ;;  %v1942_v25 = vld [vmem:[#allocation2 + $0x5c] sm:$0x1]  ;;  %v6146_v14 = vld [vmem:[#allocation2 + $0x34] sm:$0xf] }
  0xb5   : > { %v1713_v31 = vsel %vm7225_vm6, %v6126_v16, %v1712_v17  ;;  %v1978_v2 = vrot.slane %v1976_v27, 4  ;;  %v1726_v23 = vsel %vm7225_vm6, %v6127_v19, %v1725_v32  ;;  %v1981_v59 = vrot.slane %v1979_v47, 5  ;;  %v6578_v15 = vld [vmem:[#allocation2 + $0x3c] sm:$0xf0] }
  0xb6   : > { %v1992_v34 = vrot.slane %v1990_v20, 4  ;;  %v1995_v36 = vrot.slane %v1993_v22, 5  ;;  %v2072_v39 = vpack.c.b16 %v2065_v29, %v2064_v28  ;;  %v1738_v40 = vunpack.c.l.b16 %v1713_v31  ;;  %v1943_v29 = vld [vmem:[#allocation2 + $0x64] sm:$0xf]  ;;  %v1945_v31 = vld [vmem:[#allocation2 + $0x70] sm:$0xf] }
  0xb7   : > { %6107 = vmatmul.msk.bf16.gmra.mxu0 %vm675_vm7, %v6095_v43  ;;  %v1739_v41 = vunpack.c.l.b16 %v1726_v23  ;;  %v1982_v42 = vor.u32 %v1981_v59, %v1978_v2  ;;  %v1985_v43 = vshll.u32 %v1936_v37, 16  ;;  %v1999_v44 = vshll.u32 %v1938_v38, 16 }
  0xb8   : > { %v1996_v45 = vor.u32 %v1995_v36, %v1992_v34  ;;  %v6143_v56 = vor.u32 %v6577_v48, %v6142_v46  ;;  %v2004_v63 = vshrl.u32 %v1939_v58, 16  ;;  %v2007_v11 = vshll.u32 %v1939_v58, 16  ;;  %v1944_v46 = vld [vmem:[#allocation2 + $0x68] sm:$0x1]  ;;  %v1946_v48 = vld [vmem:[#allocation2 + $0x74] sm:$0x1] }
  0xb9   : > { %6138 = vmatmul.msk.bf16.gmra.mxu2 %vm675_vm7, %v1742_v61  ;;  %v1743_v49 = vpack.c.b16 %v1739_v41, %v1738_v40  ;;  %v1983_v50 = vrot.slane %v1982_v42, 4  ;;  %v1987_v51 = vrot.slane %v1985_v43, 5  ;;  %v2001_v55 = vrot.slane %v1999_v44, 5  ;;  %v6579_v58 = vld [vmem:[#allocation2 + $0x54] sm:$0xf0] }
  0xba   : > { %v1997_v52 = vrot.slane %v1996_v45, 4  ;;  %v2018_v5 = vshrl.u32 %v1941_v60, 16  ;;  %v2021_v0 = vshll.u32 %v1941_v60, 16  ;;  %v2006_v6 = vrot.slane %v2004_v63, 4 }
  0xbb   : > { %6079 = vmatmul.msk.bf16.gmra.mxu3 %vm675_vm7, %v1196_v54  ;;  %v1988_v61 = vsel %vm7283_vm12, %v1983_v50, %v1987_v51  ;;  %v2009_v53 = vrot.slane %v2007_v11, 5  ;;  %v1940_v54 = vld [vmem:[#allocation2 + $0x50] sm:$0x1]  ;;  %v2027_v27 = vshll.u32 %v1942_v25, 16  ;;  %v6147_v32 = vor.u32 %v6578_v15, %v6146_v14 }
  0xbc   : > { %6119 = vmatmul.msk.bf16.gmra.mxu1 %vm675_vm7, %v1528_v26  ;;  %v2002_v62 = vsel %vm7283_vm12, %v1997_v52, %v2001_v55  ;;  %v2066_v1 = vunpack.c.l.b16 %v1988_v61  ;;  %v2020_v3 = vrot.slane %v2018_v5, 4  ;;  %v2023_v8 = vrot.slane %v2021_v0, 5 }
  0xbd   : > { %v2067_v4 = vunpack.c.l.b16 %v2002_v62  ;;  %v2010_v16 = vor.u32 %v2009_v53, %v2006_v6  ;;  %v2013_v17 = vshll.u32 %v1940_v54, 16  ;;  %v2029_v28 = vrot.slane %v2027_v27, 5 }
  0xbe   : > { %v2024_v19 = vor.u32 %v2023_v8, %v2020_v3  ;;  %v2032_v2 = vshrl.u32 %v1943_v29, 16  ;;  %v2035_v23 = vshll.u32 %v1943_v29, 16  ;;  %v2046_v37 = vshrl.u32 %v1945_v31, 16 }
  0xbf   : > { %v2073_v10 = vpack.c.b16 %v2067_v4, %v2066_v1  ;;  %v2011_v20 = vrot.slane %v2010_v16, 4  ;;  %v2015_v22 = vrot.slane %v2013_v17, 5  ;;  %v2049_v38 = vshll.u32 %v1945_v31, 16 }
  0xc0   : > { %v2025_v26 = vrot.slane %v2024_v19, 4  ;;  %v2034_v42 = vrot.slane %v2032_v2, 4  ;;  %v2037_v43 = vrot.slane %v2035_v23, 5  ;;  %v2048_v45 = vrot.slane %v2046_v37, 4  ;;  %v6154_v2 = vld [vmem:[#allocation2 + $0x64] sm:$0xf] }
  0xc1   : > { %v2016_v34 = vsel %vm7283_vm12, %v2011_v20, %v2015_v22  ;;  %v2051_v44 = vrot.slane %v2049_v38, 5  ;;  %v2041_v60 = vshll.u32 %v1944_v46, 16  ;;  %v2055_v62 = vshll.u32 %v1946_v48, 16  ;;  %v6580_v23 = vld [vmem:[#allocation2 + $0x6c] sm:$0xf0] }
  0xc2   : > { %v2030_v36 = vsel %vm7283_vm12, %v2025_v26, %v2029_v28  ;;  %v2068_v40 = vunpack.c.l.b16 %v2016_v34  ;;  %v2038_v52 = vor.u32 %v2037_v43, %v2034_v42  ;;  %v6155_v38 = vor.u32 %v6580_v23, %v6154_v2 }
  0xc3   : > { %v2069_v41 = vunpack.c.l.b16 %v2030_v36  ;;  %v2052_v61 = vor.u32 %v2051_v44, %v2048_v45  ;;  %v2043_v6 = vrot.slane %v2041_v60, 5  ;;  %v2057_v3 = vrot.slane %v2055_v62, 5 }
  0xc4   : > { %v2039_v1 = vrot.slane %v2038_v52, 4 }
  0xc5   : > { %v2074_v51 = vpack.c.b16 %v2069_v41, %v2068_v40  ;;  %v2053_v53 = vrot.slane %v2052_v61, 4 }
  0xc7   : > { %6176 = vmatmul.msk.bf16.vlgmr.msra.gmra.mxu0 %vm675_vm7, %v2072_v39 }
  0xc9   : > { %6139 = vmatmul.msk.bf16.gmra.mxu2 %vm675_vm7, %v1743_v49 }
  0xcb   : > { %6164 = vmatmul.msk.bf16.vlgmr.msra.gmra.mxu3 %vm675_vm7, %v6143_v56  ;;  %v6150_v56 = vld [vmem:[#allocation2 + $0x4c] sm:$0xf] }
  0xcc   : > { %v6151_v0 = vor.u32 %v6579_v58, %v6150_v56 }
  0xd0   : > { %v796_v47 = vpop.f32.mrf.mxu1 }
  0xd4   : > { %v697_v13 = vpop.f32.mrf.mxu0 }
  0xd5   : > { %717 = vst.msk [vmem:[#allocation3] sm:$0xff] %vm675_vm7, %v697_v13  ;;  %v2058_v13 = vsel %vm7283_vm12, %v2053_v53, %v2057_v3 }
  0xd6   : > { %v2071_v27 = vunpack.c.l.b16 %v2058_v13 }
  0xd7   : > { %6177 = vmatmul.msk.bf16.gmra.mxu0 %vm675_vm7, %v2073_v10  ;;  %v2044_v10 = vsel %vm7283_vm12, %v2039_v1, %v2043_v6 }
  0xd8   : > { %v798_v50 = vpop.f32.mrf.mxu1  ;;  %v2070_v19 = vunpack.c.l.b16 %v2044_v10 }
  0xda   : > { %v2075_v26 = vpack.c.b16 %v2071_v27, %v2070_v19 }
  0xdb   : > { %6165 = vmatmul.msk.bf16.gmra.mxu3 %vm675_vm7, %v6147_v32 }
  0xdc   : > { %v699_v59 = vpop.f32.mrf.mxu0  ;;  %v811_v49 = vld [vmem:[#allocation3] sm:$0xff] }
  0xdd   : > { %718 = vst.msk [vmem:[#allocation3 + $0x8] sm:$0xff] %vm675_vm7, %v699_v59 }
  0xde   : > { %v702_v39 = vpop.f32.mrf.mxu3 }
  0xdf   : > { %719 = vst.msk [vmem:[#allocation3 + $0x10] sm:$0xff] %vm675_vm7, %v702_v39 }
  0xe0   : > { %v801_v25 = vpop.f32.mrf.mxu1 }
  0xe4   : > { %v791_v55 = vpop.f32.mrf.mxu0  ;;  %v812_v8 = vld [vmem:[#allocation3 + $0x8] sm:$0xff] }
  0xe5   : > { %v819_v63 = vadd.f32 %v811_v49, %v791_v55 }
  0xe6   : > { %v704_v11 = vpop.f32.mrf.mxu3  ;;  %v813_v5 = vld [vmem:[#allocation3 + $0x10] sm:$0xff] }
  0xe7   : > { %827 = vst.msk [vmem:[#allocation3] sm:$0xff] %vm675_vm7, %v819_v63  ;;  %6178 = vmatmul.msk.bf16.gmra.mxu0 %vm675_vm7, %v2074_v51  ;;  %v821_v4 = vadd.f32 %v813_v5, %v796_v47 }
  0xe8   : > { %720 = vst.msk [vmem:[#allocation3 + $0x18] sm:$0xff] %vm675_vm7, %v704_v11  ;;  %v803_v59 = vpop.f32.mrf.mxu1 }
  0xe9   : > { %829 = vst.msk [vmem:[#allocation3 + $0x10] sm:$0xff] %vm675_vm7, %v821_v4 }
  0xeb   : > { %6166 = vmatmul.msk.bf16.gmra.mxu3 %vm675_vm7, %v6151_v0  ;;  %v1021_v15 = vpop.f32.mrf.mxu2 }
  0xec   : > { %v793_v54 = vpop.f32.mrf.mxu0 }
  0xed   : > { %v820_v14 = vadd.f32 %v812_v8, %v793_v54 }
  0xee   : > { %v707_v16 = vpop.f32.mrf.mxu3  ;;  %v1036_v22 = vld [vmem:[#allocation3] sm:$0xff] }
  0xef   : > { %v814_v17 = vld [vmem:[#allocation3 + $0x18] sm:$0xff]  ;;  %828 = vst.msk [vmem:[#allocation3 + $0x8] sm:$0xff] %vm675_vm7, %v820_v14 }
  0xf0   : > { %721 = vst.msk [vmem:[#allocation3 + $0x20] sm:$0xff] %vm675_vm7, %v707_v16  ;;  %v822_v32 = vadd.f32 %v814_v17, %v798_v50  ;;  %v1038_v47 = vld [vmem:[#allocation3 + $0x10] sm:$0xff]  ;;  %v806_v49 = vpop.f32.mrf.mxu1 }
  0xf1   : > { %v1046_v20 = vadd.f32 %v1038_v47, %v1021_v15 }
  0xf2   : > { %830 = vst.msk [vmem:[#allocation3 + $0x18] sm:$0xff] %vm675_vm7, %v822_v32 }
  0xf3   : > { %1054 = vst.msk [vmem:[#allocation3 + $0x10] sm:$0xff] %vm675_vm7, %v1046_v20  ;;  %v1023_v31 = vpop.f32.mrf.mxu2 }
  0xf4   : > { %v1016_v28 = vpop.f32.mrf.mxu0 }
  0xf5   : > { %v1044_v29 = vadd.f32 %v1036_v22, %v1016_v28 }
  0xf6   : > { %v709_v34 = vpop.f32.mrf.mxu3  ;;  %v1037_v42 = vld [vmem:[#allocation3 + $0x8] sm:$0xff] }
  0xf7   : > { %v815_v36 = vld [vmem:[#allocation3 + $0x20] sm:$0xff]  ;;  %1052 = vst.msk [vmem:[#allocation3] sm:$0xff] %vm675_vm7, %v1044_v29  ;;  %6179 = vmatmul.msk.bf16.gmra.mxu0 %vm675_vm7, %v2075_v26 }
  0xf8   : > { %722 = vst.msk [vmem:[#allocation3 + $0x28] sm:$0xff] %vm675_vm7, %v709_v34  ;;  %v823_v37 = vadd.f32 %v815_v36, %v801_v25  ;;  %v808_v63 = vpop.f32.mrf.mxu1 }
  0xf9   : > { %v1039_v39 = vld [vmem:[#allocation3 + $0x18] sm:$0xff] }
  0xfa   : > { %831 = vst.msk [vmem:[#allocation3 + $0x20] sm:$0xff] %vm675_vm7, %v823_v37  ;;  %v1047_v40 = vadd.f32 %v1039_v39, %v1023_v31  ;;  %v1252_v26 = vld [vmem:[#allocation3 + $0x10] sm:$0xff] }
  0xfb   : > { %6167 = vmatmul.msk.bf16.gmra.mxu3 %vm675_vm7, %v6155_v38 }
  0xfc   : > { %1055 = vst.msk [vmem:[#allocation3 + $0x18] sm:$0xff] %vm675_vm7, %v1047_v40  ;;  %v1018_v41 = vpop.f32.mrf.mxu0  ;;  %v1026_v45 = vpop.f32.mrf.mxu2 }
  0xfd   : > { %v1045_v43 = vadd.f32 %v1037_v42, %v1018_v41 }
  0xfe   : > { %v712_v44 = vpop.f32.mrf.mxu3  ;;  %v1250_v4 = vld [vmem:[#allocation3] sm:$0xff] }
  0xff   : > { %v816_v46 = vld [vmem:[#allocation3 + $0x28] sm:$0xff]  ;;  %1053 = vst.msk [vmem:[#allocation3 + $0x8] sm:$0xff] %vm675_vm7, %v1045_v43 }
 0x100   : > { %723 = vst.msk [vmem:[#allocation3 + $0x30] sm:$0xff] %vm675_vm7, %v712_v44  ;;  %v824_v48 = vadd.f32 %v816_v46, %v803_v59  ;;  %v6586_v59 = vld [vmem:[#allocation10 + $0x8] sm:$0xff] }
 0x101   : > { %v1040_v50 = vld [vmem:[#allocation3 + $0x20] sm:$0xff]  ;;  %2379 = vmatpush.bf16.msra.mxu1 %v6586_v59 }
 0x102   : > { %832 = vst.msk [vmem:[#allocation3 + $0x28] sm:$0xff] %vm675_vm7, %v824_v48  ;;  %v1048_v51 = vadd.f32 %v1040_v50, %v1026_v45 }
 0x103   : > { %v1253_v38 = vld [vmem:[#allocation3 + $0x18] sm:$0xff] }
 0x104   : > { %1056 = vst.msk [vmem:[#allocation3 + $0x20] sm:$0xff] %vm675_vm7, %v1048_v51  ;;  %v1340_v52 = vpop.f32.mrf.mxu0  ;;  %v1028_v55 = vpop.f32.mrf.mxu2 }
 0x106   : > { %v714_v56 = vpop.f32.mrf.mxu3  ;;  %v1251_v14 = vld [vmem:[#allocation3 + $0x8] sm:$0xff] }
 0x107   : > { %v817_v58 = vld [vmem:[#allocation3 + $0x30] sm:$0xff]  ;;  %724 = vst.msk [vmem:[#allocation3 + $0x38] sm:$0xff] %vm675_vm7, %v714_v56 }
 0x108   : > { %v825_v60 = vadd.f32 %v817_v58, %v806_v49 }
 0x109   : > { %v1041_v61 = vld [vmem:[#allocation3 + $0x28] sm:$0xff]  ;;  %v1562_v54 = vpop.f32.mrf.mxu1 }
 0x10a   : > { %833 = vst.msk [vmem:[#allocation3 + $0x30] sm:$0xff] %vm675_vm7, %v825_v60  ;;  %v1049_v62 = vadd.f32 %v1041_v61, %v1028_v55 }
 0x10b   : > { %v1254_v50 = vld [vmem:[#allocation3 + $0x20] sm:$0xff] }
 0x10c   : > { %1057 = vst.msk [vmem:[#allocation3 + $0x28] sm:$0xff] %vm675_vm7, %v1049_v62  ;;  %v1342_v11 = vpop.f32.mrf.mxu0  ;;  %v1031_v5 = vpop.f32.mrf.mxu2 }
 0x10e   : > { %v818_v0 = vld [vmem:[#allocation3 + $0x38] sm:$0xff]  ;;  %v1230_v1 = vpop.f32.mrf.mxu3 }
 0x10f   : > { %v826_v6 = vadd.f32 %v818_v0, %v808_v63  ;;  %v1258_v53 = vadd.f32 %v1250_v4, %v1230_v1 }
 0x111   : > { %v1042_v3 = vld [vmem:[#allocation3 + $0x30] sm:$0xff]  ;;  %834 = vst.msk [vmem:[#allocation3 + $0x38] sm:$0xff] %vm675_vm7, %v826_v6  ;;  %v1564_v47 = vpop.f32.mrf.mxu1 }
 0x112   : > { %v1050_v8 = vadd.f32 %v1042_v3, %v1031_v5  ;;  %1266 = vst.msk [vmem:[#allocation3] sm:$0xff] %vm675_vm7, %v1258_v53 }
 0x113   : > { %v1255_v5 = vld [vmem:[#allocation3 + $0x28] sm:$0xff] }
 0x114   : > { %1058 = vst.msk [vmem:[#allocation3 + $0x30] sm:$0xff] %vm675_vm7, %v1050_v8  ;;  %v1345_v25 = vpop.f32.mrf.mxu0  ;;  %v1033_v10 = vpop.f32.mrf.mxu2 }
 0x116   : > { %v1232_v13 = vpop.f32.mrf.mxu3 }
 0x117   : > { %v1259_v15 = vadd.f32 %v1251_v14, %v1232_v13 }
 0x118   : > { %v1043_v16 = vld [vmem:[#allocation3 + $0x38] sm:$0xff] }
 0x119   : > { %v1360_v17 = vld [vmem:[#allocation3] sm:$0xff]  ;;  %1267 = vst.msk [vmem:[#allocation3 + $0x8] sm:$0xff] %vm675_vm7, %v1259_v15  ;;  %v1051_v19 = vadd.f32 %v1043_v16, %v1033_v10  ;;  %v1567_v36 = vpop.f32.mrf.mxu1 }
 0x11a   : > { %v1368_v27 = vadd.f32 %v1360_v17, %v1340_v52 }
 0x11b   : > { %1059 = vst.msk [vmem:[#allocation3 + $0x38] sm:$0xff] %vm675_vm7, %v1051_v19  ;;  %v1256_v14 = vld [vmem:[#allocation3 + $0x30] sm:$0xff] }
 0x11c   : > { %v1347_v32 = vpop.f32.mrf.mxu0  ;;  %1376 = vst.msk [vmem:[#allocation3] sm:$0xff] %vm675_vm7, %v1368_v27  ;;  %v1777_v20 = vpop.f32.mrf.mxu2 }
 0x11e   : > { %v1235_v22 = vpop.f32.mrf.mxu3 }
 0x11f   : > { %v1260_v28 = vadd.f32 %v1252_v26, %v1235_v22 }
 0x120   : > { %v1361_v29 = vld [vmem:[#allocation3 + $0x8] sm:$0xff] }
 0x121   : > { %v1369_v31 = vadd.f32 %v1361_v29, %v1342_v11  ;;  %1268 = vst.msk [vmem:[#allocation3 + $0x10] sm:$0xff] %vm675_vm7, %v1260_v28  ;;  %v1569_v52 = vpop.f32.mrf.mxu1 }
 0x122   : > { %v1257_v29 = vld [vmem:[#allocation3 + $0x38] sm:$0xff] }
 0x123   : > { %1377 = vst.msk [vmem:[#allocation3 + $0x8] sm:$0xff] %vm675_vm7, %v1369_v31  ;;  %v1582_v2 = vld [vmem:[#allocation3] sm:$0xff] }
 0x124   : > { %v1350_v23 = vpop.f32.mrf.mxu0  ;;  %v1590_v34 = vadd.f32 %v1582_v2, %v1562_v54  ;;  %v1779_v39 = vpop.f32.mrf.mxu2 }
 0x126   : > { %1598 = vst.msk [vmem:[#allocation3] sm:$0xff] %vm675_vm7, %v1590_v34  ;;  %v1237_v37 = vpop.f32.mrf.mxu3 }
 0x127   : > { %v1261_v40 = vadd.f32 %v1253_v38, %v1237_v37 }
 0x128   : > { %v1362_v41 = vld [vmem:[#allocation3 + $0x10] sm:$0xff] }
 0x129   : > { %v1370_v42 = vadd.f32 %v1362_v41, %v1345_v25  ;;  %1269 = vst.msk [vmem:[#allocation3 + $0x18] sm:$0xff] %vm675_vm7, %v1261_v40  ;;  %v1572_v53 = vpop.f32.mrf.mxu1  ;;  %v6592_v40 = vld [vmem:[#allocation10 + $0x18] sm:$0xff] }
 0x12a   : > { %v1583_v43 = vld [vmem:[#allocation3 + $0x8] sm:$0xff]  ;;  %2473 = vmatpush.bf16.msra.mxu2 %v6592_v40  ;;  %v2521_v40 = vld [vmem:[#allocation2 + $0x8] sm:$0x1] }
 0x12b   : > { %1378 = vst.msk [vmem:[#allocation3 + $0x10] sm:$0xff] %vm675_vm7, %v1370_v42  ;;  %v1591_v45 = vadd.f32 %v1583_v43, %v1564_v47 }
 0x12c   : > { %v1352_v44 = vpop.f32.mrf.mxu0  ;;  %v1782_v56 = vpop.f32.mrf.mxu2 }
 0x12d   : > { %1599 = vst.msk [vmem:[#allocation3 + $0x8] sm:$0xff] %vm675_vm7, %v1591_v45  ;;  %v1797_v46 = vld [vmem:[#allocation3] sm:$0xff] }
 0x12e   : > { %v1805_v48 = vadd.f32 %v1797_v46, %v1777_v20  ;;  %v1240_v49 = vpop.f32.mrf.mxu3 }
 0x12f   : > { %v1262_v51 = vadd.f32 %v1254_v50, %v1240_v49 }
 0x130   : > { %v1363_v55 = vld [vmem:[#allocation3 + $0x18] sm:$0xff]  ;;  %1813 = vst.msk [vmem:[#allocation3] sm:$0xff] %vm675_vm7, %v1805_v48  ;;  %v6591_v48 = vld [vmem:[#allocation10 + $0x10] sm:$0xff] }
 0x131   : > { %v1371_v58 = vadd.f32 %v1363_v55, %v1347_v32  ;;  %1270 = vst.msk [vmem:[#allocation3 + $0x20] sm:$0xff] %vm675_vm7, %v1262_v51  ;;  %v1574_v47 = vpop.f32.mrf.mxu1  ;;  %v6585_v51 = vld [vmem:[#allocation10] sm:$0xff]  ;;  %2474 = vmatpush.bf16.msra.mxu2 %v6591_v48 }
 0x132   : > { %v1584_v60 = vld [vmem:[#allocation3 + $0x10] sm:$0xff]  ;;  %2380 = vmatpush.bf16.msra.mxu1 %v6585_v51  ;;  %v2744_v51 = vld [vmem:[#allocation2 + $0x18] sm:$0x8] }
 0x133   : > { %1379 = vst.msk [vmem:[#allocation3 + $0x18] sm:$0xff] %vm675_vm7, %v1371_v58  ;;  %v1592_v61 = vadd.f32 %v1584_v60, %v1567_v36 }
 0x134   : > { %v1798_v62 = vld [vmem:[#allocation3 + $0x8] sm:$0xff]  ;;  %v1355_v0 = vpop.f32.mrf.mxu0  ;;  %v1784_v8 = vpop.f32.mrf.mxu2 }
 0x135   : > { %1600 = vst.msk [vmem:[#allocation3 + $0x10] sm:$0xff] %vm675_vm7, %v1592_v61  ;;  %v1806_v63 = vadd.f32 %v1798_v62, %v1779_v39 }
 0x136   : > { %v1242_v11 = vpop.f32.mrf.mxu3 }
 0x137   : > { %1814 = vst.msk [vmem:[#allocation3 + $0x8] sm:$0xff] %vm675_vm7, %v1806_v63  ;;  %v1263_v1 = vadd.f32 %v1255_v5, %v1242_v11  ;;  %v1907_v42 = vld [vmem:[#allocation3] sm:$0xff] }
 0x138   : > { %v1364_v4 = vld [vmem:[#allocation3 + $0x20] sm:$0xff] }
 0x139   : > { %v1372_v6 = vadd.f32 %v1364_v4, %v1350_v23  ;;  %1271 = vst.msk [vmem:[#allocation3 + $0x28] sm:$0xff] %vm675_vm7, %v1263_v1  ;;  %v1577_v39 = vpop.f32.mrf.mxu1  ;;  %v6594_v5 = vld [vmem:[#allocation10 + $0x28] sm:$0xff] }
 0x13a   : > { %v1585_v3 = vld [vmem:[#allocation3 + $0x18] sm:$0xff]  ;;  %2695 = vmatpush.bf16.msrb.mxu3 %v6594_v5  ;;  %v2546_v5 = vshll.u32 %v2521_v40, 16  ;;  %v2176_v40 = vunpack.c.l.bf16 %v7218_v30 }
 0x13b   : > { %1380 = vst.msk [vmem:[#allocation3 + $0x20] sm:$0xff] %vm675_vm7, %v1372_v6  ;;  %v1593_v54 = vadd.f32 %v1585_v3, %v1569_v52 }
 0x13c   : > { %v1799_v25 = vld [vmem:[#allocation3 + $0x10] sm:$0xff]  ;;  %v1357_v17 = vpop.f32.mrf.mxu0  ;;  %v1787_v22 = vpop.f32.mrf.mxu2 }
 0x13d   : > { %1601 = vst.msk [vmem:[#allocation3 + $0x18] sm:$0xff] %vm675_vm7, %v1593_v54  ;;  %v1807_v10 = vadd.f32 %v1799_v25, %v1782_v56 }
 0x13e   : > { %v1245_v13 = vpop.f32.mrf.mxu3  ;;  %v1908_v60 = vld [vmem:[#allocation3 + $0x8] sm:$0xff] }
 0x13f   : > { %1815 = vst.msk [vmem:[#allocation3 + $0x10] sm:$0xff] %vm675_vm7, %v1807_v10  ;;  %v1264_v15 = vadd.f32 %v1256_v14, %v1245_v13  ;;  %v6596_v10 = vld [vmem:[#allocation10 + $0x38] sm:$0xff]  ;;  %v7529_v13 = vld [vmem:[%s8343_s2] ss:$0 sm:$0xff] }
 0x140   : > { %v1365_v16 = vld [vmem:[#allocation3 + $0x28] sm:$0xff]  ;;  %2909 = vmatpush.bf16.msrb.mxu0 %v6596_v10 }
 0x141   : > { %v1373_v19 = vadd.f32 %v1365_v16, %v1352_v44  ;;  %1272 = vst.msk [vmem:[#allocation3 + $0x30] sm:$0xff] %vm675_vm7, %v1264_v15  ;;  %v1579_v63 = vpop.f32.mrf.mxu1  ;;  %v2214_v15 = vld [vmem:[#allocation2 + $0x4] sm:$0xf] }
 0x142   : > { %v1586_v27 = vld [vmem:[#allocation3 + $0x20] sm:$0xff] }
 0x143   : > { %1381 = vst.msk [vmem:[#allocation3 + $0x28] sm:$0xff] %vm675_vm7, %v1373_v19  ;;  %v1594_v32 = vadd.f32 %v1586_v27, %v1572_v53  ;;  %v6593_v53 = vld [vmem:[#allocation10 + $0x20] sm:$0xff]  ;;  %v2173_v19 = vunpack.c.l.bf16 %v7190_v7 }
 0x144   : > { %v1800_v20 = vld [vmem:[#allocation3 + $0x18] sm:$0xff]  ;;  %v2109_v34 = vpop.f32.mrf.mxu0  ;;  %v1789_v43 = vpop.f32.mrf.mxu2  ;;  %2696 = vmatpush.bf16.msrb.mxu3 %v6593_v53  ;;  %v2215_v7 = vld [vmem:[#allocation2 + $0xc] sm:$0x8]  ;;  %v2772_v53 = vshrl.u32 %v2744_v51, 16 }
 0x145   : > { %1602 = vst.msk [vmem:[#allocation3 + $0x20] sm:$0xff] %vm675_vm7, %v1594_v32  ;;  %v1808_v26 = vadd.f32 %v1800_v20, %v1784_v8  ;;  %v2213_v20 = vld [vmem:[#allocation2] sm:$0x8] }
 0x146   : > { %v1247_v28 = vpop.f32.mrf.mxu3  ;;  %v1909_v54 = vld [vmem:[#allocation3 + $0x10] sm:$0xff] }
 0x147   : > { %1816 = vst.msk [vmem:[#allocation3 + $0x18] sm:$0xff] %vm675_vm7, %v1808_v26  ;;  %v1265_v31 = vadd.f32 %v1257_v29, %v1247_v28  ;;  %v6595_v26 = vld [vmem:[#allocation10 + $0x30] sm:$0xff] }
 0x148   : > { %v1366_v2 = vld [vmem:[#allocation3 + $0x30] sm:$0xff]  ;;  %2910 = vmatpush.bf16.msrb.mxu0 %v6595_v26 }
 0x149   : > { %v1374_v23 = vadd.f32 %v1366_v2, %v1355_v0  ;;  %1273 = vst.msk [vmem:[#allocation3 + $0x38] sm:$0xff] %vm675_vm7, %v1265_v31 }
 0x14a   : > { %v1587_v59 = vld [vmem:[#allocation3 + $0x28] sm:$0xff] }
 0x14b   : > { %1382 = vst.msk [vmem:[#allocation3 + $0x30] sm:$0xff] %vm675_vm7, %v1374_v23  ;;  %v1595_v36 = vadd.f32 %v1587_v59, %v1574_v47 }
 0x14c   : > { %v1801_v37 = vld [vmem:[#allocation3 + $0x20] sm:$0xff]  ;;  %v2111_v55 = vpop.f32.mrf.mxu0  ;;  %v1792_v11 = vpop.f32.mrf.mxu2 }
 0x14d   : > { %1603 = vst.msk [vmem:[#allocation3 + $0x28] sm:$0xff] %vm675_vm7, %v1595_v36  ;;  %v1809_v38 = vadd.f32 %v1801_v37, %v1787_v22  ;;  %v2235_v22 = vshrl.u32 %v2214_v15, 16  ;;  %v2230_v36 = vshrl.u32 %v2213_v20, 16 }
 0x14e   : > { %v1887_v41 = vpop.f32.mrf.mxu3 }
 0x14f   : > { %1817 = vst.msk [vmem:[#allocation3 + $0x20] sm:$0xff] %vm675_vm7, %v1809_v38  ;;  %v1915_v45 = vadd.f32 %v1907_v42, %v1887_v41  ;;  %v2237_v38 = vrot.slane %v2235_v22, 7  ;;  %v2523_v41 = vld [vmem:[#allocation2 + $0x14] sm:$0x1]  ;;  %v6202_v22 = vld [vmem:[#allocation2 + $0x4] sm:$0xf] }
 0x150   : > { %v1367_v44 = vld [vmem:[#allocation3 + $0x38] sm:$0xff] }
 0x151   : > { %v1375_v46 = vadd.f32 %v1367_v44, %v1357_v17  ;;  %1923 = vst.msk [vmem:[#allocation3] sm:$0xff] %vm675_vm7, %v1915_v45  ;;  %v2520_v17 = vld [vmem:[#allocation2 + $0x4] sm:$0xf] }
 0x152   : > { %v1588_v49 = vld [vmem:[#allocation3 + $0x30] sm:$0xff]  ;;  %v2537_v29 = vshrl.u32 %v2520_v17, 16  ;;  %v2540_v31 = vshll.u32 %v2520_v17, 16  ;;  %v7549_v17 = vrot.slane %v2546_v5, 5 }
 0x153   : > { %1383 = vst.msk [vmem:[#allocation3 + $0x38] sm:$0xff] %vm675_vm7, %v1375_v46  ;;  %v1596_v50 = vadd.f32 %v1588_v49, %v1577_v39  ;;  %v2238_v39 = vshll.u32 %v2214_v15, 16  ;;  %v2742_v46 = vld [vmem:[#allocation2 + $0xc] sm:$0x8] }
 0x154   : > { %v1802_v52 = vld [vmem:[#allocation3 + $0x28] sm:$0xff]  ;;  %v2114_v25 = vpop.f32.mrf.mxu0  ;;  %v1794_v47 = vpop.f32.mrf.mxu2  ;;  %v2539_v45 = vrot.slane %v2537_v29, 4  ;;  %v2542_v44 = vrot.slane %v2540_v31, 5  ;;  %v7557_v31 = vrot.slane %v2772_v53, 11 }
 0x155   : > { %1604 = vst.msk [vmem:[#allocation3 + $0x30] sm:$0xff] %vm675_vm7, %v1596_v50  ;;  %v1810_v56 = vadd.f32 %v1802_v52, %v1789_v43  ;;  %v2243_v50 = vshrl.u32 %v2215_v7, 16  ;;  %v2217_v52 = vld [vmem:[#allocation2 + $0x18] sm:$0x8] }
 0x156   : > { %v1889_v58 = vpop.f32.mrf.mxu3  ;;  %v1911_v15 = vld [vmem:[#allocation3 + $0x20] sm:$0xff] }
 0x157   : > { %1818 = vst.msk [vmem:[#allocation3 + $0x28] sm:$0xff] %vm675_vm7, %v1810_v56  ;;  %v1916_v61 = vadd.f32 %v1908_v60, %v1889_v58  ;;  %v2174_v56 = vunpack.c.l.bf16 %v7197_v18  ;;  %v6180_v60 = vrot.slane %v2230_v36, 11  ;;  %v2256_v18 = vshrl.u32 %v2217_v52, 16 }
 0x158   : > { %v2129_v62 = vld [vmem:[#allocation3] sm:$0xff]  ;;  %v7545_v10 = vrot.slane %v2243_v50, 11 }
 0x159   : > { %v2137_v0 = vadd.f32 %v2129_v62, %v2109_v34  ;;  %1924 = vst.msk [vmem:[#allocation3 + $0x8] sm:$0xff] %vm675_vm7, %v1916_v61  ;;  %v1910_v34 = vld [vmem:[#allocation3 + $0x18] sm:$0xff]  ;;  %v2219_v61 = vld [vmem:[#allocation2 + $0x24] sm:$0x8]  ;;  %v2525_v62 = vld [vmem:[#allocation2 + $0x20] sm:$0x1] }
 0x15a   : > { %v1589_v1 = vld [vmem:[#allocation3 + $0x38] sm:$0xff] }
 0x15b   : > { %2145 = vst.msk [vmem:[#allocation3] sm:$0xff] %vm675_vm7, %v2137_v0  ;;  %v1597_v4 = vadd.f32 %v1589_v1, %v1579_v63  ;;  %v2560_v0 = vshll.u32 %v2523_v41, 16  ;;  %v2759_v1 = vshrl.u32 %v2742_v46, 16  ;;  %v6602_v50 = vld [vmem:[#allocation10 + $0x48] sm:$0xff] }
 0x15c   : > { %v1803_v6 = vld [vmem:[#allocation3 + $0x30] sm:$0xff]  ;;  %v2116_v49 = vpop.f32.mrf.mxu0  ;;  %3019 = vmatpush.bf16.msrb.mxu1 %v6602_v50 }
 0x15d   : > { %1605 = vst.msk [vmem:[#allocation3 + $0x38] sm:$0xff] %vm675_vm7, %v1597_v4  ;;  %v1811_v3 = vadd.f32 %v1803_v6, %v1792_v11  ;;  %v2240_v11 = vor.u32 %v2238_v39, %v2237_v38  ;;  %v2543_v6 = vor.u32 %v2542_v44, %v2539_v45  ;;  %v2221_v38 = vld [vmem:[#allocation2 + $0x30] sm:$0x8]  ;;  %v2175_v39 = vunpack.c.l.bf16 %v7202_v21 }
 0x15e   : > { %v1892_v8 = vpop.f32.mrf.mxu3  ;;  %v2282_v5 = vshrl.u32 %v2221_v38, 16 }
 0x15f   : > { %1819 = vst.msk [vmem:[#allocation3 + $0x30] sm:$0xff] %vm675_vm7, %v1811_v3  ;;  %v1917_v14 = vadd.f32 %v1909_v54, %v1892_v8  ;;  %v2269_v3 = vshrl.u32 %v2219_v61, 16  ;;  %v2574_v8 = vshll.u32 %v2525_v62, 16  ;;  %v2746_v54 = vld [vmem:[#allocation2 + $0x24] sm:$0x8]  ;;  %v7555_v26 = vrot.slane %v2543_v6, 4 }
 0x160   : > { %v2130_v16 = vld [vmem:[#allocation3 + $0x8] sm:$0xff] }
 0x161   : > { %v2138_v27 = vadd.f32 %v2130_v16, %v2111_v55  ;;  %1925 = vst.msk [vmem:[#allocation3 + $0x10] sm:$0xff] %vm675_vm7, %v1917_v14  ;;  %v2241_v16 = vsel %vm7225_vm6, %v6180_v60, %v2240_v11  ;;  %v2549_v21 = vsel %vm7283_vm12, %v7555_v26, %v7549_v17  ;;  %v1912_v6 = vld [vmem:[#allocation3 + $0x28] sm:$0xff] }
 0x162   : > { %v2153_v32 = vld [vmem:[#allocation3] sm:$0xff]  ;;  %v7570_v45 = vunpack.c.l.b16 %v2241_v16 }
 0x163   : > { %v2165_v28 = vadd.f32 %v7529_v13, %v2153_v32  ;;  %2146 = vst.msk [vmem:[#allocation3 + $0x8] sm:$0xff] %vm675_vm7, %v2138_v27  ;;  %v7553_v27 = vrot.slane %v2759_v1, 11  ;;  %v2527_v32 = vld [vmem:[#allocation2 + $0x2c] sm:$0x1] }
 0x164   : > { %v1804_v2 = vld [vmem:[#allocation3 + $0x38] sm:$0xff]  ;;  %v2588_v36 = vshll.u32 %v2527_v32, 16  ;;  %v2119_v41 = vpop.f32.mrf.mxu0 }
 0x165   : > { %v2181_v23 = vadd.f32 %v2173_v19, %v2165_v28  ;;  %v1812_v59 = vadd.f32 %v1804_v2, %v1794_v47  ;;  %v7551_v19 = vrot.slane %v2560_v0, 5  ;;  %v2785_v28 = vshrl.u32 %v2746_v54, 16  ;;  %v2529_v0 = vld [vmem:[#allocation2 + $0x38] sm:$0x1] }
 0x166   : > { %v1894_v37 = vpop.f32.mrf.mxu3  ;;  %v7559_v2 = vrot.slane %v2256_v18, 11 }
 0x167   : > { %v2189_v42 = vmax.f32 %v2181_v23, 0.0  ;;  %1820 = vst.msk [vmem:[#allocation3 + $0x38] sm:$0xff] %vm675_vm7, %v1812_v59  ;;  %v1918_v43 = vadd.f32 %v1910_v34, %v1894_v37  ;;  %v7561_v23 = vrot.slane %v2269_v3, 11  ;;  %v7563_v59 = vrot.slane %v2574_v8, 5  ;;  %v2748_v37 = vld [vmem:[#allocation2 + $0x30] sm:$0x8] }
 0x168   : > { %v2131_v48 = vld [vmem:[#allocation3 + $0x10] sm:$0xff]  ;;  %v7578_v51 = vrot.slane %v2785_v28, 11  ;;  %v2798_v61 = vshrl.u32 %v2748_v37, 16  ;;  %v7583_v3 = vrot.slane %v2588_v36, 5 }
 0x169   : > { %v7537_v55 = vpack.c.bf16 %v2189_v42, %v2189_v42  ;;  %v2139_v58 = vadd.f32 %v2131_v48, %v2114_v25  ;;  %1926 = vst.msk [vmem:[#allocation3 + $0x18] sm:$0xff] %vm675_vm7, %v1918_v43 }
 0x16a   : > { %v2154_v63 = vld [vmem:[#allocation3 + $0x8] sm:$0xff] }
 0x16b   : > { %2205 = vst.msk [vmem:[#allocation2 + $0x10] sm:$0xf] %vm446_vm0, %v7537_v55  ;;  %v2166_v4 = vadd.f32 %v7529_v13, %v2154_v63 }
 0x16c   : > { %2147 = vst.msk [vmem:[#allocation3 + $0x10] sm:$0xff] %vm675_vm7, %v2139_v58 }
 0x16d   : > { %v2182_v25 = vadd.f32 %v2174_v56, %v2166_v4 }
 0x16e   : > { %v1897_v14 = vpop.f32.mrf.mxu3 }
 0x16f   : > { %v2190_v47 = vmax.f32 %v2182_v25, 0.0  ;;  %v1919_v20 = vadd.f32 %v1911_v15, %v1897_v14 }
 0x170   : > { %v2132_v29 = vld [vmem:[#allocation3 + $0x18] sm:$0xff] }
 0x171   : > { %v7565_v34 = vpack.c.bf16 %v2190_v47, %v2190_v47  ;;  %v2140_v7 = vadd.f32 %v2132_v29, %v2116_v49  ;;  %1927 = vst.msk [vmem:[#allocation3 + $0x20] sm:$0xff] %vm675_vm7, %v1919_v20  ;;  %v7587_v47 = vrot.slane %v2798_v61, 11  ;;  %v2223_v20 = vld [vmem:[#allocation2 + $0x3c] sm:$0x8]  ;;  %v7593_v29 = vrot.slane %v2282_v5, 11  ;;  %v1913_v5 = vld [vmem:[#allocation3 + $0x30] sm:$0xff] }
 0x172   : > { %v6587_v42 = vld [vmem:[#allocation2 + $0xc] sm:$0xf0] }
 0x173   : > { %v2216_v43 = vld [vmem:[#allocation2 + $0x10] sm:$0xf]  ;;  %2206 = vst.msk [vmem:[#allocation2 + $0x1c] sm:$0xf] %vm446_vm0, %v7565_v34  ;;  %v2155_v46 = vld [vmem:[#allocation3 + $0x10] sm:$0xff]  ;;  %v6203_v48 = vor.u32 %v6587_v42, %v6202_v22  ;;  %v2602_v22 = vshll.u32 %v2529_v0, 16 }
 0x174   : > { %v2522_v44 = vld [vmem:[#allocation2 + $0x10] sm:$0xf]  ;;  %v2248_v49 = vshrl.u32 %v2216_v43, 16  ;;  %v2167_v52 = vadd.f32 %v7529_v13, %v2155_v46  ;;  %2148 = vst.msk [vmem:[#allocation3 + $0x18] sm:$0xff] %vm675_vm7, %v2140_v7  ;;  %v2251_v63 = vshll.u32 %v2216_v43, 16 }
 0x175   : > { %v2551_v56 = vshrl.u32 %v2522_v44, 16  ;;  %v2554_v58 = vshll.u32 %v2522_v44, 16  ;;  %v2743_v60 = vld [vmem:[#allocation2 + $0x10] sm:$0xf]  ;;  %6224 = vmatmul.msk.bf16.vlgmr.msra.gmra.mxu2 %vm675_vm7, %v6203_v48  ;;  %v2295_v48 = vshrl.u32 %v2223_v20, 16 }
 0x176   : > { %v2250_v62 = vrot.slane %v2248_v49, 7  ;;  %v2764_v11 = vshrl.u32 %v2743_v60, 16  ;;  %v2183_v1 = vadd.f32 %v2175_v39, %v2167_v52  ;;  %v1899_v4 = vpop.f32.mrf.mxu3  ;;  %v7585_v8 = vld [vmem:[#allocation2 + $0x10] sm:$0xf]  ;;  %v2767_v15 = vshll.u32 %v2743_v60, 16  ;;  %v2121_v49 = vpop.f32.mrf.mxu0 }
 0x177   : > { %v2553_v53 = vrot.slane %v2551_v56, 4  ;;  %v2556_v18 = vrot.slane %v2554_v58, 5  ;;  %v1920_v54 = vadd.f32 %v1912_v6, %v1899_v4  ;;  %v3083_v7 = vshrl.u32 %v7585_v8, 16 }
 0x178   : > { %v2253_v25 = vor.u32 %v2251_v63, %v2250_v62  ;;  %v2766_v14 = vrot.slane %v2764_v11, 7  ;;  %v2191_v16 = vmax.f32 %v2183_v1, 0.0  ;;  %v2133_v17 = vld [vmem:[#allocation3 + $0x20] sm:$0xff]  ;;  %v7606_v58 = vrot.slane %v2602_v22, 5 }
 0x179   : > { %v2557_v32 = vor.u32 %v2556_v18, %v2553_v53  ;;  %v2141_v26 = vadd.f32 %v2133_v17, %v2119_v41  ;;  %1928 = vst.msk [vmem:[#allocation3 + $0x28] sm:$0xff] %vm675_vm7, %v1920_v54  ;;  %v2653_v41 = vunpack.c.l.b16 %v2549_v21  ;;  %v2177_v54 = vunpack.c.l.bf16 %v7221_v33 }
 0x17a   : > { %v2254_v28 = vsel %vm7225_vm6, %v7545_v10, %v2253_v25  ;;  %v7596_v36 = vpack.c.bf16 %v2191_v16, %v2191_v16  ;;  %v2745_v39 = vld [vmem:[#allocation2 + $0x1c] sm:$0xf]  ;;  %v2769_v42 = vor.u32 %v2767_v15, %v2766_v14  ;;  %v2531_v14 = vld [vmem:[#allocation2 + $0x44] sm:$0x1] }
 0x17b   : > { %v2338_v37 = vunpack.c.l.b16 %v2254_v28  ;;  %v2558_v38 = vrot.slane %v2557_v32, 4  ;;  %v2156_v43 = vld [vmem:[#allocation3 + $0x18] sm:$0xff]  ;;  %2149 = vst.msk [vmem:[#allocation3 + $0x20] sm:$0xff] %vm675_vm7, %v2141_v26  ;;  %v2777_v44 = vshrl.u32 %v2745_v39, 16  ;;  %v2218_v46 = vld [vmem:[#allocation2 + $0x1c] sm:$0xf] }
 0x17c   : > { %2207 = vst.msk [vmem:[#allocation2 + $0x28] sm:$0xf] %vm446_vm0, %v7596_v36  ;;  %v2168_v10 = vadd.f32 %v7529_v13, %v2156_v43  ;;  %v2524_v56 = vld [vmem:[#allocation2 + $0x1c] sm:$0xf]  ;;  %v2780_v61 = vshll.u32 %v2745_v39, 16  ;;  %v2261_v62 = vshrl.u32 %v2218_v46, 16 }
 0x17d   : > { %v2345_v50 = vpack.c.b16 %v2338_v37, %v7570_v45  ;;  %v2563_v52 = vsel %vm7283_vm12, %v2558_v38, %v7551_v19  ;;  %v2779_v21 = vrot.slane %v2777_v44, 7  ;;  %v2770_v45 = vsel %vm7225_vm6, %v7553_v27, %v2769_v42  ;;  %v7620_v32 = vld [vmem:[#allocation2 + $0x3c] sm:$0x8] }
 0x17e   : > { %v2654_v60 = vunpack.c.l.b16 %v2563_v52  ;;  %v2184_v63 = vadd.f32 %v2176_v40, %v2168_v10  ;;  %v1902_v11 = vpop.f32.mrf.mxu3  ;;  %v2565_v0 = vshrl.u32 %v2524_v56, 16  ;;  %v2568_v19 = vshll.u32 %v2524_v56, 16  ;;  %v6206_v22 = vld [vmem:[#allocation2 + $0x1c] sm:$0xf] }
 0x17f   : > { %6196 = vmatmul.msk.bf16.vlgmr.msra.gmra.mxu1 %vm675_vm7, %v2345_v50  ;;  %v1921_v1 = vadd.f32 %v1913_v5, %v1902_v11  ;;  %v2782_v6 = vor.u32 %v2780_v61, %v2779_v21  ;;  %v2263_v53 = vrot.slane %v2261_v62, 7  ;;  %v2867_v16 = vunpack.c.l.b16 %v2770_v45  ;;  %v6604_v21 = vld [vmem:[#allocation10 + $0x58] sm:$0xff]  ;;  %v6601_v61 = vld [vmem:[#allocation10 + $0x40] sm:$0xff]  ;;  %v2124_v62 = vpop.f32.mrf.mxu0 }
 0x180   : > { %v2661_v4 = vpack.c.b16 %v2654_v60, %v2653_v41  ;;  %v2192_v18 = vmax.f32 %v2184_v63, 0.0  ;;  %v2134_v25 = vld [vmem:[#allocation3 + $0x28] sm:$0xff]  ;;  %v2567_v30 = vrot.slane %v2565_v0, 4  ;;  %v2570_v40 = vrot.slane %v2568_v19, 5  ;;  %v1914_v11 = vld [vmem:[#allocation3 + $0x38] sm:$0xff]  ;;  %3241 = vmatpush.bf16.msrb.mxu2 %v6604_v21  ;;  %3020 = vmatpush.bf16.msrb.mxu1 %v6601_v61 }
 0x181   : > { %v2142_v15 = vadd.f32 %v2134_v25, %v2121_v49  ;;  %1929 = vst.msk [vmem:[#allocation3 + $0x30] sm:$0xff] %vm675_vm7, %v1921_v1  ;;  %v2783_v27 = vsel %vm7225_vm6, %v7557_v31, %v2782_v6  ;;  %v2264_v17 = vshll.u32 %v2218_v46, 16  ;;  %v7624_v37 = vrot.slane %v2295_v48, 11  ;;  %v6606_v1 = vld [vmem:[#allocation10 + $0x68] sm:$0xff] }
 0x182   : > { %6236 = vmatmul.msk.bf16.vlgmr.msrb.gmra.mxu3 %vm675_vm7, %v2661_v4  ;;  %v7622_v20 = vpack.c.bf16 %v2192_v18, %v2192_v18  ;;  %v2157_v33 = vld [vmem:[#allocation3 + $0x20] sm:$0xff]  ;;  %v2868_v26 = vunpack.c.l.b16 %v2783_v27  ;;  %v2571_v28 = vor.u32 %v2570_v40, %v2567_v30  ;;  %v2616_v31 = vshll.u32 %v2531_v14, 16  ;;  %v2752_v14 = vld [vmem:[#allocation2 + $0x48] sm:$0x8] }
 0x183   : > { %v2169_v38 = vadd.f32 %v7529_v13, %v2157_v33  ;;  %2150 = vst.msk [vmem:[#allocation3 + $0x28] sm:$0xff] %vm675_vm7, %v2142_v15  ;;  %v6588_v39 = vld [vmem:[#allocation2 + $0x24] sm:$0xf0]  ;;  %v2266_v43 = vor.u32 %v2264_v17, %v2263_v53  ;;  %v2811_v49 = vshrl.u32 %v7620_v32, 16  ;;  %v2178_v48 = vunpack.c.l.bf16 %v7258_v24  ;;  %3455 = vmatpush.bf16.msra.mxu3 %v6606_v1 }
 0x184   : > { %v2220_v42 = vld [vmem:[#allocation2 + $0x28] sm:$0xf]  ;;  %2208 = vst.msk [vmem:[#allocation2 + $0x34] sm:$0xf] %vm446_vm0, %v7622_v20  ;;  %v6207_v41 = vor.u32 %v6588_v39, %v6206_v22  ;;  %v2875_v44 = vpack.c.b16 %v2868_v26, %v2867_v16  ;;  %v2572_v52 = vrot.slane %v2571_v28, 4 }
 0x185   : > { %v2274_v46 = vshrl.u32 %v2220_v42, 16  ;;  %v2526_v10 = vld [vmem:[#allocation2 + $0x28] sm:$0xf]  ;;  %v2185_v50 = vadd.f32 %v2177_v54, %v2169_v38  ;;  %v2277_v45 = vshll.u32 %v2220_v42, 16  ;;  %v2267_v24 = vsel %vm7225_vm6, %v7559_v2, %v2266_v43 }
 0x186   : > { %v2579_v56 = vshrl.u32 %v2526_v10, 16  ;;  %v2747_v60 = vld [vmem:[#allocation2 + $0x28] sm:$0xf]  ;;  %6225 = vmatmul.msk.bf16.gmra.mxu2 %vm675_vm7, %v6207_v41  ;;  %v1904_v63 = vpop.f32.mrf.mxu3  ;;  %6256 = vmatmul.msk.bf16.vlgmr.msrb.gmra.mxu0 %vm675_vm7, %v2875_v44  ;;  %v2582_v0 = vshll.u32 %v2526_v10, 16  ;;  %v2577_v16 = vsel %vm7283_vm12, %v2572_v52, %v7563_v59  ;;  %v7643_v2 = vrot.slane %v2616_v31, 5 }
 0x187   : > { %v2276_v5 = vrot.slane %v2274_v46, 7  ;;  %v2790_v19 = vshrl.u32 %v2747_v60, 16  ;;  %v2193_v4 = vmax.f32 %v2185_v50, 0.0  ;;  %v1922_v6 = vadd.f32 %v1914_v11, %v1904_v63  ;;  %v7645_v17 = vld [vmem:[#allocation2 + $0x48] sm:$0x8] }
 0x188   : > { %v2581_v53 = vrot.slane %v2579_v56, 4  ;;  %v2135_v18 = vld [vmem:[#allocation3 + $0x30] sm:$0xff]  ;;  %v2584_v25 = vrot.slane %v2582_v0, 5  ;;  %v2793_v40 = vshll.u32 %v2747_v60, 16  ;;  %v2339_v22 = vunpack.c.l.b16 %v2267_v24 }
 0x189   : > { %v2279_v54 = vor.u32 %v2277_v45, %v2276_v5  ;;  %v2792_v30 = vrot.slane %v2790_v19, 7  ;;  %v7637_v15 = vpack.c.bf16 %v2193_v4, %v2193_v4  ;;  %v2143_v27 = vadd.f32 %v2135_v18, %v2124_v62  ;;  %1930 = vst.msk [vmem:[#allocation3 + $0x38] sm:$0xff] %vm675_vm7, %v1922_v6  ;;  %v2126_v45 = vpop.f32.mrf.mxu0 }
 0x18a   : > { %v2158_v32 = vld [vmem:[#allocation3 + $0x28] sm:$0xff]  ;;  %v2585_v26 = vor.u32 %v2584_v25, %v2581_v53  ;;  %v7653_v59 = vrot.slane %v2811_v49, 11  ;;  %v2824_v43 = vshrl.u32 %v2752_v14, 16  ;;  %v2655_v41 = vunpack.c.l.b16 %v2577_v16 }
 0x18b   : > { %v2280_v33 = vsel %vm7225_vm6, %v7561_v23, %v2279_v54  ;;  %v2795_v28 = vor.u32 %v2793_v40, %v2792_v30  ;;  %2209 = vst.msk [vmem:[#allocation2 + $0x40] sm:$0xf] %vm446_vm0, %v7637_v15  ;;  %v2170_v38 = vadd.f32 %v7529_v13, %v2158_v32  ;;  %v2749_v42 = vld [vmem:[#allocation2 + $0x34] sm:$0xf]  ;;  %v2308_v23 = vshrl.u32 %v7645_v17, 16 }
 0x18c   : > { %v2340_v39 = vunpack.c.l.b16 %v2280_v33  ;;  %2151 = vst.msk [vmem:[#allocation3 + $0x30] sm:$0xff] %vm675_vm7, %v2143_v27  ;;  %v2586_v31 = vrot.slane %v2585_v26, 4  ;;  %v2803_v44 = vshrl.u32 %v2749_v42, 16  ;;  %v2222_v46 = vld [vmem:[#allocation2 + $0x34] sm:$0xf]  ;;  %v2806_v61 = vshll.u32 %v2749_v42, 16 }
 0x18d   : > { %v2186_v10 = vadd.f32 %v2178_v48, %v2170_v38  ;;  %v2796_v52 = vsel %vm7225_vm6, %v7578_v51, %v2795_v28  ;;  %v2287_v56 = vshrl.u32 %v2222_v46, 16  ;;  %v2528_v60 = vld [vmem:[#allocation2 + $0x34] sm:$0xf]  ;;  %v2290_v48 = vshll.u32 %v2222_v46, 16  ;;  %v6612_v42 = vld [vmem:[#allocation10 + $0x78] sm:$0xff] }
 0x18e   : > { %v2346_v50 = vpack.c.b16 %v2340_v39, %v2339_v22  ;;  %v2591_v49 = vsel %vm7283_vm12, %v2586_v31, %v7583_v3  ;;  %v2805_v21 = vrot.slane %v2803_v44, 7  ;;  %v2593_v62 = vshrl.u32 %v2528_v60, 16  ;;  %v6210_v53 = vld [vmem:[#allocation2 + $0x34] sm:$0xf]  ;;  %v6603_v39 = vld [vmem:[#allocation10 + $0x50] sm:$0xff]  ;;  %3565 = vmatpush.bf16.msra.mxu0 %v6612_v42 }
 0x18f   : > { %v2194_v63 = vmax.f32 %v2186_v10, 0.0  ;;  %v2656_v11 = vunpack.c.l.b16 %v2591_v49  ;;  %v2289_v5 = vrot.slane %v2287_v56, 7  ;;  %v2596_v51 = vshll.u32 %v2528_v60, 16  ;;  %v2533_v60 = vld [vmem:[#allocation2 + $0x50] sm:$0x1]  ;;  %3242 = vmatpush.bf16.msrb.mxu2 %v6603_v39 }
 0x190   : > { %6197 = vmatmul.msk.bf16.gmra.mxu1 %vm675_vm7, %v2346_v50  ;;  %v2136_v0 = vld [vmem:[#allocation3 + $0x38] sm:$0xff]  ;;  %v2808_v19 = vor.u32 %v2806_v61, %v2805_v21  ;;  %v2595_v1 = vrot.slane %v2593_v62, 4  ;;  %v7664_v4 = vrot.slane %v2824_v43, 11  ;;  %v2179_v54 = vunpack.c.l.bf16 %v7269_v57  ;;  %v2535_v62 = vld [vmem:[#allocation2 + $0x5c] sm:$0x1] }
 0x191   : > { %v7666_v6 = vpack.c.bf16 %v2194_v63, %v2194_v63  ;;  %v2144_v24 = vadd.f32 %v2136_v0, %v2126_v45  ;;  %v2662_v3 = vpack.c.b16 %v2656_v11, %v2655_v41  ;;  %v2292_v18 = vor.u32 %v2290_v48, %v2289_v5  ;;  %v6605_v45 = vld [vmem:[#allocation10 + $0x60] sm:$0xff] }
 0x192   : > { %v2180_v25 = vunpack.c.l.bf16 %v7352_v9  ;;  %v6589_v30 = vld [vmem:[#allocation2 + $0x3c] sm:$0xf0]  ;;  %v2809_v40 = vsel %vm7225_vm6, %v7587_v47, %v2808_v19  ;;  %v2869_v32 = vunpack.c.l.b16 %v2796_v52  ;;  %v2598_v38 = vrot.slane %v2596_v51, 5  ;;  %v2227_v52 = vld [vmem:[#allocation2 + $0x54] sm:$0x8]  ;;  %3456 = vmatpush.bf16.msra.mxu3 %v6605_v45 }
 0x193   : > { %v2224_v14 = vld [vmem:[#allocation2 + $0x40] sm:$0xf]  ;;  %2210 = vst.msk [vmem:[#allocation2 + $0x4c] sm:$0xf] %vm446_vm0, %v7666_v6  ;;  %v2159_v16 = vld [vmem:[#allocation3 + $0x30] sm:$0xff]  ;;  %6237 = vmatmul.msk.bf16.gmra.mxu3 %vm675_vm7, %v2662_v3  ;;  %v6211_v17 = vor.u32 %v6589_v30, %v6210_v53  ;;  %v2870_v33 = vunpack.c.l.b16 %v2809_v40  ;;  %v2293_v47 = vsel %vm7225_vm6, %v7593_v29, %v2292_v18  ;;  %v7682_v56 = vrot.slane %v2308_v23, 11 }
 0x194   : > { %v2530_v27 = vld [vmem:[#allocation2 + $0x40] sm:$0xf]  ;;  %v2300_v22 = vshrl.u32 %v2224_v14, 16  ;;  %v2171_v26 = vadd.f32 %v7529_v13, %v2159_v16  ;;  %2152 = vst.msk [vmem:[#allocation3 + $0x38] sm:$0xff] %vm675_vm7, %v2144_v24  ;;  %v2303_v28 = vshll.u32 %v2224_v14, 16  ;;  %v2599_v10 = vor.u32 %v2598_v38, %v2595_v1 }
 0x195   : > { %v2751_v57 = vld [vmem:[#allocation2 + $0x40] sm:$0xf]  ;;  %v2876_v43 = vpack.c.b16 %v2870_v33, %v2869_v32  ;;  %v2607_v41 = vshrl.u32 %v2530_v27, 16  ;;  %v2610_v44 = vshll.u32 %v2530_v27, 16  ;;  %v2341_v49 = vunpack.c.l.b16 %v2293_v47 }
 0x196   : > { %v2302_v31 = vrot.slane %v2300_v22, 7  ;;  %v2187_v46 = vadd.f32 %v2179_v54, %v2171_v26  ;;  %6226 = vmatmul.msk.bf16.gmra.mxu2 %vm675_vm7, %v6211_v17  ;;  %v2816_v50 = vshrl.u32 %v2751_v57, 16  ;;  %v2600_v11 = vrot.slane %v2599_v10, 4 }
 0x197   : > { %6257 = vmatmul.msk.bf16.gmra.mxu0 %vm675_vm7, %v2876_v43  ;;  %v2609_v21 = vrot.slane %v2607_v41, 4  ;;  %v2612_v61 = vrot.slane %v2610_v44, 5  ;;  %v2819_v48 = vshll.u32 %v2751_v57, 16  ;;  %v2321_v19 = vshrl.u32 %v2227_v52, 16  ;;  %v6614_v41 = vld [vmem:[#allocation10 + $0x88] sm:$0xff] }
 0x198   : > { %v2305_v29 = vor.u32 %v2303_v28, %v2302_v31  ;;  %v2195_v63 = vmax.f32 %v2187_v46, 0.0  ;;  %v2818_v5 = vrot.slane %v2816_v50, 7  ;;  %v2630_v1 = vshll.u32 %v2533_v60, 16  ;;  %v3067_v52 = vld [vmem:[#allocation2 + $0x14] sm:$0x1]  ;;  %3787 = vmatpush.bf16.msra.mxu1 %v6614_v41 }
 0x199   : > { %v2613_v0 = vor.u32 %v2612_v61, %v2609_v21  ;;  %v2605_v3 = vsel %vm7283_vm12, %v2600_v11, %v7606_v58  ;;  %v6187_v31 = vrot.slane %v2321_v19, 11  ;;  %v3086_v60 = vshll.u32 %v7585_v8, 16 }
 0x19a   : > { %v2306_v23 = vsel %vm7225_vm6, %v7624_v37, %v2305_v29  ;;  %v7688_v51 = vpack.c.bf16 %v2195_v63, %v2195_v63  ;;  %v2753_v53 = vld [vmem:[#allocation2 + $0x4c] sm:$0xf]  ;;  %v2821_v18 = vor.u32 %v2819_v48, %v2818_v5  ;;  %v2657_v14 = vunpack.c.l.b16 %v2605_v3 }
 0x19b   : > { %v2342_v24 = vunpack.c.l.b16 %v2306_v23  ;;  %v2226_v54 = vld [vmem:[#allocation2 + $0x4c] sm:$0xf]  ;;  %v2160_v30 = vld [vmem:[#allocation3 + $0x38] sm:$0xff]  ;;  %v2614_v40 = vrot.slane %v2613_v0, 4  ;;  %v2829_v27 = vshrl.u32 %v2753_v53, 16  ;;  %v2644_v37 = vshll.u32 %v2535_v62, 16 }
 0x19c   : > { %v2532_v16 = vld [vmem:[#allocation2 + $0x4c] sm:$0xf]  ;;  %2211 = vst.msk [vmem:[#allocation2 + $0x58] sm:$0xf] %vm446_vm0, %v7688_v51  ;;  %v2172_v17 = vadd.f32 %v7529_v13, %v2160_v30  ;;  %v2822_v58 = vsel %vm7225_vm6, %v7653_v59, %v2821_v18  ;;  %v2313_v33 = vshrl.u32 %v2226_v54, 16  ;;  %v2832_v26 = vshll.u32 %v2753_v53, 16 }
 0x19d   : > { %v2347_v32 = vpack.c.b16 %v2342_v24, %v2341_v49  ;;  %v2619_v22 = vsel %vm7283_vm12, %v2614_v40, %v7643_v2  ;;  %v2831_v57 = vrot.slane %v2829_v27, 7  ;;  %v2316_v47 = vshll.u32 %v2226_v54, 16  ;;  %v6214_v49 = vld [vmem:[#allocation2 + $0x4c] sm:$0xf]  ;;  %v3068_v62 = vld [vmem:[#allocation2 + $0x1c] sm:$0xf] }
 0x19e   : > { %v2188_v28 = vadd.f32 %v2180_v25, %v2172_v17  ;;  %v2658_v38 = vunpack.c.l.b16 %v2619_v22  ;;  %v2315_v39 = vrot.slane %v2313_v33, 7  ;;  %v2621_v42 = vshrl.u32 %v2532_v16, 16  ;;  %v6611_v18 = vld [vmem:[#allocation10 + $0x70] sm:$0xff] }
 0x19f   : > { %v2834_v13 = vor.u32 %v2832_v26, %v2831_v57  ;;  %v2871_v43 = vunpack.c.l.b16 %v2822_v58  ;;  %v2624_v59 = vshll.u32 %v2532_v16, 16  ;;  %v7708_v25 = vrot.slane %v2630_v1, 5  ;;  %v3069_v1 = vld [vmem:[#allocation2 + $0x20] sm:$0x1]  ;;  %3566 = vmatpush.bf16.msra.mxu0 %v6611_v18 }
 0x1a0   : > { %6198 = vmatmul.msk.bf16.gmra.mxu1 %vm675_vm7, %v2347_v32  ;;  %v2196_v44 = vmax.f32 %v2188_v28, 0.0  ;;  %v2663_v46 = vpack.c.b16 %v2658_v38, %v2657_v14  ;;  %v2318_v10 = vor.u32 %v2316_v47, %v2315_v39  ;;  %v2623_v2 = vrot.slane %v2621_v42, 4  ;;  %v2754_v14 = vld [vmem:[#allocation2 + $0x54] sm:$0x8] }
 0x1a1   : > { %v2835_v50 = vsel %vm7225_vm6, %v7664_v4, %v2834_v13  ;;  %v2626_v9 = vrot.slane %v2624_v59, 5  ;;  %v2646_v61 = vrot.slane %v2644_v37, 5  ;;  %v3085_v63 = vrot.slane %v3083_v7, 4 }
 0x1a2   : > { %v7711_v29 = vpack.c.bf16 %v2196_v44, %v2196_v44  ;;  %v2872_v21 = vunpack.c.l.b16 %v2835_v50  ;;  %v2319_v5 = vsel %vm7225_vm6, %v7682_v56, %v2318_v10  ;;  %v3092_v24 = vshll.u32 %v3067_v52, 16 }
 0x1a3   : > { %6238 = vmatmul.msk.bf16.gmra.mxu3 %vm675_vm7, %v2663_v46  ;;  %v6590_v11 = vld [vmem:[#allocation2 + $0x54] sm:$0xf0]  ;;  %v2627_v45 = vor.u32 %v2626_v9, %v2623_v2  ;;  %v3088_v53 = vrot.slane %v3086_v60, 5  ;;  %v3097_v56 = vshrl.u32 %v3068_v62, 16  ;;  %v3100_v40 = vshll.u32 %v3068_v62, 16 }
 0x1a4   : > { %v2228_v4 = vld [vmem:[#allocation2 + $0x58] sm:$0xf]  ;;  %2212 = vst.msk [vmem:[#allocation2 + $0x64] sm:$0xf] %vm446_vm0, %v7711_v29  ;;  %v6215_v23 = vor.u32 %v6590_v11, %v6214_v49  ;;  %v2877_v0 = vpack.c.b16 %v2872_v21, %v2871_v43  ;;  %v2343_v27 = vunpack.c.l.b16 %v2319_v5  ;;  %v3094_v33 = vrot.slane %v3092_v24, 5 }
 0x1a5   : > { %v2534_v48 = vld [vmem:[#allocation2 + $0x58] sm:$0xf]  ;;  %v2326_v19 = vshrl.u32 %v2228_v4, 16  ;;  %v2329_v8 = vshll.u32 %v2228_v4, 16  ;;  %v2628_v30 = vrot.slane %v2627_v45, 4  ;;  %v3089_v17 = vor.u32 %v3088_v53, %v3085_v63 }
 0x1a6   : > { %v2635_v7 = vshrl.u32 %v2534_v48, 16  ;;  %v2638_v3 = vshll.u32 %v2534_v48, 16  ;;  %6227 = vmatmul.msk.bf16.gmra.mxu2 %vm675_vm7, %v6215_v23  ;;  %v2755_v32 = vld [vmem:[#allocation2 + $0x58] sm:$0xf]  ;;  %v3099_v22 = vrot.slane %v3097_v56, 4  ;;  %v3102_v57 = vrot.slane %v3100_v40, 5 }
 0x1a7   : > { %v2328_v54 = vrot.slane %v2326_v19, 7  ;;  %6258 = vmatmul.msk.bf16.gmra.mxu0 %vm675_vm7, %v2877_v0  ;;  %v3090_v47 = vrot.slane %v3089_v17, 4  ;;  %v3106_v28 = vshll.u32 %v3069_v1, 16  ;;  %v2837_v38 = vshrl.u32 %v2754_v14, 16  ;;  %v2756_v43 = vld [vmem:[#allocation2 + $0x60] sm:$0x8] }
 0x1a8   : > { %v2637_v16 = vrot.slane %v2635_v7, 4  ;;  %v2640_v37 = vrot.slane %v2638_v3, 5  ;;  %v2633_v42 = vsel %vm7283_vm12, %v2628_v30, %v7708_v25  ;;  %v3103_v13 = vor.u32 %v3102_v57, %v3099_v22  ;;  %v3289_v62 = vld [vmem:[#allocation2 + $0x1c] sm:$0xf]  ;;  %v3288_v48 = vld [vmem:[#allocation2 + $0x18] sm:$0x8] }
 0x1a9   : > { %v2331_v58 = vor.u32 %v2329_v8, %v2328_v54  ;;  %v2842_v59 = vshrl.u32 %v2755_v32, 16  ;;  %v3108_v46 = vrot.slane %v3106_v28, 5  ;;  %v2845_v2 = vshll.u32 %v2755_v32, 16  ;;  %v3290_v45 = vld [vmem:[#allocation2 + $0x24] sm:$0x8] }
 0x1aa   : > { %v2641_v26 = vor.u32 %v2640_v37, %v2637_v16  ;;  %v3095_v50 = vsel %vm7283_vm12, %v3090_v47, %v3094_v33  ;;  %v3104_v9 = vrot.slane %v3103_v13, 4  ;;  %v6246_v52 = vrot.slane %v2837_v38, 11  ;;  %v3291_v24 = vld [vmem:[#allocation2 + $0x28] sm:$0xf]  ;;  %v3072_v14 = vld [vmem:[#allocation2 + $0x34] sm:$0xf] }
 0x1ab   : > { %v2332_v39 = vsel %vm7225_vm6, %v6187_v31, %v2331_v58  ;;  %v2757_v10 = vld [vmem:[#allocation2 + $0x64] sm:$0xf]  ;;  %v2844_v60 = vrot.slane %v2842_v59, 7  ;;  %v2850_v21 = vshrl.u32 %v2756_v43, 16  ;;  %v2659_v63 = vunpack.c.l.b16 %v2633_v42  ;;  %v3070_v53 = vld [vmem:[#allocation2 + $0x28] sm:$0xf] }
 0x1ac   : > { %v2344_v41 = vunpack.c.l.b16 %v2332_v39  ;;  %v2642_v44 = vrot.slane %v2641_v26, 4  ;;  %v2855_v25 = vshrl.u32 %v2757_v10, 16  ;;  %v3109_v4 = vsel %vm7283_vm12, %v3104_v9, %v3108_v46  ;;  %v3071_v37 = vld [vmem:[#allocation2 + $0x2c] sm:$0x1]  ;;  %v3073_v26 = vld [vmem:[#allocation2 + $0x38] sm:$0x1] }
 0x1ad   : > { %v2847_v5 = vor.u32 %v2845_v2, %v2844_v60  ;;  %v3200_v23 = vunpack.c.l.b16 %v3109_v4  ;;  %v6247_v0 = vrot.slane %v2850_v21, 11  ;;  %v2858_v1 = vshll.u32 %v2757_v10, 16 }
 0x1ae   : > { %v2348_v49 = vpack.c.b16 %v2344_v41, %v2343_v27  ;;  %v2647_v31 = vsel %vm7283_vm12, %v2642_v44, %v2646_v61  ;;  %v2857_v19 = vrot.slane %v2855_v25, 7  ;;  %v3199_v61 = vunpack.c.l.b16 %v3095_v50 }
 0x1af   : > { %v2660_v11 = vunpack.c.l.b16 %v2647_v31  ;;  %v2848_v7 = vsel %vm7225_vm6, %v6246_v52, %v2847_v5  ;;  %v3310_v3 = vshrl.u32 %v3289_v62, 16  ;;  %v3305_v30 = vshrl.u32 %v3288_v48, 16  ;;  %v6597_v52 = vld [vmem:[#allocation2 + $0x18] sm:$0xf0]  ;;  %v3074_v48 = vld [vmem:[#allocation2 + $0x40] sm:$0xf] }
 0x1b0   : > { %6199 = vmatmul.msk.bf16.gmra.mxu1 %vm675_vm7, %v2348_v49  ;;  %v2860_v18 = vor.u32 %v2858_v1, %v2857_v19  ;;  %v3207_v54 = vpack.c.b16 %v3200_v23, %v3199_v61  ;;  %v3318_v56 = vshrl.u32 %v3290_v45, 16  ;;  %v3323_v40 = vshrl.u32 %v3291_v24, 16 }
 0x1b1   : > { %v2664_v8 = vpack.c.b16 %v2660_v11, %v2659_v63  ;;  %v2873_v16 = vunpack.c.l.b16 %v2848_v7  ;;  %v3111_v17 = vshrl.u32 %v3070_v53, 16  ;;  %v3114_v32 = vshll.u32 %v3070_v53, 16  ;;  %v3076_v63 = vld [vmem:[#allocation2 + $0x4c] sm:$0xf]  ;;  %v6262_v11 = vld [vmem:[#allocation2 + $0x10] sm:$0xf] }
 0x1b2   : > { %v2861_v27 = vsel %vm7225_vm6, %v6247_v0, %v2860_v18  ;;  %v3312_v33 = vrot.slane %v3310_v3, 7  ;;  %v3325_v22 = vrot.slane %v3323_v40, 7  ;;  %v3326_v57 = vshll.u32 %v3291_v24, 16  ;;  %v3293_v0 = vld [vmem:[#allocation2 + $0x34] sm:$0xf] }
 0x1b3   : > { %6239 = vmatmul.msk.bf16.gmra.mxu3 %vm675_vm7, %v2664_v8  ;;  %v2874_v58 = vunpack.c.l.b16 %v2861_v27  ;;  %v3313_v47 = vshll.u32 %v3289_v62, 16  ;;  %v3113_v28 = vrot.slane %v3111_v17, 4  ;;  %v3116_v38 = vrot.slane %v3114_v32, 5  ;;  %v3295_v62 = vld [vmem:[#allocation2 + $0x40] sm:$0xf] }
 0x1b4   : > { %v3125_v39 = vshrl.u32 %v3072_v14, 16  ;;  %v6301_v13 = vrot.slane %v3318_v56, 11  ;;  %v3328_v43 = vor.u32 %v3326_v57, %v3325_v22  ;;  %v3128_v59 = vshll.u32 %v3072_v14, 16  ;;  %v3294_v3 = vld [vmem:[#allocation2 + $0x3c] sm:$0x8] }
 0x1b5   : > { %v2878_v42 = vpack.c.b16 %v2874_v58, %v2873_v16  ;;  %v3117_v41 = vor.u32 %v3116_v38, %v3113_v28  ;;  %v3120_v44 = vshll.u32 %v3071_v37, 16  ;;  %v3134_v10 = vshll.u32 %v3073_v26, 16  ;;  %v3292_v14 = vld [vmem:[#allocation2 + $0x30] sm:$0x8]  ;;  %v3077_v58 = vld [vmem:[#allocation2 + $0x50] sm:$0x1] }
 0x1b6   : > { %6296 = vmatmul.msk.bf16.vlgmr.msrb.gmra.mxu2 %vm675_vm7, %v3207_v54  ;;  %v3127_v46 = vrot.slane %v3125_v39, 4  ;;  %v6300_v2 = vrot.slane %v3305_v30, 11  ;;  %v3315_v50 = vor.u32 %v3313_v47, %v3312_v33  ;;  %v3130_v9 = vrot.slane %v3128_v59, 5  ;;  %v6613_v54 = vld [vmem:[#allocation10 + $0x80] sm:$0xff]  ;;  %v3075_v39 = vld [vmem:[#allocation2 + $0x44] sm:$0x1] }
 0x1b7   : > { %6259 = vmatmul.msk.bf16.gmra.mxu0 %vm675_vm7, %v2878_v42  ;;  %v3329_v60 = vsel %vm7225_vm6, %v6301_v13, %v3328_v43  ;;  %v3136_v31 = vrot.slane %v3134_v10, 5  ;;  %v3118_v21 = vrot.slane %v3117_v41, 4  ;;  %v3122_v25 = vrot.slane %v3120_v44, 5  ;;  %3788 = vmatpush.bf16.msra.mxu1 %v6613_v54  ;;  %v6607_v33 = vld [vmem:[#allocation2 + $0x24] sm:$0xf0] }
 0x1b8   : > { %v3131_v49 = vor.u32 %v3130_v9, %v3127_v46  ;;  %v3316_v4 = vsel %vm7225_vm6, %v6300_v2, %v3315_v50  ;;  %v6263_v45 = vor.u32 %v6597_v52, %v6262_v11  ;;  %v3414_v23 = vunpack.c.l.b16 %v3329_v60  ;;  %v6322_v42 = vld [vmem:[#allocation2 + $0x1c] sm:$0xf]  ;;  %v6598_v52 = vld [vmem:[#allocation2 + $0x30] sm:$0xf0]  ;;  %v3299_v11 = vld [vmem:[#allocation2 + $0x58] sm:$0xf] }
 0x1b9   : > { %v3349_v1 = vshrl.u32 %v3295_v62, 16  ;;  %v3153_v24 = vshrl.u32 %v3076_v63, 16  ;;  %v3156_v8 = vshll.u32 %v3076_v63, 16  ;;  %v3413_v61 = vunpack.c.l.b16 %v3316_v4 }
 0x1ba   : > { %v3132_v5 = vrot.slane %v3131_v49, 4  ;;  %v3123_v7 = vsel %vm7283_vm12, %v3118_v21, %v3122_v25  ;;  %v3139_v53 = vshrl.u32 %v3074_v48, 16  ;;  %v3142_v18 = vshll.u32 %v3074_v48, 16  ;;  %v3080_v21 = vld [vmem:[#allocation2 + $0x64] sm:$0xf] }
 0x1bb   : > { %v3336_v56 = vshrl.u32 %v3293_v0, 16  ;;  %v3421_v40 = vpack.c.b16 %v3414_v23, %v3413_v61  ;;  %v3155_v27 = vrot.slane %v3153_v24, 4  ;;  %v3158_v16 = vrot.slane %v3156_v8, 5  ;;  %v6266_v25 = vld [vmem:[#allocation2 + $0x28] sm:$0xf] }
 0x1bc   : > { %v3137_v19 = vsel %vm7283_vm12, %v3132_v5, %v3136_v31  ;;  %v3201_v37 = vunpack.c.l.b16 %v3123_v7  ;;  %v3344_v17 = vshrl.u32 %v3294_v3, 16  ;;  %v3351_v32 = vrot.slane %v3349_v1, 7  ;;  %v3078_v48 = vld [vmem:[#allocation2 + $0x58] sm:$0xf]  ;;  %v3298_v7 = vld [vmem:[#allocation2 + $0x54] sm:$0x8] }
 0x1bd   : > { %v3202_v30 = vunpack.c.l.b16 %v3137_v19  ;;  %v3141_v22 = vrot.slane %v3139_v53, 4  ;;  %v3144_v57 = vrot.slane %v3142_v18, 5  ;;  %v3331_v47 = vshrl.u32 %v3292_v14, 16 }
 0x1be   : > { %v3338_v28 = vrot.slane %v3336_v56, 7  ;;  %v3352_v38 = vshll.u32 %v3295_v62, 16  ;;  %v3159_v13 = vor.u32 %v3158_v16, %v3155_v27  ;;  %v3162_v43 = vshll.u32 %v3077_v58, 16  ;;  %v3296_v56 = vld [vmem:[#allocation2 + $0x48] sm:$0x8] }
 0x1bf   : > { %v3208_v26 = vpack.c.b16 %v3202_v30, %v3201_v37  ;;  %v6323_v59 = vor.u32 %v6607_v33, %v6322_v42  ;;  %v3339_v41 = vshll.u32 %v3293_v0, 16  ;;  %v6303_v44 = vrot.slane %v3344_v17, 11  ;;  %v3297_v0 = vld [vmem:[#allocation2 + $0x4c] sm:$0xf]  ;;  %v3081_v17 = vld [vmem:[#allocation2 + $0x68] sm:$0x1] }
 0x1c0   : > { %6284 = vmatmul.msk.bf16.vlgmr.msrb.gmra.mxu1 %vm675_vm7, %v6263_v45  ;;  %v3354_v46 = vor.u32 %v3352_v38, %v3351_v32  ;;  %v3145_v10 = vor.u32 %v3144_v57, %v3141_v22  ;;  %v3148_v2 = vshll.u32 %v3075_v39, 16  ;;  %v6302_v50 = vrot.slane %v3331_v47, 11  ;;  %v6608_v32 = vld [vmem:[#allocation2 + $0x3c] sm:$0xf0]  ;;  %v6326_v38 = vld [vmem:[#allocation2 + $0x34] sm:$0xf] }
 0x1c1   : > { %v3341_v9 = vor.u32 %v3339_v41, %v3338_v28  ;;  %v3160_v60 = vrot.slane %v3159_v13, 4  ;;  %v3164_v49 = vrot.slane %v3162_v43, 5  ;;  %v6267_v4 = vor.u32 %v6598_v52, %v6266_v25  ;;  %v3079_v28 = vld [vmem:[#allocation2 + $0x5c] sm:$0x1]  ;;  %v6599_v52 = vld [vmem:[#allocation2 + $0x48] sm:$0xf0] }
 0x1c2   : > { %v3355_v31 = vsel %vm7225_vm6, %v6303_v44, %v3354_v46  ;;  %v3146_v62 = vrot.slane %v3145_v10, 4  ;;  %v3150_v63 = vrot.slane %v3148_v2, 5  ;;  %v3181_v19 = vshrl.u32 %v3080_v21, 16  ;;  %v3303_v25 = vld [vmem:[#allocation2 + $0x70] sm:$0xf] }
 0x1c3   : > { %6316 = vmatmul.msk.bf16.vlgmr.msra.gmra.mxu3 %vm675_vm7, %v3421_v40  ;;  %v3342_v5 = vsel %vm7225_vm6, %v6302_v50, %v3341_v9  ;;  %v3416_v45 = vunpack.c.l.b16 %v3355_v31  ;;  %v3165_v23 = vsel %vm7283_vm12, %v3160_v60, %v3164_v49  ;;  %v3184_v1 = vshll.u32 %v3080_v21, 16  ;;  %v3301_v21 = vld [vmem:[#allocation2 + $0x64] sm:$0xf] }
 0x1c4   : > { %v3375_v24 = vshrl.u32 %v3299_v11, 16  ;;  %v3415_v8 = vunpack.c.l.b16 %v3342_v5  ;;  %v3151_v61 = vsel %vm7283_vm12, %v3146_v62, %v3150_v63  ;;  %v3167_v3 = vshrl.u32 %v3078_v48, 16  ;;  %v6270_v62 = vld [vmem:[#allocation2 + $0x40] sm:$0xf] }
 0x1c5   : > { %v3170_v53 = vshll.u32 %v3078_v48, 16  ;;  %v3204_v18 = vunpack.c.l.b16 %v3165_v23  ;;  %v3362_v54 = vshrl.u32 %v3297_v0, 16  ;;  %v3183_v40 = vrot.slane %v3181_v19, 4  ;;  %v3300_v48 = vld [vmem:[#allocation2 + $0x60] sm:$0x8] }
 0x1c6   : > { %6297 = vmatmul.msk.bf16.gmra.mxu2 %vm675_vm7, %v3208_v26  ;;  %v3422_v30 = vpack.c.b16 %v3416_v45, %v3415_v8  ;;  %v3186_v14 = vrot.slane %v3184_v1, 5  ;;  %v3203_v27 = vunpack.c.l.b16 %v3151_v61  ;;  %v3370_v16 = vshrl.u32 %v3298_v7, 16  ;;  %v3302_v45 = vld [vmem:[#allocation2 + $0x6c] sm:$0x8] }
 0x1c7   : > { %6344 = vmatmul.msk.bf16.vlgmr.msra.gmra.mxu0 %vm675_vm7, %v6323_v59  ;;  %v3377_v37 = vrot.slane %v3375_v24, 7  ;;  %v3169_v58 = vrot.slane %v3167_v3, 4  ;;  %v3172_v33 = vrot.slane %v3170_v53, 5  ;;  %v3357_v57 = vshrl.u32 %v3296_v56, 16  ;;  %v6609_v53 = vld [vmem:[#allocation2 + $0x54] sm:$0xf0] }
 0x1c8   : > { %v3209_v22 = vpack.c.b16 %v3204_v18, %v3203_v27  ;;  %v3364_v26 = vrot.slane %v3362_v54, 7  ;;  %v3378_v47 = vshll.u32 %v3299_v11, 16  ;;  %v3187_v39 = vor.u32 %v3186_v14, %v3183_v40  ;;  %v3614_v56 = vld [vmem:[#allocation2 + $0x28] sm:$0xf]  ;;  %v6330_v14 = vld [vmem:[#allocation2 + $0x4c] sm:$0xf] }
 0x1c9   : > { %v3190_v42 = vshll.u32 %v3081_v17, 16  ;;  %v6327_v13 = vor.u32 %v6608_v32, %v6326_v38  ;;  %v3365_v43 = vshll.u32 %v3297_v0, 16  ;;  %v6305_v59 = vrot.slane %v3370_v16, 11  ;;  %v3612_v32 = vld [vmem:[#allocation2 + $0x1c] sm:$0xf] }
 0x1ca   : > { %v3380_v41 = vor.u32 %v3378_v47, %v3377_v37  ;;  %v3173_v44 = vor.u32 %v3172_v33, %v3169_v58  ;;  %v3176_v46 = vshll.u32 %v3079_v28, 16  ;;  %v6304_v10 = vrot.slane %v3357_v57, 11  ;;  %v6600_v28 = vld [vmem:[#allocation2 + $0x60] sm:$0xf0] }
 0x1cb   : > { %v3367_v2 = vor.u32 %v3365_v43, %v3364_v26  ;;  %v3188_v50 = vrot.slane %v3187_v39, 4  ;;  %v3192_v9 = vrot.slane %v3190_v42, 5  ;;  %v6271_v11 = vor.u32 %v6599_v52, %v6270_v62  ;;  %v3615_v43 = vld [vmem:[#allocation2 + $0x2c] sm:$0x1]  ;;  %v6334_v62 = vld [vmem:[#allocation2 + $0x64] sm:$0xf] }
 0x1cc   : > { %v3381_v60 = vsel %vm7225_vm6, %v6305_v59, %v3380_v41  ;;  %v3174_v49 = vrot.slane %v3173_v44, 4  ;;  %v3178_v31 = vrot.slane %v3176_v46, 5  ;;  %v3388_v23 = vshrl.u32 %v3301_v21, 16  ;;  %v6274_v59 = vld [vmem:[#allocation2 + $0x58] sm:$0xf] }
 0x1cd   : > { %v3368_v63 = vsel %vm7225_vm6, %v6304_v10, %v3367_v2  ;;  %v3193_v5 = vsel %vm7283_vm12, %v3188_v50, %v3192_v9  ;;  %v3401_v0 = vshrl.u32 %v3303_v25, 16  ;;  %v3383_v61 = vshrl.u32 %v3300_v48, 16  ;;  %v3613_v50 = vld [vmem:[#allocation2 + $0x20] sm:$0x1]  ;;  %v3616_v48 = vld [vmem:[#allocation2 + $0x34] sm:$0xf] }
 0x1ce   : > { %v3417_v19 = vunpack.c.l.b16 %v3368_v63  ;;  %v3179_v1 = vsel %vm7283_vm12, %v3174_v49, %v3178_v31  ;;  %v3206_v24 = vunpack.c.l.b16 %v3193_v5  ;;  %v3396_v7 = vshrl.u32 %v3302_v45, 16  ;;  %v6610_v63 = vld [vmem:[#allocation2 + $0x6c] sm:$0xf0] }
 0x1cf   : > { %v3205_v3 = vunpack.c.l.b16 %v3179_v1  ;;  %v3390_v18 = vrot.slane %v3388_v23, 7  ;;  %v3403_v54 = vrot.slane %v3401_v0, 7  ;;  %v3391_v27 = vshll.u32 %v3301_v21, 16 }
 0x1d0   : > { %6285 = vmatmul.msk.bf16.gmra.mxu1 %vm675_vm7, %v6267_v4  ;;  %v3418_v4 = vunpack.c.l.b16 %v3381_v60  ;;  %v6331_v16 = vor.u32 %v6609_v53, %v6330_v14  ;;  %v6306_v37 = vrot.slane %v3383_v61, 11  ;;  %v6307_v17 = vrot.slane %v3396_v7, 11 }
 0x1d1   : > { %v3210_v40 = vpack.c.b16 %v3206_v24, %v3205_v3  ;;  %v3393_v58 = vor.u32 %v3391_v27, %v3390_v18  ;;  %v3646_v57 = vshll.u32 %v3614_v56, 16  ;;  %v3629_v26 = vshrl.u32 %v3612_v32, 16  ;;  %v3617_v27 = vld [vmem:[#allocation2 + $0x38] sm:$0x1] }
 0x1d2   : > { %v3423_v8 = vpack.c.b16 %v3418_v4, %v3417_v19  ;;  %v3632_v47 = vshll.u32 %v3612_v32, 16  ;;  %v6275_v46 = vor.u32 %v6600_v28, %v6274_v59  ;;  %v3652_v52 = vshll.u32 %v3615_v43, 16  ;;  %v3622_v28 = vld [vmem:[#allocation2 + $0x58] sm:$0xf]  ;;  %v3620_v43 = vld [vmem:[#allocation2 + $0x4c] sm:$0xf] }
 0x1d3   : > { %6317 = vmatmul.msk.bf16.gmra.mxu3 %vm675_vm7, %v3422_v30  ;;  %v3404_v30 = vshll.u32 %v3303_v25, 16  ;;  %v3394_v38 = vsel %vm7225_vm6, %v6306_v37, %v3393_v58  ;;  %v3631_v41 = vrot.slane %v3629_v26, 4  ;;  %v3638_v49 = vshll.u32 %v3613_v50, 16 }
 0x1d4   : > { %v3634_v44 = vrot.slane %v3632_v47, 5  ;;  %v3419_v10 = vunpack.c.l.b16 %v3394_v38  ;;  %v3654_v25 = vrot.slane %v3652_v52, 5  ;;  %v6335_v45 = vor.u32 %v6610_v63, %v6334_v62 }
 0x1d5   : > { %v3406_v33 = vor.u32 %v3404_v30, %v3403_v54  ;;  %v3640_v5 = vrot.slane %v3638_v49, 5  ;;  %v3660_v61 = vshll.u32 %v3616_v48, 16  ;;  %v3619_v30 = vld [vmem:[#allocation2 + $0x44] sm:$0x1]  ;;  %v3666_v58 = vshll.u32 %v3617_v27, 16 }
 0x1d6   : > { %6298 = vmatmul.msk.bf16.gmra.mxu2 %vm675_vm7, %v3209_v22  ;;  %v3643_v22 = vshrl.u32 %v3614_v56, 16  ;;  %v3635_v60 = vor.u32 %v3634_v44, %v3631_v41  ;;  %v3680_v37 = vshll.u32 %v3619_v30, 16  ;;  %v3699_v41 = vshrl.u32 %v3622_v28, 16 }
 0x1d7   : > { %6345 = vmatmul.msk.bf16.gmra.mxu0 %vm675_vm7, %v6327_v13  ;;  %v3407_v39 = vsel %vm7225_vm6, %v6307_v17, %v3406_v33  ;;  %v3648_v13 = vrot.slane %v3646_v57, 5  ;;  %v3702_v44 = vshll.u32 %v3622_v28, 16 }
 0x1d8   : > { %v3645_v42 = vrot.slane %v3643_v22, 4  ;;  %v3420_v2 = vunpack.c.l.b16 %v3407_v39  ;;  %v3636_v4 = vrot.slane %v3635_v60, 4  ;;  %v3682_v22 = vrot.slane %v3680_v37, 5 }
 0x1d9   : > { %v3701_v52 = vrot.slane %v3699_v41, 4  ;;  %v3704_v60 = vrot.slane %v3702_v44, 5 }
 0x1da   : > { %v3649_v9 = vor.u32 %v3648_v13, %v3645_v42  ;;  %v3424_v31 = vpack.c.b16 %v3420_v2, %v3419_v10  ;;  %v3641_v24 = vsel %vm7283_vm12, %v3636_v4, %v3640_v5  ;;  %v3668_v13 = vrot.slane %v3666_v58, 5 }
 0x1db   : > { %v3745_v54 = vunpack.c.l.b16 %v3641_v24  ;;  %v3685_v10 = vshrl.u32 %v3620_v43, 16  ;;  %v3688_v2 = vshll.u32 %v3620_v43, 16 }
 0x1dc   : > { %v3650_v21 = vrot.slane %v3649_v9, 4 }
 0x1dd   : > { %v3687_v4 = vrot.slane %v3685_v10, 4  ;;  %v3690_v5 = vrot.slane %v3688_v2, 5  ;;  %v3627_v10 = vld [vmem:[#allocation2 + $0x74] sm:$0x1] }
 0x1de   : > { %v3655_v23 = vsel %vm7283_vm12, %v3650_v21, %v3654_v25  ;;  %v3623_v25 = vld [vmem:[#allocation2 + $0x5c] sm:$0x1] }
 0x1df   : > { %v3746_v7 = vunpack.c.l.b16 %v3655_v23  ;;  %v3621_v23 = vld [vmem:[#allocation2 + $0x50] sm:$0x1]  ;;  %v3691_v24 = vor.u32 %v3690_v5, %v3687_v4 }
 0x1e0   : > { %6286 = vmatmul.msk.bf16.gmra.mxu1 %vm675_vm7, %v6271_v11  ;;  %v3618_v11 = vld [vmem:[#allocation2 + $0x40] sm:$0xf] }
 0x1e1   : > { %v3671_v0 = vshrl.u32 %v3618_v11, 16  ;;  %v3674_v19 = vshll.u32 %v3618_v11, 16  ;;  %v3753_v14 = vpack.c.b16 %v3746_v7, %v3745_v54 }
 0x1e3   : > { %6318 = vmatmul.msk.bf16.gmra.mxu3 %vm675_vm7, %v3423_v8  ;;  %v3657_v8 = vshrl.u32 %v3616_v48, 16  ;;  %v3673_v3 = vrot.slane %v3671_v0, 4  ;;  %v3676_v53 = vrot.slane %v3674_v19, 5  ;;  %v3705_v19 = vor.u32 %v3704_v60, %v3701_v52 }
 0x1e5   : > { %v3659_v56 = vrot.slane %v3657_v8, 4  ;;  %v3694_v8 = vshll.u32 %v3621_v23, 16  ;;  %v3706_v7 = vrot.slane %v3705_v19, 4 }
 0x1e6   : > { %6299 = vmatmul.msk.bf16.gmra.mxu2 %vm675_vm7, %v3210_v40  ;;  %v3662_v40 = vrot.slane %v3660_v61, 5 }
 0x1e7   : > { %6346 = vmatmul.msk.bf16.gmra.mxu0 %vm675_vm7, %v6331_v16  ;;  %v3677_v16 = vor.u32 %v3676_v53, %v3673_v3  ;;  %v3624_v53 = vld [vmem:[#allocation2 + $0x64] sm:$0xf] }
 0x1e8   : > { %v3663_v32 = vor.u32 %v3662_v40, %v3659_v56  ;;  %v3692_v40 = vrot.slane %v3691_v24, 4  ;;  %v3713_v37 = vshrl.u32 %v3624_v53, 16 }
 0x1e9   : > { %v3678_v33 = vrot.slane %v3677_v16, 4 }
 0x1ea   : > { %v3664_v42 = vrot.slane %v3663_v32, 4 }
 0x1eb   : > { %v3683_v59 = vsel %vm7283_vm12, %v3678_v33, %v3682_v22 }
 0x1ec   : > { %v3748_v9 = vunpack.c.l.b16 %v3683_v59 }
 0x1f0   : > { %6287 = vmatmul.msk.bf16.gmra.mxu1 %vm675_vm7, %v6275_v46  ;;  %v3669_v46 = vsel %vm7283_vm12, %v3664_v42, %v3668_v13  ;;  %v3715_v13 = vrot.slane %v3713_v37, 4 }
 0x1f1   : > { %v3747_v21 = vunpack.c.l.b16 %v3669_v46  ;;  %v3625_v46 = vld [vmem:[#allocation2 + $0x68] sm:$0x1] }
 0x1f3   : > { %6319 = vmatmul.msk.bf16.gmra.mxu3 %vm675_vm7, %v3424_v31 }
 0x1f7   : > { %6347 = vmatmul.msk.bf16.gmra.mxu0 %vm675_vm7, %v6335_v45  ;;  %v3754_v45 = vpack.c.b16 %v3748_v9, %v3747_v21 }
 0x1f8   : > { %v2476_v1 = vpop.f32.mrf.mxu2 }
 0x1fc   : > { %v2382_v18 = vpop.f32.mrf.mxu1 }
 0x1fd   : > { %2402 = vst.msk [vmem:[#allocation3] sm:$0xff] %vm675_vm7, %v2382_v18  ;;  %v3626_v18 = vld [vmem:[#allocation2 + $0x70] sm:$0xf] }
 0x1fe   : > { %v3727_v22 = vshrl.u32 %v3626_v18, 16 }
 0x200   : > { %6356 = vmatmul.msk.bf16.vlgmr.msra.gmra.mxu1 %vm675_vm7, %v3753_v14  ;;  %v2478_v17 = vpop.f32.mrf.mxu2  ;;  %v3696_v14 = vrot.slane %v3694_v8, 5  ;;  %v3729_v59 = vrot.slane %v3727_v22, 4 }
 0x203   : > { %v2912_v47 = vpop.f32.mrf.mxu0 }
 0x204   : > { %v2496_v57 = vld [vmem:[#allocation3] sm:$0xff]  ;;  %v2384_v26 = vpop.f32.mrf.mxu1 }
 0x205   : > { %v2504_v38 = vadd.f32 %v2496_v57, %v2476_v1  ;;  %2403 = vst.msk [vmem:[#allocation3 + $0x8] sm:$0xff] %vm675_vm7, %v2384_v26  ;;  %v2698_v39 = vpop.f32.mrf.mxu3  ;;  %v3708_v1 = vshll.u32 %v3623_v25, 16  ;;  %v3730_v57 = vshll.u32 %v3626_v18, 16  ;;  %v3722_v25 = vshll.u32 %v3625_v46, 16 }
 0x207   : > { %2512 = vst.msk [vmem:[#allocation3] sm:$0xff] %vm675_vm7, %v2504_v38  ;;  %v3710_v3 = vrot.slane %v3708_v1, 5  ;;  %v3697_v38 = vsel %vm7283_vm12, %v3692_v40, %v3696_v14  ;;  %v3732_v41 = vrot.slane %v3730_v57, 5  ;;  %v3724_v23 = vrot.slane %v3722_v25, 5 }
 0x208   : > { %v3749_v44 = vunpack.c.l.b16 %v3697_v38 }
 0x209   : > { %v2481_v50 = vpop.f32.mrf.mxu2  ;;  %v3711_v33 = vsel %vm7283_vm12, %v3706_v7, %v3710_v3 }
 0x20a   : > { %v3750_v42 = vunpack.c.l.b16 %v3711_v33 }
 0x20b   : > { %v7797_v31 = vpop.f32.mrf.mxu0 }
 0x20c   : > { %v2497_v49 = vld [vmem:[#allocation3 + $0x8] sm:$0xff]  ;;  %v3755_v52 = vpack.c.b16 %v3750_v42, %v3749_v44 }
 0x20d   : > { %v2505_v62 = vadd.f32 %v2497_v49, %v2478_v17  ;;  %v2387_v63 = vpop.f32.mrf.mxu1  ;;  %v2700_v11 = vpop.f32.mrf.mxu3  ;;  %v3716_v17 = vshll.u32 %v3624_v53, 16 }
 0x20e   : > { %v2718_v48 = vld [vmem:[#allocation3] sm:$0xff]  ;;  %2404 = vst.msk [vmem:[#allocation3 + $0x10] sm:$0xff] %vm675_vm7, %v2387_v63  ;;  %v3736_v63 = vshll.u32 %v3627_v10, 16 }
 0x20f   : > { %2513 = vst.msk [vmem:[#allocation3 + $0x8] sm:$0xff] %vm675_vm7, %v2505_v62  ;;  %v2726_v0 = vadd.f32 %v2718_v48, %v2698_v39  ;;  %v3718_v43 = vrot.slane %v3716_v17, 5  ;;  %v3733_v62 = vor.u32 %v3732_v41, %v3729_v59 }
 0x210   : > { %6357 = vmatmul.msk.bf16.gmra.mxu1 %vm675_vm7, %v3754_v45  ;;  %v3738_v19 = vrot.slane %v3736_v63, 5 }
 0x211   : > { %2734 = vst.msk [vmem:[#allocation3] sm:$0xff] %vm675_vm7, %v2726_v0  ;;  %v2483_v61 = vpop.f32.mrf.mxu2  ;;  %v3719_v21 = vor.u32 %v3718_v43, %v3715_v13  ;;  %v3734_v0 = vrot.slane %v3733_v62, 4 }
 0x213   : > { %v3720_v45 = vrot.slane %v3719_v21, 4  ;;  %v3739_v53 = vsel %vm7283_vm12, %v3734_v0, %v3738_v19 }
 0x214   : > { %v7803_v56 = vpop.f32.mrf.mxu0 }
 0x215   : > { %v2498_v54 = vld [vmem:[#allocation3 + $0x10] sm:$0xff]  ;;  %v2389_v30 = vpop.f32.mrf.mxu1 }
 0x216   : > { %v2506_v27 = vadd.f32 %v2498_v54, %v2481_v50  ;;  %v2719_v16 = vld [vmem:[#allocation3 + $0x8] sm:$0xff]  ;;  %2405 = vst.msk [vmem:[#allocation3 + $0x18] sm:$0xff] %vm675_vm7, %v2389_v30  ;;  %v2703_v58 = vpop.f32.mrf.mxu3 }
 0x217   : > { %v2727_v32 = vadd.f32 %v2719_v16, %v2700_v11 }
 0x218   : > { %v2932_v26 = vld [vmem:[#allocation3] sm:$0xff]  ;;  %2514 = vst.msk [vmem:[#allocation3 + $0x10] sm:$0xff] %vm675_vm7, %v2506_v27  ;;  %v3752_v27 = vunpack.c.l.b16 %v3739_v53 }
 0x219   : > { %v2940_v28 = vadd.f32 %v2932_v26, %v2912_v47  ;;  %2735 = vst.msk [vmem:[#allocation3 + $0x8] sm:$0xff] %vm675_vm7, %v2727_v32  ;;  %v2486_v39 = vpop.f32.mrf.mxu2 }
 0x21b   : > { %2948 = vst.msk [vmem:[#allocation3] sm:$0xff] %vm675_vm7, %v2940_v28 }
 0x21c   : > { %v2919_v9 = vpop.f32.mrf.mxu0 }
 0x21d   : > { %v2499_v2 = vld [vmem:[#allocation3 + $0x18] sm:$0xff]  ;;  %v2392_v50 = vpop.f32.mrf.mxu1 }
 0x21e   : > { %v2507_v47 = vadd.f32 %v2499_v2, %v2483_v61  ;;  %2406 = vst.msk [vmem:[#allocation3 + $0x20] sm:$0xff] %vm675_vm7, %v2392_v50  ;;  %v2705_v49 = vpop.f32.mrf.mxu3 }
 0x21f   : > { %v2720_v60 = vld [vmem:[#allocation3 + $0x10] sm:$0xff] }
 0x220   : > { %v2933_v11 = vld [vmem:[#allocation3 + $0x8] sm:$0xff]  ;;  %2515 = vst.msk [vmem:[#allocation3 + $0x18] sm:$0xff] %vm675_vm7, %v2507_v47  ;;  %v2728_v4 = vadd.f32 %v2720_v60, %v2703_v58  ;;  %6358 = vmatmul.msk.bf16.gmra.mxu1 %vm675_vm7, %v3755_v52 }
 0x221   : > { %v2941_v5 = vadd.f32 %v2933_v11, %v7797_v31  ;;  %v2488_v48 = vpop.f32.mrf.mxu2  ;;  %v3725_v31 = vsel %vm7283_vm12, %v3720_v45, %v3724_v23 }
 0x222   : > { %2736 = vst.msk [vmem:[#allocation3 + $0x10] sm:$0xff] %vm675_vm7, %v2728_v4  ;;  %v3751_v14 = vunpack.c.l.b16 %v3725_v31 }
 0x223   : > { %2949 = vst.msk [vmem:[#allocation3 + $0x8] sm:$0xff] %vm675_vm7, %v2941_v5 }
 0x224   : > { %v2922_v8 = vpop.f32.mrf.mxu0  ;;  %v3756_v58 = vpack.c.b16 %v3752_v27, %v3751_v14 }
 0x225   : > { %v2500_v1 = vld [vmem:[#allocation3 + $0x20] sm:$0xff]  ;;  %v2394_v24 = vpop.f32.mrf.mxu1 }
 0x226   : > { %v2508_v61 = vadd.f32 %v2500_v1, %v2486_v39  ;;  %2407 = vst.msk [vmem:[#allocation3 + $0x28] sm:$0xff] %vm675_vm7, %v2394_v24  ;;  %v2708_v3 = vpop.f32.mrf.mxu3 }
 0x227   : > { %v2721_v7 = vld [vmem:[#allocation3 + $0x18] sm:$0xff] }
 0x228   : > { %2516 = vst.msk [vmem:[#allocation3 + $0x20] sm:$0xff] %vm675_vm7, %v2508_v61  ;;  %v2729_v18 = vadd.f32 %v2721_v7, %v2705_v49 }
 0x229   : > { %v2934_v54 = vld [vmem:[#allocation3 + $0x10] sm:$0xff]  ;;  %v2491_v40 = vpop.f32.mrf.mxu2 }
 0x22a   : > { %v2942_v30 = vadd.f32 %v2934_v54, %v7803_v56  ;;  %2737 = vst.msk [vmem:[#allocation3 + $0x18] sm:$0xff] %vm675_vm7, %v2729_v18  ;;  %v3043_v5 = vld [vmem:[#allocation3 + $0x8] sm:$0xff] }
 0x22c   : > { %2950 = vst.msk [vmem:[#allocation3 + $0x10] sm:$0xff] %vm675_vm7, %v2942_v30  ;;  %v2924_v32 = vpop.f32.mrf.mxu0 }
 0x22d   : > { %v2501_v16 = vld [vmem:[#allocation3 + $0x28] sm:$0xff]  ;;  %v2397_v37 = vpop.f32.mrf.mxu1 }
 0x22e   : > { %v2509_v17 = vadd.f32 %v2501_v16, %v2488_v48  ;;  %2408 = vst.msk [vmem:[#allocation3 + $0x30] sm:$0xff] %vm675_vm7, %v2397_v37  ;;  %v2710_v22 = vpop.f32.mrf.mxu3 }
 0x22f   : > { %v2722_v33 = vld [vmem:[#allocation3 + $0x20] sm:$0xff] }
 0x230   : > { %2517 = vst.msk [vmem:[#allocation3 + $0x28] sm:$0xff] %vm675_vm7, %v2509_v17  ;;  %v2730_v57 = vadd.f32 %v2722_v33, %v2708_v3  ;;  %6359 = vmatmul.msk.bf16.gmra.mxu1 %vm675_vm7, %v3756_v58 }
 0x231   : > { %v2935_v56 = vld [vmem:[#allocation3 + $0x18] sm:$0xff]  ;;  %v2493_v28 = vpop.f32.mrf.mxu2 }
 0x232   : > { %v2943_v26 = vadd.f32 %v2935_v56, %v2919_v9  ;;  %2738 = vst.msk [vmem:[#allocation3 + $0x20] sm:$0xff] %vm675_vm7, %v2730_v57  ;;  %v3042_v9 = vld [vmem:[#allocation3] sm:$0xff] }
 0x233   : > { %v3044_v31 = vld [vmem:[#allocation3 + $0x10] sm:$0xff] }
 0x234   : > { %2951 = vst.msk [vmem:[#allocation3 + $0x18] sm:$0xff] %vm675_vm7, %v2943_v26  ;;  %v2927_v41 = vpop.f32.mrf.mxu0 }
 0x235   : > { %v2502_v38 = vld [vmem:[#allocation3 + $0x30] sm:$0xff]  ;;  %v2399_v39 = vpop.f32.mrf.mxu1 }
 0x236   : > { %v2510_v42 = vadd.f32 %v2502_v38, %v2491_v40  ;;  %2409 = vst.msk [vmem:[#allocation3 + $0x38] sm:$0xff] %vm675_vm7, %v2399_v39  ;;  %v2713_v43 = vpop.f32.mrf.mxu3 }
 0x237   : > { %v2723_v13 = vld [vmem:[#allocation3 + $0x28] sm:$0xff] }
 0x238   : > { %2518 = vst.msk [vmem:[#allocation3 + $0x30] sm:$0xff] %vm675_vm7, %v2510_v42  ;;  %v2731_v59 = vadd.f32 %v2723_v13, %v2710_v22  ;;  %v6616_v22 = vld [vmem:[#allocation11 + $0x8] sm:$0xff] }
 0x239   : > { %v2936_v44 = vld [vmem:[#allocation3 + $0x20] sm:$0xff]  ;;  %v3244_v10 = vpop.f32.mrf.mxu2  ;;  %4060 = vmatpush.bf16.msra.mxu2 %v6616_v22 }
 0x23a   : > { %v2944_v46 = vadd.f32 %v2936_v44, %v2922_v8  ;;  %2739 = vst.msk [vmem:[#allocation3 + $0x28] sm:$0xff] %vm675_vm7, %v2731_v59 }
 0x23b   : > { %v3045_v17 = vld [vmem:[#allocation3 + $0x18] sm:$0xff] }
 0x23c   : > { %2952 = vst.msk [vmem:[#allocation3 + $0x20] sm:$0xff] %vm675_vm7, %v2944_v46  ;;  %v2929_v63 = vpop.f32.mrf.mxu0 }
 0x23d   : > { %v2503_v2 = vld [vmem:[#allocation3 + $0x38] sm:$0xff]  ;;  %v3022_v50 = vpop.f32.mrf.mxu1 }
 0x23e   : > { %v2511_v47 = vadd.f32 %v2503_v2, %v2493_v28  ;;  %v3050_v52 = vadd.f32 %v3042_v9, %v3022_v50  ;;  %v2715_v49 = vpop.f32.mrf.mxu3 }
 0x23f   : > { %v2724_v60 = vld [vmem:[#allocation3 + $0x30] sm:$0xff] }
 0x240   : > { %2519 = vst.msk [vmem:[#allocation3 + $0x38] sm:$0xff] %vm675_vm7, %v2511_v47  ;;  %v2732_v21 = vadd.f32 %v2724_v60, %v2713_v43 }
 0x241   : > { %v2937_v25 = vld [vmem:[#allocation3 + $0x28] sm:$0xff]  ;;  %3058 = vst.msk [vmem:[#allocation3] sm:$0xff] %vm675_vm7, %v3050_v52  ;;  %v3246_v11 = vpop.f32.mrf.mxu2 }
 0x242   : > { %v2945_v62 = vadd.f32 %v2937_v25, %v2924_v32  ;;  %2740 = vst.msk [vmem:[#allocation3 + $0x30] sm:$0xff] %vm675_vm7, %v2732_v21 }
 0x243   : > { %v3046_v43 = vld [vmem:[#allocation3 + $0x20] sm:$0xff] }
 0x244   : > { %2953 = vst.msk [vmem:[#allocation3 + $0x28] sm:$0xff] %vm675_vm7, %v2945_v62  ;;  %v3568_v61 = vpop.f32.mrf.mxu0 }
 0x245   : > { %v3024_v4 = vpop.f32.mrf.mxu1 }
 0x246   : > { %v3051_v48 = vadd.f32 %v3043_v5, %v3024_v4  ;;  %v3458_v23 = vpop.f32.mrf.mxu3 }
 0x247   : > { %v2725_v45 = vld [vmem:[#allocation3 + $0x38] sm:$0xff] }
 0x248   : > { %v2733_v0 = vadd.f32 %v2725_v45, %v2715_v49  ;;  %3059 = vst.msk [vmem:[#allocation3 + $0x8] sm:$0xff] %vm675_vm7, %v3051_v48  ;;  %v3264_v19 = vld [vmem:[#allocation3] sm:$0xff] }
 0x249   : > { %v2938_v1 = vld [vmem:[#allocation3 + $0x30] sm:$0xff]  ;;  %v3272_v24 = vadd.f32 %v3264_v19, %v3244_v10  ;;  %v3249_v7 = vpop.f32.mrf.mxu2 }
 0x24a   : > { %v2946_v8 = vadd.f32 %v2938_v1, %v2927_v41  ;;  %2741 = vst.msk [vmem:[#allocation3 + $0x38] sm:$0xff] %vm675_vm7, %v2733_v0 }
 0x24b   : > { %3280 = vst.msk [vmem:[#allocation3] sm:$0xff] %vm675_vm7, %v3272_v24  ;;  %v3047_v49 = vld [vmem:[#allocation3 + $0x28] sm:$0xff] }
 0x24c   : > { %2954 = vst.msk [vmem:[#allocation3 + $0x30] sm:$0xff] %vm675_vm7, %v2946_v8  ;;  %v3570_v32 = vpop.f32.mrf.mxu0 }
 0x24d   : > { %v3027_v3 = vpop.f32.mrf.mxu1 }
 0x24e   : > { %v3052_v53 = vadd.f32 %v3044_v31, %v3027_v3  ;;  %v3460_v54 = vpop.f32.mrf.mxu3 }
 0x24f   : > { %v3265_v18 = vld [vmem:[#allocation3 + $0x8] sm:$0xff] }
 0x250   : > { %3060 = vst.msk [vmem:[#allocation3 + $0x10] sm:$0xff] %vm675_vm7, %v3052_v53  ;;  %v3273_v30 = vadd.f32 %v3265_v18, %v3246_v11 }
 0x251   : > { %v2939_v40 = vld [vmem:[#allocation3 + $0x38] sm:$0xff]  ;;  %v3251_v58 = vpop.f32.mrf.mxu2 }
 0x252   : > { %v2947_v14 = vadd.f32 %v2939_v40, %v2929_v63  ;;  %v3478_v27 = vld [vmem:[#allocation3] sm:$0xff]  ;;  %3281 = vst.msk [vmem:[#allocation3 + $0x8] sm:$0xff] %vm675_vm7, %v3273_v30 }
 0x253   : > { %v3486_v16 = vadd.f32 %v3478_v27, %v3458_v23  ;;  %v3048_v19 = vld [vmem:[#allocation3 + $0x30] sm:$0xff]  ;;  %v6615_v27 = vld [vmem:[#allocation11] sm:$0xff] }
 0x254   : > { %2955 = vst.msk [vmem:[#allocation3 + $0x38] sm:$0xff] %vm675_vm7, %v2947_v14  ;;  %v3573_v44 = vpop.f32.mrf.mxu0  ;;  %4061 = vmatpush.bf16.msra.mxu2 %v6615_v27 }
 0x255   : > { %3494 = vst.msk [vmem:[#allocation3] sm:$0xff] %vm675_vm7, %v3486_v16  ;;  %v3029_v37 = vpop.f32.mrf.mxu1 }
 0x256   : > { %v3053_v33 = vadd.f32 %v3045_v17, %v3029_v37  ;;  %v3463_v56 = vpop.f32.mrf.mxu3  ;;  %v6622_v17 = vld [vmem:[#allocation11 + $0x18] sm:$0xff] }
 0x257   : > { %v3266_v57 = vld [vmem:[#allocation3 + $0x10] sm:$0xff]  ;;  %4154 = vmatpush.bf16.msrb.mxu3 %v6622_v17 }
 0x258   : > { %3061 = vst.msk [vmem:[#allocation3 + $0x18] sm:$0xff] %vm675_vm7, %v3053_v33  ;;  %v3274_v26 = vadd.f32 %v3266_v57, %v3249_v7 }
 0x259   : > { %v3479_v28 = vld [vmem:[#allocation3 + $0x8] sm:$0xff]  ;;  %v3254_v46 = vpop.f32.mrf.mxu2 }
 0x25a   : > { %v3487_v38 = vadd.f32 %v3479_v28, %v3460_v54  ;;  %3282 = vst.msk [vmem:[#allocation3 + $0x10] sm:$0xff] %vm675_vm7, %v3274_v26 }
 0x25b   : > { %v3049_v40 = vld [vmem:[#allocation3 + $0x38] sm:$0xff] }
 0x25c   : > { %v3588_v39 = vld [vmem:[#allocation3] sm:$0xff]  ;;  %3495 = vst.msk [vmem:[#allocation3 + $0x8] sm:$0xff] %vm675_vm7, %v3487_v38  ;;  %v3575_v4 = vpop.f32.mrf.mxu0 }
 0x25d   : > { %v3596_v42 = vadd.f32 %v3588_v39, %v3568_v61  ;;  %v3032_v13 = vpop.f32.mrf.mxu1 }
 0x25e   : > { %v3054_v59 = vadd.f32 %v3046_v43, %v3032_v13  ;;  %v3465_v50 = vpop.f32.mrf.mxu3 }
 0x25f   : > { %3604 = vst.msk [vmem:[#allocation3] sm:$0xff] %vm675_vm7, %v3596_v42  ;;  %v3267_v41 = vld [vmem:[#allocation3 + $0x18] sm:$0xff] }
 0x260   : > { %3062 = vst.msk [vmem:[#allocation3 + $0x20] sm:$0xff] %vm675_vm7, %v3054_v59  ;;  %v3275_v10 = vadd.f32 %v3267_v41, %v3251_v58 }
 0x261   : > { %v3480_v2 = vld [vmem:[#allocation3 + $0x10] sm:$0xff]  ;;  %v3256_v5 = vpop.f32.mrf.mxu2 }
 0x262   : > { %v3488_v9 = vadd.f32 %v3480_v2, %v3463_v56  ;;  %3283 = vst.msk [vmem:[#allocation3 + $0x18] sm:$0xff] %vm675_vm7, %v3275_v10 }
 0x263   : > { %v3589_v47 = vld [vmem:[#allocation3 + $0x8] sm:$0xff] }
 0x264   : > { %v3597_v52 = vadd.f32 %v3589_v47, %v3570_v32  ;;  %3496 = vst.msk [vmem:[#allocation3 + $0x10] sm:$0xff] %vm675_vm7, %v3488_v9  ;;  %v3578_v53 = vpop.f32.mrf.mxu0 }
 0x265   : > { %v3034_v60 = vpop.f32.mrf.mxu1 }
 0x266   : > { %3605 = vst.msk [vmem:[#allocation3 + $0x8] sm:$0xff] %vm675_vm7, %v3597_v52  ;;  %v3055_v21 = vadd.f32 %v3047_v49, %v3034_v60  ;;  %v3468_v45 = vpop.f32.mrf.mxu3  ;;  %v3810_v56 = vld [vmem:[#allocation3] sm:$0xff]  ;;  %v3854_v52 = vunpack.c.l.bf16 %v7537_v55 }
 0x267   : > { %v3268_v25 = vld [vmem:[#allocation3 + $0x20] sm:$0xff] }
 0x268   : > { %3063 = vst.msk [vmem:[#allocation3 + $0x28] sm:$0xff] %vm675_vm7, %v3055_v21  ;;  %v3276_v62 = vadd.f32 %v3268_v25, %v3254_v46  ;;  %v7875_v46 = vld [vmem:[%s8345_s4] ss:$0 sm:$0xff]  ;;  %v6624_v25 = vld [vmem:[#allocation11 + $0x28] sm:$0xff] }
 0x269   : > { %v3481_v63 = vld [vmem:[#allocation3 + $0x18] sm:$0xff]  ;;  %v3259_v18 = vpop.f32.mrf.mxu2  ;;  %4376 = vmatpush.bf16.msrb.mxu0 %v6624_v25 }
 0x26a   : > { %v3489_v11 = vadd.f32 %v3481_v63, %v3465_v50  ;;  %3284 = vst.msk [vmem:[#allocation3 + $0x20] sm:$0xff] %vm675_vm7, %v3276_v62  ;;  %v6621_v62 = vld [vmem:[#allocation11 + $0x10] sm:$0xff] }
 0x26b   : > { %v3590_v48 = vld [vmem:[#allocation3 + $0x10] sm:$0xff]  ;;  %4155 = vmatpush.bf16.msrb.mxu3 %v6621_v62 }
 0x26c   : > { %v3598_v23 = vadd.f32 %v3590_v48, %v3573_v44  ;;  %3497 = vst.msk [vmem:[#allocation3 + $0x18] sm:$0xff] %vm675_vm7, %v3489_v11  ;;  %v3580_v26 = vpop.f32.mrf.mxu0 }
 0x26d   : > { %v3037_v0 = vpop.f32.mrf.mxu1  ;;  %v3811_v2 = vld [vmem:[#allocation3 + $0x8] sm:$0xff] }
 0x26e   : > { %3606 = vst.msk [vmem:[#allocation3 + $0x10] sm:$0xff] %vm675_vm7, %v3598_v23  ;;  %v3056_v1 = vadd.f32 %v3048_v19, %v3037_v0  ;;  %v3470_v54 = vpop.f32.mrf.mxu3 }
 0x26f   : > { %v3269_v24 = vld [vmem:[#allocation3 + $0x28] sm:$0xff] }
 0x270   : > { %3064 = vst.msk [vmem:[#allocation3 + $0x30] sm:$0xff] %vm675_vm7, %v3056_v1  ;;  %v3277_v8 = vadd.f32 %v3269_v24, %v3256_v5  ;;  %v3855_v24 = vunpack.c.l.bf16 %v7565_v34 }
 0x271   : > { %v3482_v61 = vld [vmem:[#allocation3 + $0x20] sm:$0xff]  ;;  %v3261_v38 = vpop.f32.mrf.mxu2 }
 0x272   : > { %v3490_v7 = vadd.f32 %v3482_v61, %v3468_v45  ;;  %3285 = vst.msk [vmem:[#allocation3 + $0x28] sm:$0xff] %vm675_vm7, %v3277_v8  ;;  %v6626_v8 = vld [vmem:[#allocation11 + $0x38] sm:$0xff]  ;;  %v6623_v61 = vld [vmem:[#allocation11 + $0x20] sm:$0xff] }
 0x273   : > { %v3591_v3 = vld [vmem:[#allocation3 + $0x18] sm:$0xff]  ;;  %4590 = vmatpush.bf16.msrb.mxu1 %v6626_v8  ;;  %4377 = vmatpush.bf16.msrb.mxu0 %v6623_v61 }
 0x274   : > { %v3599_v31 = vadd.f32 %v3591_v3, %v3575_v4  ;;  %3498 = vst.msk [vmem:[#allocation3 + $0x20] sm:$0xff] %vm675_vm7, %v3490_v7  ;;  %v3583_v60 = vpop.f32.mrf.mxu0  ;;  %v3894_v7 = vld [vmem:[#allocation2] sm:$0x8]  ;;  %v3895_v3 = vld [vmem:[#allocation2 + $0x4] sm:$0xf] }
 0x275   : > { %v3039_v30 = vpop.f32.mrf.mxu1  ;;  %v3812_v23 = vld [vmem:[#allocation3 + $0x10] sm:$0xff] }
 0x276   : > { %3607 = vst.msk [vmem:[#allocation3 + $0x18] sm:$0xff] %vm675_vm7, %v3599_v31  ;;  %v3057_v14 = vadd.f32 %v3049_v40, %v3039_v30  ;;  %v3473_v39 = vpop.f32.mrf.mxu3  ;;  %v3896_v31 = vld [vmem:[#allocation2 + $0xc] sm:$0x8]  ;;  %v3919_v30 = vshll.u32 %v3895_v3, 16  ;;  %v6632_v40 = vld [vmem:[#allocation11 + $0x48] sm:$0xff] }
 0x277   : > { %v3270_v16 = vld [vmem:[#allocation3 + $0x30] sm:$0xff]  ;;  %4700 = vmatpush.bf16.msrb.mxu2 %v6632_v40 }
 0x278   : > { %3065 = vst.msk [vmem:[#allocation3 + $0x38] sm:$0xff] %vm675_vm7, %v3057_v14  ;;  %v3278_v37 = vadd.f32 %v3270_v16, %v3259_v18  ;;  %v3924_v16 = vshrl.u32 %v3896_v31, 16 }
 0x279   : > { %v3483_v32 = vld [vmem:[#allocation3 + $0x28] sm:$0xff] }
 0x27a   : > { %v3491_v58 = vadd.f32 %v3483_v32, %v3470_v54  ;;  %3286 = vst.msk [vmem:[#allocation3 + $0x30] sm:$0xff] %vm675_vm7, %v3278_v37  ;;  %v3916_v54 = vshrl.u32 %v3895_v3, 16 }
 0x27b   : > { %v3592_v33 = vld [vmem:[#allocation3 + $0x20] sm:$0xff] }
 0x27c   : > { %v3600_v22 = vadd.f32 %v3592_v33, %v3578_v53  ;;  %3499 = vst.msk [vmem:[#allocation3 + $0x28] sm:$0xff] %vm675_vm7, %v3491_v58  ;;  %v3911_v53 = vshrl.u32 %v3894_v7, 16  ;;  %v3585_v14 = vpop.f32.mrf.mxu0  ;;  %v3918_v32 = vrot.slane %v3916_v54, 7  ;;  %v4425_v7 = vld [vmem:[#allocation2 + $0x18] sm:$0x8] }
 0x27d   : > { %v3790_v57 = vpop.f32.mrf.mxu1  ;;  %v3813_v33 = vld [vmem:[#allocation3 + $0x18] sm:$0xff] }
 0x27e   : > { %3608 = vst.msk [vmem:[#allocation3 + $0x20] sm:$0xff] %vm675_vm7, %v3600_v22  ;;  %v3818_v28 = vadd.f32 %v3810_v56, %v3790_v57  ;;  %v3475_v49 = vpop.f32.mrf.mxu3  ;;  %v6360_v34 = vrot.slane %v3911_v53, 11  ;;  %v6382_v22 = vld [vmem:[#allocation2 + $0x4] sm:$0xf] }
 0x27f   : > { %v3271_v42 = vld [vmem:[#allocation3 + $0x38] sm:$0xff] }
 0x280   : > { %v3279_v13 = vadd.f32 %v3271_v42, %v3261_v38  ;;  %3826 = vst.msk [vmem:[#allocation3] sm:$0xff] %vm675_vm7, %v3818_v28 }
 0x281   : > { %v3484_v43 = vld [vmem:[#allocation3 + $0x30] sm:$0xff] }
 0x282   : > { %v3492_v59 = vadd.f32 %v3484_v43, %v3473_v39  ;;  %3287 = vst.msk [vmem:[#allocation3 + $0x38] sm:$0xff] %vm675_vm7, %v3279_v13  ;;  %v6361_v43 = vrot.slane %v3924_v16, 11 }
 0x283   : > { %v3593_v41 = vld [vmem:[#allocation3 + $0x28] sm:$0xff] }
 0x284   : > { %v3601_v44 = vadd.f32 %v3593_v41, %v3580_v26  ;;  %3500 = vst.msk [vmem:[#allocation3 + $0x30] sm:$0xff] %vm675_vm7, %v3492_v59  ;;  %v3921_v26 = vor.u32 %v3919_v30, %v3918_v32  ;;  %v6625_v41 = vld [vmem:[#allocation11 + $0x30] sm:$0xff]  ;;  %v4453_v32 = vshrl.u32 %v4425_v7, 16 }
 0x285   : > { %v3792_v10 = vpop.f32.mrf.mxu1  ;;  %4591 = vmatpush.bf16.msrb.mxu1 %v6625_v41 }
 0x286   : > { %3609 = vst.msk [vmem:[#allocation3 + $0x28] sm:$0xff] %vm675_vm7, %v3601_v44  ;;  %v3819_v50 = vadd.f32 %v3811_v2, %v3792_v10  ;;  %v3922_v13 = vsel %vm7225_vm6, %v6360_v34, %v3921_v26  ;;  %v3856_v10 = vunpack.c.l.bf16 %v7596_v36  ;;  %v4423_v36 = vld [vmem:[#allocation2 + $0xc] sm:$0x8]  ;;  %v3898_v26 = vld [vmem:[#allocation2 + $0x18] sm:$0x8] }
 0x287   : > { %v3834_v9 = vld [vmem:[#allocation3] sm:$0xff] }
 0x288   : > { %v3846_v47 = vadd.f32 %v7875_v46, %v3834_v9  ;;  %3827 = vst.msk [vmem:[#allocation3 + $0x8] sm:$0xff] %vm675_vm7, %v3819_v50  ;;  %v4201_v50 = vld [vmem:[#allocation2 + $0x4] sm:$0xf]  ;;  %v4202_v9 = vld [vmem:[#allocation2 + $0x8] sm:$0x1] }
 0x289   : > { %v3485_v21 = vld [vmem:[#allocation3 + $0x38] sm:$0xff]  ;;  %v4218_v25 = vshrl.u32 %v4201_v50, 16 }
 0x28a   : > { %v3493_v63 = vadd.f32 %v3485_v21, %v3475_v49  ;;  %v3862_v11 = vadd.f32 %v3854_v52, %v3846_v47  ;;  %v3857_v47 = vunpack.c.l.bf16 %v7622_v20  ;;  %v4204_v21 = vld [vmem:[#allocation2 + $0x14] sm:$0x1] }
 0x28b   : > { %v3594_v4 = vld [vmem:[#allocation3 + $0x30] sm:$0xff] }
 0x28c   : > { %v3602_v5 = vadd.f32 %v3594_v4, %v3583_v60  ;;  %3501 = vst.msk [vmem:[#allocation3 + $0x38] sm:$0xff] %vm675_vm7, %v3493_v63  ;;  %v3870_v48 = vmax.f32 %v3862_v11, 0.0  ;;  %v4018_v60 = vunpack.c.l.b16 %v3922_v13  ;;  %v4221_v63 = vshll.u32 %v4201_v50, 16 }
 0x28d   : > { %v3795_v45 = vpop.f32.mrf.mxu1  ;;  %v4227_v11 = vshll.u32 %v4202_v9, 16 }
 0x28e   : > { %3610 = vst.msk [vmem:[#allocation3 + $0x30] sm:$0xff] %vm675_vm7, %v3602_v5  ;;  %v7883_v55 = vpack.c.bf16 %v3870_v48, %v3870_v48  ;;  %v3820_v0 = vadd.f32 %v3812_v23, %v3795_v45  ;;  %v3814_v5 = vld [vmem:[#allocation3 + $0x20] sm:$0xff]  ;;  %v4220_v45 = vrot.slane %v4218_v25, 4 }
 0x28f   : > { %v3835_v19 = vld [vmem:[#allocation3 + $0x8] sm:$0xff]  ;;  %v4229_v8 = vrot.slane %v4227_v11, 5 }
 0x290   : > { %3886 = vst.msk [vmem:[#allocation2 + $0x10] sm:$0xf] %vm446_vm0, %v7883_v55  ;;  %v3847_v1 = vadd.f32 %v7875_v46, %v3835_v19 }
 0x291   : > { %3828 = vst.msk [vmem:[#allocation3 + $0x10] sm:$0xff] %vm675_vm7, %v3820_v0  ;;  %v4241_v0 = vshll.u32 %v4204_v21, 16  ;;  %v3815_v21 = vld [vmem:[#allocation3 + $0x28] sm:$0xff] }
 0x292   : > { %v3863_v18 = vadd.f32 %v3855_v24, %v3847_v1  ;;  %v4223_v24 = vrot.slane %v4221_v63, 5 }
 0x293   : > { %v3595_v27 = vld [vmem:[#allocation3 + $0x38] sm:$0xff] }
 0x294   : > { %v3603_v37 = vadd.f32 %v3595_v27, %v3585_v14  ;;  %v3871_v17 = vmax.f32 %v3863_v18, 0.0  ;;  %v4243_v18 = vrot.slane %v4241_v0, 5  ;;  %v4224_v40 = vor.u32 %v4223_v24, %v4220_v45 }
 0x295   : > { %v3797_v58 = vpop.f32.mrf.mxu1  ;;  %v4440_v27 = vshrl.u32 %v4423_v36, 16 }
 0x296   : > { %3611 = vst.msk [vmem:[#allocation3 + $0x38] sm:$0xff] %vm675_vm7, %v3603_v37  ;;  %v7891_v57 = vpack.c.bf16 %v3871_v17, %v3871_v17  ;;  %v3821_v56 = vadd.f32 %v3813_v33, %v3797_v58 }
 0x297   : > { %v6617_v28 = vld [vmem:[#allocation2 + $0xc] sm:$0xf0] }
 0x298   : > { %v3897_v38 = vld [vmem:[#allocation2 + $0x10] sm:$0xf]  ;;  %3887 = vst.msk [vmem:[#allocation2 + $0x1c] sm:$0xf] %vm446_vm0, %v7891_v57  ;;  %v3836_v39 = vld [vmem:[#allocation3 + $0x10] sm:$0xff]  ;;  %v6383_v42 = vor.u32 %v6617_v28, %v6382_v22  ;;  %v4225_v22 = vrot.slane %v4224_v40, 4 }
 0x299   : > { %v3929_v59 = vshrl.u32 %v3897_v38, 16  ;;  %v3848_v44 = vadd.f32 %v7875_v46, %v3836_v39  ;;  %3829 = vst.msk [vmem:[#allocation3 + $0x18] sm:$0xff] %vm675_vm7, %v3821_v56  ;;  %v3932_v2 = vshll.u32 %v3897_v38, 16  ;;  %v4203_v49 = vld [vmem:[#allocation2 + $0x10] sm:$0xf]  ;;  %v6420_v56 = vrot.slane %v4440_v27, 11 }
 0x29a   : > { %6404 = vmatmul.msk.bf16.vlgmr.msrb.gmra.mxu3 %vm675_vm7, %v6383_v42  ;;  %v4232_v4 = vshrl.u32 %v4203_v49, 16  ;;  %v4235_v23 = vshll.u32 %v4203_v49, 16  ;;  %v4424_v19 = vld [vmem:[#allocation2 + $0x10] sm:$0xf]  ;;  %v6421_v39 = vrot.slane %v4453_v32, 11 }
 0x29b   : > { %v3931_v52 = vrot.slane %v3929_v59, 7  ;;  %v3864_v62 = vadd.f32 %v3856_v10, %v3848_v44  ;;  %v4445_v17 = vshrl.u32 %v4424_v19, 16  ;;  %v4448_v34 = vshll.u32 %v4424_v19, 16 }
 0x29c   : > { %v4234_v61 = vrot.slane %v4232_v4, 4  ;;  %v4237_v53 = vrot.slane %v4235_v23, 5  ;;  %v4230_v59 = vsel %vm7283_vm12, %v4225_v22, %v4229_v8  ;;  %v3937_v44 = vshrl.u32 %v3898_v26, 16  ;;  %v4208_v26 = vld [vmem:[#allocation2 + $0x2c] sm:$0x1] }
 0x29d   : > { %v3934_v48 = vor.u32 %v3932_v2, %v3931_v52  ;;  %v3872_v20 = vmax.f32 %v3864_v62, 0.0  ;;  %v3800_v1 = vpop.f32.mrf.mxu1  ;;  %v4447_v38 = vrot.slane %v4445_v17, 7  ;;  %v4334_v2 = vunpack.c.l.b16 %v4230_v59 }
 0x29e   : > { %v3822_v3 = vadd.f32 %v3814_v5, %v3800_v1  ;;  %v4238_v37 = vor.u32 %v4237_v53, %v4234_v61  ;;  %v6362_v36 = vrot.slane %v3937_v44, 11 }
 0x29f   : > { %v3935_v31 = vsel %vm7225_vm6, %v6361_v43, %v3934_v48  ;;  %v7904_v54 = vpack.c.bf16 %v3872_v20, %v3872_v20  ;;  %v4426_v14 = vld [vmem:[#allocation2 + $0x1c] sm:$0xf]  ;;  %v4450_v50 = vor.u32 %v4448_v34, %v4447_v38 }
 0x2a0   : > { %v4019_v30 = vunpack.c.l.b16 %v3935_v31  ;;  %v3837_v16 = vld [vmem:[#allocation3 + $0x18] sm:$0xff]  ;;  %3830 = vst.msk [vmem:[#allocation3 + $0x20] sm:$0xff] %vm675_vm7, %v3822_v3  ;;  %v4239_v28 = vrot.slane %v4238_v37, 4  ;;  %v4458_v42 = vshrl.u32 %v4426_v14, 16  ;;  %v3899_v13 = vld [vmem:[#allocation2 + $0x1c] sm:$0xf] }
 0x2a1   : > { %3888 = vst.msk [vmem:[#allocation2 + $0x28] sm:$0xf] %vm446_vm0, %v7904_v54  ;;  %v3849_v58 = vadd.f32 %v7875_v46, %v3837_v16  ;;  %v4461_v41 = vshll.u32 %v4426_v14, 16  ;;  %v3942_v62 = vshrl.u32 %v3899_v13, 16  ;;  %v4451_v11 = vsel %vm7225_vm6, %v6420_v56, %v4450_v50  ;;  %v6386_v23 = vld [vmem:[#allocation2 + $0x1c] sm:$0xf] }
 0x2a2   : > { %v4026_v33 = vpack.c.b16 %v4019_v30, %v4018_v60  ;;  %v4244_v10 = vsel %vm7283_vm12, %v4239_v28, %v4243_v18  ;;  %v4460_v9 = vrot.slane %v4458_v42, 7  ;;  %v3858_v60 = vunpack.c.l.bf16 %v7637_v15  ;;  %v4205_v18 = vld [vmem:[#allocation2 + $0x1c] sm:$0xf]  ;;  %v4206_v37 = vld [vmem:[#allocation2 + $0x20] sm:$0x1]  ;;  %v3816_v42 = vld [vmem:[#allocation3 + $0x30] sm:$0xff] }
 0x2a3   : > { %v3865_v43 = vadd.f32 %v3857_v47, %v3849_v58  ;;  %v4335_v25 = vunpack.c.l.b16 %v4244_v10  ;;  %v3900_v47 = vld [vmem:[#allocation2 + $0x24] sm:$0x8]  ;;  %v3944_v0 = vrot.slane %v3942_v62, 7  ;;  %v3945_v19 = vshll.u32 %v3899_v13, 16  ;;  %v6631_v30 = vld [vmem:[#allocation11 + $0x40] sm:$0xff] }
 0x2a4   : > { %6376 = vmatmul.msk.bf16.vlgmr.msra.gmra.mxu2 %vm675_vm7, %v4026_v33  ;;  %v4463_v4 = vor.u32 %v4461_v41, %v4460_v9  ;;  %v4548_v24 = vunpack.c.l.b16 %v4451_v11  ;;  %v3950_v61 = vshrl.u32 %v3900_v47, 16  ;;  %v3859_v14 = vunpack.c.l.bf16 %v7666_v6  ;;  %v6634_v6 = vld [vmem:[#allocation11 + $0x58] sm:$0xff]  ;;  %v4427_v9 = vld [vmem:[#allocation2 + $0x24] sm:$0x8] }
 0x2a5   : > { %v3873_v52 = vmax.f32 %v3865_v43, 0.0  ;;  %v3802_v49 = vpop.f32.mrf.mxu1  ;;  %v4342_v45 = vpack.c.b16 %v4335_v25, %v4334_v2  ;;  %v3947_v31 = vor.u32 %v3945_v19, %v3944_v0  ;;  %v4246_v33 = vshrl.u32 %v4205_v18, 16  ;;  %4701 = vmatpush.bf16.msrb.mxu2 %v6631_v30  ;;  %4922 = vmatpush.bf16.msra.mxu3 %v6634_v6 }
 0x2a6   : > { %v3823_v63 = vadd.f32 %v3815_v21, %v3802_v49  ;;  %v4464_v1 = vsel %vm7225_vm6, %v6421_v39, %v4463_v4  ;;  %v6363_v27 = vrot.slane %v3950_v61, 11  ;;  %v3860_v56 = vunpack.c.l.bf16 %v7688_v51 }
 0x2a7   : > { %v7918_v5 = vpack.c.bf16 %v3873_v52, %v3873_v52  ;;  %v3838_v48 = vld [vmem:[#allocation3 + $0x20] sm:$0xff]  ;;  %6416 = vmatmul.msk.bf16.vlgmr.msrb.gmra.mxu0 %vm675_vm7, %v4342_v45  ;;  %v4549_v3 = vunpack.c.l.b16 %v4464_v1  ;;  %v3948_v32 = vsel %vm7225_vm6, %v6362_v36, %v3947_v31  ;;  %v4249_v28 = vshll.u32 %v4205_v18, 16  ;;  %v4429_v36 = vld [vmem:[#allocation2 + $0x30] sm:$0x8] }
 0x2a8   : > { %v3850_v15 = vadd.f32 %v7875_v46, %v3838_v48  ;;  %3831 = vst.msk [vmem:[#allocation3 + $0x28] sm:$0xff] %vm675_vm7, %v3823_v63  ;;  %v6618_v20 = vld [vmem:[#allocation2 + $0x24] sm:$0xf0]  ;;  %v4255_v38 = vshll.u32 %v4206_v37, 16  ;;  %v4248_v43 = vrot.slane %v4246_v33, 4  ;;  %v4020_v2 = vunpack.c.l.b16 %v3948_v32  ;;  %v3817_v37 = vld [vmem:[#allocation3 + $0x38] sm:$0xff] }
 0x2a9   : > { %v3901_v8 = vld [vmem:[#allocation2 + $0x28] sm:$0xf]  ;;  %3889 = vst.msk [vmem:[#allocation2 + $0x34] sm:$0xf] %vm446_vm0, %v7918_v5  ;;  %v6387_v7 = vor.u32 %v6618_v20, %v6386_v23  ;;  %v4556_v34 = vpack.c.b16 %v4549_v3, %v4548_v24  ;;  %v4251_v50 = vrot.slane %v4249_v28, 5  ;;  %v4269_v47 = vshll.u32 %v4208_v26, 16 }
 0x2aa   : > { %v3955_v53 = vshrl.u32 %v3901_v8, 16  ;;  %v3866_v40 = vadd.f32 %v3858_v60, %v3850_v15  ;;  %v3958_v16 = vshll.u32 %v3901_v8, 16  ;;  %v4207_v17 = vld [vmem:[#allocation2 + $0x28] sm:$0xf]  ;;  %v4257_v4 = vrot.slane %v4255_v38, 5 }
 0x2ab   : > { %6405 = vmatmul.msk.bf16.gmra.mxu3 %vm675_vm7, %v6387_v7  ;;  %6436 = vmatmul.msk.bf16.vlgmr.msrb.gmra.mxu1 %vm675_vm7, %v4556_v34  ;;  %v4260_v59 = vshrl.u32 %v4207_v17, 16  ;;  %v4263_v41 = vshll.u32 %v4207_v17, 16  ;;  %v4428_v52 = vld [vmem:[#allocation2 + $0x28] sm:$0xf]  ;;  %v4252_v11 = vor.u32 %v4251_v50, %v4248_v43  ;;  %v4271_v45 = vrot.slane %v4269_v47, 5 }
 0x2ac   : > { %v3957_v58 = vrot.slane %v3955_v53, 7  ;;  %v3874_v22 = vmax.f32 %v3866_v40, 0.0  ;;  %v4466_v0 = vshrl.u32 %v4427_v9, 16  ;;  %v4471_v19 = vshrl.u32 %v4428_v52, 16  ;;  %v3902_v31 = vld [vmem:[#allocation2 + $0x30] sm:$0x8] }
 0x2ad   : > { %v3805_v39 = vpop.f32.mrf.mxu1  ;;  %v4262_v21 = vrot.slane %v4260_v59, 4  ;;  %v4265_v25 = vrot.slane %v4263_v41, 5  ;;  %v4253_v1 = vrot.slane %v4252_v11, 4  ;;  %v4474_v24 = vshll.u32 %v4428_v52, 16  ;;  %v3904_v38 = vld [vmem:[#allocation2 + $0x3c] sm:$0x8] }
 0x2ae   : > { %v3960_v13 = vor.u32 %v3958_v16, %v3957_v58  ;;  %v7933_v44 = vpack.c.bf16 %v3874_v22, %v3874_v22  ;;  %v3824_v10 = vadd.f32 %v3816_v42, %v3805_v39  ;;  %v6422_v61 = vrot.slane %v4466_v0, 11  ;;  %v4210_v47 = vld [vmem:[#allocation2 + $0x38] sm:$0x1]  ;;  %v4212_v0 = vld [vmem:[#allocation2 + $0x44] sm:$0x1] }
 0x2af   : > { %v3839_v60 = vld [vmem:[#allocation3 + $0x28] sm:$0xff]  ;;  %v4266_v48 = vor.u32 %v4265_v25, %v4262_v21  ;;  %v4473_v7 = vrot.slane %v4471_v19, 7  ;;  %v4479_v3 = vshrl.u32 %v4429_v36, 16  ;;  %v4258_v18 = vsel %vm7283_vm12, %v4253_v1, %v4257_v4 }
 0x2b0   : > { %v3961_v49 = vsel %vm7225_vm6, %v6363_v27, %v3960_v13  ;;  %3890 = vst.msk [vmem:[#allocation2 + $0x40] sm:$0xf] %vm446_vm0, %v7933_v44  ;;  %v3851_v62 = vadd.f32 %v7875_v46, %v3839_v60  ;;  %v4430_v23 = vld [vmem:[#allocation2 + $0x34] sm:$0xf]  ;;  %v4336_v17 = vunpack.c.l.b16 %v4258_v18  ;;  %v3861_v6 = vunpack.c.l.bf16 %v7711_v29 }
 0x2b1   : > { %v4021_v63 = vunpack.c.l.b16 %v3961_v49  ;;  %3832 = vst.msk [vmem:[#allocation3 + $0x30] sm:$0xff] %vm675_vm7, %v3824_v10  ;;  %v4267_v8 = vrot.slane %v4266_v48, 4  ;;  %v4484_v30 = vshrl.u32 %v4430_v23, 16  ;;  %v4487_v40 = vshll.u32 %v4430_v23, 16  ;;  %v3903_v27 = vld [vmem:[#allocation2 + $0x34] sm:$0xf] }
 0x2b2   : > { %v3867_v15 = vadd.f32 %v3859_v14, %v3851_v62  ;;  %v4476_v34 = vor.u32 %v4474_v24, %v4473_v7  ;;  %v6423_v32 = vrot.slane %v4479_v3, 11  ;;  %v6390_v26 = vld [vmem:[#allocation2 + $0x34] sm:$0xf]  ;;  %v3963_v43 = vshrl.u32 %v3902_v31, 16 }
 0x2b3   : > { %v4027_v20 = vpack.c.b16 %v4021_v63, %v4020_v2  ;;  %v4272_v14 = vsel %vm7283_vm12, %v4267_v8, %v4271_v45  ;;  %v4486_v28 = vrot.slane %v4484_v30, 7  ;;  %v3968_v59 = vshrl.u32 %v3903_v27, 16  ;;  %v4209_v52 = vld [vmem:[#allocation2 + $0x34] sm:$0xf]  ;;  %v6636_v8 = vld [vmem:[#allocation11 + $0x68] sm:$0xff] }
 0x2b4   : > { %v3875_v53 = vmax.f32 %v3867_v15, 0.0  ;;  %v4337_v22 = vunpack.c.l.b16 %v4272_v14  ;;  %v4477_v42 = vsel %vm7225_vm6, %v6422_v61, %v4476_v34  ;;  %v6364_v49 = vrot.slane %v3963_v43, 11  ;;  %v6633_v61 = vld [vmem:[#allocation11 + $0x50] sm:$0xff]  ;;  %5136 = vmatpush.bf16.msra.mxu0 %v6636_v8 }
 0x2b5   : > { %6377 = vmatmul.msk.bf16.gmra.mxu2 %vm675_vm7, %v4027_v20  ;;  %v3807_v16 = vpop.f32.mrf.mxu1  ;;  %v4489_v50 = vor.u32 %v4487_v40, %v4486_v28  ;;  %v4550_v9 = vunpack.c.l.b16 %v4477_v42  ;;  %v3970_v21 = vrot.slane %v3968_v59, 7  ;;  %v3971_v25 = vshll.u32 %v3903_v27, 16  ;;  %4923 = vmatpush.bf16.msra.mxu3 %v6633_v61 }
 0x2b6   : > { %v7946_v58 = vpack.c.bf16 %v3875_v53, %v3875_v53  ;;  %v3825_v33 = vadd.f32 %v3817_v37, %v3807_v16  ;;  %v4343_v10 = vpack.c.b16 %v4337_v22, %v4336_v17  ;;  %v3976_v63 = vshrl.u32 %v3904_v38, 16  ;;  %v4433_v22 = vld [vmem:[#allocation2 + $0x48] sm:$0x8] }
 0x2b7   : > { %v6619_v39 = vld [vmem:[#allocation2 + $0x3c] sm:$0xf0]  ;;  %v4490_v62 = vsel %vm7225_vm6, %v6423_v32, %v4489_v50  ;;  %v3973_v45 = vor.u32 %v3971_v25, %v3970_v21  ;;  %v4274_v19 = vshrl.u32 %v4209_v52, 16  ;;  %v4277_v1 = vshll.u32 %v4209_v52, 16  ;;  %v6642_v25 = vld [vmem:[#allocation11 + $0x78] sm:$0xff] }
 0x2b8   : > { %v3905_v13 = vld [vmem:[#allocation2 + $0x40] sm:$0xf]  ;;  %3891 = vst.msk [vmem:[#allocation2 + $0x4c] sm:$0xf] %vm446_vm0, %v7946_v58  ;;  %v3840_v41 = vld [vmem:[#allocation3 + $0x30] sm:$0xff]  ;;  %v6391_v2 = vor.u32 %v6619_v39, %v6390_v26  ;;  %6417 = vmatmul.msk.bf16.gmra.mxu0 %vm675_vm7, %v4343_v10  ;;  %v4551_v48 = vunpack.c.l.b16 %v4490_v62  ;;  %v6365_v15 = vrot.slane %v3976_v63, 11  ;;  %5246 = vmatpush.bf16.msra.mxu1 %v6642_v25 }
 0x2b9   : > { %v3852_v60 = vadd.f32 %v7875_v46, %v3840_v41  ;;  %3833 = vst.msk [vmem:[#allocation3 + $0x38] sm:$0xff] %vm675_vm7, %v3825_v33  ;;  %v3981_v11 = vshrl.u32 %v3905_v13, 16  ;;  %v3984_v4 = vshll.u32 %v3905_v13, 16  ;;  %v4211_v23 = vld [vmem:[#allocation2 + $0x40] sm:$0xf]  ;;  %v4283_v24 = vshll.u32 %v4210_v47, 16 }
 0x2ba   : > { %v4557_v3 = vpack.c.b16 %v4551_v48, %v4550_v9  ;;  %v3974_v31 = vsel %vm7225_vm6, %v6364_v49, %v3973_v45  ;;  %v4276_v51 = vrot.slane %v4274_v19, 4  ;;  %v4432_v53 = vld [vmem:[#allocation2 + $0x40] sm:$0xf]  ;;  %v4279_v40 = vrot.slane %v4277_v1, 5  ;;  %v3906_v49 = vld [vmem:[#allocation2 + $0x48] sm:$0x8] }
 0x2bb   : > { %v3868_v36 = vadd.f32 %v3860_v56, %v3852_v60  ;;  %6406 = vmatmul.msk.bf16.gmra.mxu3 %vm675_vm7, %v6391_v2  ;;  %v3983_v20 = vrot.slane %v3981_v11, 7  ;;  %v4431_v56 = vld [vmem:[#allocation2 + $0x3c] sm:$0x8]  ;;  %v4022_v30 = vunpack.c.l.b16 %v3974_v31  ;;  %v4285_v27 = vrot.slane %v4283_v24, 5 }
 0x2bc   : > { %6437 = vmatmul.msk.bf16.gmra.mxu1 %vm675_vm7, %v4557_v3  ;;  %v4288_v37 = vshrl.u32 %v4211_v23, 16  ;;  %v4291_v14 = vshll.u32 %v4211_v23, 16  ;;  %v4297_v17 = vshll.u32 %v4212_v0, 16  ;;  %v4280_v33 = vor.u32 %v4279_v40, %v4276_v51  ;;  %v6635_v11 = vld [vmem:[#allocation11 + $0x60] sm:$0xff]  ;;  %v3908_v0 = vld [vmem:[#allocation2 + $0x54] sm:$0x8] }
 0x2bd   : > { %v3876_v7 = vmax.f32 %v3868_v36, 0.0  ;;  %v3986_v18 = vor.u32 %v3984_v4, %v3983_v20  ;;  %v4492_v26 = vshrl.u32 %v4431_v56, 16  ;;  %v4497_v28 = vshrl.u32 %v4432_v53, 16  ;;  %5137 = vmatpush.bf16.msra.mxu0 %v6635_v11  ;;  %v4214_v3 = vld [vmem:[#allocation2 + $0x50] sm:$0x1] }
 0x2be   : > { %v4290_v42 = vrot.slane %v4288_v37, 4  ;;  %v4293_v13 = vrot.slane %v4291_v14, 5  ;;  %v4281_v59 = vrot.slane %v4280_v33, 4  ;;  %v4299_v41 = vrot.slane %v4297_v17, 5 }
 0x2bf   : > { %v7963_v16 = vpack.c.bf16 %v3876_v7, %v3876_v7  ;;  %v3987_v32 = vsel %vm7225_vm6, %v6365_v15, %v3986_v18  ;;  %v4434_v43 = vld [vmem:[#allocation2 + $0x4c] sm:$0xf]  ;;  %v6424_v10 = vrot.slane %v4492_v26, 11  ;;  %v4499_v2 = vrot.slane %v4497_v28, 7 }
 0x2c0   : > { %v3841_v34 = vld [vmem:[#allocation3 + $0x38] sm:$0xff]  ;;  %v4023_v39 = vunpack.c.l.b16 %v3987_v32  ;;  %v4294_v52 = vor.u32 %v4293_v13, %v4290_v42  ;;  %v4500_v60 = vshll.u32 %v4432_v53, 16  ;;  %v3907_v21 = vld [vmem:[#allocation2 + $0x4c] sm:$0xf]  ;;  %v4505_v47 = vshrl.u32 %v4433_v22, 16 }
 0x2c1   : > { %3892 = vst.msk [vmem:[#allocation2 + $0x58] sm:$0xf] %vm446_vm0, %v7963_v16  ;;  %v3853_v38 = vadd.f32 %v7875_v46, %v3841_v34  ;;  %v4286_v46 = vsel %vm7283_vm12, %v4281_v59, %v4285_v27  ;;  %v4510_v62 = vshrl.u32 %v4434_v43, 16  ;;  %v4513_v63 = vshll.u32 %v4434_v43, 16  ;;  %v6394_v24 = vld [vmem:[#allocation2 + $0x4c] sm:$0xf] }
 0x2c2   : > { %v4028_v9 = vpack.c.b16 %v4023_v39, %v4022_v30  ;;  %v4295_v36 = vrot.slane %v4294_v52, 4  ;;  %v4338_v48 = vunpack.c.l.b16 %v4286_v46  ;;  %v4502_v29 = vor.u32 %v4500_v60, %v4499_v2  ;;  %v4213_v7 = vld [vmem:[#allocation2 + $0x4c] sm:$0xf]  ;;  %v4216_v42 = vld [vmem:[#allocation2 + $0x5c] sm:$0x1] }
 0x2c3   : > { %v3869_v50 = vadd.f32 %v3861_v6, %v3853_v38  ;;  %v6644_v6 = vld [vmem:[#allocation11 + $0x88] sm:$0xff]  ;;  %v6425_v45 = vrot.slane %v4505_v47, 11  ;;  %v4512_v23 = vrot.slane %v4510_v62, 7  ;;  %v3989_v19 = vshrl.u32 %v3906_v49, 16  ;;  %v4747_v13 = vld [vmem:[#allocation2 + $0x10] sm:$0xf] }
 0x2c4   : > { %v3994_v15 = vshrl.u32 %v3907_v21, 16  ;;  %v4300_v1 = vsel %vm7283_vm12, %v4295_v36, %v4299_v41  ;;  %v4503_v8 = vsel %vm7225_vm6, %v6424_v10, %v4502_v29  ;;  %v3997_v61 = vshll.u32 %v3907_v21, 16  ;;  %5468 = vmatpush.bf16.msra.mxu2 %v6644_v6  ;;  %v6641_v2 = vld [vmem:[#allocation11 + $0x70] sm:$0xff]  ;;  %v4748_v49 = vld [vmem:[#allocation2 + $0x14] sm:$0x1] }
 0x2c5   : > { %v3877_v4 = vmax.f32 %v3869_v50, 0.0  ;;  %6378 = vmatmul.msk.bf16.gmra.mxu2 %vm675_vm7, %v4028_v9  ;;  %v4339_v31 = vunpack.c.l.b16 %v4300_v1  ;;  %v4515_v56 = vor.u32 %v4513_v63, %v4512_v23  ;;  %v4552_v53 = vunpack.c.l.b16 %v4503_v8  ;;  %v4749_v62 = vld [vmem:[#allocation2 + $0x1c] sm:$0xf]  ;;  %5247 = vmatpush.bf16.msra.mxu1 %v6641_v2  ;;  %v4750_v6 = vld [vmem:[#allocation2 + $0x20] sm:$0x1] }
 0x2c6   : > { %v6366_v30 = vrot.slane %v3989_v19, 11  ;;  %v3996_v27 = vrot.slane %v3994_v15, 7  ;;  %v4002_v37 = vshrl.u32 %v3908_v0, 16  ;;  %v4302_v22 = vshrl.u32 %v4213_v7, 16  ;;  %v4435_v0 = vld [vmem:[#allocation2 + $0x54] sm:$0x8] }
 0x2c7   : > { %v7976_v20 = vpack.c.bf16 %v3877_v4, %v3877_v4  ;;  %v4344_v17 = vpack.c.b16 %v4339_v31, %v4338_v48  ;;  %v4516_v34 = vsel %vm7225_vm6, %v6425_v45, %v4515_v56  ;;  %v4305_v59 = vshll.u32 %v4213_v7, 16 }
 0x2c8   : > { %v6620_v51 = vld [vmem:[#allocation2 + $0x54] sm:$0xf0]  ;;  %v4553_v26 = vunpack.c.l.b16 %v4516_v34  ;;  %v3999_v28 = vor.u32 %v3997_v61, %v3996_v27  ;;  %v6367_v38 = vrot.slane %v4002_v37, 11  ;;  %v4304_v43 = vrot.slane %v4302_v22, 4  ;;  %v4437_v27 = vld [vmem:[#allocation2 + $0x60] sm:$0x8] }
 0x2c9   : > { %v3909_v18 = vld [vmem:[#allocation2 + $0x58] sm:$0xf]  ;;  %3893 = vst.msk [vmem:[#allocation2 + $0x64] sm:$0xf] %vm446_vm0, %v7976_v20  ;;  %v6395_v40 = vor.u32 %v6620_v51, %v6394_v24  ;;  %6418 = vmatmul.msk.bf16.gmra.mxu0 %vm675_vm7, %v4344_v17  ;;  %v4311_v41 = vshll.u32 %v4214_v3, 16  ;;  %v4307_v25 = vrot.slane %v4305_v59, 5 }
 0x2ca   : > { %v4007_v14 = vshrl.u32 %v3909_v18, 16  ;;  %v4010_v32 = vshll.u32 %v3909_v18, 16  ;;  %v4215_v33 = vld [vmem:[#allocation2 + $0x58] sm:$0xf]  ;;  %v4558_v50 = vpack.c.b16 %v4553_v26, %v4552_v53  ;;  %v4000_v9 = vsel %vm7225_vm6, %v6366_v30, %v3999_v28 }
 0x2cb   : > { %6407 = vmatmul.msk.bf16.gmra.mxu3 %vm675_vm7, %v6395_v40  ;;  %v4316_v10 = vshrl.u32 %v4215_v33, 16  ;;  %v4319_v60 = vshll.u32 %v4215_v33, 16  ;;  %v4024_v21 = vunpack.c.l.b16 %v4000_v9  ;;  %v4313_v46 = vrot.slane %v4311_v41, 5  ;;  %v4436_v8 = vld [vmem:[#allocation2 + $0x58] sm:$0xf] }
 0x2cc   : > { %v4009_v39 = vrot.slane %v4007_v14, 7  ;;  %6438 = vmatmul.msk.bf16.gmra.mxu1 %vm675_vm7, %v4558_v50  ;;  %v4325_v4 = vshll.u32 %v4216_v42, 16  ;;  %v4764_v36 = vshrl.u32 %v4747_v13, 16  ;;  %v4308_v29 = vor.u32 %v4307_v25, %v4304_v43  ;;  %v4970_v41 = vld [vmem:[#allocation2 + $0x1c] sm:$0xf] }
 0x2cd   : > { %v4318_v47 = vrot.slane %v4316_v10, 4  ;;  %v4321_v11 = vrot.slane %v4319_v60, 5  ;;  %v4767_v45 = vshll.u32 %v4747_v13, 16  ;;  %v4773_v23 = vshll.u32 %v4748_v49, 16  ;;  %v4971_v50 = vld [vmem:[#allocation2 + $0x24] sm:$0x8] }
 0x2ce   : > { %v4012_v52 = vor.u32 %v4010_v32, %v4009_v39  ;;  %v4327_v15 = vrot.slane %v4325_v4, 5  ;;  %v4766_v1 = vrot.slane %v4764_v36, 4  ;;  %v4778_v24 = vshrl.u32 %v4749_v62, 16  ;;  %v4972_v9 = vld [vmem:[#allocation2 + $0x28] sm:$0xf] }
 0x2cf   : > { %v4322_v19 = vor.u32 %v4321_v11, %v4318_v47  ;;  %v4309_v7 = vrot.slane %v4308_v29, 4  ;;  %v4769_v3 = vrot.slane %v4767_v45, 5  ;;  %v4775_v31 = vrot.slane %v4773_v23, 5 }
 0x2d0   : > { %v4013_v63 = vsel %vm7225_vm6, %v6367_v38, %v4012_v52  ;;  %v4780_v56 = vrot.slane %v4778_v24, 4  ;;  %v4781_v53 = vshll.u32 %v4749_v62, 16  ;;  %v4787_v18 = vshll.u32 %v4750_v6, 16  ;;  %v4438_v37 = vld [vmem:[#allocation2 + $0x64] sm:$0xf] }
 0x2d1   : > { %v4025_v48 = vunpack.c.l.b16 %v4013_v63  ;;  %v4323_v51 = vrot.slane %v4322_v19, 4  ;;  %v4314_v30 = vsel %vm7283_vm12, %v4309_v7, %v4313_v46  ;;  %v4770_v40 = vor.u32 %v4769_v3, %v4766_v1 }
 0x2d2   : > { %v4518_v14 = vshrl.u32 %v4435_v0, 16  ;;  %v4523_v17 = vshrl.u32 %v4436_v8, 16  ;;  %v4340_v32 = vunpack.c.l.b16 %v4314_v30  ;;  %v4783_v33 = vrot.slane %v4781_v53, 5  ;;  %v4752_v0 = vld [vmem:[#allocation2 + $0x2c] sm:$0x1] }
 0x2d3   : > { %v4029_v61 = vpack.c.b16 %v4025_v48, %v4024_v21  ;;  %v4328_v34 = vsel %vm7283_vm12, %v4323_v51, %v4327_v15  ;;  %v4789_v22 = vrot.slane %v4787_v18, 5  ;;  %v4771_v28 = vrot.slane %v4770_v40, 4  ;;  %v4969_v21 = vld [vmem:[#allocation2 + $0x18] sm:$0x8]  ;;  %v4751_v48 = vld [vmem:[#allocation2 + $0x28] sm:$0xf] }
 0x2d4   : > { %v4341_v26 = vunpack.c.l.b16 %v4328_v34  ;;  %v6426_v38 = vrot.slane %v4518_v14, 11  ;;  %v4525_v39 = vrot.slane %v4523_v17, 7  ;;  %v4784_v42 = vor.u32 %v4783_v33, %v4780_v56  ;;  %v6627_v56 = vld [vmem:[#allocation2 + $0x18] sm:$0xf0]  ;;  %v4754_v40 = vld [vmem:[#allocation2 + $0x38] sm:$0x1] }
 0x2d5   : > { %6379 = vmatmul.msk.bf16.gmra.mxu2 %vm675_vm7, %v4029_v61  ;;  %v4526_v13 = vshll.u32 %v4436_v8, 16  ;;  %v4531_v43 = vshrl.u32 %v4437_v27, 16  ;;  %v4536_v59 = vshrl.u32 %v4438_v37, 16  ;;  %v4776_v2 = vsel %vm7283_vm12, %v4771_v28, %v4775_v31  ;;  %v4753_v8 = vld [vmem:[#allocation2 + $0x34] sm:$0xf] }
 0x2d6   : > { %v4345_v10 = vpack.c.b16 %v4341_v26, %v4340_v32  ;;  %v4785_v52 = vrot.slane %v4784_v42, 4  ;;  %v4539_v49 = vshll.u32 %v4438_v37, 16  ;;  %v4880_v25 = vunpack.c.l.b16 %v4776_v2 }
 0x2d7   : > { %v4528_v60 = vor.u32 %v4526_v13, %v4525_v39  ;;  %v6427_v46 = vrot.slane %v4531_v43, 11  ;;  %v4538_v47 = vrot.slane %v4536_v59, 7  ;;  %v4991_v62 = vshrl.u32 %v4970_v41, 16 }
 0x2d8   : > { %v4790_v63 = vsel %vm7283_vm12, %v4785_v52, %v4789_v22  ;;  %v4999_v4 = vshrl.u32 %v4971_v50, 16  ;;  %v5004_v36 = vshrl.u32 %v4972_v9, 16  ;;  %v4986_v45 = vshrl.u32 %v4969_v21, 16  ;;  %v6442_v22 = vld [vmem:[#allocation2 + $0x10] sm:$0xf] }
 0x2d9   : > { %v4529_v11 = vsel %vm7225_vm6, %v6426_v38, %v4528_v60  ;;  %6419 = vmatmul.msk.bf16.gmra.mxu0 %vm675_vm7, %v4345_v10  ;;  %v4881_v29 = vunpack.c.l.b16 %v4790_v63  ;;  %v4541_v6 = vor.u32 %v4539_v49, %v4538_v47  ;;  %v4994_v23 = vshll.u32 %v4970_v41, 16  ;;  %v4976_v41 = vld [vmem:[#allocation2 + $0x40] sm:$0xf]  ;;  %v4757_v21 = vld [vmem:[#allocation2 + $0x4c] sm:$0xf] }
 0x2da   : > { %v4554_v19 = vunpack.c.l.b16 %v4529_v11  ;;  %v4993_v15 = vrot.slane %v4991_v62, 7  ;;  %v5006_v1 = vrot.slane %v5004_v36, 7  ;;  %v5007_v24 = vshll.u32 %v4972_v9, 16  ;;  %v4974_v9 = vld [vmem:[#allocation2 + $0x34] sm:$0xf]  ;;  %v6643_v60 = vld [vmem:[#allocation11 + $0x80] sm:$0xff] }
 0x2db   : > { %v4888_v61 = vpack.c.b16 %v4881_v29, %v4880_v25  ;;  %v4542_v7 = vsel %vm7225_vm6, %v6427_v46, %v4541_v6  ;;  %v4792_v3 = vshrl.u32 %v4751_v48, 16  ;;  %v4795_v31 = vshll.u32 %v4751_v48, 16  ;;  %v4755_v52 = vld [vmem:[#allocation2 + $0x40] sm:$0xf]  ;;  %5469 = vmatpush.bf16.msra.mxu2 %v6643_v60  ;;  %v4975_v63 = vld [vmem:[#allocation2 + $0x3c] sm:$0x8] }
 0x2dc   : > { %v4555_v51 = vunpack.c.l.b16 %v4542_v7  ;;  %v6481_v53 = vrot.slane %v4999_v4, 11  ;;  %v5009_v18 = vor.u32 %v5007_v24, %v5006_v1  ;;  %v4801_v30 = vshll.u32 %v4752_v0, 16  ;;  %v4973_v48 = vld [vmem:[#allocation2 + $0x30] sm:$0x8]  ;;  %v4978_v60 = vld [vmem:[#allocation2 + $0x4c] sm:$0xf] }
 0x2dd   : > { %6476 = vmatmul.msk.bf16.vlgmr.msra.gmra.mxu3 %vm675_vm7, %v4888_v61  ;;  %v4794_v27 = vrot.slane %v4792_v3, 4  ;;  %v4797_v37 = vrot.slane %v4795_v31, 5  ;;  %v4806_v14 = vshrl.u32 %v4753_v8, 16  ;;  %v4809_v17 = vshll.u32 %v4753_v8, 16  ;;  %v4758_v61 = vld [vmem:[#allocation2 + $0x50] sm:$0x1] }
 0x2de   : > { %v4559_v34 = vpack.c.b16 %v4555_v51, %v4554_v19  ;;  %v6480_v32 = vrot.slane %v4986_v45, 11  ;;  %v4996_v33 = vor.u32 %v4994_v23, %v4993_v15  ;;  %v6443_v38 = vor.u32 %v6627_v56, %v6442_v22  ;;  %v6637_v3 = vld [vmem:[#allocation2 + $0x24] sm:$0xf0] }
 0x2df   : > { %v4798_v26 = vor.u32 %v4797_v37, %v4794_v27  ;;  %v4808_v28 = vrot.slane %v4806_v14, 4  ;;  %v5010_v39 = vsel %vm7225_vm6, %v6481_v53, %v5009_v18  ;;  %v4811_v42 = vrot.slane %v4809_v17, 5  ;;  %v6502_v27 = vld [vmem:[#allocation2 + $0x1c] sm:$0xf] }
 0x2e0   : > { %6439 = vmatmul.msk.bf16.gmra.mxu1 %vm675_vm7, %v4559_v34  ;;  %v4815_v13 = vshll.u32 %v4754_v40, 16  ;;  %v4803_v59 = vrot.slane %v4801_v30, 5  ;;  %v4997_v10 = vsel %vm7225_vm6, %v6480_v32, %v4996_v33  ;;  %v5095_v49 = vunpack.c.l.b16 %v5010_v39  ;;  %v4756_v40 = vld [vmem:[#allocation2 + $0x44] sm:$0x1]  ;;  %v6628_v33 = vld [vmem:[#allocation2 + $0x30] sm:$0xf0] }
 0x2e1   : > { %v4799_v43 = vrot.slane %v4798_v26, 4  ;;  %v4812_v2 = vor.u32 %v4811_v42, %v4808_v28  ;;  %v5030_v46 = vshrl.u32 %v4976_v41, 16  ;;  %v5094_v47 = vunpack.c.l.b16 %v4997_v10  ;;  %v6446_v39 = vld [vmem:[#allocation2 + $0x28] sm:$0xf]  ;;  %v4761_v10 = vld [vmem:[#allocation2 + $0x64] sm:$0xf] }
 0x2e2   : > { %v4817_v50 = vrot.slane %v4815_v13, 5  ;;  %v5017_v11 = vshrl.u32 %v4974_v9, 16  ;;  %v4820_v4 = vshrl.u32 %v4755_v52, 16  ;;  %v4823_v29 = vshll.u32 %v4755_v52, 16 }
 0x2e3   : > { %v4813_v25 = vrot.slane %v4812_v2, 4  ;;  %v4804_v62 = vsel %vm7283_vm12, %v4799_v43, %v4803_v59  ;;  %v4834_v6 = vshrl.u32 %v4757_v21, 16  ;;  %v4837_v45 = vshll.u32 %v4757_v21, 16 }
 0x2e4   : > { %v5102_v23 = vpack.c.b16 %v5095_v49, %v5094_v47  ;;  %v5025_v19 = vshrl.u32 %v4975_v63, 16  ;;  %v5032_v15 = vrot.slane %v5030_v46, 7  ;;  %v4882_v24 = vunpack.c.l.b16 %v4804_v62  ;;  %v4759_v49 = vld [vmem:[#allocation2 + $0x58] sm:$0xf]  ;;  %v4979_v63 = vld [vmem:[#allocation2 + $0x54] sm:$0x8] }
 0x2e5   : > { %6464 = vmatmul.msk.bf16.vlgmr.msrb.gmra.mxu2 %vm675_vm7, %v6443_v38  ;;  %v4818_v36 = vsel %vm7283_vm12, %v4813_v25, %v4817_v50  ;;  %v4836_v1 = vrot.slane %v4834_v6, 4  ;;  %v5012_v8 = vshrl.u32 %v4973_v48, 16  ;;  %v4839_v7 = vrot.slane %v4837_v45, 5 }
 0x2e6   : > { %v4883_v0 = vunpack.c.l.b16 %v4818_v36  ;;  %v5019_v31 = vrot.slane %v5017_v11, 7  ;;  %v5033_v51 = vshll.u32 %v4976_v41, 16  ;;  %v4822_v56 = vrot.slane %v4820_v4, 4  ;;  %v4980_v41 = vld [vmem:[#allocation2 + $0x58] sm:$0xf] }
 0x2e7   : > { %v4825_v53 = vrot.slane %v4823_v29, 5  ;;  %v5020_v30 = vshll.u32 %v4974_v9, 16  ;;  %v6483_v37 = vrot.slane %v5025_v19, 11  ;;  %v4840_v17 = vor.u32 %v4839_v7, %v4836_v1  ;;  %v4977_v4 = vld [vmem:[#allocation2 + $0x48] sm:$0x8] }
 0x2e8   : > { %v4889_v18 = vpack.c.b16 %v4883_v0, %v4882_v24  ;;  %v5035_v14 = vor.u32 %v5033_v51, %v5032_v15  ;;  %v4843_v34 = vshll.u32 %v4758_v61, 16  ;;  %v6503_v32 = vor.u32 %v6637_v3, %v6502_v27  ;;  %v6638_v61 = vld [vmem:[#allocation2 + $0x3c] sm:$0xf0] }
 0x2e9   : > { %6496 = vmatmul.msk.bf16.vlgmr.msra.gmra.mxu0 %vm675_vm7, %v5102_v23  ;;  %v6482_v22 = vrot.slane %v5012_v8, 11  ;;  %v5022_v26 = vor.u32 %v5020_v30, %v5019_v31  ;;  %v4826_v28 = vor.u32 %v4825_v53, %v4822_v56  ;;  %v4829_v38 = vshll.u32 %v4756_v40, 16  ;;  %v4762_v8 = vld [vmem:[#allocation2 + $0x68] sm:$0x1]  ;;  %v6506_v30 = vld [vmem:[#allocation2 + $0x34] sm:$0xf] }
 0x2ea   : > { %v6447_v42 = vor.u32 %v6628_v33, %v6446_v39  ;;  %v5036_v13 = vsel %vm7225_vm6, %v6483_v37, %v5035_v14  ;;  %v4841_v43 = vrot.slane %v4840_v17, 4  ;;  %v4845_v59 = vrot.slane %v4843_v34, 5  ;;  %v6629_v34 = vld [vmem:[#allocation2 + $0x48] sm:$0xf0] }
 0x2eb   : > { %v5023_v2 = vsel %vm7225_vm6, %v6482_v22, %v5022_v26  ;;  %v4827_v50 = vrot.slane %v4826_v28, 4  ;;  %v4831_v9 = vrot.slane %v4829_v38, 5  ;;  %v5097_v52 = vunpack.c.l.b16 %v5036_v13  ;;  %v6450_v28 = vld [vmem:[#allocation2 + $0x40] sm:$0xf] }
 0x2ec   : > { %v4846_v21 = vsel %vm7283_vm12, %v4841_v43, %v4845_v59  ;;  %v5056_v25 = vshrl.u32 %v4980_v41, 16  ;;  %v4862_v46 = vshrl.u32 %v4761_v10, 16  ;;  %v4865_v47 = vshll.u32 %v4761_v10, 16  ;;  %v4982_v43 = vld [vmem:[#allocation2 + $0x64] sm:$0xf] }
 0x2ed   : > { %6477 = vmatmul.msk.bf16.gmra.mxu3 %vm675_vm7, %v4889_v18  ;;  %v5096_v62 = vunpack.c.l.b16 %v5023_v2  ;;  %v4832_v11 = vsel %vm7283_vm12, %v4827_v50, %v4831_v9  ;;  %v5043_v36 = vshrl.u32 %v4978_v60, 16  ;;  %v4848_v48 = vshrl.u32 %v4759_v49, 16  ;;  %v4760_v18 = vld [vmem:[#allocation2 + $0x5c] sm:$0x1]  ;;  %v4984_v59 = vld [vmem:[#allocation2 + $0x70] sm:$0xf] }
 0x2ee   : > { %v4851_v29 = vshll.u32 %v4759_v49, 16  ;;  %v4885_v45 = vunpack.c.l.b16 %v4846_v21  ;;  %v5051_v23 = vshrl.u32 %v4979_v63, 16  ;;  %v5058_v0 = vrot.slane %v5056_v25, 7  ;;  %v4983_v25 = vld [vmem:[#allocation2 + $0x6c] sm:$0x8] }
 0x2ef   : > { %v5103_v6 = vpack.c.b16 %v5097_v52, %v5096_v62  ;;  %v4864_v19 = vrot.slane %v4862_v46, 4  ;;  %v4867_v15 = vrot.slane %v4865_v47, 5  ;;  %v4884_v1 = vunpack.c.l.b16 %v4832_v11  ;;  %v4981_v52 = vld [vmem:[#allocation2 + $0x60] sm:$0x8]  ;;  %v5295_v47 = vld [vmem:[#allocation2 + $0x28] sm:$0xf] }
 0x2f0   : > { %6524 = vmatmul.msk.bf16.vlgmr.msra.gmra.mxu1 %vm675_vm7, %v6503_v32  ;;  %v5038_v24 = vshrl.u32 %v4977_v4, 16  ;;  %v5045_v7 = vrot.slane %v5043_v36, 7  ;;  %v5059_v3 = vshll.u32 %v4980_v41, 16  ;;  %v4850_v31 = vrot.slane %v4848_v48, 4 }
 0x2f1   : > { %v4853_v51 = vrot.slane %v4851_v29, 5  ;;  %v4890_v56 = vpack.c.b16 %v4885_v45, %v4884_v1  ;;  %v5046_v53 = vshll.u32 %v4978_v60, 16  ;;  %v6485_v40 = vrot.slane %v5051_v23, 11  ;;  %v6639_v1 = vld [vmem:[#allocation2 + $0x54] sm:$0xf0] }
 0x2f2   : > { %v5061_v27 = vor.u32 %v5059_v3, %v5058_v0  ;;  %v4868_v37 = vor.u32 %v4867_v15, %v4864_v19  ;;  %v4871_v14 = vshll.u32 %v4762_v8, 16  ;;  %v6507_v17 = vor.u32 %v6638_v61, %v6506_v30 }
 0x2f3   : > { %v6484_v32 = vrot.slane %v5038_v24, 11  ;;  %v5048_v33 = vor.u32 %v5046_v53, %v5045_v7  ;;  %v4854_v22 = vor.u32 %v4853_v51, %v4850_v31  ;;  %v4857_v26 = vshll.u32 %v4760_v18, 16  ;;  %v6510_v51 = vld [vmem:[#allocation2 + $0x4c] sm:$0xf] }
 0x2f4   : > { %v6451_v38 = vor.u32 %v6629_v34, %v6450_v28  ;;  %v5062_v39 = vsel %vm7225_vm6, %v6485_v40, %v5061_v27  ;;  %v4873_v13 = vrot.slane %v4871_v14, 5  ;;  %v5069_v60 = vshrl.u32 %v4982_v43, 16  ;;  %v5296_v40 = vld [vmem:[#allocation2 + $0x2c] sm:$0x1]  ;;  %v6454_v27 = vld [vmem:[#allocation2 + $0x58] sm:$0xf] }
 0x2f5   : > { %6465 = vmatmul.msk.bf16.gmra.mxu2 %vm675_vm7, %v6447_v42  ;;  %v4869_v42 = vrot.slane %v4868_v37, 4  ;;  %v5049_v41 = vsel %vm7225_vm6, %v6484_v32, %v5048_v33  ;;  %v4855_v10 = vrot.slane %v4854_v22, 4  ;;  %v4859_v2 = vrot.slane %v4857_v26, 5  ;;  %v5294_v33 = vld [vmem:[#allocation2 + $0x20] sm:$0x1] }
 0x2f6   : > { %v5099_v50 = vunpack.c.l.b16 %v5062_v39  ;;  %v5082_v49 = vshrl.u32 %v4984_v59, 16  ;;  %v5098_v21 = vunpack.c.l.b16 %v5049_v41  ;;  %v5064_v11 = vshrl.u32 %v4981_v52, 16 }
 0x2f7   : > { %v4874_v9 = vsel %vm7283_vm12, %v4869_v42, %v4873_v13  ;;  %v4860_v46 = vsel %vm7283_vm12, %v4855_v10, %v4859_v2  ;;  %v5071_v4 = vrot.slane %v5069_v60, 7  ;;  %v5077_v36 = vshrl.u32 %v4983_v25, 16 }
 0x2f8   : > { %v5104_v62 = vpack.c.b16 %v5099_v50, %v5098_v21  ;;  %v4887_v63 = vunpack.c.l.b16 %v4874_v9  ;;  %v5084_v48 = vrot.slane %v5082_v49, 7  ;;  %v5085_v29 = vshll.u32 %v4984_v59, 16  ;;  %v5299_v59 = vld [vmem:[#allocation2 + $0x40] sm:$0xf]  ;;  %v5297_v50 = vld [vmem:[#allocation2 + $0x34] sm:$0xf] }
 0x2f9   : > { %6497 = vmatmul.msk.bf16.gmra.mxu0 %vm675_vm7, %v5103_v6  ;;  %v5293_v6 = vld [vmem:[#allocation2 + $0x1c] sm:$0xf]  ;;  %v4886_v45 = vunpack.c.l.b16 %v4860_v46  ;;  %v5324_v23 = vshrl.u32 %v5295_v47, 16  ;;  %v5327_v0 = vshll.u32 %v5295_v47, 16  ;;  %v5072_v19 = vshll.u32 %v4982_v43, 16 }
 0x2fa   : > { %v5310_v24 = vshrl.u32 %v5293_v6, 16  ;;  %v5313_v8 = vshll.u32 %v5293_v6, 16  ;;  %v6486_v61 = vrot.slane %v5064_v11, 11  ;;  %v6487_v3 = vrot.slane %v5077_v36, 11  ;;  %v6514_v49 = vld [vmem:[#allocation2 + $0x64] sm:$0xf] }
 0x2fb   : > { %v4891_v15 = vpack.c.b16 %v4887_v63, %v4886_v45  ;;  %v5074_v7 = vor.u32 %v5072_v19, %v5071_v4  ;;  %v5087_v31 = vor.u32 %v5085_v29, %v5084_v48  ;;  %v5326_v53 = vrot.slane %v5324_v23, 4  ;;  %v6640_v21 = vld [vmem:[#allocation2 + $0x6c] sm:$0xf0]  ;;  %v5300_v48 = vld [vmem:[#allocation2 + $0x44] sm:$0x1] }
 0x2fc   : > { %v5329_v18 = vrot.slane %v5327_v0, 5  ;;  %v6511_v30 = vor.u32 %v6639_v1, %v6510_v51  ;;  %v5312_v37 = vrot.slane %v5310_v24, 4  ;;  %v5315_v14 = vrot.slane %v5313_v8, 5  ;;  %v5298_v23 = vld [vmem:[#allocation2 + $0x38] sm:$0x1] }
 0x2fd   : > { %6478 = vmatmul.msk.bf16.gmra.mxu3 %vm675_vm7, %v4890_v56  ;;  %v6630_v56 = vld [vmem:[#allocation2 + $0x60] sm:$0xf0]  ;;  %v5075_v34 = vsel %vm7225_vm6, %v6486_v61, %v5074_v7  ;;  %v5088_v32 = vsel %vm7225_vm6, %v6487_v3, %v5087_v31  ;;  %v5333_v26 = vshll.u32 %v5296_v40, 16  ;;  %v5319_v42 = vshll.u32 %v5294_v33, 16  ;;  %v5303_v31 = vld [vmem:[#allocation2 + $0x58] sm:$0xf] }
 0x2fe   : > { %v5330_v22 = vor.u32 %v5329_v18, %v5326_v53  ;;  %v5100_v28 = vunpack.c.l.b16 %v5075_v34  ;;  %v5316_v39 = vor.u32 %v5315_v14, %v5312_v37  ;;  %v5352_v9 = vshrl.u32 %v5299_v59, 16  ;;  %v5301_v18 = vld [vmem:[#allocation2 + $0x4c] sm:$0xf] }
 0x2ff   : > { %v5335_v43 = vrot.slane %v5333_v26, 5  ;;  %v5321_v2 = vrot.slane %v5319_v42, 5  ;;  %v5355_v52 = vshll.u32 %v5299_v59, 16  ;;  %v5338_v46 = vshrl.u32 %v5297_v50, 16 }
 0x300   : > { %6525 = vmatmul.msk.bf16.gmra.mxu1 %vm675_vm7, %v6507_v17  ;;  %v6455_v17 = vor.u32 %v6630_v56, %v6454_v27  ;;  %v5331_v13 = vrot.slane %v5330_v22, 4  ;;  %v5317_v10 = vrot.slane %v5316_v39, 4  ;;  %v5341_v47 = vshll.u32 %v5297_v50, 16 }
 0x301   : > { %v5354_v63 = vrot.slane %v5352_v9, 4  ;;  %v5357_v11 = vrot.slane %v5355_v52, 5  ;;  %v6515_v4 = vor.u32 %v6640_v21, %v6514_v49  ;;  %v5340_v29 = vrot.slane %v5338_v46, 4 }
 0x302   : > { %v5336_v35 = vsel %vm7283_vm12, %v5331_v13, %v5335_v43  ;;  %v5322_v25 = vsel %vm7283_vm12, %v5317_v10, %v5321_v2  ;;  %v5343_v6 = vrot.slane %v5341_v47, 5  ;;  %v5361_v19 = vshll.u32 %v5300_v48, 16  ;;  %v5304_v13 = vld [vmem:[#allocation2 + $0x5c] sm:$0x1]  ;;  %v5302_v2 = vld [vmem:[#allocation2 + $0x50] sm:$0x1] }
 0x303   : > { %v5426_v36 = vunpack.c.l.b16 %v5322_v25  ;;  %v5358_v0 = vor.u32 %v5357_v11, %v5354_v63  ;;  %v5347_v61 = vshll.u32 %v5298_v23, 16  ;;  %v5380_v40 = vshrl.u32 %v5303_v31, 16  ;;  %v5305_v11 = vld [vmem:[#allocation2 + $0x64] sm:$0xf] }
 0x304   : > { %v5344_v8 = vor.u32 %v5343_v6, %v5340_v29  ;;  %v5363_v3 = vrot.slane %v5361_v19, 5  ;;  %v5383_v27 = vshll.u32 %v5303_v31, 16  ;;  %v5369_v33 = vshll.u32 %v5301_v18, 16 }
 0x305   : > { %6466 = vmatmul.msk.bf16.gmra.mxu2 %vm675_vm7, %v6451_v38  ;;  %v5101_v38 = vunpack.c.l.b16 %v5088_v32  ;;  %v5359_v7 = vrot.slane %v5358_v0, 4  ;;  %v5349_v53 = vrot.slane %v5347_v61, 5  ;;  %v5366_v32 = vshrl.u32 %v5301_v18, 16 }
 0x306   : > { %v5345_v56 = vrot.slane %v5344_v8, 4  ;;  %v5385_v39 = vrot.slane %v5383_v27, 5  ;;  %v5394_v6 = vshrl.u32 %v5305_v11, 16 }
 0x307   : > { %v5105_v41 = vpack.c.b16 %v5101_v38, %v5100_v28  ;;  %v5382_v38 = vrot.slane %v5380_v40, 4  ;;  %v5368_v59 = vrot.slane %v5366_v32, 4 }
 0x308   : > { %v5350_v34 = vsel %vm7283_vm12, %v5345_v56, %v5349_v53  ;;  %v5396_v31 = vrot.slane %v5394_v6, 4 }
 0x309   : > { %6498 = vmatmul.msk.bf16.gmra.mxu0 %vm675_vm7, %v5104_v62  ;;  %v5427_v62 = vunpack.c.l.b16 %v5336_v35  ;;  %v5428_v42 = vunpack.c.l.b16 %v5350_v34  ;;  %v5386_v50 = vor.u32 %v5385_v39, %v5382_v38  ;;  %v5389_v35 = vshll.u32 %v5304_v13, 16  ;;  %v5308_v34 = vld [vmem:[#allocation2 + $0x74] sm:$0x1] }
 0x30a   : > { %v5417_v39 = vshll.u32 %v5308_v34, 16 }
 0x30b   : > { %v5434_v45 = vpack.c.b16 %v5427_v62, %v5426_v36  ;;  %v5387_v62 = vrot.slane %v5386_v50, 4  ;;  %v5391_v63 = vrot.slane %v5389_v35, 5  ;;  %v5307_v36 = vld [vmem:[#allocation2 + $0x70] sm:$0xf] }
 0x30c   : > { %v5408_v19 = vshrl.u32 %v5307_v36, 16 }
 0x30d   : > { %6479 = vmatmul.msk.bf16.gmra.mxu3 %vm675_vm7, %v4891_v15  ;;  %v5392_v0 = vsel %vm7283_vm12, %v5387_v62, %v5391_v63 }
 0x30e   : > { %v5410_v18 = vrot.slane %v5408_v19, 4 }
 0x310   : > { %6526 = vmatmul.msk.bf16.gmra.mxu1 %vm675_vm7, %v6511_v30  ;;  %v5364_v30 = vsel %vm7283_vm12, %v5359_v7, %v5363_v3  ;;  %v5431_v3 = vunpack.c.l.b16 %v5392_v0 }
 0x311   : > { %v5429_v28 = vunpack.c.l.b16 %v5364_v30 }
 0x313   : > { %v5435_v10 = vpack.c.b16 %v5429_v28, %v5428_v42 }
 0x315   : > { %6467 = vmatmul.msk.bf16.gmra.mxu2 %vm675_vm7, %v6455_v17 }
 0x319   : > { %6499 = vmatmul.msk.bf16.gmra.mxu0 %vm675_vm7, %v5105_v41  ;;  %v5371_v41 = vrot.slane %v5369_v33, 5 }
 0x31b   : > { %v5372_v52 = vor.u32 %v5371_v41, %v5368_v59 }
 0x31d   : > { %v4157_v60 = vpop.f32.mrf.mxu3  ;;  %v5373_v48 = vrot.slane %v5372_v52, 4 }
 0x320   : > { %6527 = vmatmul.msk.bf16.gmra.mxu1 %vm675_vm7, %v6515_v4 }
 0x324   : > { %v4379_v1 = vpop.f32.mrf.mxu0 }
 0x325   : > { %6536 = vmatmul.msk.bf16.vlgmr.msra.gmra.mxu2 %vm675_vm7, %v5434_v45  ;;  %v4159_v15 = vpop.f32.mrf.mxu3  ;;  %v5397_v45 = vshll.u32 %v5305_v11, 16 }
 0x327   : > { %v4063_v24 = vpop.f32.mrf.mxu2  ;;  %v5399_v56 = vrot.slane %v5397_v45, 5 }
 0x328   : > { %4083 = vst.msk [vmem:[#allocation3] sm:$0xff] %vm675_vm7, %v4063_v24  ;;  %v8058_v51 = vpop.f32.mrf.mxu1 }
 0x329   : > { %v5400_v28 = vor.u32 %v5399_v56, %v5396_v31 }
 0x32b   : > { %v5401_v41 = vrot.slane %v5400_v28, 4 }
 0x32c   : > { %v8062_v14 = vpop.f32.mrf.mxu0 }
 0x32e   : > { %v4162_v17 = vpop.f32.mrf.mxu3 }
 0x32f   : > { %v4177_v37 = vld [vmem:[#allocation3] sm:$0xff]  ;;  %v4065_v26 = vpop.f32.mrf.mxu2 }
 0x330   : > { %v4185_v22 = vadd.f32 %v4177_v37, %v4157_v60  ;;  %4084 = vst.msk [vmem:[#allocation3 + $0x8] sm:$0xff] %vm675_vm7, %v4065_v26  ;;  %v8068_v43 = vpop.f32.mrf.mxu1  ;;  %v5375_v60 = vshll.u32 %v5302_v2, 16  ;;  %v5306_v37 = vld [vmem:[#allocation2 + $0x68] sm:$0x1] }
 0x332   : > { %4193 = vst.msk [vmem:[#allocation3] sm:$0xff] %vm675_vm7, %v4185_v22  ;;  %v5377_v29 = vrot.slane %v5375_v60, 5 }
 0x335   : > { %6537 = vmatmul.msk.bf16.gmra.mxu2 %vm675_vm7, %v5435_v10  ;;  %v4384_v21 = vpop.f32.mrf.mxu0 }
 0x336   : > { %v4164_v9 = vpop.f32.mrf.mxu3 }
 0x337   : > { %v4178_v49 = vld [vmem:[#allocation3 + $0x8] sm:$0xff] }
 0x338   : > { %v4068_v25 = vpop.f32.mrf.mxu2  ;;  %v4186_v47 = vadd.f32 %v4178_v49, %v4159_v15  ;;  %v5411_v15 = vshll.u32 %v5307_v36, 16 }
 0x339   : > { %v4399_v46 = vld [vmem:[#allocation3] sm:$0xff]  ;;  %4085 = vst.msk [vmem:[#allocation3 + $0x10] sm:$0xff] %vm675_vm7, %v4068_v25  ;;  %v8074_v23 = vpop.f32.mrf.mxu1 }
 0x33a   : > { %v4407_v4 = vadd.f32 %v4399_v46, %v4379_v1  ;;  %4194 = vst.msk [vmem:[#allocation3 + $0x8] sm:$0xff] %vm675_vm7, %v4186_v47  ;;  %v5378_v1 = vsel %vm7283_vm12, %v5373_v48, %v5377_v29  ;;  %v5413_v30 = vrot.slane %v5411_v15, 5 }
 0x33b   : > { %v5430_v27 = vunpack.c.l.b16 %v5378_v1 }
 0x33c   : > { %4415 = vst.msk [vmem:[#allocation3] sm:$0xff] %vm675_vm7, %v4407_v4  ;;  %v5414_v38 = vor.u32 %v5413_v30, %v5410_v18 }
 0x33d   : > { %v4386_v61 = vpop.f32.mrf.mxu0  ;;  %v5436_v26 = vpack.c.b16 %v5431_v3, %v5430_v27 }
 0x33e   : > { %v4167_v24 = vpop.f32.mrf.mxu3  ;;  %v5415_v50 = vrot.slane %v5414_v38, 4 }
 0x340   : > { %v4179_v8 = vld [vmem:[#allocation3 + $0x10] sm:$0xff]  ;;  %v4070_v7 = vpop.f32.mrf.mxu2 }
 0x341   : > { %v4187_v53 = vadd.f32 %v4179_v8, %v4162_v17  ;;  %4086 = vst.msk [vmem:[#allocation3 + $0x18] sm:$0xff] %vm675_vm7, %v4070_v7  ;;  %v4400_v40 = vld [vmem:[#allocation3 + $0x8] sm:$0xff]  ;;  %v5403_v17 = vshll.u32 %v5306_v37, 16  ;;  %v4600_v42 = vpop.f32.mrf.mxu1 }
 0x342   : > { %v4408_v33 = vadd.f32 %v4400_v40, %v8062_v14 }
 0x343   : > { %v4613_v32 = vld [vmem:[#allocation3] sm:$0xff]  ;;  %4195 = vst.msk [vmem:[#allocation3 + $0x10] sm:$0xff] %vm675_vm7, %v4187_v53  ;;  %v5405_v2 = vrot.slane %v5403_v17, 5 }
 0x344   : > { %v4621_v22 = vadd.f32 %v4613_v32, %v8058_v51  ;;  %4416 = vst.msk [vmem:[#allocation3 + $0x8] sm:$0xff] %vm675_vm7, %v4408_v33  ;;  %v5419_v51 = vrot.slane %v5417_v39, 5 }
 0x345   : > { %6538 = vmatmul.msk.bf16.gmra.mxu2 %vm675_vm7, %v5436_v26  ;;  %v5406_v46 = vsel %vm7283_vm12, %v5401_v41, %v5405_v2 }
 0x346   : > { %4629 = vst.msk [vmem:[#allocation3] sm:$0xff] %vm675_vm7, %v4621_v22  ;;  %v4169_v13 = vpop.f32.mrf.mxu3  ;;  %v4389_v52 = vpop.f32.mrf.mxu0  ;;  %v5432_v62 = vunpack.c.l.b16 %v5406_v46 }
 0x348   : > { %v4180_v59 = vld [vmem:[#allocation3 + $0x18] sm:$0xff]  ;;  %v4073_v10 = vpop.f32.mrf.mxu2 }
 0x349   : > { %v4188_v14 = vadd.f32 %v4180_v59, %v4164_v9  ;;  %4087 = vst.msk [vmem:[#allocation3 + $0x20] sm:$0xff] %vm675_vm7, %v4073_v10  ;;  %v5420_v9 = vsel %vm7283_vm12, %v5415_v50, %v5419_v51  ;;  %v4603_v47 = vpop.f32.mrf.mxu1 }
 0x34a   : > { %v4401_v35 = vld [vmem:[#allocation3 + $0x10] sm:$0xff]  ;;  %v5433_v63 = vunpack.c.l.b16 %v5420_v9 }
 0x34b   : > { %v4409_v60 = vadd.f32 %v4401_v35, %v4384_v21  ;;  %4196 = vst.msk [vmem:[#allocation3 + $0x18] sm:$0xff] %vm675_vm7, %v4188_v14  ;;  %v4614_v49 = vld [vmem:[#allocation3 + $0x8] sm:$0xff] }
 0x34c   : > { %v4622_v25 = vadd.f32 %v4614_v49, %v8068_v43  ;;  %v5437_v45 = vpack.c.b16 %v5433_v63, %v5432_v62 }
 0x34d   : > { %4417 = vst.msk [vmem:[#allocation3 + $0x10] sm:$0xff] %vm675_vm7, %v4409_v60  ;;  %v4723_v26 = vld [vmem:[#allocation3] sm:$0xff] }
 0x34e   : > { %4630 = vst.msk [vmem:[#allocation3 + $0x8] sm:$0xff] %vm675_vm7, %v4622_v25  ;;  %v4172_v21 = vpop.f32.mrf.mxu3  ;;  %v4391_v29 = vpop.f32.mrf.mxu0 }
 0x350   : > { %v4181_v11 = vld [vmem:[#allocation3 + $0x20] sm:$0xff]  ;;  %v4075_v4 = vpop.f32.mrf.mxu2 }
 0x351   : > { %v4189_v48 = vadd.f32 %v4181_v11, %v4167_v24  ;;  %4088 = vst.msk [vmem:[#allocation3 + $0x28] sm:$0xff] %vm675_vm7, %v4075_v4  ;;  %v4605_v24 = vpop.f32.mrf.mxu1 }
 0x352   : > { %v4402_v36 = vld [vmem:[#allocation3 + $0x18] sm:$0xff] }
 0x353   : > { %v4410_v43 = vadd.f32 %v4402_v36, %v4386_v61  ;;  %4197 = vst.msk [vmem:[#allocation3 + $0x20] sm:$0xff] %vm675_vm7, %v4189_v48 }
 0x354   : > { %v4615_v6 = vld [vmem:[#allocation3 + $0x10] sm:$0xff] }
 0x355   : > { %v4623_v12 = vadd.f32 %v4615_v6, %v8074_v23  ;;  %4418 = vst.msk [vmem:[#allocation3 + $0x18] sm:$0xff] %vm675_vm7, %v4410_v43  ;;  %6539 = vmatmul.msk.bf16.gmra.mxu2 %vm675_vm7, %v5437_v45  ;;  %v4724_v2 = vld [vmem:[#allocation3 + $0x8] sm:$0xff] }
 0x356   : > { %v4394_v1 = vpop.f32.mrf.mxu0  ;;  %v4174_v61 = vpop.f32.mrf.mxu3 }
 0x357   : > { %4631 = vst.msk [vmem:[#allocation3 + $0x10] sm:$0xff] %vm675_vm7, %v4623_v12 }
 0x358   : > { %v4182_v0 = vld [vmem:[#allocation3 + $0x28] sm:$0xff]  ;;  %v4078_v19 = vpop.f32.mrf.mxu2 }
 0x359   : > { %v4190_v15 = vadd.f32 %v4182_v0, %v4169_v13  ;;  %4089 = vst.msk [vmem:[#allocation3 + $0x30] sm:$0xff] %vm675_vm7, %v4078_v19 }
 0x35a   : > { %v4403_v8 = vld [vmem:[#allocation3 + $0x20] sm:$0xff] }
 0x35b   : > { %v4411_v3 = vadd.f32 %v4403_v8, %v4389_v52  ;;  %4198 = vst.msk [vmem:[#allocation3 + $0x28] sm:$0xff] %vm675_vm7, %v4190_v15 }
 0x35c   : > { %v4616_v7 = vld [vmem:[#allocation3 + $0x18] sm:$0xff] }
 0x35d   : > { %v4624_v23 = vadd.f32 %v4616_v7, %v4600_v42  ;;  %4419 = vst.msk [vmem:[#allocation3 + $0x20] sm:$0xff] %vm675_vm7, %v4411_v3  ;;  %v4608_v40 = vpop.f32.mrf.mxu1 }
 0x35e   : > { %v4396_v27 = vpop.f32.mrf.mxu0  ;;  %v4725_v63 = vld [vmem:[#allocation3 + $0x10] sm:$0xff] }
 0x35f   : > { %4632 = vst.msk [vmem:[#allocation3 + $0x18] sm:$0xff] %vm675_vm7, %v4624_v23 }
 0x360   : > { %v4183_v31 = vld [vmem:[#allocation3 + $0x30] sm:$0xff]  ;;  %v4080_v56 = vpop.f32.mrf.mxu2  ;;  %v4925_v34 = vpop.f32.mrf.mxu3 }
 0x361   : > { %v4191_v53 = vadd.f32 %v4183_v31, %v4172_v21  ;;  %4090 = vst.msk [vmem:[#allocation3 + $0x38] sm:$0xff] %vm675_vm7, %v4080_v56 }
 0x362   : > { %v4404_v18 = vld [vmem:[#allocation3 + $0x28] sm:$0xff] }
 0x363   : > { %v4412_v30 = vadd.f32 %v4404_v18, %v4391_v29  ;;  %4199 = vst.msk [vmem:[#allocation3 + $0x30] sm:$0xff] %vm675_vm7, %v4191_v53 }
 0x364   : > { %v4617_v37 = vld [vmem:[#allocation3 + $0x20] sm:$0xff] }
 0x365   : > { %v4625_v32 = vadd.f32 %v4617_v37, %v4603_v47  ;;  %4420 = vst.msk [vmem:[#allocation3 + $0x28] sm:$0xff] %vm675_vm7, %v4412_v30  ;;  %v4610_v59 = vpop.f32.mrf.mxu1 }
 0x366   : > { %v5139_v41 = vpop.f32.mrf.mxu0  ;;  %v4726_v45 = vld [vmem:[#allocation3 + $0x18] sm:$0xff] }
 0x367   : > { %4633 = vst.msk [vmem:[#allocation3 + $0x20] sm:$0xff] %vm675_vm7, %v4625_v32 }
 0x368   : > { %v4184_v33 = vld [vmem:[#allocation3 + $0x38] sm:$0xff]  ;;  %v4703_v22 = vpop.f32.mrf.mxu2  ;;  %v4927_v14 = vpop.f32.mrf.mxu3 }
 0x369   : > { %v4192_v28 = vadd.f32 %v4184_v33, %v4174_v61  ;;  %v4731_v17 = vadd.f32 %v4723_v26, %v4703_v22 }
 0x36a   : > { %v4405_v38 = vld [vmem:[#allocation3 + $0x30] sm:$0xff] }
 0x36b   : > { %v4413_v39 = vadd.f32 %v4405_v38, %v4394_v1  ;;  %4200 = vst.msk [vmem:[#allocation3 + $0x38] sm:$0xff] %vm675_vm7, %v4192_v28 }
 0x36c   : > { %v4618_v42 = vld [vmem:[#allocation3 + $0x28] sm:$0xff]  ;;  %4739 = vst.msk [vmem:[#allocation3] sm:$0xff] %vm675_vm7, %v4731_v17 }
 0x36d   : > { %v4626_v13 = vadd.f32 %v4618_v42, %v4605_v24  ;;  %4421 = vst.msk [vmem:[#allocation3 + $0x30] sm:$0xff] %vm675_vm7, %v4413_v39  ;;  %v5249_v46 = vpop.f32.mrf.mxu1 }
 0x36e   : > { %v5141_v9 = vpop.f32.mrf.mxu0  ;;  %v4727_v31 = vld [vmem:[#allocation3 + $0x20] sm:$0xff] }
 0x36f   : > { %4634 = vst.msk [vmem:[#allocation3 + $0x28] sm:$0xff] %vm675_vm7, %v4626_v13 }
 0x370   : > { %v4705_v10 = vpop.f32.mrf.mxu2  ;;  %v4930_v47 = vpop.f32.mrf.mxu3 }
 0x371   : > { %v4732_v50 = vadd.f32 %v4724_v2, %v4705_v10 }
 0x372   : > { %v4406_v51 = vld [vmem:[#allocation3 + $0x38] sm:$0xff] }
 0x373   : > { %v4414_v35 = vadd.f32 %v4406_v51, %v4396_v27  ;;  %v4945_v52 = vld [vmem:[#allocation3] sm:$0xff]  ;;  %4740 = vst.msk [vmem:[#allocation3 + $0x8] sm:$0xff] %vm675_vm7, %v4732_v50 }
 0x374   : > { %v4619_v60 = vld [vmem:[#allocation3 + $0x30] sm:$0xff]  ;;  %v4953_v49 = vadd.f32 %v4945_v52, %v4925_v34 }
 0x375   : > { %v4627_v25 = vadd.f32 %v4619_v60, %v4608_v40  ;;  %4422 = vst.msk [vmem:[#allocation3 + $0x38] sm:$0xff] %vm675_vm7, %v4414_v35  ;;  %v5251_v12 = vpop.f32.mrf.mxu1 }
 0x376   : > { %4961 = vst.msk [vmem:[#allocation3] sm:$0xff] %vm675_vm7, %v4953_v49  ;;  %v5144_v0 = vpop.f32.mrf.mxu0  ;;  %v4728_v26 = vld [vmem:[#allocation3 + $0x28] sm:$0xff] }
 0x377   : > { %4635 = vst.msk [vmem:[#allocation3 + $0x30] sm:$0xff] %vm675_vm7, %v4627_v25 }
 0x378   : > { %v4708_v62 = vpop.f32.mrf.mxu2  ;;  %v4932_v15 = vpop.f32.mrf.mxu3 }
 0x379   : > { %v4733_v11 = vadd.f32 %v4725_v63, %v4708_v62 }
 0x37a   : > { %v4946_v21 = vld [vmem:[#allocation3 + $0x8] sm:$0xff] }
 0x37b   : > { %v4954_v4 = vadd.f32 %v4946_v21, %v4927_v14  ;;  %4741 = vst.msk [vmem:[#allocation3 + $0x10] sm:$0xff] %vm675_vm7, %v4733_v11 }
 0x37c   : > { %v4620_v36 = vld [vmem:[#allocation3 + $0x38] sm:$0xff] }
 0x37d   : > { %v4628_v48 = vadd.f32 %v4620_v36, %v4610_v59  ;;  %v5159_v29 = vld [vmem:[#allocation3] sm:$0xff]  ;;  %4962 = vst.msk [vmem:[#allocation3 + $0x8] sm:$0xff] %vm675_vm7, %v4954_v4  ;;  %v5254_v18 = vpop.f32.mrf.mxu1 }
 0x37e   : > { %v5167_v43 = vadd.f32 %v5159_v29, %v5139_v41  ;;  %v5146_v30 = vpop.f32.mrf.mxu0  ;;  %v4729_v50 = vld [vmem:[#allocation3 + $0x30] sm:$0xff] }
 0x37f   : > { %4636 = vst.msk [vmem:[#allocation3 + $0x38] sm:$0xff] %vm675_vm7, %v4628_v48 }
 0x380   : > { %5175 = vst.msk [vmem:[#allocation3] sm:$0xff] %vm675_vm7, %v5167_v43  ;;  %v4710_v6 = vpop.f32.mrf.mxu2  ;;  %v4935_v37 = vpop.f32.mrf.mxu3 }
 0x381   : > { %v4734_v19 = vadd.f32 %v4726_v45, %v4710_v6 }
 0x382   : > { %v4947_v24 = vld [vmem:[#allocation3 + $0x10] sm:$0xff] }
 0x383   : > { %v4955_v1 = vadd.f32 %v4947_v24, %v4930_v47  ;;  %4742 = vst.msk [vmem:[#allocation3 + $0x18] sm:$0xff] %vm675_vm7, %v4734_v19 }
 0x384   : > { %v5160_v8 = vld [vmem:[#allocation3 + $0x8] sm:$0xff] }
 0x385   : > { %v5168_v61 = vadd.f32 %v5160_v8, %v5141_v9  ;;  %4963 = vst.msk [vmem:[#allocation3 + $0x10] sm:$0xff] %vm675_vm7, %v4955_v1  ;;  %v5256_v13 = vpop.f32.mrf.mxu1 }
 0x386   : > { %v5149_v59 = vpop.f32.mrf.mxu0  ;;  %v4730_v11 = vld [vmem:[#allocation3 + $0x38] sm:$0xff] }
 0x387   : > { %v5269_v7 = vld [vmem:[#allocation3] sm:$0xff]  ;;  %5176 = vst.msk [vmem:[#allocation3 + $0x8] sm:$0xff] %vm675_vm7, %v5168_v61 }
 0x388   : > { %v5277_v3 = vadd.f32 %v5269_v7, %v5249_v46  ;;  %v4713_v23 = vpop.f32.mrf.mxu2  ;;  %v4937_v14 = vpop.f32.mrf.mxu3 }
 0x389   : > { %v4735_v56 = vadd.f32 %v4727_v31, %v4713_v23  ;;  %v8148_v31 = vld [vmem:[%s8347_s6] ss:$0 sm:$0xff] }
 0x38a   : > { %5285 = vst.msk [vmem:[#allocation3] sm:$0xff] %vm675_vm7, %v5277_v3  ;;  %v4948_v53 = vld [vmem:[#allocation3 + $0x18] sm:$0xff] }
 0x38b   : > { %v4956_v40 = vadd.f32 %v4948_v53, %v4932_v15  ;;  %4743 = vst.msk [vmem:[#allocation3 + $0x20] sm:$0xff] %vm675_vm7, %v4735_v56 }
 0x38c   : > { %v5161_v27 = vld [vmem:[#allocation3 + $0x10] sm:$0xff] }
 0x38d   : > { %v5169_v34 = vadd.f32 %v5161_v27, %v5144_v0  ;;  %4964 = vst.msk [vmem:[#allocation3 + $0x18] sm:$0xff] %vm675_vm7, %v4956_v40  ;;  %v5259_v9 = vpop.f32.mrf.mxu1  ;;  %v5535_v27 = vunpack.c.l.bf16 %v7883_v55 }
 0x38e   : > { %v5270_v32 = vld [vmem:[#allocation3 + $0x8] sm:$0xff]  ;;  %v5151_v47 = vpop.f32.mrf.mxu0 }
 0x38f   : > { %v5278_v33 = vadd.f32 %v5270_v32, %v5251_v12  ;;  %5177 = vst.msk [vmem:[#allocation3 + $0x10] sm:$0xff] %vm675_vm7, %v5169_v34 }
 0x390   : > { %v4715_v22 = vpop.f32.mrf.mxu2  ;;  %v4940_v62 = vpop.f32.mrf.mxu3 }
 0x391   : > { %5286 = vst.msk [vmem:[#allocation3 + $0x8] sm:$0xff] %vm675_vm7, %v5278_v33  ;;  %v4736_v28 = vadd.f32 %v4728_v26, %v4715_v22  ;;  %v5491_v12 = vld [vmem:[#allocation3] sm:$0xff]  ;;  %v8159_v26 = vld [vmem:[%s8348_s7] ss:$0 sm:$0xff] }
 0x392   : > { %v4949_v17 = vld [vmem:[#allocation3 + $0x20] sm:$0xff] }
 0x393   : > { %v4957_v38 = vadd.f32 %v4949_v17, %v4935_v37  ;;  %4744 = vst.msk [vmem:[#allocation3 + $0x28] sm:$0xff] %vm675_vm7, %v4736_v28 }
 0x394   : > { %v5162_v39 = vld [vmem:[#allocation3 + $0x18] sm:$0xff] }
 0x395   : > { %v5170_v42 = vadd.f32 %v5162_v39, %v5146_v30  ;;  %4965 = vst.msk [vmem:[#allocation3 + $0x20] sm:$0xff] %vm675_vm7, %v4957_v38  ;;  %v5261_v0 = vpop.f32.mrf.mxu1 }
 0x396   : > { %v5271_v41 = vld [vmem:[#allocation3 + $0x10] sm:$0xff]  ;;  %v5154_v15 = vpop.f32.mrf.mxu0 }
 0x397   : > { %v5279_v10 = vadd.f32 %v5271_v41, %v5254_v18  ;;  %5178 = vst.msk [vmem:[#allocation3 + $0x18] sm:$0xff] %vm675_vm7, %v5170_v42 }
 0x398   : > { %v4718_v2 = vpop.f32.mrf.mxu2  ;;  %v4942_v24 = vpop.f32.mrf.mxu3  ;;  %v5492_v53 = vld [vmem:[#allocation3 + $0x8] sm:$0xff] }
 0x399   : > { %5287 = vst.msk [vmem:[#allocation3 + $0x10] sm:$0xff] %vm675_vm7, %v5279_v10  ;;  %v4737_v51 = vadd.f32 %v4729_v50, %v4718_v2  ;;  %v5536_v10 = vunpack.c.l.bf16 %v7891_v57 }
 0x39a   : > { %v4950_v35 = vld [vmem:[#allocation3 + $0x28] sm:$0xff] }
 0x39b   : > { %v4958_v52 = vadd.f32 %v4950_v35, %v4937_v14  ;;  %4745 = vst.msk [vmem:[#allocation3 + $0x30] sm:$0xff] %vm675_vm7, %v4737_v51 }
 0x39c   : > { %v5163_v60 = vld [vmem:[#allocation3 + $0x20] sm:$0xff] }
 0x39d   : > { %v5171_v49 = vadd.f32 %v5163_v60, %v5149_v59  ;;  %4966 = vst.msk [vmem:[#allocation3 + $0x28] sm:$0xff] %vm675_vm7, %v4958_v52  ;;  %v5264_v37 = vpop.f32.mrf.mxu1 }
 0x39e   : > { %v5272_v25 = vld [vmem:[#allocation3 + $0x18] sm:$0xff]  ;;  %v5156_v34 = vpop.f32.mrf.mxu0 }
 0x39f   : > { %v5280_v46 = vadd.f32 %v5272_v25, %v5256_v13  ;;  %5179 = vst.msk [vmem:[#allocation3 + $0x20] sm:$0xff] %vm675_vm7, %v5171_v49 }
 0x3a0   : > { %v4720_v63 = vpop.f32.mrf.mxu2  ;;  %v5493_v42 = vld [vmem:[#allocation3 + $0x10] sm:$0xff] }
 0x3a1   : > { %5288 = vst.msk [vmem:[#allocation3 + $0x18] sm:$0xff] %vm675_vm7, %v5280_v46  ;;  %v4738_v21 = vadd.f32 %v4730_v11, %v4720_v63 }
 0x3a2   : > { %v4951_v4 = vld [vmem:[#allocation3 + $0x30] sm:$0xff] }
 0x3a3   : > { %v4959_v36 = vadd.f32 %v4951_v4, %v4940_v62  ;;  %4746 = vst.msk [vmem:[#allocation3 + $0x38] sm:$0xff] %vm675_vm7, %v4738_v21  ;;  %v5537_v62 = vunpack.c.l.bf16 %v7904_v54  ;;  %v5538_v54 = vunpack.c.l.bf16 %v7918_v5  ;;  %v5539_v5 = vunpack.c.l.bf16 %v7933_v44 }
 0x3a4   : > { %v5164_v48 = vld [vmem:[#allocation3 + $0x28] sm:$0xff]  ;;  %v5540_v44 = vunpack.c.l.bf16 %v7946_v58  ;;  %v5541_v58 = vunpack.c.l.bf16 %v7963_v16 }
 0x3a5   : > { %v5172_v29 = vadd.f32 %v5164_v48, %v5151_v47  ;;  %4967 = vst.msk [vmem:[#allocation3 + $0x30] sm:$0xff] %vm675_vm7, %v4959_v36  ;;  %v5266_v50 = vpop.f32.mrf.mxu1 }
 0x3a6   : > { %v5273_v43 = vld [vmem:[#allocation3 + $0x20] sm:$0xff] }
 0x3a7   : > { %v5281_v6 = vadd.f32 %v5273_v43, %v5259_v9  ;;  %5180 = vst.msk [vmem:[#allocation3 + $0x28] sm:$0xff] %vm675_vm7, %v5172_v29 }
 0x3a8   : > { %v5471_v45 = vpop.f32.mrf.mxu2  ;;  %v5494_v49 = vld [vmem:[#allocation3 + $0x18] sm:$0xff] }
 0x3a9   : > { %5289 = vst.msk [vmem:[#allocation3 + $0x20] sm:$0xff] %vm675_vm7, %v5281_v6  ;;  %v5499_v19 = vadd.f32 %v5491_v12, %v5471_v45 }
 0x3aa   : > { %v4952_v1 = vld [vmem:[#allocation3 + $0x38] sm:$0xff] }
 0x3ab   : > { %v4960_v8 = vadd.f32 %v4952_v1, %v4942_v24  ;;  %5507 = vst.msk [vmem:[#allocation3] sm:$0xff] %vm675_vm7, %v5499_v19 }
 0x3ac   : > { %v5165_v61 = vld [vmem:[#allocation3 + $0x30] sm:$0xff] }
 0x3ad   : > { %v5173_v7 = vadd.f32 %v5165_v61, %v5154_v15  ;;  %4968 = vst.msk [vmem:[#allocation3 + $0x38] sm:$0xff] %vm675_vm7, %v4960_v8 }
 0x3ae   : > { %v5274_v3 = vld [vmem:[#allocation3 + $0x28] sm:$0xff] }
 0x3af   : > { %v5282_v23 = vadd.f32 %v5274_v3, %v5261_v0  ;;  %5181 = vst.msk [vmem:[#allocation3 + $0x30] sm:$0xff] %vm675_vm7, %v5173_v7 }
 0x3b0   : > { %v5473_v56 = vpop.f32.mrf.mxu2  ;;  %v5495_v4 = vld [vmem:[#allocation3 + $0x20] sm:$0xff] }
 0x3b1   : > { %5290 = vst.msk [vmem:[#allocation3 + $0x28] sm:$0xff] %vm675_vm7, %v5282_v23  ;;  %v5500_v18 = vadd.f32 %v5492_v53, %v5473_v56 }
 0x3b2   : > { %v5515_v30 = vld [vmem:[#allocation3] sm:$0xff] }
 0x3b3   : > { %5508 = vst.msk [vmem:[#allocation3 + $0x8] sm:$0xff] %vm675_vm7, %v5500_v18  ;;  %v5527_v40 = vadd.f32 %v8148_v31, %v5515_v30 }
 0x3b4   : > { %v5166_v32 = vld [vmem:[#allocation3 + $0x38] sm:$0xff] }
 0x3b5   : > { %v5174_v33 = vadd.f32 %v5166_v32, %v5156_v34  ;;  %v8154_v22 = vadd.f32 %v5535_v27, %v5527_v40 }
 0x3b6   : > { %v5275_v28 = vld [vmem:[#allocation3 + $0x30] sm:$0xff] }
 0x3b7   : > { %v5283_v17 = vadd.f32 %v5275_v28, %v5264_v37  ;;  %5182 = vst.msk [vmem:[#allocation3 + $0x38] sm:$0xff] %vm675_vm7, %v5174_v33  ;;  %v5551_v38 = vmax.f32 %v8154_v22, 0.0 }
 0x3b8   : > { %v5476_v39 = vpop.f32.mrf.mxu2  ;;  %v5496_v19 = vld [vmem:[#allocation3 + $0x28] sm:$0xff] }
 0x3b9   : > { %5291 = vst.msk [vmem:[#allocation3 + $0x30] sm:$0xff] %vm675_vm7, %v5283_v17  ;;  %v5501_v55 = vadd.f32 %v5493_v42, %v5476_v39  ;;  %v5563_v13 = vmul.f32 %v8159_v26, %v5551_v38 }
 0x3ba   : > { %v5516_v59 = vld [vmem:[#allocation3 + $0x8] sm:$0xff] }
 0x3bb   : > { %5509 = vst.msk [vmem:[#allocation3 + $0x10] sm:$0xff] %vm675_vm7, %v5501_v55  ;;  %v5571_v41 = vsel %vm675_vm7, %v5563_v13, 0.0  ;;  %v5528_v14 = vadd.f32 %v8148_v31, %v5516_v59 }
 0x3bc   : > { %5572 = vadd.xlane.f32.xlu0 %v5571_v41 }
 0x3bd   : > { %v8171_v2 = vadd.f32 %v5536_v10, %v5528_v14 }
 0x3be   : > { %v5276_v51 = vld [vmem:[#allocation3 + $0x38] sm:$0xff] }
 0x3bf   : > { %v5284_v35 = vadd.f32 %v5276_v51, %v5266_v50  ;;  %v5552_v52 = vmax.f32 %v8171_v2, 0.0  ;;  %v5542_v51 = vunpack.c.l.bf16 %v7976_v20 }
 0x3c0   : > { %v5478_v60 = vpop.f32.mrf.mxu2  ;;  %v5497_v56 = vld [vmem:[#allocation3 + $0x30] sm:$0xff] }
 0x3c1   : > { %5292 = vst.msk [vmem:[#allocation3 + $0x38] sm:$0xff] %vm675_vm7, %v5284_v35  ;;  %v5502_v25 = vadd.f32 %v5494_v49, %v5478_v60  ;;  %v5564_v46 = vmul.f32 %v8159_v26, %v5552_v52 }
 0x3c2   : > { %v5517_v9 = vld [vmem:[#allocation3 + $0x10] sm:$0xff] }
 0x3c3   : > { %5510 = vst.msk [vmem:[#allocation3 + $0x18] sm:$0xff] %vm675_vm7, %v5502_v25  ;;  %v5574_v57 = vsel %vm675_vm7, %v5564_v46, 0.0  ;;  %v5529_v47 = vadd.f32 %v8148_v31, %v5517_v9  ;;  %v8238_v25 = vld [vmem:[#allocation4] ss:$0 sm:$0xff] }
 0x3c4   : > { %5575 = vadd.xlane.f32.xlu0 %v5574_v57 }
 0x3c5   : > { %v8182_v63 = vadd.f32 %v5537_v62, %v5529_v47 }
 0x3c7   : > { %v5553_v11 = vmax.f32 %v8182_v63, 0.0 }
 0x3c8   : > { %v5481_v21 = vpop.f32.mrf.mxu2  ;;  %v5498_v33 = vld [vmem:[#allocation3 + $0x38] sm:$0xff] }
 0x3c9   : > { %v5503_v36 = vadd.f32 %v5495_v4, %v5481_v21  ;;  %v5565_v48 = vmul.f32 %v8159_v26, %v5553_v11 }
 0x3ca   : > { %v5518_v29 = vld [vmem:[#allocation3 + $0x18] sm:$0xff] }
 0x3cb   : > { %5511 = vst.msk [vmem:[#allocation3 + $0x20] sm:$0xff] %vm675_vm7, %v5503_v36  ;;  %v5577_v43 = vsel %vm675_vm7, %v5565_v48, 0.0  ;;  %v5530_v6 = vadd.f32 %v8148_v31, %v5518_v29 }
 0x3cc   : > { %5578 = vadd.xlane.f32.xlu1 %v5577_v43 }
 0x3cd   : > { %v8192_v45 = vadd.f32 %v5538_v54, %v5530_v6 }
 0x3cf   : > { %v5554_v12 = vmax.f32 %v8192_v45, 0.0 }
 0x3d0   : > { %v5483_v0 = vpop.f32.mrf.mxu2 }
 0x3d1   : > { %v5504_v15 = vadd.f32 %v5496_v19, %v5483_v0  ;;  %v5566_v24 = vmul.f32 %v8159_v26, %v5554_v12 }
 0x3d2   : > { %v5519_v1 = vld [vmem:[#allocation3 + $0x20] sm:$0xff] }
 0x3d3   : > { %5512 = vst.msk [vmem:[#allocation3 + $0x28] sm:$0xff] %vm675_vm7, %v5504_v15  ;;  %v5580_v8 = vsel %vm675_vm7, %v5566_v24, 0.0  ;;  %v5531_v61 = vadd.f32 %v8148_v31, %v5519_v1 }
 0x3d4   : > { %5581 = vadd.xlane.f32.xlu1 %v5580_v8 }
 0x3d5   : > { %v8202_v7 = vadd.f32 %v5539_v5, %v5531_v61 }
 0x3d7   : > { %v5555_v3 = vmax.f32 %v8202_v7, 0.0 }
 0x3d8   : > { %v5486_v23 = vpop.f32.mrf.mxu2 }
 0x3d9   : > { %v5505_v53 = vadd.f32 %v5497_v56, %v5486_v23  ;;  %v5567_v18 = vmul.f32 %v8159_v26, %v5555_v3 }
 0x3da   : > { %v5520_v30 = vld [vmem:[#allocation3 + $0x28] sm:$0xff] }
 0x3db   : > { %5513 = vst.msk [vmem:[#allocation3 + $0x30] sm:$0xff] %vm675_vm7, %v5505_v53  ;;  %v5583_v40 = vsel %vm675_vm7, %v5567_v18, 0.0  ;;  %v5532_v27 = vadd.f32 %v8148_v31, %v5520_v30 }
 0x3dc   : > { %5584 = vadd.xlane.f32.xlu2 %v5583_v40 }
 0x3dd   : > { %v8212_v37 = vadd.f32 %v5540_v44, %v5532_v27 }
 0x3df   : > { %v5556_v34 = vmax.f32 %v8212_v37, 0.0 }
 0x3e0   : > { %v5488_v32 = vpop.f32.mrf.mxu2 }
 0x3e1   : > { %v5506_v28 = vadd.f32 %v5498_v33, %v5488_v32  ;;  %v5568_v17 = vmul.f32 %v8159_v26, %v5556_v34 }
 0x3e2   : > { %v5521_v39 = vld [vmem:[#allocation3 + $0x30] sm:$0xff] }
 0x3e3   : > { %5514 = vst.msk [vmem:[#allocation3 + $0x38] sm:$0xff] %vm675_vm7, %v5506_v28  ;;  %v5586_v42 = vsel %vm675_vm7, %v5568_v17, 0.0  ;;  %v5533_v55 = vadd.f32 %v8148_v31, %v5521_v39 }
 0x3e4   : > { %5587 = vadd.xlane.f32.xlu2 %v5586_v42 }
 0x3e5   : > { %v8222_v13 = vadd.f32 %v5541_v58, %v5533_v55 }
 0x3e7   : > { %v5557_v59 = vmax.f32 %v8222_v13, 0.0 }
 0x3e9   : > { %v5569_v41 = vmul.f32 %v8159_v26, %v5557_v59 }
 0x3ea   : > { %v5522_v14 = vld [vmem:[#allocation3 + $0x38] sm:$0xff] }
 0x3eb   : > { %v5589_v10 = vsel %vm675_vm7, %v5569_v41, 0.0  ;;  %v5534_v50 = vadd.f32 %v8148_v31, %v5522_v14 }
 0x3ec   : > { %5590 = vadd.xlane.f32.xlu0 %v5589_v10 }
 0x3ed   : > { %v8231_v35 = vadd.f32 %v5542_v51, %v5534_v50 }
 0x3ef   : > { %v5558_v16 = vmax.f32 %v8231_v35, 0.0 }
 0x3f1   : > { %v5570_v60 = vmul.f32 %v8159_v26, %v5558_v16 }
 0x3f3   : > { %v5592_v49 = vsel %vm675_vm7, %v5570_v60, 0.0 }
 0x3f4   : > { %5593 = vadd.xlane.f32.xlu1 %v5592_v49 }
 0x42f   : > { %v5573_v46 = vpop.xlane.xlu0 %5572 }
 0x430   : > { %v5599_v31 = vadd.f32 %v8238_v25, %v5573_v46 }
 0x432   : > { %v6540_v9 = vmul.f32 -1.442695, %v5599_v31 }
 0x434   : > { %6742 = vpow2.f32 %v6540_v9 }
 0x437   : > { %v5576_v20 = vpop.xlane.xlu0 %5575 }
 0x438   : > { %v5600_v57 = vadd.f32 %v8238_v25, %v5576_v20 }
 0x43a   : > { %v6743_v47 = vpop.eup %6742  ;;  %v6541_v62 = vmul.f32 -1.442695, %v5600_v57 }
 0x43b   : > { %v5631_v21 = vadd.f32 1.0, %v6743_v47 }
 0x43c   : > { %6744 = vpow2.f32 %v6541_v62 }
 0x43d   : > { %6746 = vrcp.f32 %v5631_v21  ;;  %v5650_v19 = vand.u32 2147483648, %v5631_v21  ;;  %v5648_v1 = vand.u32 2147483647, %v5631_v21  ;;  %vm5644_vm14 = vweird.f32 %v5631_v21 }
 0x43f   : > { %v5579_v26 = vpop.xlane.xlu1 %5578  ;;  %v5651_v53 = vor.u32 1.1754944e-38, %v5650_v19  ;;  %vm5649_vm2 = vcmp.eq.f32.partialorder %v5648_v1, 8.507059e+37 }
 0x440   : > { %v5601_v4 = vadd.f32 %v8238_v25, %v5579_v26 }
 0x442   : > { %v6745_v36 = vpop.eup %6744  ;;  %v6542_v48 = vmul.f32 -1.442695, %v5601_v4 }
 0x443   : > { %v6747_v29 = vpop.eup %6746  ;;  %v5632_v43 = vadd.f32 1.0, %v6745_v36 }
 0x444   : > { %6748 = vpow2.f32 %v6542_v48  ;;  %v5640_v6 = vmul.f32 %v6747_v29, %v5631_v21  ;;  %vm5645_vm13 = vweird.f32 %v6747_v29 }
 0x445   : > { %6750 = vrcp.f32 %v5632_v43  ;;  %vm5646_vm15 = vmor %vm5644_vm14, %vm5645_vm13  ;;  %v5665_v32 = vand.u32 2147483648, %v5632_v43  ;;  %v5663_v17 = vand.u32 2147483647, %v5632_v43  ;;  %vm5659_vm4 = vweird.f32 %v5632_v43 }
 0x446   : > { %v5641_v54 = vsub.f32 1.0, %v5640_v6 }
 0x447   : > { %v5582_v0 = vpop.xlane.xlu1 %5581  ;;  %v5666_v14 = vor.u32 1.1754944e-38, %v5665_v32  ;;  %vm5664_vm6 = vcmp.eq.f32.partialorder %v5663_v17, 8.507059e+37 }
 0x448   : > { %v5602_v15 = vadd.f32 %v8238_v25, %v5582_v0  ;;  %v5642_v24 = vmul.f32 %v6747_v29, %v5641_v54 }
 0x44a   : > { %v6749_v8 = vpop.eup %6748  ;;  %v6543_v61 = vmul.f32 -1.442695, %v5602_v15  ;;  %v5643_v5 = vadd.f32 %v6747_v29, %v5642_v24 }
 0x44b   : > { %v6751_v23 = vpop.eup %6750  ;;  %v5633_v56 = vadd.f32 1.0, %v6749_v8 }
 0x44c   : > { %6752 = vpow2.f32 %v6543_v61  ;;  %v5647_v18 = vsel %vm5646_vm15, %v6747_v29, %v5643_v5  ;;  %v5655_v30 = vmul.f32 %v6751_v23, %v5632_v43  ;;  %vm5660_vm3 = vweird.f32 %v6751_v23 }
 0x44d   : > { %6754 = vrcp.f32 %v5633_v56  ;;  %v5652_v40 = vsel %vm5649_vm2, %v5651_v53, %v5647_v18  ;;  %vm5661_vm5 = vmor %vm5659_vm4, %vm5660_vm3  ;;  %v5680_v46 = vand.u32 2147483648, %v5633_v56  ;;  %v5678_v20 = vand.u32 2147483647, %v5633_v56 }
 0x44e   : > { %5760 = vst.msk [vmem:[%s8249_s28] sm:$0xff] %vm5759_vm1, %v5652_v40  ;;  %5770 = vperm.xlu2 %6734, %v5652_v40   ;;  %v5656_v27 = vsub.f32 1.0, %v5655_v30  ;;  %vm5674_vm8 = vweird.f32 %v5633_v56 }
 0x44f   : > { %v5585_v44 = vpop.xlane.xlu2 %5584  ;;  %v5681_v4 = vor.u32 1.1754944e-38, %v5680_v46  ;;  %vm5679_vm10 = vcmp.eq.f32.partialorder %v5678_v20, 8.507059e+37 }
 0x450   : > { %v5603_v33 = vadd.f32 %v8238_v25, %v5585_v44  ;;  %v5657_v28 = vmul.f32 %v6751_v23, %v5656_v27 }
 0x452   : > { %v6753_v39 = vpop.eup %6752  ;;  %v6544_v42 = vmul.f32 -1.442695, %v5603_v33  ;;  %v5658_v55 = vadd.f32 %v6751_v23, %v5657_v28 }
 0x453   : > { %v6755_v58 = vpop.eup %6754  ;;  %v5634_v41 = vadd.f32 1.0, %v6753_v39 }
 0x454   : > { %6756 = vpow2.f32 %v6544_v42  ;;  %v5662_v10 = vsel %vm5661_vm5, %v6751_v23, %v5658_v55  ;;  %v5670_v50 = vmul.f32 %v6755_v58, %v5633_v56  ;;  %vm5675_vm7 = vweird.f32 %v6755_v58 }
 0x455   : > { %6758 = vrcp.f32 %v5634_v41  ;;  %v5667_v51 = vsel %vm5664_vm6, %v5666_v14, %v5662_v10  ;;  %vm5676_vm9 = vmor %vm5674_vm8, %vm5675_vm7  ;;  %v5695_v54 = vand.u32 2147483648, %v5634_v41  ;;  %v5693_v15 = vand.u32 2147483647, %v5634_v41 }
 0x456   : > { %5761 = vst.msk [vmem:[%s8249_s28 + $0x8] sm:$0xff] %vm5759_vm1, %v5667_v51  ;;  %5775 = vperm.xlu0 %6735, %v5667_v51   ;;  %v5671_v60 = vsub.f32 1.0, %v5670_v50  ;;  %vm5689_vm12 = vweird.f32 %v5634_v41 }
 0x457   : > { %v5588_v49 = vpop.xlane.xlu2 %5587  ;;  %v5696_v23 = vor.u32 1.1754944e-38, %v5695_v54  ;;  %vm5694_vm14 = vcmp.eq.f32.partialorder %v5693_v15, 8.507059e+37 }
 0x458   : > { %v5604_v31 = vadd.f32 %v8238_v25, %v5588_v49  ;;  %v5672_v9 = vmul.f32 %v6755_v58, %v5671_v60 }
 0x45a   : > { %v6757_v57 = vpop.eup %6756  ;;  %v6545_v47 = vmul.f32 -1.442695, %v5604_v31  ;;  %v5673_v62 = vadd.f32 %v6755_v58, %v5672_v9 }
 0x45b   : > { %v6759_v21 = vpop.eup %6758  ;;  %v5635_v26 = vadd.f32 1.0, %v6757_v57 }
 0x45c   : > { %6760 = vpow2.f32 %v6545_v47  ;;  %v5677_v36 = vsel %vm5676_vm9, %v6755_v58, %v5673_v62  ;;  %v5685_v48 = vmul.f32 %v6759_v21, %v5634_v41  ;;  %vm5690_vm11 = vweird.f32 %v6759_v21 }
 0x45d   : > { %6762 = vrcp.f32 %v5635_v26  ;;  %v5682_v29 = vsel %vm5679_vm10, %v5681_v4, %v5677_v36  ;;  %vm5691_vm13 = vmor %vm5689_vm12, %vm5690_vm11  ;;  %v5710_v27 = vand.u32 2147483648, %v5635_v26  ;;  %v5708_v33 = vand.u32 2147483647, %v5635_v26 }
 0x45e   : > { %5762 = vst.msk [vmem:[%s8249_s28 + $0x10] sm:$0xff] %vm5759_vm1, %v5682_v29  ;;  %5780 = vperm.xlu1 %6736, %v5682_v29   ;;  %v5686_v43 = vsub.f32 1.0, %v5685_v48  ;;  %vm5704_vm2 = vweird.f32 %v5635_v26 }
 0x45f   : > { %v5591_v6 = vpop.xlane.xlu0 %5590  ;;  %v5711_v58 = vor.u32 1.1754944e-38, %v5710_v27  ;;  %vm5709_vm4 = vcmp.eq.f32.partialorder %v5708_v33, 8.507059e+37 }
 0x460   : > { %v5605_v0 = vadd.f32 %v8238_v25, %v5591_v6  ;;  %v5687_v19 = vmul.f32 %v6759_v21, %v5686_v43 }
 0x462   : > { %v6761_v24 = vpop.eup %6760  ;;  %v6546_v1 = vmul.f32 -1.442695, %v5605_v0  ;;  %v5688_v8 = vadd.f32 %v6759_v21, %v5687_v19 }
 0x463   : > { %v6763_v61 = vpop.eup %6762  ;;  %v5636_v5 = vadd.f32 1.0, %v6761_v24 }
 0x464   : > { %6764 = vpow2.f32 %v6546_v1  ;;  %v5692_v56 = vsel %vm5691_vm13, %v6759_v21, %v5688_v8  ;;  %v5700_v53 = vmul.f32 %v6763_v61, %v5635_v26  ;;  %vm5705_vm15 = vweird.f32 %v6763_v61 }
 0x465   : > { %6766 = vrcp.f32 %v5636_v5  ;;  %v5697_v18 = vsel %vm5694_vm14, %v5696_v23, %v5692_v56  ;;  %vm5706_vm3 = vmor %vm5704_vm2, %vm5705_vm15  ;;  %v5725_v50 = vand.u32 2147483648, %v5636_v5  ;;  %v5723_v60 = vand.u32 2147483647, %v5636_v5 }
 0x466   : > { %5763 = vst.msk [vmem:[%s8249_s28 + $0x18] sm:$0xff] %vm5759_vm1, %v5697_v18  ;;  %5785 = vperm.xlu2 %6734, %v5697_v18   ;;  %v5701_v30 = vsub.f32 1.0, %v5700_v53  ;;  %vm5719_vm6 = vweird.f32 %v5636_v5 }
 0x467   : > { %v5594_v40 = vpop.xlane.xlu1 %5593  ;;  %v5726_v20 = vor.u32 1.1754944e-38, %v5725_v50  ;;  %vm5724_vm8 = vcmp.eq.f32.partialorder %v5723_v60, 8.507059e+37 }
 0x468   : > { %v5606_v44 = vadd.f32 %v8238_v25, %v5594_v40  ;;  %v5702_v32 = vmul.f32 %v6763_v61, %v5701_v30 }
 0x46a   : > { %v6765_v28 = vpop.eup %6764  ;;  %v6547_v17 = vmul.f32 -1.442695, %v5606_v44  ;;  %v5703_v39 = vadd.f32 %v6763_v61, %v5702_v32 }
 0x46b   : > { %v6767_v42 = vpop.eup %6766  ;;  %v5637_v55 = vadd.f32 1.0, %v6765_v28 }
 0x46c   : > { %6768 = vpow2.f32 %v6547_v17  ;;  %v5707_v41 = vsel %vm5706_vm3, %v6763_v61, %v5703_v39  ;;  %v5715_v14 = vmul.f32 %v6767_v42, %v5636_v5  ;;  %vm5720_vm5 = vweird.f32 %v6767_v42 }
 0x46d   : > { %6770 = vrcp.f32 %v5637_v55  ;;  %v5712_v10 = vsel %vm5709_vm4, %v5711_v58, %v5707_v41  ;;  %vm5721_vm7 = vmor %vm5719_vm6, %vm5720_vm5  ;;  %v5740_v26 = vand.u32 2147483648, %v5637_v55  ;;  %v5738_v36 = vand.u32 2147483647, %v5637_v55 }
 0x46e   : > { %5764 = vst.msk [vmem:[%s8249_s28 + $0x20] sm:$0xff] %vm5759_vm1, %v5712_v10  ;;  %5790 = vperm.xlu2 %6734, %v5712_v10   ;;  %v5716_v25 = vsub.f32 1.0, %v5715_v14  ;;  %vm5734_vm10 = vweird.f32 %v5637_v55 }
 0x46f   : > { %v5741_v43 = vor.u32 1.1754944e-38, %v5740_v26  ;;  %vm5739_vm12 = vcmp.eq.f32.partialorder %v5738_v36, 8.507059e+37 }
 0x470   : > { %v5717_v51 = vmul.f32 %v6767_v42, %v5716_v25 }
 0x472   : > { %v6769_v49 = vpop.eup %6768  ;;  %v5718_v46 = vadd.f32 %v6767_v42, %v5717_v51 }
 0x473   : > { %v6771_v31 = vpop.eup %6770  ;;  %v5638_v9 = vadd.f32 1.0, %v6769_v49 }
 0x474   : > { %v5722_v57 = vsel %vm5721_vm7, %v6767_v42, %v5718_v46  ;;  %v5730_v47 = vmul.f32 %v6771_v31, %v5637_v55  ;;  %vm5735_vm9 = vweird.f32 %v6771_v31 }
 0x475   : > { %6772 = vrcp.f32 %v5638_v9  ;;  %v5727_v62 = vsel %vm5724_vm8, %v5726_v20, %v5722_v57  ;;  %vm5736_vm11 = vmor %vm5734_vm10, %vm5735_vm9  ;;  %v5755_v15 = vand.u32 2147483648, %v5638_v9  ;;  %v5753_v1 = vand.u32 2147483647, %v5638_v9 }
 0x476   : > { %5765 = vst.msk [vmem:[%s8249_s28 + $0x28] sm:$0xff] %vm5759_vm1, %v5727_v62  ;;  %5795 = vperm.xlu1 %6736, %v5727_v62   ;;  %v5731_v21 = vsub.f32 1.0, %v5730_v47  ;;  %vm5749_vm14 = vweird.f32 %v5638_v9 }
 0x477   : > { %v5756_v61 = vor.u32 1.1754944e-38, %v5755_v15  ;;  %vm5754_vm2 = vcmp.eq.f32.partialorder %v5753_v1, 8.507059e+37 }
 0x478   : > { %v5732_v4 = vmul.f32 %v6771_v31, %v5731_v21 }
 0x47a   : > { %v5733_v48 = vadd.f32 %v6771_v31, %v5732_v4 }
 0x47b   : > { %v6773_v29 = vpop.eup %6772 }
 0x47c   : > { %v5737_v6 = vsel %vm5736_vm11, %v6771_v31, %v5733_v48  ;;  %v5745_v54 = vmul.f32 %v6773_v29, %v5638_v9  ;;  %vm5750_vm13 = vweird.f32 %v6773_v29 }
 0x47d   : > { %v5742_v0 = vsel %vm5739_vm12, %v5741_v43, %v5737_v6  ;;  %vm5751_vm15 = vmor %vm5749_vm14, %vm5750_vm13 }
 0x47e   : > { %5800 = vperm.xlu2 %6734, %v5742_v0   ;;  %5766 = vst.msk [vmem:[%s8249_s28 + $0x30] sm:$0xff] %vm5759_vm1, %v5742_v0  ;;  %v5746_v19 = vsub.f32 1.0, %v5745_v54 }
 0x480   : > { %v5747_v24 = vmul.f32 %v6773_v29, %v5746_v19 }
 0x482   : > { %v5748_v8 = vadd.f32 %v6773_v29, %v5747_v24 }
 0x484   : > { %v5752_v5 = vsel %vm5751_vm15, %v6773_v29, %v5748_v8 }
 0x485   : > { %v5757_v23 = vsel %vm5754_vm2, %v5756_v61, %v5752_v5 }
 0x486   : > { %5805 = vperm.xlu1 %6736, %v5757_v23   ;;  %5767 = vst.msk [vmem:[%s8249_s28 + $0x38] sm:$0xff] %vm5759_vm1, %v5757_v23 }
 0x4a8   : > { %v5771_v56 = vpop.permute.xlu2 %5770 }
 0x4a9   : > { %v5808_v53 = vmul.f32 %v5771_v56, %v5551_v38 }
 0x4ab   : > { %v5816_v18 = vpack.c.bf16 %v5808_v53, %v5808_v53 }
 0x4ad   : > { %5824 = vst.msk [vmem:[%s8275_s20] sm:$0xf] %vm446_vm0, %v5816_v18 }
 0x4c0   : > { %v5786_v30 = vpop.permute.xlu2 %5785 }
 0x4c1   : > { %v5811_v40 = vmul.f32 %v5786_v30, %v5554_v12 }
 0x4c3   : > { %v5819_v27 = vpack.c.bf16 %v5811_v40, %v5811_v40 }
 0x4c5   : > { %5827 = vst.msk [vmem:[%s8275_s20 + $0xc] sm:$0xf] %vm446_vm0, %v5819_v27 }
 0x4c8   : > { %v5791_v22 = vpop.permute.xlu2 %5790  ;;  %v5776_v38 = vpop.permute.xlu0 %5775 }
 0x4c9   : > { %v5812_v44 = vmul.f32 %v5791_v22, %v5555_v3  ;;  %v5809_v32 = vmul.f32 %v5776_v38, %v5552_v52 }
 0x4cb   : > { %v5820_v33 = vpack.c.bf16 %v5812_v44, %v5812_v44  ;;  %v5817_v28 = vpack.c.bf16 %v5809_v32, %v5809_v32 }
 0x4cd   : > { %5828 = vst.msk [vmem:[%s8275_s20 + $0x10] sm:$0xf] %vm446_vm0, %v5820_v33 }
 0x4ce   : > { %5825 = vst.msk [vmem:[%s8275_s20 + $0x4] sm:$0xf] %vm446_vm0, %v5817_v28 }
 0x4d0   : > { %v5781_v45 = vpop.permute.xlu1 %5780 }
 0x4d1   : > { %v5810_v12 = vmul.f32 %v5781_v45, %v5553_v11 }
 0x4d3   : > { %v5818_v17 = vpack.c.bf16 %v5810_v12, %v5810_v12 }
 0x4d5   : > { %5826 = vst.msk [vmem:[%s8275_s20 + $0x8] sm:$0xf] %vm446_vm0, %v5818_v17 }
 0x4d8   : > { %v5801_v7 = vpop.permute.xlu2 %5800 }
 0x4d9   : > { %v5814_v2 = vmul.f32 %v5801_v7, %v5557_v59 }
 0x4db   : > { %v5822_v52 = vpack.c.bf16 %v5814_v2, %v5814_v2 }
 0x4dd   : > { %5830 = vst.msk [vmem:[%s8275_s20 + $0x18] sm:$0xf] %vm446_vm0, %v5822_v52 }
 0x4e8   : > { %v5796_v3 = vpop.permute.xlu1 %5795 }
 0x4e9   : > { %v5813_v39 = vmul.f32 %v5796_v3, %v5556_v34 }
 0x4eb   : > { %v5821_v42 = vpack.c.bf16 %v5813_v39, %v5813_v39 }
 0x4ed   : > { %5829 = vst.msk [vmem:[%s8275_s20 + $0x14] sm:$0xf] %vm446_vm0, %v5821_v42 }
 0x4f8   : > { %v5806_v63 = vpop.permute.xlu1 %5805 }
 0x4f9   : > { %v5815_v11 = vmul.f32 %v5806_v63, %v5558_v16 }
 0x4fb   : > { %v5823_v13 = vpack.c.bf16 %v5815_v11, %v5815_v11 }
 0x4fd   : > { %5831 = vst.msk [vmem:[%s8275_s20 + $0x1c] sm:$0xf] %vm446_vm0, %v5823_v13 }
 0x4fe   : > { %6921 = shalt.err (!%p6918_p12)
}
 0x4ff   : > { %s6976_s1 = smov 64   ;;  %s6977_s20 = smov 4  }
 0x500   : > { %6666 = dma.vmem_to_hbm [thread:$0]  (%p7127_p3), %s5851_s27, 512, %s5853_s14, %s5833_s23, %s6976_s1, %s6976_s1, %s6977_s20  }
 0x501 PF: > { %s5870_s3 = sand.u32 1, %s6956_s15   ;;  %p8376_p13 = scmp.ge.s32.totalorder %s6968_s18, 2 }
 0x502   : > { %s5871_s25 = scalar_lea.sflag [#allocation7], %s5870_s3 }
 0x503   : > { %p6683_p0 = pnand %p8376_p13, %p7071_p6 }
 0x505   : > { %p6684_p5 = pneg %p6683_p0 }
 0x507   : > { %6951 = dma.done.wait (%p6684_p5), %s5871_s25, 512  }
 0x508   : > { %6953 = vsyncadd (%p6684_p5), %s5871_s25, 4294966784  ;;  %p28_p7 = scmp.ge.s32.totalorder %s7109_s29, 4   ;;  %s8377_s15 = smov %s6960_s16 }
 0x509   : > { %s8378_s16 = smov %s6964_s17  ;;  %s8379_s17 = smov %s7123_s22 }
 0x50a   : > { %s8380_s18 = smov %s7109_s29  ;;  %30 = sbr.rel (!%p28_p7) target bundleno = 11 (0xb), region = 152 }
 0x50f   :  { %5885 = vsyncpa [#allocation6], 1 }
 0x510   :  { %5887 = vsyncpa [#allocation6 + $0x1], 1 }
 0x511   :  { %5888 = vsyncpa [#allocation9], 1 }
 0x512   :  { %5889 = vsyncpa [#allocation12], 1 }
 0x513   :  { %5890 = vsyncpa [#allocation7], 1 }
 0x514   :  { %5892 = vsyncpa [#allocation7 + $0x1], 1 }

</bundles_post_ra>
